<compile_context>
chip_gen: v7x
topology: tpu7x:2x2x1
jax: 0.10.0
libtpu: 0.0.40
codegen_flags: <defaults>
</compile_context>

<pallas_src>
import functools

import jax
import jax.numpy as jnp
from jax.experimental import pallas as pl
from jax.experimental.pallas import tpu as pltpu


# (stride, normalize, leaky_relu) per layer — mirrors Discriminator.__init__
LAYER_CFG = [
    (2, False, True),   # Conv(3   ->  64)
    (2, True,  True),   # Conv(64  -> 128) + InstanceNorm
    (2, True,  True),   # Conv(128 -> 256) + InstanceNorm
    (1, True,  True),   # Conv(256 -> 512) + InstanceNorm
    (1, False, False),  # Conv(512 ->   1)
]
LAYER_CHANNELS = [(3, 64), (64, 128), (128, 256), (256, 512), (512, 1)]


# -----------------------------------------------------------------------------
# Pallas kernel: one sample x one C_out tile.
# 3x3 conv expressed as 9 statically-shifted 2D matmuls (in-kernel im2col),
# accumulated in f32, fused with bias + InstanceNorm + LeakyReLU.
# -----------------------------------------------------------------------------
def conv_block_kernel(ph_ref, w_ref, b_ref, o_ref, *,
                      stride, h_out, w_out, rows_per_phase,
                      normalize, activate):
    # ph_ref: (R_total, C_in) bf16  stacked shifted/phase rows (see make_phases)
    # w_ref : (9, C_in, CT)   bf16  per-tap weights for this C_out tile
    # b_ref : (1, CT)         f32
    # o_ref : (HW, CT)        f32
    hw = h_out * w_out
    ct = o_ref.shape[-1]
    acc = jnp.zeros((hw, ct), jnp.float32)

    # 9 taps: each is a contiguous, statically-known row window of the stacked
    # phase tensor, matmul'd against the (C_in, CT) tap weight on the MXU.
    # bf16 inputs, f32 accumulation.
    for kh in range(3):
        for kw in range(3):
            blk = kw * stride + (kh % stride)       # which (kw, row-phase) block
            roff = kh // stride                     # row shift inside the block
            start = (blk * rows_per_phase + roff) * w_out
            xs = ph_ref[start:start + hw, :]        # (HW, C_in) bf16
            acc = acc + jnp.dot(xs, w_ref[kh * 3 + kw],
                                preferred_element_type=jnp.float32)

    y = acc + b_ref[...]                            # (HW, CT) f32

    if normalize:
        # InstanceNorm2d(affine=False, eps=1e-5): per-sample / per-channel
        # stats over the spatial rows, biased variance — matches PyTorch.
        # Channel tiling is exact because stats are independent per channel.
        # All vector math kept in f32 (v5e has no bf16 VPU/EUP path).
        mean = jnp.mean(y, axis=0, keepdims=True)
        var = jnp.mean((y - mean) ** 2, axis=0, keepdims=True)
        y = (y - mean) * jax.lax.rsqrt(var + 1e-5)

    if activate:
        y = jnp.where(y >= 0.0, y, 0.2 * y)         # LeakyReLU(0.2)

    o_ref[...] = y


# -----------------------------------------------------------------------------
# Wrapper glue (plain JAX, NHWC residency, no big transposes)
# -----------------------------------------------------------------------------
def make_phases(x_nhwc, stride):
    """NHWC activation -> stacked shifted rows for the in-kernel im2col.

    For a 3x3 / pad-1 / stride-s conv, block index (kw*s + ph) holds
    x_pad[:, ph::s, kw::s, :] flattened over (row, col).  With this layout,
    every conv tap (kh, kw) the kernel needs is a contiguous, statically-known
    row window of a single (rows, C_in) matrix: no strided reads and no
    reshapes inside the kernel, and ~1.5x (s=2) / ~3x (s=1) HBM bytes instead
    of a 9x im2col patch array plus layout transposes.
    """
    n, h, w, c = x_nhwc.shape
    s = stride
    h_out = (h - 1) // s + 1
    w_out = (w - 1) // s + 1
    rp = -(-(h + 2) // s)                                  # rows per phase (ceil)
    xp = jnp.pad(x_nhwc, ((0, 0), (1, 1), (1, 1), (0, 0)))
    blocks = []
    for kw in range(3):
        col = xp[:, :, kw:kw + (w_out - 1) * s + 1:s, :]   # (N, H+2, w_out, C)
        for ph in range(s):
            rows = col[:, ph::s, :, :]                     # (N, <=rp, w_out, C)
            if rows.shape[1] < rp:                         # pad to common length
                rows = jnp.pad(rows, ((0, 0), (0, rp - rows.shape[1]),
                                      (0, 0), (0, 0)))
            blocks.append(rows.reshape(n, rp * w_out, c))
    phases = jnp.concatenate(blocks, axis=1).astype(jnp.bfloat16)
    return phases, h_out, w_out, rp


def conv_block(x_nhwc, w, b, *, stride, normalize, activate):
    """x_nhwc (N,H,W,C_in) f32, w (C_out,C_in,3,3), b (C_out,)
    -> (N, H_out, W_out, C_out_padded) f32 NHWC (caller slices lane padding)."""
    n = x_nhwc.shape[0]
    c_in = x_nhwc.shape[-1]
    c_out = w.shape[0]

    phases, h_out, w_out, rp = make_phases(x_nhwc, stride)
    hw = h_out * w_out
    r_total = phases.shape[1]

    # Lane-dense output tiles: tile C_out by 128 (full lane width); narrow
    # heads (the final 512 -> 1 conv) are zero-padded to 128 so both the MXU
    # result and the output stores are full-lane.
    if c_out % 128 == 0:
        ct, c_out_p = 128, c_out
    elif c_out == 64:
        ct, c_out_p = 64, 64
    else:
        assert c_out < 128
        ct, c_out_p = 128, 128

    # PyTorch weight (C_out, C_in, 3, 3) -> (kh*3+kw, C_in, C_out_p) bf16.
    w9 = jnp.transpose(w, (2, 3, 1, 0)).reshape(9, c_in, c_out)
    b2 = b.reshape(1, c_out).astype(jnp.float32)
    if c_out_p != c_out:
        w9 = jnp.pad(w9, ((0, 0), (0, 0), (0, c_out_p - c_out)))
        b2 = jnp.pad(b2, ((0, 0), (0, c_out_p - c_out)))
    w9 = w9.astype(jnp.bfloat16)

    n_ct = c_out_p // ct
    kernel = functools.partial(
        conv_block_kernel, stride=stride, h_out=h_out, w_out=w_out,
        rows_per_phase=rp, normalize=normalize, activate=activate)

    flops = 2 * n * hw * 9 * c_in * c_out_p
    bytes_accessed = (phases.size * 2 + w9.size * 2 * n_ct
                      + b2.size * 4 + n * hw * c_out_p * 4)
    cost = pl.CostEstimate(flops=int(flops),
                           transcendentals=int(n * c_out_p) if normalize else 0,
                           bytes_accessed=int(bytes_accessed))

    y = pl.pallas_call(
        kernel,
        out_shape=jax.ShapeDtypeStruct((n, hw, c_out_p), jnp.float32),
        grid=(n, n_ct),
        in_specs=[
            # per-sample stacked phases; same block revisited (not re-fetched)
            # across the C_out-tile axis
            pl.BlockSpec((pl.Squeezed(), r_total, c_in), lambda i, c: (i, 0, 0)),
            # all 9 taps of one C_out tile
            pl.BlockSpec((9, c_in, ct), lambda i, c: (0, 0, c)),
            pl.BlockSpec((1, ct), lambda i, c: (0, c)),
        ],
        out_specs=pl.BlockSpec((pl.Squeezed(), hw, ct), lambda i, c: (i, 0, c)),
        compiler_params=pltpu.CompilerParams(
            dimension_semantics=("parallel", "parallel"),
            vmem_limit_bytes=48 << 20,      # fits v7x's 64 MiB VMEM budget
        ),
        cost_estimate=cost,
    )(phases, w9, b2)

    return y.reshape(n, h_out, w_out, c_out_p)


def discriminator_forward(img, params):
    """img: (N, C, H, W) NCHW float32 -> (N, 1, H', W') NCHW float32."""
    # One small NCHW->NHWC conversion at the input; all layers stay NHWC.
    x = jnp.transpose(img, (0, 2, 3, 1))
    for (stride, normalize, activate), (w, b) in zip(LAYER_CFG, params):
        x = conv_block(x, w, b, stride=stride, normalize=normalize,
                       activate=activate)
        x = x[..., : w.shape[0]]   # drop lane padding (no-op except last layer)
    return jnp.transpose(x, (0, 3, 1, 2))       # back to PyTorch NCHW


def init_params(key):
    """Deterministic PyTorch-style (kaiming-uniform-ish) init for all convs."""
    params = []
    for c_in, c_out in LAYER_CHANNELS:
        key, kw, kb = jax.random.split(key, 3)
        fan_in = c_in * 9
        bound = 1.0 / (fan_in ** 0.5)
        w = jax.random.uniform(
            kw, (c_out, c_in, 3, 3), minval=-bound, maxval=bound,
            dtype=jnp.float32)
        b = jax.random.uniform(
            kb, (c_out,), minval=-bound, maxval=bound, dtype=jnp.float32)
        params.append((w, b))
    return params


if __name__ == "__main__":
    key = jax.random.PRNGKey(0)
    key, pkey, xkey = jax.random.split(key, 3)

    params = init_params(pkey)
    # Small input consistent with the module: batch=2, channels=3, 16x16 image.
    img = jax.random.normal(xkey, (2, 3, 16, 16), dtype=jnp.float32)

    fwd = jax.jit(discriminator_forward)
    out = fwd(img, params)                      # expected shape (2, 1, 2, 2)
    jax.block_until_ready(out)

    assert out.shape == (2, 1, 2, 2), out.shape
    assert out.dtype == jnp.float32
    print("KERNEL_OK")
</pallas_src>

<mosaic_0001>
module attributes {stable_mosaic.version = 11 : i64} {
  func.func @conv_block_kernel(%arg0: i32, %arg1: i32, %arg2: memref<1x432x3xbf16, #tpu.memory_space<vmem>>, %arg3: memref<9x3x64xbf16, #tpu.memory_space<vmem>>, %arg4: memref<1x64xf32, #tpu.memory_space<vmem>>, %arg5: memref<1x64x64xf32, #tpu.memory_space<vmem>>) attributes {dimension_semantics = [#tpu.dimension_semantics<parallel>, #tpu.dimension_semantics<parallel>], iteration_bounds = array<i64: 2, 1>, scalar_prefetch = 0 : i64, scratch_operands = 0 : i64, tpu.core_type = #tpu.core_type<tc>, window_params = [{transform_indices = @transform_0, window_bounds = array<i64: 1, 432, 3>}, {transform_indices = @transform_1, window_bounds = array<i64: 9, 3, 64>}, {transform_indices = @transform_2, window_bounds = array<i64: 1, 64>}, {transform_indices = @transform_3, window_bounds = array<i64: 1, 64, 64>}]} {
    %cst = arith.constant 0.000000e+00 : f32
    %0 = vector.broadcast %cst : f32 to vector<64x64xf32>
    %c0 = arith.constant 0 : index
    %c0_0 = arith.constant 0 : index
    %c0_1 = arith.constant 0 : index
    %1 = vector.load %arg2[%c0, %c0_0, %c0_1] : memref<1x432x3xbf16, #tpu.memory_space<vmem>>, vector<1x64x3xbf16>
    %2 = vector.shape_cast %1 : vector<1x64x3xbf16> to vector<64x3xbf16>
    %c0_2 = arith.constant 0 : index
    %c0_3 = arith.constant 0 : index
    %c0_4 = arith.constant 0 : index
    %3 = vector.load %arg3[%c0_2, %c0_3, %c0_4] : memref<9x3x64xbf16, #tpu.memory_space<vmem>>, vector<1x3x64xbf16>
    %4 = vector.shape_cast %3 : vector<1x3x64xbf16> to vector<3x64xbf16>
    %cst_5 = arith.constant dense<0.000000e+00> : vector<64x64xf32>
    %5 = tpu.matmul %2, %4, %cst_5 {dimension_numbers = #tpu.dot_dimension_numbers<[1], [0], [0], [1], [0, 0, 1, 1], [], []>} : vector<64x3xbf16>, vector<3x64xbf16>, vector<64x64xf32> -> vector<64x64xf32>
    %6 = arith.addf %0, %5 : vector<64x64xf32>
    %c0_6 = arith.constant 0 : index
    %c144 = arith.constant 144 : index
    %c0_7 = arith.constant 0 : index
    %7 = vector.load %arg2[%c0_6, %c144, %c0_7] : memref<1x432x3xbf16, #tpu.memory_space<vmem>>, vector<1x64x3xbf16>
    %8 = vector.shape_cast %7 : vector<1x64x3xbf16> to vector<64x3xbf16>
    %c1 = arith.constant 1 : index
    %c0_8 = arith.constant 0 : index
    %c0_9 = arith.constant 0 : index
    %9 = vector.load %arg3[%c1, %c0_8, %c0_9] : memref<9x3x64xbf16, #tpu.memory_space<vmem>>, vector<1x3x64xbf16>
    %10 = vector.shape_cast %9 : vector<1x3x64xbf16> to vector<3x64xbf16>
    %cst_10 = arith.constant dense<0.000000e+00> : vector<64x64xf32>
    %11 = tpu.matmul %8, %10, %cst_10 {dimension_numbers = #tpu.dot_dimension_numbers<[1], [0], [0], [1], [0, 0, 1, 1], [], []>} : vector<64x3xbf16>, vector<3x64xbf16>, vector<64x64xf32> -> vector<64x64xf32>
    %12 = arith.addf %6, %11 : vector<64x64xf32>
    %c0_11 = arith.constant 0 : index
    %c288 = arith.constant 288 : index
    %c0_12 = arith.constant 0 : index
    %13 = vector.load %arg2[%c0_11, %c288, %c0_12] : memref<1x432x3xbf16, #tpu.memory_space<vmem>>, vector<1x64x3xbf16>
    %14 = vector.shape_cast %13 : vector<1x64x3xbf16> to vector<64x3xbf16>
    %c2 = arith.constant 2 : index
    %c0_13 = arith.constant 0 : index
    %c0_14 = arith.constant 0 : index
    %15 = vector.load %arg3[%c2, %c0_13, %c0_14] : memref<9x3x64xbf16, #tpu.memory_space<vmem>>, vector<1x3x64xbf16>
    %16 = vector.shape_cast %15 : vector<1x3x64xbf16> to vector<3x64xbf16>
    %cst_15 = arith.constant dense<0.000000e+00> : vector<64x64xf32>
    %17 = tpu.matmul %14, %16, %cst_15 {dimension_numbers = #tpu.dot_dimension_numbers<[1], [0], [0], [1], [0, 0, 1, 1], [], []>} : vector<64x3xbf16>, vector<3x64xbf16>, vector<64x64xf32> -> vector<64x64xf32>
    %18 = arith.addf %12, %17 : vector<64x64xf32>
    %c0_16 = arith.constant 0 : index
    %c72 = arith.constant 72 : index
    %c0_17 = arith.constant 0 : index
    %19 = vector.load %arg2[%c0_16, %c72, %c0_17] : memref<1x432x3xbf16, #tpu.memory_space<vmem>>, vector<1x64x3xbf16>
    %20 = vector.shape_cast %19 : vector<1x64x3xbf16> to vector<64x3xbf16>
    %c3 = arith.constant 3 : index
    %c0_18 = arith.constant 0 : index
    %c0_19 = arith.constant 0 : index
    %21 = vector.load %arg3[%c3, %c0_18, %c0_19] : memref<9x3x64xbf16, #tpu.memory_space<vmem>>, vector<1x3x64xbf16>
    %22 = vector.shape_cast %21 : vector<1x3x64xbf16> to vector<3x64xbf16>
    %cst_20 = arith.constant dense<0.000000e+00> : vector<64x64xf32>
    %23 = tpu.matmul %20, %22, %cst_20 {dimension_numbers = #tpu.dot_dimension_numbers<[1], [0], [0], [1], [0, 0, 1, 1], [], []>} : vector<64x3xbf16>, vector<3x64xbf16>, vector<64x64xf32> -> vector<64x64xf32>
    %24 = arith.addf %18, %23 : vector<64x64xf32>
    %c0_21 = arith.constant 0 : index
    %c216 = arith.constant 216 : index
    %c0_22 = arith.constant 0 : index
    %25 = vector.load %arg2[%c0_21, %c216, %c0_22] : memref<1x432x3xbf16, #tpu.memory_space<vmem>>, vector<1x64x3xbf16>
    %26 = vector.shape_cast %25 : vector<1x64x3xbf16> to vector<64x3xbf16>
    %c4 = arith.constant 4 : index
    %c0_23 = arith.constant 0 : index
    %c0_24 = arith.constant 0 : index
    %27 = vector.load %arg3[%c4, %c0_23, %c0_24] : memref<9x3x64xbf16, #tpu.memory_space<vmem>>, vector<1x3x64xbf16>
    %28 = vector.shape_cast %27 : vector<1x3x64xbf16> to vector<3x64xbf16>
    %cst_25 = arith.constant dense<0.000000e+00> : vector<64x64xf32>
    %29 = tpu.matmul %26, %28, %cst_25 {dimension_numbers = #tpu.dot_dimension_numbers<[1], [0], [0], [1], [0, 0, 1, 1], [], []>} : vector<64x3xbf16>, vector<3x64xbf16>, vector<64x64xf32> -> vector<64x64xf32>
    %30 = arith.addf %24, %29 : vector<64x64xf32>
    %c0_26 = arith.constant 0 : index
    %c360 = arith.constant 360 : index
    %c0_27 = arith.constant 0 : index
    %31 = vector.load %arg2[%c0_26, %c360, %c0_27] : memref<1x432x3xbf16, #tpu.memory_space<vmem>>, vector<1x64x3xbf16>
    %32 = vector.shape_cast %31 : vector<1x64x3xbf16> to vector<64x3xbf16>
    %c5 = arith.constant 5 : index
    %c0_28 = arith.constant 0 : index
    %c0_29 = arith.constant 0 : index
    %33 = vector.load %arg3[%c5, %c0_28, %c0_29] : memref<9x3x64xbf16, #tpu.memory_space<vmem>>, vector<1x3x64xbf16>
    %34 = vector.shape_cast %33 : vector<1x3x64xbf16> to vector<3x64xbf16>
    %cst_30 = arith.constant dense<0.000000e+00> : vector<64x64xf32>
    %35 = tpu.matmul %32, %34, %cst_30 {dimension_numbers = #tpu.dot_dimension_numbers<[1], [0], [0], [1], [0, 0, 1, 1], [], []>} : vector<64x3xbf16>, vector<3x64xbf16>, vector<64x64xf32> -> vector<64x64xf32>
    %36 = arith.addf %30, %35 : vector<64x64xf32>
    %c0_31 = arith.constant 0 : index
    %c8 = arith.constant 8 : index
    %c0_32 = arith.constant 0 : index
    %37 = vector.load %arg2[%c0_31, %c8, %c0_32] : memref<1x432x3xbf16, #tpu.memory_space<vmem>>, vector<1x64x3xbf16>
    %38 = vector.shape_cast %37 : vector<1x64x3xbf16> to vector<64x3xbf16>
    %c6 = arith.constant 6 : index
    %c0_33 = arith.constant 0 : index
    %c0_34 = arith.constant 0 : index
    %39 = vector.load %arg3[%c6, %c0_33, %c0_34] : memref<9x3x64xbf16, #tpu.memory_space<vmem>>, vector<1x3x64xbf16>
    %40 = vector.shape_cast %39 : vector<1x3x64xbf16> to vector<3x64xbf16>
    %cst_35 = arith.constant dense<0.000000e+00> : vector<64x64xf32>
    %41 = tpu.matmul %38, %40, %cst_35 {dimension_numbers = #tpu.dot_dimension_numbers<[1], [0], [0], [1], [0, 0, 1, 1], [], []>} : vector<64x3xbf16>, vector<3x64xbf16>, vector<64x64xf32> -> vector<64x64xf32>
    %42 = arith.addf %36, %41 : vector<64x64xf32>
    %c0_36 = arith.constant 0 : index
    %c152 = arith.constant 152 : index
    %c0_37 = arith.constant 0 : index
    %43 = vector.load %arg2[%c0_36, %c152, %c0_37] : memref<1x432x3xbf16, #tpu.memory_space<vmem>>, vector<1x64x3xbf16>
    %44 = vector.shape_cast %43 : vector<1x64x3xbf16> to vector<64x3xbf16>
    %c7 = arith.constant 7 : index
    %c0_38 = arith.constant 0 : index
    %c0_39 = arith.constant 0 : index
    %45 = vector.load %arg3[%c7, %c0_38, %c0_39] : memref<9x3x64xbf16, #tpu.memory_space<vmem>>, vector<1x3x64xbf16>
    %46 = vector.shape_cast %45 : vector<1x3x64xbf16> to vector<3x64xbf16>
    %cst_40 = arith.constant dense<0.000000e+00> : vector<64x64xf32>
    %47 = tpu.matmul %44, %46, %cst_40 {dimension_numbers = #tpu.dot_dimension_numbers<[1], [0], [0], [1], [0, 0, 1, 1], [], []>} : vector<64x3xbf16>, vector<3x64xbf16>, vector<64x64xf32> -> vector<64x64xf32>
    %48 = arith.addf %42, %47 : vector<64x64xf32>
    %c0_41 = arith.constant 0 : index
    %c296 = arith.constant 296 : index
    %c0_42 = arith.constant 0 : index
    %49 = vector.load %arg2[%c0_41, %c296, %c0_42] : memref<1x432x3xbf16, #tpu.memory_space<vmem>>, vector<1x64x3xbf16>
    %50 = vector.shape_cast %49 : vector<1x64x3xbf16> to vector<64x3xbf16>
    %c8_43 = arith.constant 8 : index
    %c0_44 = arith.constant 0 : index
    %c0_45 = arith.constant 0 : index
    %51 = vector.load %arg3[%c8_43, %c0_44, %c0_45] : memref<9x3x64xbf16, #tpu.memory_space<vmem>>, vector<1x3x64xbf16>
    %52 = vector.shape_cast %51 : vector<1x3x64xbf16> to vector<3x64xbf16>
    %cst_46 = arith.constant dense<0.000000e+00> : vector<64x64xf32>
    %53 = tpu.matmul %50, %52, %cst_46 {dimension_numbers = #tpu.dot_dimension_numbers<[1], [0], [0], [1], [0, 0, 1, 1], [], []>} : vector<64x3xbf16>, vector<3x64xbf16>, vector<64x64xf32> -> vector<64x64xf32>
    %54 = arith.addf %48, %53 : vector<64x64xf32>
    %c0_47 = arith.constant 0 : index
    %c0_48 = arith.constant 0 : index
    %55 = vector.load %arg4[%c0_47, %c0_48] : memref<1x64xf32, #tpu.memory_space<vmem>>, vector<1x64xf32>
    %56 = vector.broadcast %55 : vector<1x64xf32> to vector<64x64xf32>
    %57 = arith.addf %54, %56 : vector<64x64xf32>
    %cst_49 = arith.constant 0.000000e+00 : f32
    %58 = vector.broadcast %cst_49 : f32 to vector<64x64xf32>
    %59 = arith.cmpf oge, %57, %58 : vector<64x64xf32>
    %cst_50 = arith.constant 2.000000e-01 : f32
    %60 = vector.broadcast %cst_50 : f32 to vector<64x64xf32>
    %61 = arith.mulf %60, %57 : vector<64x64xf32>
    %62 = arith.select %59, %57, %61 : vector<64x64xi1>, vector<64x64xf32>
    %c0_51 = arith.constant 0 : index
    %c0_52 = arith.constant 0 : index
    %c0_53 = arith.constant 0 : index
    %63 = vector.load %arg5[%c0_51, %c0_52, %c0_53] : memref<1x64x64xf32, #tpu.memory_space<vmem>>, vector<1x64x64xf32>
    %64 = vector.shape_cast %63 : vector<1x64x64xf32> to vector<64x64xf32>
    %65 = vector.shape_cast %62 : vector<64x64xf32> to vector<1x64x64xf32>
    tpu.vector_store %arg5[%c0_51, %c0_52, %c0_53], %65 {strides = array<i32>} : memref<1x64x64xf32, #tpu.memory_space<vmem>>, vector<1x64x64xf32>,
    return
  }
  func.func @transform_0(%arg0: i32, %arg1: i32) -> (i32, i32, i32) {
    %c0_i32 = arith.constant 0 : i32
    %c0_i32_0 = arith.constant 0 : i32
    %c0_i32_1 = arith.constant 0 : i32
    return %arg0, %c0_i32, %c0_i32_0 : i32, i32, i32
  }
  func.func @transform_1(%arg0: i32, %arg1: i32) -> (i32, i32, i32) {
    %c0_i32 = arith.constant 0 : i32
    %c0_i32_0 = arith.constant 0 : i32
    %c0_i32_1 = arith.constant 0 : i32
    return %c0_i32, %c0_i32_0, %arg1 : i32, i32, i32
  }
  func.func @transform_2(%arg0: i32, %arg1: i32) -> (i32, i32) {
    %c0_i32 = arith.constant 0 : i32
    %c0_i32_0 = arith.constant 0 : i32
    return %c0_i32, %arg1 : i32, i32
  }
  func.func @transform_3(%arg0: i32, %arg1: i32) -> (i32, i32, i32) {
    %c0_i32 = arith.constant 0 : i32
    %c0_i32_0 = arith.constant 0 : i32
    return %arg0, %c0_i32, %arg1 : i32, i32, i32
  }
}

module attributes {stable_mosaic.version = 11 : i64} {
  func.func @conv_block_kernel(%arg0: i32, %arg1: i32, %arg2: memref<1x120x64xbf16, #tpu.memory_space<vmem>>, %arg3: memref<9x64x128xbf16, #tpu.memory_space<vmem>>, %arg4: memref<1x128xf32, #tpu.memory_space<vmem>>, %arg5: memref<1x16x128xf32, #tpu.memory_space<vmem>>) attributes {dimension_semantics = [#tpu.dimension_semantics<parallel>, #tpu.dimension_semantics<parallel>], iteration_bounds = array<i64: 2, 1>, scalar_prefetch = 0 : i64, scratch_operands = 0 : i64, tpu.core_type = #tpu.core_type<tc>, window_params = [{transform_indices = @transform_0, window_bounds = array<i64: 1, 120, 64>}, {transform_indices = @transform_1, window_bounds = array<i64: 9, 64, 128>}, {transform_indices = @transform_2, window_bounds = array<i64: 1, 128>}, {transform_indices = @transform_3, window_bounds = array<i64: 1, 16, 128>}]} {
    %cst = arith.constant 0.000000e+00 : f32
    %0 = vector.broadcast %cst : f32 to vector<16x128xf32>
    %c0 = arith.constant 0 : index
    %c0_0 = arith.constant 0 : index
    %c0_1 = arith.constant 0 : index
    %1 = vector.load %arg2[%c0, %c0_0, %c0_1] : memref<1x120x64xbf16, #tpu.memory_space<vmem>>, vector<1x16x64xbf16>
    %2 = vector.shape_cast %1 : vector<1x16x64xbf16> to vector<16x64xbf16>
    %c0_2 = arith.constant 0 : index
    %c0_3 = arith.constant 0 : index
    %c0_4 = arith.constant 0 : index
    %3 = vector.load %arg3[%c0_2, %c0_3, %c0_4] : memref<9x64x128xbf16, #tpu.memory_space<vmem>>, vector<1x64x128xbf16>
    %4 = vector.shape_cast %3 : vector<1x64x128xbf16> to vector<64x128xbf16>
    %cst_5 = arith.constant dense<0.000000e+00> : vector<16x128xf32>
    %5 = tpu.matmul %2, %4, %cst_5 {dimension_numbers = #tpu.dot_dimension_numbers<[1], [0], [0], [1], [0, 0, 1, 1], [], []>} : vector<16x64xbf16>, vector<64x128xbf16>, vector<16x128xf32> -> vector<16x128xf32>
    %6 = arith.addf %0, %5 : vector<16x128xf32>
    %c0_6 = arith.constant 0 : index
    %c40 = arith.constant 40 : index
    %c0_7 = arith.constant 0 : index
    %7 = vector.load %arg2[%c0_6, %c40, %c0_7] : memref<1x120x64xbf16, #tpu.memory_space<vmem>>, vector<1x16x64xbf16>
    %8 = vector.shape_cast %7 : vector<1x16x64xbf16> to vector<16x64xbf16>
    %c1 = arith.constant 1 : index
    %c0_8 = arith.constant 0 : index
    %c0_9 = arith.constant 0 : index
    %9 = vector.load %arg3[%c1, %c0_8, %c0_9] : memref<9x64x128xbf16, #tpu.memory_space<vmem>>, vector<1x64x128xbf16>
    %10 = vector.shape_cast %9 : vector<1x64x128xbf16> to vector<64x128xbf16>
    %cst_10 = arith.constant dense<0.000000e+00> : vector<16x128xf32>
    %11 = tpu.matmul %8, %10, %cst_10 {dimension_numbers = #tpu.dot_dimension_numbers<[1], [0], [0], [1], [0, 0, 1, 1], [], []>} : vector<16x64xbf16>, vector<64x128xbf16>, vector<16x128xf32> -> vector<16x128xf32>
    %12 = arith.addf %6, %11 : vector<16x128xf32>
    %c0_11 = arith.constant 0 : index
    %c80 = arith.constant 80 : index
    %c0_12 = arith.constant 0 : index
    %13 = vector.load %arg2[%c0_11, %c80, %c0_12] : memref<1x120x64xbf16, #tpu.memory_space<vmem>>, vector<1x16x64xbf16>
    %14 = vector.shape_cast %13 : vector<1x16x64xbf16> to vector<16x64xbf16>
    %c2 = arith.constant 2 : index
    %c0_13 = arith.constant 0 : index
    %c0_14 = arith.constant 0 : index
    %15 = vector.load %arg3[%c2, %c0_13, %c0_14] : memref<9x64x128xbf16, #tpu.memory_space<vmem>>, vector<1x64x128xbf16>
    %16 = vector.shape_cast %15 : vector<1x64x128xbf16> to vector<64x128xbf16>
    %cst_15 = arith.constant dense<0.000000e+00> : vector<16x128xf32>
    %17 = tpu.matmul %14, %16, %cst_15 {dimension_numbers = #tpu.dot_dimension_numbers<[1], [0], [0], [1], [0, 0, 1, 1], [], []>} : vector<16x64xbf16>, vector<64x128xbf16>, vector<16x128xf32> -> vector<16x128xf32>
    %18 = arith.addf %12, %17 : vector<16x128xf32>
    %c0_16 = arith.constant 0 : index
    %c20 = arith.constant 20 : index
    %c0_17 = arith.constant 0 : index
    %19 = vector.load %arg2[%c0_16, %c20, %c0_17] : memref<1x120x64xbf16, #tpu.memory_space<vmem>>, vector<1x16x64xbf16>
    %20 = vector.shape_cast %19 : vector<1x16x64xbf16> to vector<16x64xbf16>
    %c3 = arith.constant 3 : index
    %c0_18 = arith.constant 0 : index
    %c0_19 = arith.constant 0 : index
    %21 = vector.load %arg3[%c3, %c0_18, %c0_19] : memref<9x64x128xbf16, #tpu.memory_space<vmem>>, vector<1x64x128xbf16>
    %22 = vector.shape_cast %21 : vector<1x64x128xbf16> to vector<64x128xbf16>
    %cst_20 = arith.constant dense<0.000000e+00> : vector<16x128xf32>
    %23 = tpu.matmul %20, %22, %cst_20 {dimension_numbers = #tpu.dot_dimension_numbers<[1], [0], [0], [1], [0, 0, 1, 1], [], []>} : vector<16x64xbf16>, vector<64x128xbf16>, vector<16x128xf32> -> vector<16x128xf32>
    %24 = arith.addf %18, %23 : vector<16x128xf32>
    %c0_21 = arith.constant 0 : index
    %c60 = arith.constant 60 : index
    %c0_22 = arith.constant 0 : index
    %25 = vector.load %arg2[%c0_21, %c60, %c0_22] : memref<1x120x64xbf16, #tpu.memory_space<vmem>>, vector<1x16x64xbf16>
    %26 = vector.shape_cast %25 : vector<1x16x64xbf16> to vector<16x64xbf16>
    %c4 = arith.constant 4 : index
    %c0_23 = arith.constant 0 : index
    %c0_24 = arith.constant 0 : index
    %27 = vector.load %arg3[%c4, %c0_23, %c0_24] : memref<9x64x128xbf16, #tpu.memory_space<vmem>>, vector<1x64x128xbf16>
    %28 = vector.shape_cast %27 : vector<1x64x128xbf16> to vector<64x128xbf16>
    %cst_25 = arith.constant dense<0.000000e+00> : vector<16x128xf32>
    %29 = tpu.matmul %26, %28, %cst_25 {dimension_numbers = #tpu.dot_dimension_numbers<[1], [0], [0], [1], [0, 0, 1, 1], [], []>} : vector<16x64xbf16>, vector<64x128xbf16>, vector<16x128xf32> -> vector<16x128xf32>
    %30 = arith.addf %24, %29 : vector<16x128xf32>
    %c0_26 = arith.constant 0 : index
    %c100 = arith.constant 100 : index
    %c0_27 = arith.constant 0 : index
    %31 = vector.load %arg2[%c0_26, %c100, %c0_27] : memref<1x120x64xbf16, #tpu.memory_space<vmem>>, vector<1x16x64xbf16>
    %32 = vector.shape_cast %31 : vector<1x16x64xbf16> to vector<16x64xbf16>
    %c5 = arith.constant 5 : index
    %c0_28 = arith.constant 0 : index
    %c0_29 = arith.constant 0 : index
    %33 = vector.load %arg3[%c5, %c0_28, %c0_29] : memref<9x64x128xbf16, #tpu.memory_space<vmem>>, vector<1x64x128xbf16>
    %34 = vector.shape_cast %33 : vector<1x64x128xbf16> to vector<64x128xbf16>
    %cst_30 = arith.constant dense<0.000000e+00> : vector<16x128xf32>
    %35 = tpu.matmul %32, %34, %cst_30 {dimension_numbers = #tpu.dot_dimension_numbers<[1], [0], [0], [1], [0, 0, 1, 1], [], []>} : vector<16x64xbf16>, vector<64x128xbf16>, vector<16x128xf32> -> vector<16x128xf32>
    %36 = arith.addf %30, %35 : vector<16x128xf32>
    %c0_31 = arith.constant 0 : index
    %c4_32 = arith.constant 4 : index
    %c0_33 = arith.constant 0 : index
    %37 = vector.load %arg2[%c0_31, %c4_32, %c0_33] : memref<1x120x64xbf16, #tpu.memory_space<vmem>>, vector<1x16x64xbf16>
    %38 = vector.shape_cast %37 : vector<1x16x64xbf16> to vector<16x64xbf16>
    %c6 = arith.constant 6 : index
    %c0_34 = arith.constant 0 : index
    %c0_35 = arith.constant 0 : index
    %39 = vector.load %arg3[%c6, %c0_34, %c0_35] : memref<9x64x128xbf16, #tpu.memory_space<vmem>>, vector<1x64x128xbf16>
    %40 = vector.shape_cast %39 : vector<1x64x128xbf16> to vector<64x128xbf16>
    %cst_36 = arith.constant dense<0.000000e+00> : vector<16x128xf32>
    %41 = tpu.matmul %38, %40, %cst_36 {dimension_numbers = #tpu.dot_dimension_numbers<[1], [0], [0], [1], [0, 0, 1, 1], [], []>} : vector<16x64xbf16>, vector<64x128xbf16>, vector<16x128xf32> -> vector<16x128xf32>
    %42 = arith.addf %36, %41 : vector<16x128xf32>
    %c0_37 = arith.constant 0 : index
    %c44 = arith.constant 44 : index
    %c0_38 = arith.constant 0 : index
    %43 = vector.load %arg2[%c0_37, %c44, %c0_38] : memref<1x120x64xbf16, #tpu.memory_space<vmem>>, vector<1x16x64xbf16>
    %44 = vector.shape_cast %43 : vector<1x16x64xbf16> to vector<16x64xbf16>
    %c7 = arith.constant 7 : index
    %c0_39 = arith.constant 0 : index
    %c0_40 = arith.constant 0 : index
    %45 = vector.load %arg3[%c7, %c0_39, %c0_40] : memref<9x64x128xbf16, #tpu.memory_space<vmem>>, vector<1x64x128xbf16>
    %46 = vector.shape_cast %45 : vector<1x64x128xbf16> to vector<64x128xbf16>
    %cst_41 = arith.constant dense<0.000000e+00> : vector<16x128xf32>
    %47 = tpu.matmul %44, %46, %cst_41 {dimension_numbers = #tpu.dot_dimension_numbers<[1], [0], [0], [1], [0, 0, 1, 1], [], []>} : vector<16x64xbf16>, vector<64x128xbf16>, vector<16x128xf32> -> vector<16x128xf32>
    %48 = arith.addf %42, %47 : vector<16x128xf32>
    %c0_42 = arith.constant 0 : index
    %c84 = arith.constant 84 : index
    %c0_43 = arith.constant 0 : index
    %49 = vector.load %arg2[%c0_42, %c84, %c0_43] : memref<1x120x64xbf16, #tpu.memory_space<vmem>>, vector<1x16x64xbf16>
    %50 = vector.shape_cast %49 : vector<1x16x64xbf16> to vector<16x64xbf16>
    %c8 = arith.constant 8 : index
    %c0_44 = arith.constant 0 : index
    %c0_45 = arith.constant 0 : index
    %51 = vector.load %arg3[%c8, %c0_44, %c0_45] : memref<9x64x128xbf16, #tpu.memory_space<vmem>>, vector<1x64x128xbf16>
    %52 = vector.shape_cast %51 : vector<1x64x128xbf16> to vector<64x128xbf16>
    %cst_46 = arith.constant dense<0.000000e+00> : vector<16x128xf32>
    %53 = tpu.matmul %50, %52, %cst_46 {dimension_numbers = #tpu.dot_dimension_numbers<[1], [0], [0], [1], [0, 0, 1, 1], [], []>} : vector<16x64xbf16>, vector<64x128xbf16>, vector<16x128xf32> -> vector<16x128xf32>
    %54 = arith.addf %48, %53 : vector<16x128xf32>
    %c0_47 = arith.constant 0 : index
    %c0_48 = arith.constant 0 : index
    %55 = vector.load %arg4[%c0_47, %c0_48] : memref<1x128xf32, #tpu.memory_space<vmem>>, vector<1x128xf32>
    %56 = vector.broadcast %55 : vector<1x128xf32> to vector<16x128xf32>
    %57 = arith.addf %54, %56 : vector<16x128xf32>
    %cst_49 = arith.constant dense<0.000000e+00> : vector<128xf32>
    %58 = vector.multi_reduction <add>, %57, %cst_49 [0] : vector<16x128xf32> to vector<128xf32>
    %59 = vector.shape_cast %58 : vector<128xf32> to vector<1x128xf32>
    %cst_50 = arith.constant 1.600000e+01 : f32
    %60 = vector.broadcast %cst_50 : f32 to vector<1x128xf32>
    %61 = arith.divf %59, %60 : vector<1x128xf32>
    %62 = vector.broadcast %61 : vector<1x128xf32> to vector<16x128xf32>
    %63 = arith.subf %57, %62 : vector<16x128xf32>
    %64 = arith.mulf %63, %63 : vector<16x128xf32>
    %cst_51 = arith.constant dense<0.000000e+00> : vector<128xf32>
    %65 = vector.multi_reduction <add>, %64, %cst_51 [0] : vector<16x128xf32> to vector<128xf32>
    %66 = vector.shape_cast %65 : vector<128xf32> to vector<1x128xf32>
    %cst_52 = arith.constant 1.600000e+01 : f32
    %67 = vector.broadcast %cst_52 : f32 to vector<1x128xf32>
    %68 = arith.divf %66, %67 : vector<1x128xf32>
    %69 = vector.broadcast %61 : vector<1x128xf32> to vector<16x128xf32>
    %70 = arith.subf %57, %69 : vector<16x128xf32>
    %cst_53 = arith.constant 9.99999974E-6 : f32
    %71 = vector.broadcast %cst_53 : f32 to vector<1x128xf32>
    %72 = arith.addf %68, %71 : vector<1x128xf32>
    %73 = math.rsqrt %72 : vector<1x128xf32>
    %74 = vector.broadcast %73 : vector<1x128xf32> to vector<16x128xf32>
    %75 = arith.mulf %70, %74 : vector<16x128xf32>
    %cst_54 = arith.constant 0.000000e+00 : f32
    %76 = vector.broadcast %cst_54 : f32 to vector<16x128xf32>
    %77 = arith.cmpf oge, %75, %76 : vector<16x128xf32>
    %cst_55 = arith.constant 2.000000e-01 : f32
    %78 = vector.broadcast %cst_55 : f32 to vector<16x128xf32>
    %79 = arith.mulf %78, %75 : vector<16x128xf32>
    %80 = arith.select %77, %75, %79 : vector<16x128xi1>, vector<16x128xf32>
    %c0_56 = arith.constant 0 : index
    %c0_57 = arith.constant 0 : index
    %c0_58 = arith.constant 0 : index
    %81 = vector.load %arg5[%c0_56, %c0_57, %c0_58] : memref<1x16x128xf32, #tpu.memory_space<vmem>>, vector<1x16x128xf32>
    %82 = vector.shape_cast %81 : vector<1x16x128xf32> to vector<16x128xf32>
    %83 = vector.shape_cast %80 : vector<16x128xf32> to vector<1x16x128xf32>
    tpu.vector_store %arg5[%c0_56, %c0_57, %c0_58], %83 {strides = array<i32>} : memref<1x16x128xf32, #tpu.memory_space<vmem>>, vector<1x16x128xf32>,
    return
  }
  func.func @transform_0(%arg0: i32, %arg1: i32) -> (i32, i32, i32) {
    %c0_i32 = arith.constant 0 : i32
    %c0_i32_0 = arith.constant 0 : i32
    %c0_i32_1 = arith.constant 0 : i32
    return %arg0, %c0_i32, %c0_i32_0 : i32, i32, i32
  }
  func.func @transform_1(%arg0: i32, %arg1: i32) -> (i32, i32, i32) {
    %c0_i32 = arith.constant 0 : i32
    %c0_i32_0 = arith.constant 0 : i32
    %c0_i32_1 = arith.constant 0 : i32
    return %c0_i32, %c0_i32_0, %arg1 : i32, i32, i32
  }
  func.func @transform_2(%arg0: i32, %arg1: i32) -> (i32, i32) {
    %c0_i32 = arith.constant 0 : i32
    %c0_i32_0 = arith.constant 0 : i32
    return %c0_i32, %arg1 : i32, i32
  }
  func.func @transform_3(%arg0: i32, %arg1: i32) -> (i32, i32, i32) {
    %c0_i32 = arith.constant 0 : i32
    %c0_i32_0 = arith.constant 0 : i32
    return %arg0, %c0_i32, %arg1 : i32, i32, i32
  }
}

module attributes {stable_mosaic.version = 11 : i64} {
  func.func @conv_block_kernel(%arg0: i32, %arg1: i32, %arg2: memref<1x36x128xbf16, #tpu.memory_space<vmem>>, %arg3: memref<9x128x128xbf16, #tpu.memory_space<vmem>>, %arg4: memref<1x128xf32, #tpu.memory_space<vmem>>, %arg5: memref<1x4x128xf32, #tpu.memory_space<vmem>>) attributes {dimension_semantics = [#tpu.dimension_semantics<parallel>, #tpu.dimension_semantics<parallel>], iteration_bounds = array<i64: 2, 2>, scalar_prefetch = 0 : i64, scratch_operands = 0 : i64, tpu.core_type = #tpu.core_type<tc>, window_params = [{transform_indices = @transform_0, window_bounds = array<i64: 1, 36, 128>}, {transform_indices = @transform_1, window_bounds = array<i64: 9, 128, 128>}, {transform_indices = @transform_2, window_bounds = array<i64: 1, 128>}, {transform_indices = @transform_3, window_bounds = array<i64: 1, 4, 128>}]} {
    %cst = arith.constant 0.000000e+00 : f32
    %0 = vector.broadcast %cst : f32 to vector<4x128xf32>
    %c0 = arith.constant 0 : index
    %c0_0 = arith.constant 0 : index
    %c0_1 = arith.constant 0 : index
    %1 = vector.load %arg2[%c0, %c0_0, %c0_1] : memref<1x36x128xbf16, #tpu.memory_space<vmem>>, vector<1x4x128xbf16>
    %2 = vector.shape_cast %1 : vector<1x4x128xbf16> to vector<4x128xbf16>
    %c0_2 = arith.constant 0 : index
    %c0_3 = arith.constant 0 : index
    %c0_4 = arith.constant 0 : index
    %3 = vector.load %arg3[%c0_2, %c0_3, %c0_4] : memref<9x128x128xbf16, #tpu.memory_space<vmem>>, vector<1x128x128xbf16>
    %4 = vector.shape_cast %3 : vector<1x128x128xbf16> to vector<128x128xbf16>
    %cst_5 = arith.constant dense<0.000000e+00> : vector<4x128xf32>
    %5 = tpu.matmul %2, %4, %cst_5 {dimension_numbers = #tpu.dot_dimension_numbers<[1], [0], [0], [1], [0, 0, 1, 1], [], []>} : vector<4x128xbf16>, vector<128x128xbf16>, vector<4x128xf32> -> vector<4x128xf32>
    %6 = arith.addf %0, %5 : vector<4x128xf32>
    %c0_6 = arith.constant 0 : index
    %c12 = arith.constant 12 : index
    %c0_7 = arith.constant 0 : index
    %7 = vector.load %arg2[%c0_6, %c12, %c0_7] : memref<1x36x128xbf16, #tpu.memory_space<vmem>>, vector<1x4x128xbf16>
    %8 = vector.shape_cast %7 : vector<1x4x128xbf16> to vector<4x128xbf16>
    %c1 = arith.constant 1 : index
    %c0_8 = arith.constant 0 : index
    %c0_9 = arith.constant 0 : index
    %9 = vector.load %arg3[%c1, %c0_8, %c0_9] : memref<9x128x128xbf16, #tpu.memory_space<vmem>>, vector<1x128x128xbf16>
    %10 = vector.shape_cast %9 : vector<1x128x128xbf16> to vector<128x128xbf16>
    %cst_10 = arith.constant dense<0.000000e+00> : vector<4x128xf32>
    %11 = tpu.matmul %8, %10, %cst_10 {dimension_numbers = #tpu.dot_dimension_numbers<[1], [0], [0], [1], [0, 0, 1, 1], [], []>} : vector<4x128xbf16>, vector<128x128xbf16>, vector<4x128xf32> -> vector<4x128xf32>
    %12 = arith.addf %6, %11 : vector<4x128xf32>
    %c0_11 = arith.constant 0 : index
    %c24 = arith.constant 24 : index
    %c0_12 = arith.constant 0 : index
    %13 = vector.load %arg2[%c0_11, %c24, %c0_12] : memref<1x36x128xbf16, #tpu.memory_space<vmem>>, vector<1x4x128xbf16>
    %14 = vector.shape_cast %13 : vector<1x4x128xbf16> to vector<4x128xbf16>
    %c2 = arith.constant 2 : index
    %c0_13 = arith.constant 0 : index
    %c0_14 = arith.constant 0 : index
    %15 = vector.load %arg3[%c2, %c0_13, %c0_14] : memref<9x128x128xbf16, #tpu.memory_space<vmem>>, vector<1x128x128xbf16>
    %16 = vector.shape_cast %15 : vector<1x128x128xbf16> to vector<128x128xbf16>
    %cst_15 = arith.constant dense<0.000000e+00> : vector<4x128xf32>
    %17 = tpu.matmul %14, %16, %cst_15 {dimension_numbers = #tpu.dot_dimension_numbers<[1], [0], [0], [1], [0, 0, 1, 1], [], []>} : vector<4x128xbf16>, vector<128x128xbf16>, vector<4x128xf32> -> vector<4x128xf32>
    %18 = arith.addf %12, %17 : vector<4x128xf32>
    %c0_16 = arith.constant 0 : index
    %c6 = arith.constant 6 : index
    %c0_17 = arith.constant 0 : index
    %19 = vector.load %arg2[%c0_16, %c6, %c0_17] : memref<1x36x128xbf16, #tpu.memory_space<vmem>>, vector<1x4x128xbf16>
    %20 = vector.shape_cast %19 : vector<1x4x128xbf16> to vector<4x128xbf16>
    %c3 = arith.constant 3 : index
    %c0_18 = arith.constant 0 : index
    %c0_19 = arith.constant 0 : index
    %21 = vector.load %arg3[%c3, %c0_18, %c0_19] : memref<9x128x128xbf16, #tpu.memory_space<vmem>>, vector<1x128x128xbf16>
    %22 = vector.shape_cast %21 : vector<1x128x128xbf16> to vector<128x128xbf16>
    %cst_20 = arith.constant dense<0.000000e+00> : vector<4x128xf32>
    %23 = tpu.matmul %20, %22, %cst_20 {dimension_numbers = #tpu.dot_dimension_numbers<[1], [0], [0], [1], [0, 0, 1, 1], [], []>} : vector<4x128xbf16>, vector<128x128xbf16>, vector<4x128xf32> -> vector<4x128xf32>
    %24 = arith.addf %18, %23 : vector<4x128xf32>
    %c0_21 = arith.constant 0 : index
    %c18 = arith.constant 18 : index
    %c0_22 = arith.constant 0 : index
    %25 = vector.load %arg2[%c0_21, %c18, %c0_22] : memref<1x36x128xbf16, #tpu.memory_space<vmem>>, vector<1x4x128xbf16>
    %26 = vector.shape_cast %25 : vector<1x4x128xbf16> to vector<4x128xbf16>
    %c4 = arith.constant 4 : index
    %c0_23 = arith.constant 0 : index
    %c0_24 = arith.constant 0 : index
    %27 = vector.load %arg3[%c4, %c0_23, %c0_24] : memref<9x128x128xbf16, #tpu.memory_space<vmem>>, vector<1x128x128xbf16>
    %28 = vector.shape_cast %27 : vector<1x128x128xbf16> to vector<128x128xbf16>
    %cst_25 = arith.constant dense<0.000000e+00> : vector<4x128xf32>
    %29 = tpu.matmul %26, %28, %cst_25 {dimension_numbers = #tpu.dot_dimension_numbers<[1], [0], [0], [1], [0, 0, 1, 1], [], []>} : vector<4x128xbf16>, vector<128x128xbf16>, vector<4x128xf32> -> vector<4x128xf32>
    %30 = arith.addf %24, %29 : vector<4x128xf32>
    %c0_26 = arith.constant 0 : index
    %c30 = arith.constant 30 : index
    %c0_27 = arith.constant 0 : index
    %31 = vector.load %arg2[%c0_26, %c30, %c0_27] : memref<1x36x128xbf16, #tpu.memory_space<vmem>>, vector<1x4x128xbf16>
    %32 = vector.shape_cast %31 : vector<1x4x128xbf16> to vector<4x128xbf16>
    %c5 = arith.constant 5 : index
    %c0_28 = arith.constant 0 : index
    %c0_29 = arith.constant 0 : index
    %33 = vector.load %arg3[%c5, %c0_28, %c0_29] : memref<9x128x128xbf16, #tpu.memory_space<vmem>>, vector<1x128x128xbf16>
    %34 = vector.shape_cast %33 : vector<1x128x128xbf16> to vector<128x128xbf16>
    %cst_30 = arith.constant dense<0.000000e+00> : vector<4x128xf32>
    %35 = tpu.matmul %32, %34, %cst_30 {dimension_numbers = #tpu.dot_dimension_numbers<[1], [0], [0], [1], [0, 0, 1, 1], [], []>} : vector<4x128xbf16>, vector<128x128xbf16>, vector<4x128xf32> -> vector<4x128xf32>
    %36 = arith.addf %30, %35 : vector<4x128xf32>
    %c0_31 = arith.constant 0 : index
    %c2_32 = arith.constant 2 : index
    %c0_33 = arith.constant 0 : index
    %37 = vector.load %arg2[%c0_31, %c2_32, %c0_33] : memref<1x36x128xbf16, #tpu.memory_space<vmem>>, vector<1x4x128xbf16>
    %38 = vector.shape_cast %37 : vector<1x4x128xbf16> to vector<4x128xbf16>
    %c6_34 = arith.constant 6 : index
    %c0_35 = arith.constant 0 : index
    %c0_36 = arith.constant 0 : index
    %39 = vector.load %arg3[%c6_34, %c0_35, %c0_36] : memref<9x128x128xbf16, #tpu.memory_space<vmem>>, vector<1x128x128xbf16>
    %40 = vector.shape_cast %39 : vector<1x128x128xbf16> to vector<128x128xbf16>
    %cst_37 = arith.constant dense<0.000000e+00> : vector<4x128xf32>
    %41 = tpu.matmul %38, %40, %cst_37 {dimension_numbers = #tpu.dot_dimension_numbers<[1], [0], [0], [1], [0, 0, 1, 1], [], []>} : vector<4x128xbf16>, vector<128x128xbf16>, vector<4x128xf32> -> vector<4x128xf32>
    %42 = arith.addf %36, %41 : vector<4x128xf32>
    %c0_38 = arith.constant 0 : index
    %c14 = arith.constant 14 : index
    %c0_39 = arith.constant 0 : index
    %43 = vector.load %arg2[%c0_38, %c14, %c0_39] : memref<1x36x128xbf16, #tpu.memory_space<vmem>>, vector<1x4x128xbf16>
    %44 = vector.shape_cast %43 : vector<1x4x128xbf16> to vector<4x128xbf16>
    %c7 = arith.constant 7 : index
    %c0_40 = arith.constant 0 : index
    %c0_41 = arith.constant 0 : index
    %45 = vector.load %arg3[%c7, %c0_40, %c0_41] : memref<9x128x128xbf16, #tpu.memory_space<vmem>>, vector<1x128x128xbf16>
    %46 = vector.shape_cast %45 : vector<1x128x128xbf16> to vector<128x128xbf16>
    %cst_42 = arith.constant dense<0.000000e+00> : vector<4x128xf32>
    %47 = tpu.matmul %44, %46, %cst_42 {dimension_numbers = #tpu.dot_dimension_numbers<[1], [0], [0], [1], [0, 0, 1, 1], [], []>} : vector<4x128xbf16>, vector<128x128xbf16>, vector<4x128xf32> -> vector<4x128xf32>
    %48 = arith.addf %42, %47 : vector<4x128xf32>
    %c0_43 = arith.constant 0 : index
    %c26 = arith.constant 26 : index
    %c0_44 = arith.constant 0 : index
    %49 = vector.load %arg2[%c0_43, %c26, %c0_44] : memref<1x36x128xbf16, #tpu.memory_space<vmem>>, vector<1x4x128xbf16>
    %50 = vector.shape_cast %49 : vector<1x4x128xbf16> to vector<4x128xbf16>
    %c8 = arith.constant 8 : index
    %c0_45 = arith.constant 0 : index
    %c0_46 = arith.constant 0 : index
    %51 = vector.load %arg3[%c8, %c0_45, %c0_46] : memref<9x128x128xbf16, #tpu.memory_space<vmem>>, vector<1x128x128xbf16>
    %52 = vector.shape_cast %51 : vector<1x128x128xbf16> to vector<128x128xbf16>
    %cst_47 = arith.constant dense<0.000000e+00> : vector<4x128xf32>
    %53 = tpu.matmul %50, %52, %cst_47 {dimension_numbers = #tpu.dot_dimension_numbers<[1], [0], [0], [1], [0, 0, 1, 1], [], []>} : vector<4x128xbf16>, vector<128x128xbf16>, vector<4x128xf32> -> vector<4x128xf32>
    %54 = arith.addf %48, %53 : vector<4x128xf32>
    %c0_48 = arith.constant 0 : index
    %c0_49 = arith.constant 0 : index
    %55 = vector.load %arg4[%c0_48, %c0_49] : memref<1x128xf32, #tpu.memory_space<vmem>>, vector<1x128xf32>
    %56 = vector.broadcast %55 : vector<1x128xf32> to vector<4x128xf32>
    %57 = arith.addf %54, %56 : vector<4x128xf32>
    %cst_50 = arith.constant dense<0.000000e+00> : vector<128xf32>
    %58 = vector.multi_reduction <add>, %57, %cst_50 [0] : vector<4x128xf32> to vector<128xf32>
    %59 = vector.shape_cast %58 : vector<128xf32> to vector<1x128xf32>
    %cst_51 = arith.constant 4.000000e+00 : f32
    %60 = vector.broadcast %cst_51 : f32 to vector<1x128xf32>
    %61 = arith.divf %59, %60 : vector<1x128xf32>
    %62 = vector.broadcast %61 : vector<1x128xf32> to vector<4x128xf32>
    %63 = arith.subf %57, %62 : vector<4x128xf32>
    %64 = arith.mulf %63, %63 : vector<4x128xf32>
    %cst_52 = arith.constant dense<0.000000e+00> : vector<128xf32>
    %65 = vector.multi_reduction <add>, %64, %cst_52 [0] : vector<4x128xf32> to vector<128xf32>
    %66 = vector.shape_cast %65 : vector<128xf32> to vector<1x128xf32>
    %cst_53 = arith.constant 4.000000e+00 : f32
    %67 = vector.broadcast %cst_53 : f32 to vector<1x128xf32>
    %68 = arith.divf %66, %67 : vector<1x128xf32>
    %69 = vector.broadcast %61 : vector<1x128xf32> to vector<4x128xf32>
    %70 = arith.subf %57, %69 : vector<4x128xf32>
    %cst_54 = arith.constant 9.99999974E-6 : f32
    %71 = vector.broadcast %cst_54 : f32 to vector<1x128xf32>
    %72 = arith.addf %68, %71 : vector<1x128xf32>
    %73 = math.rsqrt %72 : vector<1x128xf32>
    %74 = vector.broadcast %73 : vector<1x128xf32> to vector<4x128xf32>
    %75 = arith.mulf %70, %74 : vector<4x128xf32>
    %cst_55 = arith.constant 0.000000e+00 : f32
    %76 = vector.broadcast %cst_55 : f32 to vector<4x128xf32>
    %77 = arith.cmpf oge, %75, %76 : vector<4x128xf32>
    %cst_56 = arith.constant 2.000000e-01 : f32
    %78 = vector.broadcast %cst_56 : f32 to vector<4x128xf32>
    %79 = arith.mulf %78, %75 : vector<4x128xf32>
    %80 = arith.select %77, %75, %79 : vector<4x128xi1>, vector<4x128xf32>
    %c0_57 = arith.constant 0 : index
    %c0_58 = arith.constant 0 : index
    %c0_59 = arith.constant 0 : index
    %81 = vector.load %arg5[%c0_57, %c0_58, %c0_59] : memref<1x4x128xf32, #tpu.memory_space<vmem>>, vector<1x4x128xf32>
    %82 = vector.shape_cast %81 : vector<1x4x128xf32> to vector<4x128xf32>
    %83 = vector.shape_cast %80 : vector<4x128xf32> to vector<1x4x128xf32>
    tpu.vector_store %arg5[%c0_57, %c0_58, %c0_59], %83 {strides = array<i32>} : memref<1x4x128xf32, #tpu.memory_space<vmem>>, vector<1x4x128xf32>,
    return
  }
  func.func @transform_0(%arg0: i32, %arg1: i32) -> (i32, i32, i32) {
    %c0_i32 = arith.constant 0 : i32
    %c0_i32_0 = arith.constant 0 : i32
    %c0_i32_1 = arith.constant 0 : i32
    return %arg0, %c0_i32, %c0_i32_0 : i32, i32, i32
  }
  func.func @transform_1(%arg0: i32, %arg1: i32) -> (i32, i32, i32) {
    %c0_i32 = arith.constant 0 : i32
    %c0_i32_0 = arith.constant 0 : i32
    %c0_i32_1 = arith.constant 0 : i32
    return %c0_i32, %c0_i32_0, %arg1 : i32, i32, i32
  }
  func.func @transform_2(%arg0: i32, %arg1: i32) -> (i32, i32) {
    %c0_i32 = arith.constant 0 : i32
    %c0_i32_0 = arith.constant 0 : i32
    return %c0_i32, %arg1 : i32, i32
  }
  func.func @transform_3(%arg0: i32, %arg1: i32) -> (i32, i32, i32) {
    %c0_i32 = arith.constant 0 : i32
    %c0_i32_0 = arith.constant 0 : i32
    return %arg0, %c0_i32, %arg1 : i32, i32, i32
  }
}

module attributes {stable_mosaic.version = 11 : i64} {
  func.func @conv_block_kernel(%arg0: i32, %arg1: i32, %arg2: memref<1x24x256xbf16, #tpu.memory_space<vmem>>, %arg3: memref<9x256x128xbf16, #tpu.memory_space<vmem>>, %arg4: memref<1x128xf32, #tpu.memory_space<vmem>>, %arg5: memref<1x4x128xf32, #tpu.memory_space<vmem>>) attributes {dimension_semantics = [#tpu.dimension_semantics<parallel>, #tpu.dimension_semantics<parallel>], iteration_bounds = array<i64: 2, 4>, scalar_prefetch = 0 : i64, scratch_operands = 0 : i64, tpu.core_type = #tpu.core_type<tc>, window_params = [{transform_indices = @transform_0, window_bounds = array<i64: 1, 24, 256>}, {transform_indices = @transform_1, window_bounds = array<i64: 9, 256, 128>}, {transform_indices = @transform_2, window_bounds = array<i64: 1, 128>}, {transform_indices = @transform_3, window_bounds = array<i64: 1, 4, 128>}]} {
    %cst = arith.constant 0.000000e+00 : f32
    %0 = vector.broadcast %cst : f32 to vector<4x128xf32>
    %c0 = arith.constant 0 : index
    %c0_0 = arith.constant 0 : index
    %c0_1 = arith.constant 0 : index
    %1 = vector.load %arg2[%c0, %c0_0, %c0_1] : memref<1x24x256xbf16, #tpu.memory_space<vmem>>, vector<1x4x256xbf16>
    %2 = vector.shape_cast %1 : vector<1x4x256xbf16> to vector<4x256xbf16>
    %c0_2 = arith.constant 0 : index
    %c0_3 = arith.constant 0 : index
    %c0_4 = arith.constant 0 : index
    %3 = vector.load %arg3[%c0_2, %c0_3, %c0_4] : memref<9x256x128xbf16, #tpu.memory_space<vmem>>, vector<1x256x128xbf16>
    %4 = vector.shape_cast %3 : vector<1x256x128xbf16> to vector<256x128xbf16>
    %cst_5 = arith.constant dense<0.000000e+00> : vector<4x128xf32>
    %5 = tpu.matmul %2, %4, %cst_5 {dimension_numbers = #tpu.dot_dimension_numbers<[1], [0], [0], [1], [0, 0, 1, 1], [], []>} : vector<4x256xbf16>, vector<256x128xbf16>, vector<4x128xf32> -> vector<4x128xf32>
    %6 = arith.addf %0, %5 : vector<4x128xf32>
    %c0_6 = arith.constant 0 : index
    %c8 = arith.constant 8 : index
    %c0_7 = arith.constant 0 : index
    %7 = vector.load %arg2[%c0_6, %c8, %c0_7] : memref<1x24x256xbf16, #tpu.memory_space<vmem>>, vector<1x4x256xbf16>
    %8 = vector.shape_cast %7 : vector<1x4x256xbf16> to vector<4x256xbf16>
    %c1 = arith.constant 1 : index
    %c0_8 = arith.constant 0 : index
    %c0_9 = arith.constant 0 : index
    %9 = vector.load %arg3[%c1, %c0_8, %c0_9] : memref<9x256x128xbf16, #tpu.memory_space<vmem>>, vector<1x256x128xbf16>
    %10 = vector.shape_cast %9 : vector<1x256x128xbf16> to vector<256x128xbf16>
    %cst_10 = arith.constant dense<0.000000e+00> : vector<4x128xf32>
    %11 = tpu.matmul %8, %10, %cst_10 {dimension_numbers = #tpu.dot_dimension_numbers<[1], [0], [0], [1], [0, 0, 1, 1], [], []>} : vector<4x256xbf16>, vector<256x128xbf16>, vector<4x128xf32> -> vector<4x128xf32>
    %12 = arith.addf %6, %11 : vector<4x128xf32>
    %c0_11 = arith.constant 0 : index
    %c16 = arith.constant 16 : index
    %c0_12 = arith.constant 0 : index
    %13 = vector.load %arg2[%c0_11, %c16, %c0_12] : memref<1x24x256xbf16, #tpu.memory_space<vmem>>, vector<1x4x256xbf16>
    %14 = vector.shape_cast %13 : vector<1x4x256xbf16> to vector<4x256xbf16>
    %c2 = arith.constant 2 : index
    %c0_13 = arith.constant 0 : index
    %c0_14 = arith.constant 0 : index
    %15 = vector.load %arg3[%c2, %c0_13, %c0_14] : memref<9x256x128xbf16, #tpu.memory_space<vmem>>, vector<1x256x128xbf16>
    %16 = vector.shape_cast %15 : vector<1x256x128xbf16> to vector<256x128xbf16>
    %cst_15 = arith.constant dense<0.000000e+00> : vector<4x128xf32>
    %17 = tpu.matmul %14, %16, %cst_15 {dimension_numbers = #tpu.dot_dimension_numbers<[1], [0], [0], [1], [0, 0, 1, 1], [], []>} : vector<4x256xbf16>, vector<256x128xbf16>, vector<4x128xf32> -> vector<4x128xf32>
    %18 = arith.addf %12, %17 : vector<4x128xf32>
    %c0_16 = arith.constant 0 : index
    %c2_17 = arith.constant 2 : index
    %c0_18 = arith.constant 0 : index
    %19 = vector.load %arg2[%c0_16, %c2_17, %c0_18] : memref<1x24x256xbf16, #tpu.memory_space<vmem>>, vector<1x4x256xbf16>
    %20 = vector.shape_cast %19 : vector<1x4x256xbf16> to vector<4x256xbf16>
    %c3 = arith.constant 3 : index
    %c0_19 = arith.constant 0 : index
    %c0_20 = arith.constant 0 : index
    %21 = vector.load %arg3[%c3, %c0_19, %c0_20] : memref<9x256x128xbf16, #tpu.memory_space<vmem>>, vector<1x256x128xbf16>
    %22 = vector.shape_cast %21 : vector<1x256x128xbf16> to vector<256x128xbf16>
    %cst_21 = arith.constant dense<0.000000e+00> : vector<4x128xf32>
    %23 = tpu.matmul %20, %22, %cst_21 {dimension_numbers = #tpu.dot_dimension_numbers<[1], [0], [0], [1], [0, 0, 1, 1], [], []>} : vector<4x256xbf16>, vector<256x128xbf16>, vector<4x128xf32> -> vector<4x128xf32>
    %24 = arith.addf %18, %23 : vector<4x128xf32>
    %c0_22 = arith.constant 0 : index
    %c10 = arith.constant 10 : index
    %c0_23 = arith.constant 0 : index
    %25 = vector.load %arg2[%c0_22, %c10, %c0_23] : memref<1x24x256xbf16, #tpu.memory_space<vmem>>, vector<1x4x256xbf16>
    %26 = vector.shape_cast %25 : vector<1x4x256xbf16> to vector<4x256xbf16>
    %c4 = arith.constant 4 : index
    %c0_24 = arith.constant 0 : index
    %c0_25 = arith.constant 0 : index
    %27 = vector.load %arg3[%c4, %c0_24, %c0_25] : memref<9x256x128xbf16, #tpu.memory_space<vmem>>, vector<1x256x128xbf16>
    %28 = vector.shape_cast %27 : vector<1x256x128xbf16> to vector<256x128xbf16>
    %cst_26 = arith.constant dense<0.000000e+00> : vector<4x128xf32>
    %29 = tpu.matmul %26, %28, %cst_26 {dimension_numbers = #tpu.dot_dimension_numbers<[1], [0], [0], [1], [0, 0, 1, 1], [], []>} : vector<4x256xbf16>, vector<256x128xbf16>, vector<4x128xf32> -> vector<4x128xf32>
    %30 = arith.addf %24, %29 : vector<4x128xf32>
    %c0_27 = arith.constant 0 : index
    %c18 = arith.constant 18 : index
    %c0_28 = arith.constant 0 : index
    %31 = vector.load %arg2[%c0_27, %c18, %c0_28] : memref<1x24x256xbf16, #tpu.memory_space<vmem>>, vector<1x4x256xbf16>
    %32 = vector.shape_cast %31 : vector<1x4x256xbf16> to vector<4x256xbf16>
    %c5 = arith.constant 5 : index
    %c0_29 = arith.constant 0 : index
    %c0_30 = arith.constant 0 : index
    %33 = vector.load %arg3[%c5, %c0_29, %c0_30] : memref<9x256x128xbf16, #tpu.memory_space<vmem>>, vector<1x256x128xbf16>
    %34 = vector.shape_cast %33 : vector<1x256x128xbf16> to vector<256x128xbf16>
    %cst_31 = arith.constant dense<0.000000e+00> : vector<4x128xf32>
    %35 = tpu.matmul %32, %34, %cst_31 {dimension_numbers = #tpu.dot_dimension_numbers<[1], [0], [0], [1], [0, 0, 1, 1], [], []>} : vector<4x256xbf16>, vector<256x128xbf16>, vector<4x128xf32> -> vector<4x128xf32>
    %36 = arith.addf %30, %35 : vector<4x128xf32>
    %c0_32 = arith.constant 0 : index
    %c4_33 = arith.constant 4 : index
    %c0_34 = arith.constant 0 : index
    %37 = vector.load %arg2[%c0_32, %c4_33, %c0_34] : memref<1x24x256xbf16, #tpu.memory_space<vmem>>, vector<1x4x256xbf16>
    %38 = vector.shape_cast %37 : vector<1x4x256xbf16> to vector<4x256xbf16>
    %c6 = arith.constant 6 : index
    %c0_35 = arith.constant 0 : index
    %c0_36 = arith.constant 0 : index
    %39 = vector.load %arg3[%c6, %c0_35, %c0_36] : memref<9x256x128xbf16, #tpu.memory_space<vmem>>, vector<1x256x128xbf16>
    %40 = vector.shape_cast %39 : vector<1x256x128xbf16> to vector<256x128xbf16>
    %cst_37 = arith.constant dense<0.000000e+00> : vector<4x128xf32>
    %41 = tpu.matmul %38, %40, %cst_37 {dimension_numbers = #tpu.dot_dimension_numbers<[1], [0], [0], [1], [0, 0, 1, 1], [], []>} : vector<4x256xbf16>, vector<256x128xbf16>, vector<4x128xf32> -> vector<4x128xf32>
    %42 = arith.addf %36, %41 : vector<4x128xf32>
    %c0_38 = arith.constant 0 : index
    %c12 = arith.constant 12 : index
    %c0_39 = arith.constant 0 : index
    %43 = vector.load %arg2[%c0_38, %c12, %c0_39] : memref<1x24x256xbf16, #tpu.memory_space<vmem>>, vector<1x4x256xbf16>
    %44 = vector.shape_cast %43 : vector<1x4x256xbf16> to vector<4x256xbf16>
    %c7 = arith.constant 7 : index
    %c0_40 = arith.constant 0 : index
    %c0_41 = arith.constant 0 : index
    %45 = vector.load %arg3[%c7, %c0_40, %c0_41] : memref<9x256x128xbf16, #tpu.memory_space<vmem>>, vector<1x256x128xbf16>
    %46 = vector.shape_cast %45 : vector<1x256x128xbf16> to vector<256x128xbf16>
    %cst_42 = arith.constant dense<0.000000e+00> : vector<4x128xf32>
    %47 = tpu.matmul %44, %46, %cst_42 {dimension_numbers = #tpu.dot_dimension_numbers<[1], [0], [0], [1], [0, 0, 1, 1], [], []>} : vector<4x256xbf16>, vector<256x128xbf16>, vector<4x128xf32> -> vector<4x128xf32>
    %48 = arith.addf %42, %47 : vector<4x128xf32>
    %c0_43 = arith.constant 0 : index
    %c20 = arith.constant 20 : index
    %c0_44 = arith.constant 0 : index
    %49 = vector.load %arg2[%c0_43, %c20, %c0_44] : memref<1x24x256xbf16, #tpu.memory_space<vmem>>, vector<1x4x256xbf16>
    %50 = vector.shape_cast %49 : vector<1x4x256xbf16> to vector<4x256xbf16>
    %c8_45 = arith.constant 8 : index
    %c0_46 = arith.constant 0 : index
    %c0_47 = arith.constant 0 : index
    %51 = vector.load %arg3[%c8_45, %c0_46, %c0_47] : memref<9x256x128xbf16, #tpu.memory_space<vmem>>, vector<1x256x128xbf16>
    %52 = vector.shape_cast %51 : vector<1x256x128xbf16> to vector<256x128xbf16>
    %cst_48 = arith.constant dense<0.000000e+00> : vector<4x128xf32>
    %53 = tpu.matmul %50, %52, %cst_48 {dimension_numbers = #tpu.dot_dimension_numbers<[1], [0], [0], [1], [0, 0, 1, 1], [], []>} : vector<4x256xbf16>, vector<256x128xbf16>, vector<4x128xf32> -> vector<4x128xf32>
    %54 = arith.addf %48, %53 : vector<4x128xf32>
    %c0_49 = arith.constant 0 : index
    %c0_50 = arith.constant 0 : index
    %55 = vector.load %arg4[%c0_49, %c0_50] : memref<1x128xf32, #tpu.memory_space<vmem>>, vector<1x128xf32>
    %56 = vector.broadcast %55 : vector<1x128xf32> to vector<4x128xf32>
    %57 = arith.addf %54, %56 : vector<4x128xf32>
    %cst_51 = arith.constant dense<0.000000e+00> : vector<128xf32>
    %58 = vector.multi_reduction <add>, %57, %cst_51 [0] : vector<4x128xf32> to vector<128xf32>
    %59 = vector.shape_cast %58 : vector<128xf32> to vector<1x128xf32>
    %cst_52 = arith.constant 4.000000e+00 : f32
    %60 = vector.broadcast %cst_52 : f32 to vector<1x128xf32>
    %61 = arith.divf %59, %60 : vector<1x128xf32>
    %62 = vector.broadcast %61 : vector<1x128xf32> to vector<4x128xf32>
    %63 = arith.subf %57, %62 : vector<4x128xf32>
    %64 = arith.mulf %63, %63 : vector<4x128xf32>
    %cst_53 = arith.constant dense<0.000000e+00> : vector<128xf32>
    %65 = vector.multi_reduction <add>, %64, %cst_53 [0] : vector<4x128xf32> to vector<128xf32>
    %66 = vector.shape_cast %65 : vector<128xf32> to vector<1x128xf32>
    %cst_54 = arith.constant 4.000000e+00 : f32
    %67 = vector.broadcast %cst_54 : f32 to vector<1x128xf32>
    %68 = arith.divf %66, %67 : vector<1x128xf32>
    %69 = vector.broadcast %61 : vector<1x128xf32> to vector<4x128xf32>
    %70 = arith.subf %57, %69 : vector<4x128xf32>
    %cst_55 = arith.constant 9.99999974E-6 : f32
    %71 = vector.broadcast %cst_55 : f32 to vector<1x128xf32>
    %72 = arith.addf %68, %71 : vector<1x128xf32>
    %73 = math.rsqrt %72 : vector<1x128xf32>
    %74 = vector.broadcast %73 : vector<1x128xf32> to vector<4x128xf32>
    %75 = arith.mulf %70, %74 : vector<4x128xf32>
    %cst_56 = arith.constant 0.000000e+00 : f32
    %76 = vector.broadcast %cst_56 : f32 to vector<4x128xf32>
    %77 = arith.cmpf oge, %75, %76 : vector<4x128xf32>
    %cst_57 = arith.constant 2.000000e-01 : f32
    %78 = vector.broadcast %cst_57 : f32 to vector<4x128xf32>
    %79 = arith.mulf %78, %75 : vector<4x128xf32>
    %80 = arith.select %77, %75, %79 : vector<4x128xi1>, vector<4x128xf32>
    %c0_58 = arith.constant 0 : index
    %c0_59 = arith.constant 0 : index
    %c0_60 = arith.constant 0 : index
    %81 = vector.load %arg5[%c0_58, %c0_59, %c0_60] : memref<1x4x128xf32, #tpu.memory_space<vmem>>, vector<1x4x128xf32>
    %82 = vector.shape_cast %81 : vector<1x4x128xf32> to vector<4x128xf32>
    %83 = vector.shape_cast %80 : vector<4x128xf32> to vector<1x4x128xf32>
    tpu.vector_store %arg5[%c0_58, %c0_59, %c0_60], %83 {strides = array<i32>} : memref<1x4x128xf32, #tpu.memory_space<vmem>>, vector<1x4x128xf32>,
    return
  }
  func.func @transform_0(%arg0: i32, %arg1: i32) -> (i32, i32, i32) {
    %c0_i32 = arith.constant 0 : i32
    %c0_i32_0 = arith.constant 0 : i32
    %c0_i32_1 = arith.constant 0 : i32
    return %arg0, %c0_i32, %c0_i32_0 : i32, i32, i32
  }
  func.func @transform_1(%arg0: i32, %arg1: i32) -> (i32, i32, i32) {
    %c0_i32 = arith.constant 0 : i32
    %c0_i32_0 = arith.constant 0 : i32
    %c0_i32_1 = arith.constant 0 : i32
    return %c0_i32, %c0_i32_0, %arg1 : i32, i32, i32
  }
  func.func @transform_2(%arg0: i32, %arg1: i32) -> (i32, i32) {
    %c0_i32 = arith.constant 0 : i32
    %c0_i32_0 = arith.constant 0 : i32
    return %c0_i32, %arg1 : i32, i32
  }
  func.func @transform_3(%arg0: i32, %arg1: i32) -> (i32, i32, i32) {
    %c0_i32 = arith.constant 0 : i32
    %c0_i32_0 = arith.constant 0 : i32
    return %arg0, %c0_i32, %arg1 : i32, i32, i32
  }
}

module attributes {stable_mosaic.version = 11 : i64} {
  func.func @conv_block_kernel(%arg0: i32, %arg1: i32, %arg2: memref<1x24x512xbf16, #tpu.memory_space<vmem>>, %arg3: memref<9x512x128xbf16, #tpu.memory_space<vmem>>, %arg4: memref<1x128xf32, #tpu.memory_space<vmem>>, %arg5: memref<1x4x128xf32, #tpu.memory_space<vmem>>) attributes {dimension_semantics = [#tpu.dimension_semantics<parallel>, #tpu.dimension_semantics<parallel>], iteration_bounds = array<i64: 2, 1>, scalar_prefetch = 0 : i64, scratch_operands = 0 : i64, tpu.core_type = #tpu.core_type<tc>, window_params = [{transform_indices = @transform_0, window_bounds = array<i64: 1, 24, 512>}, {transform_indices = @transform_1, window_bounds = array<i64: 9, 512, 128>}, {transform_indices = @transform_2, window_bounds = array<i64: 1, 128>}, {transform_indices = @transform_3, window_bounds = array<i64: 1, 4, 128>}]} {
    %cst = arith.constant 0.000000e+00 : f32
    %0 = vector.broadcast %cst : f32 to vector<4x128xf32>
    %c0 = arith.constant 0 : index
    %c0_0 = arith.constant 0 : index
    %c0_1 = arith.constant 0 : index
    %1 = vector.load %arg2[%c0, %c0_0, %c0_1] : memref<1x24x512xbf16, #tpu.memory_space<vmem>>, vector<1x4x512xbf16>
    %2 = vector.shape_cast %1 : vector<1x4x512xbf16> to vector<4x512xbf16>
    %c0_2 = arith.constant 0 : index
    %c0_3 = arith.constant 0 : index
    %c0_4 = arith.constant 0 : index
    %3 = vector.load %arg3[%c0_2, %c0_3, %c0_4] : memref<9x512x128xbf16, #tpu.memory_space<vmem>>, vector<1x512x128xbf16>
    %4 = vector.shape_cast %3 : vector<1x512x128xbf16> to vector<512x128xbf16>
    %cst_5 = arith.constant dense<0.000000e+00> : vector<4x128xf32>
    %5 = tpu.matmul %2, %4, %cst_5 {dimension_numbers = #tpu.dot_dimension_numbers<[1], [0], [0], [1], [0, 0, 1, 1], [], []>} : vector<4x512xbf16>, vector<512x128xbf16>, vector<4x128xf32> -> vector<4x128xf32>
    %6 = arith.addf %0, %5 : vector<4x128xf32>
    %c0_6 = arith.constant 0 : index
    %c8 = arith.constant 8 : index
    %c0_7 = arith.constant 0 : index
    %7 = vector.load %arg2[%c0_6, %c8, %c0_7] : memref<1x24x512xbf16, #tpu.memory_space<vmem>>, vector<1x4x512xbf16>
    %8 = vector.shape_cast %7 : vector<1x4x512xbf16> to vector<4x512xbf16>
    %c1 = arith.constant 1 : index
    %c0_8 = arith.constant 0 : index
    %c0_9 = arith.constant 0 : index
    %9 = vector.load %arg3[%c1, %c0_8, %c0_9] : memref<9x512x128xbf16, #tpu.memory_space<vmem>>, vector<1x512x128xbf16>
    %10 = vector.shape_cast %9 : vector<1x512x128xbf16> to vector<512x128xbf16>
    %cst_10 = arith.constant dense<0.000000e+00> : vector<4x128xf32>
    %11 = tpu.matmul %8, %10, %cst_10 {dimension_numbers = #tpu.dot_dimension_numbers<[1], [0], [0], [1], [0, 0, 1, 1], [], []>} : vector<4x512xbf16>, vector<512x128xbf16>, vector<4x128xf32> -> vector<4x128xf32>
    %12 = arith.addf %6, %11 : vector<4x128xf32>
    %c0_11 = arith.constant 0 : index
    %c16 = arith.constant 16 : index
    %c0_12 = arith.constant 0 : index
    %13 = vector.load %arg2[%c0_11, %c16, %c0_12] : memref<1x24x512xbf16, #tpu.memory_space<vmem>>, vector<1x4x512xbf16>
    %14 = vector.shape_cast %13 : vector<1x4x512xbf16> to vector<4x512xbf16>
    %c2 = arith.constant 2 : index
    %c0_13 = arith.constant 0 : index
    %c0_14 = arith.constant 0 : index
    %15 = vector.load %arg3[%c2, %c0_13, %c0_14] : memref<9x512x128xbf16, #tpu.memory_space<vmem>>, vector<1x512x128xbf16>
    %16 = vector.shape_cast %15 : vector<1x512x128xbf16> to vector<512x128xbf16>
    %cst_15 = arith.constant dense<0.000000e+00> : vector<4x128xf32>
    %17 = tpu.matmul %14, %16, %cst_15 {dimension_numbers = #tpu.dot_dimension_numbers<[1], [0], [0], [1], [0, 0, 1, 1], [], []>} : vector<4x512xbf16>, vector<512x128xbf16>, vector<4x128xf32> -> vector<4x128xf32>
    %18 = arith.addf %12, %17 : vector<4x128xf32>
    %c0_16 = arith.constant 0 : index
    %c2_17 = arith.constant 2 : index
    %c0_18 = arith.constant 0 : index
    %19 = vector.load %arg2[%c0_16, %c2_17, %c0_18] : memref<1x24x512xbf16, #tpu.memory_space<vmem>>, vector<1x4x512xbf16>
    %20 = vector.shape_cast %19 : vector<1x4x512xbf16> to vector<4x512xbf16>
    %c3 = arith.constant 3 : index
    %c0_19 = arith.constant 0 : index
    %c0_20 = arith.constant 0 : index
    %21 = vector.load %arg3[%c3, %c0_19, %c0_20] : memref<9x512x128xbf16, #tpu.memory_space<vmem>>, vector<1x512x128xbf16>
    %22 = vector.shape_cast %21 : vector<1x512x128xbf16> to vector<512x128xbf16>
    %cst_21 = arith.constant dense<0.000000e+00> : vector<4x128xf32>
    %23 = tpu.matmul %20, %22, %cst_21 {dimension_numbers = #tpu.dot_dimension_numbers<[1], [0], [0], [1], [0, 0, 1, 1], [], []>} : vector<4x512xbf16>, vector<512x128xbf16>, vector<4x128xf32> -> vector<4x128xf32>
    %24 = arith.addf %18, %23 : vector<4x128xf32>
    %c0_22 = arith.constant 0 : index
    %c10 = arith.constant 10 : index
    %c0_23 = arith.constant 0 : index
    %25 = vector.load %arg2[%c0_22, %c10, %c0_23] : memref<1x24x512xbf16, #tpu.memory_space<vmem>>, vector<1x4x512xbf16>
    %26 = vector.shape_cast %25 : vector<1x4x512xbf16> to vector<4x512xbf16>
    %c4 = arith.constant 4 : index
    %c0_24 = arith.constant 0 : index
    %c0_25 = arith.constant 0 : index
    %27 = vector.load %arg3[%c4, %c0_24, %c0_25] : memref<9x512x128xbf16, #tpu.memory_space<vmem>>, vector<1x512x128xbf16>
    %28 = vector.shape_cast %27 : vector<1x512x128xbf16> to vector<512x128xbf16>
    %cst_26 = arith.constant dense<0.000000e+00> : vector<4x128xf32>
    %29 = tpu.matmul %26, %28, %cst_26 {dimension_numbers = #tpu.dot_dimension_numbers<[1], [0], [0], [1], [0, 0, 1, 1], [], []>} : vector<4x512xbf16>, vector<512x128xbf16>, vector<4x128xf32> -> vector<4x128xf32>
    %30 = arith.addf %24, %29 : vector<4x128xf32>
    %c0_27 = arith.constant 0 : index
    %c18 = arith.constant 18 : index
    %c0_28 = arith.constant 0 : index
    %31 = vector.load %arg2[%c0_27, %c18, %c0_28] : memref<1x24x512xbf16, #tpu.memory_space<vmem>>, vector<1x4x512xbf16>
    %32 = vector.shape_cast %31 : vector<1x4x512xbf16> to vector<4x512xbf16>
    %c5 = arith.constant 5 : index
    %c0_29 = arith.constant 0 : index
    %c0_30 = arith.constant 0 : index
    %33 = vector.load %arg3[%c5, %c0_29, %c0_30] : memref<9x512x128xbf16, #tpu.memory_space<vmem>>, vector<1x512x128xbf16>
    %34 = vector.shape_cast %33 : vector<1x512x128xbf16> to vector<512x128xbf16>
    %cst_31 = arith.constant dense<0.000000e+00> : vector<4x128xf32>
    %35 = tpu.matmul %32, %34, %cst_31 {dimension_numbers = #tpu.dot_dimension_numbers<[1], [0], [0], [1], [0, 0, 1, 1], [], []>} : vector<4x512xbf16>, vector<512x128xbf16>, vector<4x128xf32> -> vector<4x128xf32>
    %36 = arith.addf %30, %35 : vector<4x128xf32>
    %c0_32 = arith.constant 0 : index
    %c4_33 = arith.constant 4 : index
    %c0_34 = arith.constant 0 : index
    %37 = vector.load %arg2[%c0_32, %c4_33, %c0_34] : memref<1x24x512xbf16, #tpu.memory_space<vmem>>, vector<1x4x512xbf16>
    %38 = vector.shape_cast %37 : vector<1x4x512xbf16> to vector<4x512xbf16>
    %c6 = arith.constant 6 : index
    %c0_35 = arith.constant 0 : index
    %c0_36 = arith.constant 0 : index
    %39 = vector.load %arg3[%c6, %c0_35, %c0_36] : memref<9x512x128xbf16, #tpu.memory_space<vmem>>, vector<1x512x128xbf16>
    %40 = vector.shape_cast %39 : vector<1x512x128xbf16> to vector<512x128xbf16>
    %cst_37 = arith.constant dense<0.000000e+00> : vector<4x128xf32>
    %41 = tpu.matmul %38, %40, %cst_37 {dimension_numbers = #tpu.dot_dimension_numbers<[1], [0], [0], [1], [0, 0, 1, 1], [], []>} : vector<4x512xbf16>, vector<512x128xbf16>, vector<4x128xf32> -> vector<4x128xf32>
    %42 = arith.addf %36, %41 : vector<4x128xf32>
    %c0_38 = arith.constant 0 : index
    %c12 = arith.constant 12 : index
    %c0_39 = arith.constant 0 : index
    %43 = vector.load %arg2[%c0_38, %c12, %c0_39] : memref<1x24x512xbf16, #tpu.memory_space<vmem>>, vector<1x4x512xbf16>
    %44 = vector.shape_cast %43 : vector<1x4x512xbf16> to vector<4x512xbf16>
    %c7 = arith.constant 7 : index
    %c0_40 = arith.constant 0 : index
    %c0_41 = arith.constant 0 : index
    %45 = vector.load %arg3[%c7, %c0_40, %c0_41] : memref<9x512x128xbf16, #tpu.memory_space<vmem>>, vector<1x512x128xbf16>
    %46 = vector.shape_cast %45 : vector<1x512x128xbf16> to vector<512x128xbf16>
    %cst_42 = arith.constant dense<0.000000e+00> : vector<4x128xf32>
    %47 = tpu.matmul %44, %46, %cst_42 {dimension_numbers = #tpu.dot_dimension_numbers<[1], [0], [0], [1], [0, 0, 1, 1], [], []>} : vector<4x512xbf16>, vector<512x128xbf16>, vector<4x128xf32> -> vector<4x128xf32>
    %48 = arith.addf %42, %47 : vector<4x128xf32>
    %c0_43 = arith.constant 0 : index
    %c20 = arith.constant 20 : index
    %c0_44 = arith.constant 0 : index
    %49 = vector.load %arg2[%c0_43, %c20, %c0_44] : memref<1x24x512xbf16, #tpu.memory_space<vmem>>, vector<1x4x512xbf16>
    %50 = vector.shape_cast %49 : vector<1x4x512xbf16> to vector<4x512xbf16>
    %c8_45 = arith.constant 8 : index
    %c0_46 = arith.constant 0 : index
    %c0_47 = arith.constant 0 : index
    %51 = vector.load %arg3[%c8_45, %c0_46, %c0_47] : memref<9x512x128xbf16, #tpu.memory_space<vmem>>, vector<1x512x128xbf16>
    %52 = vector.shape_cast %51 : vector<1x512x128xbf16> to vector<512x128xbf16>
    %cst_48 = arith.constant dense<0.000000e+00> : vector<4x128xf32>
    %53 = tpu.matmul %50, %52, %cst_48 {dimension_numbers = #tpu.dot_dimension_numbers<[1], [0], [0], [1], [0, 0, 1, 1], [], []>} : vector<4x512xbf16>, vector<512x128xbf16>, vector<4x128xf32> -> vector<4x128xf32>
    %54 = arith.addf %48, %53 : vector<4x128xf32>
    %c0_49 = arith.constant 0 : index
    %c0_50 = arith.constant 0 : index
    %55 = vector.load %arg4[%c0_49, %c0_50] : memref<1x128xf32, #tpu.memory_space<vmem>>, vector<1x128xf32>
    %56 = vector.broadcast %55 : vector<1x128xf32> to vector<4x128xf32>
    %57 = arith.addf %54, %56 : vector<4x128xf32>
    %c0_51 = arith.constant 0 : index
    %c0_52 = arith.constant 0 : index
    %c0_53 = arith.constant 0 : index
    %58 = vector.load %arg5[%c0_51, %c0_52, %c0_53] : memref<1x4x128xf32, #tpu.memory_space<vmem>>, vector<1x4x128xf32>
    %59 = vector.shape_cast %58 : vector<1x4x128xf32> to vector<4x128xf32>
    %60 = vector.shape_cast %57 : vector<4x128xf32> to vector<1x4x128xf32>
    tpu.vector_store %arg5[%c0_51, %c0_52, %c0_53], %60 {strides = array<i32>} : memref<1x4x128xf32, #tpu.memory_space<vmem>>, vector<1x4x128xf32>,
    return
  }
  func.func @transform_0(%arg0: i32, %arg1: i32) -> (i32, i32, i32) {
    %c0_i32 = arith.constant 0 : i32
    %c0_i32_0 = arith.constant 0 : i32
    %c0_i32_1 = arith.constant 0 : i32
    return %arg0, %c0_i32, %c0_i32_0 : i32, i32, i32
  }
  func.func @transform_1(%arg0: i32, %arg1: i32) -> (i32, i32, i32) {
    %c0_i32 = arith.constant 0 : i32
    %c0_i32_0 = arith.constant 0 : i32
    %c0_i32_1 = arith.constant 0 : i32
    return %c0_i32, %c0_i32_0, %arg1 : i32, i32, i32
  }
  func.func @transform_2(%arg0: i32, %arg1: i32) -> (i32, i32) {
    %c0_i32 = arith.constant 0 : i32
    %c0_i32_0 = arith.constant 0 : i32
    return %c0_i32, %arg1 : i32, i32
  }
  func.func @transform_3(%arg0: i32, %arg1: i32) -> (i32, i32, i32) {
    %c0_i32 = arith.constant 0 : i32
    %c0_i32_0 = arith.constant 0 : i32
    return %arg0, %c0_i32, %arg1 : i32, i32, i32
  }
}

</mosaic_0001>

<bundles_post_ra>
// kernel: discriminator_forward.5
= control target key start
LH: loop header
LB: loop body
LE: loop exit
PB: predicated region body
PF: predicated region fallthrough
CT: control target
= control target key end

     0   :  { %8 = vsyncpa [#allocation3], 0  ;;  %s1881_s12 = smov 0   ;;  %s1883_s13 = smov 0   ;;  %s2097_s0 = inlined_call_operand.vmem [shape: bf16[2,432,3], index: 0, kind: input, shape index: {}]   ;;  %s2098_s1 = inlined_call_operand.vmem [shape: bf16[9,3,64], index: 1, kind: input, shape index: {}]   ;;  %s2099_s2 = inlined_call_operand.hbm [shape: f32[1,64], index: 2, kind: input, shape index: {}]   ;;  %s2100_s3 = inlined_call_operand.vmem [shape: f32[2,64,64], index: 3, kind: output, shape index: {}]  }
   0x1   :  { %s1885_s14 = smov 0  }
   0x2 LB: > { %s1434_s15 = sadd.s32 4294967295, %s1857_s14   ;;  %s26_s16 = sadd.s32 1, %s1853_s13  ;;  %s1857_s14 = sphi %s1885_s14, %s14_s14   ;;  %s1853_s13 = sphi %s1883_s13, %s2110_s13   ;;  %s1849_s12 = sphi %s1881_s12, %s2109_s12  }
   0x3   : > { %p28_p0 = scmp.ge.s32.totalorder %s26_s16, 2  ;;  %p1436_p1 = scmp.ge.s32.totalorder %s1857_s14, 1 }
   0x4   : > { %p137_p2 = scmp.lt.s32.totalorder %s1857_s14, 3  ;;  %p1906_p4 = scmp.eq.s32.totalorder %s1434_s15, 0 }
   0x5   : > { %s2112_s16 = smov (%p28_p0, %s26_s16), 0  ;;  %s1859_s19 = smov [#allocation2]  }
   0x6   : > { %p1902_p3 = pnand %p1436_p1, %p137_p2  ;;  %s159_s20 = sshll.u32 %s1859_s19, 4  ;;  %s160_s20 = int_to_ptr.vmem [resolvable:$true] %s159_s20 }
   0x7   : > { %s2105_s18 = scalar_select %p1906_p4, 1, 0 }
   0x8   : > { %s2104_s17 = scalar_select %p1902_p3, 1, 0 }
   0x9   : > { %p1735_p5 = pneg %p1902_p3  ;;  %s1803_s24 = scalar_lea.hbm %s2099_s2, 16 }
   0xa   : > { %p1804_p7 = scmp.ne.s32.totalorder %s2099_s2, %s1803_s24  ;;  %p1810_p11 = scmp.lt.u32.totalorder %s1803_s24, %s2099_s2 }
   0xb   : > { %p1914_p6 = pnand %p1906_p4, %p1735_p5 }
   0xd   : > { %p1805_p8 = pneg %p1914_p6 }
   0xf   : > { %p1806_p9 = pnand %p1805_p8, %p1804_p7 }
  0x11   : > { %p1807_p10 = pneg %p1806_p9 }
  0x13   : > { %p1812_p12 = pnand %p1810_p11, %p1807_p10 }
  0x15   : > { %1815 = shalt.err (!%p1812_p12)
}
  0x16   : > { %s1816_s29 = scalar_lea.vmem %s160_s20, 16  ;;  %s1823_s30 = scalar_lea.vmem %s160_s20, 32 }
  0x17   : > { %p1817_p13 = scmp.ne.s32.totalorder %s160_s20, %s1816_s29  ;;  %p1824_p2 = scmp.lt.s32.totalorder %s160_s20, %s160_s20 }
  0x18   : > { %p1825_p5 = scmp.lt.s32.totalorder %s1823_s30, %s1816_s29 }
  0x19   : > { %p1819_p0 = pnand %p1817_p13, %p1805_p8 }
  0x1a   : > { %p1826_p4 = por %p1825_p5, %p1824_p2 }
  0x1b   : > { %p1820_p1 = pneg %p1819_p0 }
  0x1d   : > { %p1827_p3 = pnand %p1826_p4, %p1820_p1 }
  0x1f   : > { %1830 = shalt.err (!%p1827_p3)
}
  0x20   : > { %1738 = dma.hbm_to_vmem [thread:$0]  (!%p1914_p6), %s2099_s2, 16, %s160_s20, [#allocation3]  }
  0x21   : > { %p2107_p7 = scmp.ne.s32.totalorder %s2104_s17, 0 }
  0x22   : > { %p2108_p9 = scmp.ne.s32.totalorder (!%p2107_p7), %s2105_s18, 0 }
  0x23   : > { %180 = sbr.rel (%p2107_p7) target bundleno = 343 (0x157), region = 32 }
  0x2a   : > { %1844 = dma.done.wait (%p2108_p9), [#allocation3], 16  }
  0x2b   : > { %1846 = vsyncadd (%p2108_p9), [#allocation3], 4294967280  ;;  %vm281_vm0 = vcmask 1040384   ;;  %p211_p4 = scmp.lt.s32.totalorder %s1849_s12, 1  ;;  %vm282_vm1 = vcmask 1041408   ;;  %v1860_v0 = vmov 65535  }
  0x2c   : > { %v283_v1 = vsel %vm281_vm0, 4294967295, %v1860_v0  ;;  %v1445_v3 = vld [vmem:[%s2098_s1 + $0x2] sm:$0x3]  ;;  %v1480_v4 = vld [vmem:[%s2098_s1 + $0x8] sm:$0x3]  ;;  %vm268_vm2 = vcmask 23552  }
  0x2d   : > { %s2114_s12 = smov (!%p211_p4, %s1849_s12), 1  ;;  %v1945_v2 = vsel %vm282_vm1, %v283_v1, 0  ;;  %v237_v10 = vld [vmem:[%s2098_s1] sm:$0x3]  ;;  %v1489_v13 = vld [vmem:[%s2098_s1 + $0xa] sm:$0x3] }
  0x2e   : > { %s1730_s6 = smul.u32 216, %s2114_s12  ;;  %v286_v5 = vand.u32 %v1445_v3, %v1945_v2  ;;  %v1960_v6 = vand.u32 %v1480_v4, %v1945_v2  ;;  %v386_v11 = vand.u32 %v1945_v2, %v237_v10  ;;  %v850_v14 = vand.u32 %v1489_v13, %v1945_v2  ;;  %v1498_v17 = vld [vmem:[%s2098_s1 + $0xc] sm:$0x3]  ;;  %v1462_v20 = vld [vmem:[%s2098_s1 + $0x4] sm:$0x3]  ;;  %s1528_s5 = sshll.u32 %s2114_s12, 6 }
  0x2f   : > { %v968_v18 = vand.u32 %v1498_v17, %v1945_v2  ;;  %v496_v22 = vand.u32 %v1462_v20, %v1945_v2  ;;  %v1507_v25 = vld [vmem:[%s2098_s1 + $0xe] sm:$0x3]  ;;  %v1471_v29 = vld [vmem:[%s2098_s1 + $0x6] sm:$0x3]  ;;  %v1516_v35 = vld [vmem:[%s2098_s1 + $0x10] sm:$0x3]  ;;  %s2070_s8 = scalar_lea.vmem %s2100_s3, %s1528_s5 }
  0x30   : > { %s1950_s9 = scalar_lea.vmem %s2097_s0, %s1730_s6  ;;  %1574 = vmatprep.subr.bf16.mxu1 %v286_v5  ;;  %1614 = vmatprep.subr.bf16.mxu0 %v1960_v6  ;;  %v1086_v27 = vand.u32 %v1507_v25, %v1945_v2  ;;  %v614_v30 = vand.u32 %v1471_v29, %v1945_v2  ;;  %v1204_v38 = vand.u32 %v1516_v35, %v1945_v2  ;;  %v1525_v62 = vld [vmem:[#allocation2] ss:$0 sm:$0xff]  ;;  %vm1318_vm4 = vcmask 523264  }
  0x31   : > { %v1767_v7 = vld [vmem:[%s1950_s9 + $0x48] sm:$0xff]   ;;  %v1769_v9 = vld [vmem:[%s1950_s9 + $0x50] sm:$0xff]   ;;  %1575 = vmatpush3.bf16.msra.mxu1 %v286_v5  ;;  %1615 = vmatpush3.bf16.msra.mxu0 %v1960_v6  ;;  %v1771_v15 = vld [vmem:[%s1950_s9 + $0x58] sm:$0xff]  }
  0x32   : > { %v1768_v8 = vld [vmem:[%s1950_s9 + $0x6c] sm:$0xff]   ;;  %v1770_v12 = vld [vmem:[%s1950_s9 + $0x74] sm:$0xff]   ;;  %1576 = vmatprep.mubr.msk.bf16.mxu1 %vm268_vm2, %v1767_v7  ;;  %1584 = vmatprep.subr.bf16.mxu1 %v386_v11  ;;  %v1772_v19 = vld [vmem:[%s1950_s9 + $0x60] sm:$0xff]  }
  0x33   : > { %1616 = vmatprep.mubr.msk.bf16.mxu0 %vm268_vm2, %v1768_v8  ;;  %1624 = vmatprep.subr.bf16.mxu0 %v850_v14  ;;  %v1773_v16 = vld [vmem:[%s1950_s9 + $0xb4] sm:$0xff]   ;;  %v1775_v21 = vld [vmem:[%s1950_s9] sm:$0xff]   ;;  %v1776_v26 = vld [vmem:[%s1950_s9 + $0x8] sm:$0xff]  }
  0x34   : > { %1577 = vmatmul.mubr.msk.bf16.vlgmr.msra.gmra.mrb[0].mxu1 %vm268_vm2, %v1769_v9  ;;  %1617 = vmatmul.mubr.msk.bf16.vlgmr.msra.gmra.mrb[0].mxu0 %vm268_vm2, %v1770_v12  ;;  %v1774_v23 = vld [vmem:[%s1950_s9 + $0xbc] sm:$0xff]   ;;  %v1777_v24 = vld [vmem:[%s1950_s9 + $0xc4] sm:$0xff]   ;;  %v1779_v28 = vld [vmem:[%s1950_s9 + $0x10] sm:$0xff]  }
  0x35   : > { %1585 = vmatpush3.bf16.msra.mxu1 %v386_v11  ;;  %1625 = vmatpush3.bf16.msra.mxu0 %v850_v14  ;;  %v1778_v31 = vld [vmem:[%s1950_s9 + $0xcc] sm:$0xff]   ;;  %v1781_v32 = vld [vmem:[%s1950_s9 + $0x4] sm:$0xff]   ;;  %v1780_v33 = vld [vmem:[%s1950_s9 + $0x18] sm:$0xff]  }
  0x36   : > { %1580 = vmatprep.mubr.msk.bf16.mxu1 %vm268_vm2, %v1771_v15  ;;  %1626 = vmatprep.mubr.msk.bf16.mxu0 %vm268_vm2, %v1773_v16  ;;  %v1783_v34 = vld [vmem:[%s1950_s9 + $0x90] sm:$0xff]   ;;  %v1784_v39 = vld [vmem:[%s1950_s9 + $0x98] sm:$0xff]   ;;  %v1787_v40 = vld [vmem:[%s1950_s9 + $0xa0] sm:$0xff]  }
  0x37   : > { %1634 = vmatprep.subr.bf16.mxu0 %v968_v18  ;;  %1594 = vmatprep.subr.bf16.mxu1 %v496_v22  ;;  %v1782_v36 = vld [vmem:[%s1950_s9 + $0xc] sm:$0xff]   ;;  %v1785_v37 = vld [vmem:[%s1950_s9 + $0x14] sm:$0xff]   ;;  %v1786_v41 = vld [vmem:[%s1950_s9 + $0x1c] sm:$0xff]  }
  0x38   : > { %v1789_v42 = vld [vmem:[%s1950_s9 + $0x4c] sm:$0xff]   ;;  %v1791_v44 = vld [vmem:[%s1950_s9 + $0x24] sm:$0xff]   ;;  %v1790_v45 = vld [vmem:[%s1950_s9 + $0x54] sm:$0xff]  }
  0x39   : > { %v1788_v43 = vld [vmem:[%s1950_s9 + $0xa8] sm:$0xff]   ;;  %v1793_v46 = vld [vmem:[%s1950_s9 + $0x5c] sm:$0xff]   ;;  %v1795_v48 = vld [vmem:[%s1950_s9 + $0x34] sm:$0xff]  }
  0x3a   : > { %v1792_v47 = vld [vmem:[%s1950_s9 + $0x2c] sm:$0xff]   ;;  %v1794_v49 = vld [vmem:[%s1950_s9 + $0x64] sm:$0xff]   ;;  %v1797_v50 = vld [vmem:[%s1950_s9 + $0x94] sm:$0xff]  }
  0x3b   : > { %v1796_v51 = vld [vmem:[%s1950_s9 + $0x3c] sm:$0xff]   ;;  %v1800_v54 = vld [vmem:[%s1950_s9 + $0xa4] sm:$0xff]   ;;  %v1802_v56 = vld [vmem:[%s1950_s9 + $0xac] sm:$0xff]  }
  0x3c   : > { %1581 = vmatmul.mubr.msk.bf16.gmra.mrb[4].mxu1 %vm268_vm2, %v1772_v19  ;;  %v1799_v52 = vld [vmem:[%s1950_s9 + $0x7c] sm:$0xff]   ;;  %v1801_v55 = vld [vmem:[%s1950_s9 + $0x84] sm:$0xff]  }
  0x3d   : > { %1586 = vmatprep.mubr.msk.bf16.mxu1 %vm268_vm2, %v1775_v21  ;;  %v1798_v53 = vld [vmem:[%s1950_s9 + $0x9c] sm:$0xff]  }
  0x40   : > { %1627 = vmatmul.mubr.msk.bf16.vlgmr.msra.gmra.mrb[0].mxu0 %vm268_vm2, %v1774_v23 }
  0x41   : > { %1635 = vmatpush3.bf16.msra.mxu0 %v968_v18  ;;  %1630 = vmatprep.mubr.msk.bf16.mxu0 %vm268_vm2, %v1777_v24 }
  0x42   : > { %1644 = vmatprep.subr.bf16.mxu0 %v1086_v27 }
  0x44   : > { %1587 = vmatmul.mubr.msk.bf16.vlgmr.msra.gmra.mrb[0].mxu1 %vm268_vm2, %v1776_v26 }
  0x45   : > { %1595 = vmatpush3.bf16.msra.mxu1 %v496_v22  ;;  %1590 = vmatprep.mubr.msk.bf16.mxu1 %vm268_vm2, %v1779_v28 }
  0x46   : > { %1604 = vmatprep.subr.bf16.mxu1 %v614_v30 }
  0x48   : > { %1631 = vmatmul.mubr.msk.bf16.gmra.mrb[4].mxu0 %vm268_vm2, %v1778_v31 }
  0x49   : > { %1636 = vmatprep.mubr.msk.bf16.mxu0 %vm268_vm2, %v1781_v32 }
  0x4c   : > { %1591 = vmatmul.mubr.msk.bf16.gmra.mrb[4].mxu1 %vm268_vm2, %v1780_v33 }
  0x4d   : > { %1596 = vmatprep.mubr.msk.bf16.mxu1 %vm268_vm2, %v1783_v34 }
  0x50   : > { %1637 = vmatmul.mubr.msk.bf16.vlgmr.msra.gmra.mrb[0].mxu0 %vm268_vm2, %v1782_v36 }
  0x51   : > { %1645 = vmatpush3.bf16.msra.mxu0 %v1086_v27  ;;  %1640 = vmatprep.mubr.msk.bf16.mxu0 %vm268_vm2, %v1785_v37 }
  0x52   : > { %1654 = vmatprep.subr.bf16.mxu0 %v1204_v38 }
  0x54   : > { %1597 = vmatmul.mubr.msk.bf16.vlgmr.msra.gmra.mrb[0].mxu1 %vm268_vm2, %v1784_v39 }
  0x55   : > { %1605 = vmatpush3.bf16.msra.mxu1 %v614_v30  ;;  %1600 = vmatprep.mubr.msk.bf16.mxu1 %vm268_vm2, %v1787_v40 }
  0x56   : > { %1664 = vmatprep.subr.bf16.mxu1 %v1960_v6 }
  0x58   : > { %1641 = vmatmul.mubr.msk.bf16.gmra.mrb[4].mxu0 %vm268_vm2, %v1786_v41 }
  0x59   : > { %1646 = vmatprep.mubr.msk.bf16.mxu0 %vm268_vm2, %v1789_v42 }
  0x5c   : > { %1601 = vmatmul.mubr.msk.bf16.gmra.mrb[4].mxu1 %vm268_vm2, %v1788_v43 }
  0x5d   : > { %1606 = vmatprep.mubr.msk.bf16.mxu1 %vm268_vm2, %v1791_v44 }
  0x60   : > { %1647 = vmatmul.mubr.msk.bf16.vlgmr.msra.gmra.mrb[0].mxu0 %vm268_vm2, %v1790_v45 }
  0x61   : > { %1655 = vmatpush3.bf16.msra.mxu0 %v1204_v38  ;;  %1650 = vmatprep.mubr.msk.bf16.mxu0 %vm268_vm2, %v1793_v46 }
  0x64   : > { %1607 = vmatmul.mubr.msk.bf16.vlgmr.msra.gmra.mrb[0].mxu1 %vm268_vm2, %v1792_v47 }
  0x65   : > { %1665 = vmatpush3.bf16.msra.mxu1 %v1960_v6  ;;  %1610 = vmatprep.mubr.msk.bf16.mxu1 %vm268_vm2, %v1795_v48 }
  0x68   : > { %1651 = vmatmul.mubr.msk.bf16.gmra.mrb[4].mxu0 %vm268_vm2, %v1794_v49 }
  0x69   : > { %1656 = vmatprep.mubr.msk.bf16.mxu0 %vm268_vm2, %v1797_v50 }
  0x6c   : > { %1611 = vmatmul.mubr.msk.bf16.gmra.mrb[4].mxu1 %vm268_vm2, %v1796_v51 }
  0x6d   : > { %1620 = vmatprep.mubr.msk.bf16.mxu1 %vm268_vm2, %v1799_v52 }
  0x70   : > { %1657 = vmatmul.mubr.msk.bf16.vlgmr.msra.gmra.mrb[0].mxu0 %vm268_vm2, %v1798_v53 }
  0x71   : > { %1660 = vmatprep.mubr.msk.bf16.mxu0 %vm268_vm2, %v1800_v54 }
  0x78   : > { %1621 = vmatmul.mubr.msk.bf16.vlgmr.msra.gmra.mrb[4].mxu1 %vm268_vm2, %v1801_v55  ;;  %1661 = vmatmul.mubr.msk.bf16.gmra.mrb[4].mxu0 %vm268_vm2, %v1802_v56 }
 0x137   : > { %v1608_v57 = vpop.f32.mrb[0].mxu1 }
 0x138   : > { %v650_v58 = vpop.f32.mrb[1].mxu1 }
 0x139   : > { %v1609_v59 = vpop.f32.mrb[2].mxu1 }
 0x13a   : > { %v653_v60 = vpop.f32.mrb[3].mxu1 }
 0x143   : > { %v1658_v61 = vpop.f32.mrb[0].mxu0 }
 0x144   : > { %v1666_v63 = vadd.f32 %v1658_v61, %v1608_v57  ;;  %v1240_v0 = vpop.f32.mrb[1].mxu0 }
 0x145   : > { %v1667_v1 = vadd.f32 %v1240_v0, %v650_v58  ;;  %v1659_v2 = vpop.f32.mrb[2].mxu0 }
 0x146   : > { %v1288_v3 = vadd.f32 %v1666_v63, %v1525_v62  ;;  %v1668_v4 = vadd.f32 %v1659_v2, %v1609_v59  ;;  %v1243_v5 = vpop.f32.mrb[3].mxu0 }
 0x147   : > { %v1286_v6 = vadd.f32 %v1667_v1, %v1525_v62  ;;  %v1669_v7 = vadd.f32 %v1243_v5, %v653_v60 }
 0x148   : > { %vm1296_vm3 = vcmp.ge.f32.partialorder %v1288_v3, 0.0  ;;  %v1304_v8 = vmul.f32 0.2, %v1288_v3  ;;  %v1289_v9 = vadd.f32 %v1668_v4, %v1525_v62 }
 0x149   : > { %vm1294_vm5 = vcmp.ge.f32.partialorder %v1286_v6, 0.0  ;;  %v1302_v10 = vmul.f32 0.2, %v1286_v6  ;;  %v1287_v11 = vadd.f32 %v1669_v7, %v1525_v62 }
 0x14a   : > { %v1312_v12 = vsel %vm1296_vm3, %v1288_v3, %v1304_v8  ;;  %vm1297_vm6 = vcmp.ge.f32.partialorder %v1289_v9, 0.0  ;;  %v1305_v13 = vmul.f32 0.2, %v1289_v9 }
 0x14b   : > { %1321 = vst.msk [vmem:[%s2070_s8 + $0x10] sm:$0xff] %vm1318_vm4, %v1312_v12  ;;  %v1310_v14 = vsel %vm1294_vm5, %v1286_v6, %v1302_v10  ;;  %vm1295_vm7 = vcmp.ge.f32.partialorder %v1287_v11, 0.0  ;;  %v1303_v15 = vmul.f32 0.2, %v1287_v11  ;;  %v1622_v16 = vpop.f32.mrb[4].mxu1  ;;  %v1662_v17 = vpop.f32.mrb[4].mxu0 }
 0x14c   : > { %1319 = vst.msk [vmem:[%s2070_s8] sm:$0xff] %vm1318_vm4, %v1310_v14  ;;  %v1313_v18 = vsel %vm1297_vm6, %v1289_v9, %v1305_v13  ;;  %v1670_v19 = vadd.f32 %v1662_v17, %v1622_v16  ;;  %v784_v20 = vpop.f32.mrb[5].mxu1  ;;  %v1256_v21 = vpop.f32.mrb[5].mxu0 }
 0x14d   : > { %1322 = vst.msk [vmem:[%s2070_s8 + $0x18] sm:$0xff] %vm1318_vm4, %v1313_v18  ;;  %v1311_v22 = vsel %vm1295_vm7, %v1287_v11, %v1303_v15  ;;  %v1671_v23 = vadd.f32 %v1256_v21, %v784_v20  ;;  %v1623_v24 = vpop.f32.mrb[6].mxu1  ;;  %v1663_v25 = vpop.f32.mrb[6].mxu0 }
 0x14e   : > { %1320 = vst.msk [vmem:[%s2070_s8 + $0x8] sm:$0xff] %vm1318_vm4, %v1311_v22  ;;  %v1292_v26 = vadd.f32 %v1670_v19, %v1525_v62  ;;  %v1672_v27 = vadd.f32 %v1663_v25, %v1623_v24  ;;  %v787_v28 = vpop.f32.mrb[7].mxu1  ;;  %v1259_v29 = vpop.f32.mrb[7].mxu0 }
 0x14f   : > { %v1290_v30 = vadd.f32 %v1671_v23, %v1525_v62  ;;  %v1673_v31 = vadd.f32 %v1259_v29, %v787_v28 }
 0x150   : > { %vm1300_vm8 = vcmp.ge.f32.partialorder %v1292_v26, 0.0  ;;  %v1308_v32 = vmul.f32 0.2, %v1292_v26  ;;  %v1293_v33 = vadd.f32 %v1672_v27, %v1525_v62 }
 0x151   : > { %vm1298_vm9 = vcmp.ge.f32.partialorder %v1290_v30, 0.0  ;;  %v1306_v34 = vmul.f32 0.2, %v1290_v30  ;;  %v1291_v35 = vadd.f32 %v1673_v31, %v1525_v62 }
 0x152   : > { %v1316_v36 = vsel %vm1300_vm8, %v1292_v26, %v1308_v32  ;;  %vm1301_vm10 = vcmp.ge.f32.partialorder %v1293_v33, 0.0  ;;  %v1309_v37 = vmul.f32 0.2, %v1293_v33 }
 0x153   : > { %1325 = vst.msk [vmem:[%s2070_s8 + $0x30] sm:$0xff] %vm1318_vm4, %v1316_v36  ;;  %v1314_v38 = vsel %vm1298_vm9, %v1290_v30, %v1306_v34  ;;  %vm1299_vm11 = vcmp.ge.f32.partialorder %v1291_v35, 0.0  ;;  %v1307_v39 = vmul.f32 0.2, %v1291_v35 }
 0x154   : > { %1323 = vst.msk [vmem:[%s2070_s8 + $0x20] sm:$0xff] %vm1318_vm4, %v1314_v38  ;;  %v1317_v40 = vsel %vm1301_vm10, %v1293_v33, %v1309_v37 }
 0x155   : > { %1326 = vst.msk [vmem:[%s2070_s8 + $0x38] sm:$0xff] %vm1318_vm4, %v1317_v40  ;;  %v1315_v41 = vsel %vm1299_vm11, %v1291_v35, %v1307_v39 }
 0x156   : > { %1324 = vst.msk [vmem:[%s2070_s8 + $0x28] sm:$0xff] %vm1318_vm4, %v1315_v41 }
 0x157 PF: > { %s14_s14 = sadd.s32 1, %s1857_s14   ;;  %s2109_s12 = smov %s1853_s13 }
 0x158   : > { %p11_p3 = scmp.ge.s32.totalorder %s14_s14, 4   ;;  %s2110_s13 = smov %s2112_s16 }
 0x15a   :  { %13 = sbr.rel (!%p11_p3) target bundleno = 2 (0x2), region = 79 }
 0x161   :  { %1354 = vsyncpa [#allocation3], 1 }
 0x162   :  { %1356 = vsyncpa [#allocation3 + $0x1], 1 }

// kernel: discriminator_forward.6
= control target key start
LH: loop header
LB: loop body
LE: loop exit
PB: predicated region body
PF: predicated region fallthrough
CT: control target
= control target key end

     0   :  { %s1600_s12 = smov 0   ;;  %s1602_s13 = smov 0   ;;  %s1834_s0 = inlined_call_operand.vmem [shape: bf16[2,120,64], index: 0, kind: input, shape index: {}]   ;;  %s1835_s1 = inlined_call_operand.vmem [shape: bf16[9,64,128], index: 1, kind: input, shape index: {}]   ;;  %s1836_s2 = inlined_call_operand.vmem [shape: f32[1,128], index: 2, kind: input, shape index: {}]   ;;  %s1837_s3 = inlined_call_operand.vmem [shape: f32[2,16,128], index: 3, kind: output, shape index: {}]  }
   0x1   :  { %s1604_s14 = smov 0  }
   0x2 LB: > { %s25_s15 = sadd.s32 1, %s1572_s13  ;;  %p1189_p0 = scmp.ge.s32.totalorder %s1576_s14, 1  ;;  %s1576_s14 = sphi %s1604_s14, %s13_s14   ;;  %s1572_s13 = sphi %s1602_s13, %s1839_s13   ;;  %s1568_s12 = sphi %s1600_s12, %s1838_s12  }
   0x3   : > { %p27_p1 = scmp.ge.s32.totalorder %s25_s15, 2  ;;  %p168_p2 = scmp.lt.s32.totalorder %s1576_s14, 3 }
   0x5   : > { %s1841_s15 = smov (%p27_p1, %s25_s15), 0  ;;  %p169_p3 = pnand %p1189_p0, %p168_p2 }
   0x6   : > { %v1501_v0 = vld [vmem:[%s1835_s1 + $0x20] sm:$0xff] (!%p169_p3)   ;;  %v1578_v1 = vmov (!%p169_p3), 0.0   ;;  %v1503_v3 = vld [vmem:[%s1835_s1 + $0x28] sm:$0xff] (!%p169_p3)   ;;  %vm1579_vm0 = vmmov (!%p169_p3), 0   ;;  %p202_p4 = scmp.lt.s32.totalorder (!%p169_p3), %s1568_s12, 1  ;;  %v1505_v5 = vld [vmem:[%s1835_s1 + $0x30] sm:$0xff] (!%p169_p3)  }
   0x7   : > { %172 = sbr.rel (%p169_p3) target bundleno = 360 (0x168), region = 32  ;;  %1366 = vmatprep.subr.bf16.mxu0 (!%p169_p3), %v1578_v1  ;;  %1378 = vmatprep.subr.bf16.mxu1 (!%p169_p3), %v1578_v1  ;;  %v1502_v2 = vld [vmem:[%s1835_s1] sm:$0xff] (!%p169_p3)   ;;  %v1504_v4 = vld [vmem:[%s1835_s1 + $0x8] sm:$0xff] (!%p169_p3)   ;;  %v1506_v6 = vld [vmem:[%s1835_s1 + $0x10] sm:$0xff] (!%p169_p3)   ;;  %vm273_vm1 = vcmask (!%p169_p3), 523264   ;;  %vm497_vm2 = vcmask (!%p169_p3), 1045504  }
   0x8   : > { %1367 = vmatpush3.bf16.msra.mxu0 (!%p169_p3), %v1501_v0  ;;  %1374 = vmatprep.mubr.msk.bf16.mxu0 (!%p169_p3), %vm1579_vm0, %v1578_v1  ;;  %v1507_v7 = vld [vmem:[%s1835_s1 + $0x38] sm:$0xff] (!%p169_p3)   ;;  %v1511_v9 = vld [vmem:[%s1835_s1 + $0x40] sm:$0xff] (!%p169_p3)   ;;  %v1513_v13 = vld [vmem:[%s1835_s1 + $0x48] sm:$0xff] (!%p169_p3)  }
   0x9   : > { %1379 = vmatpush3.bf16.msra.mxu1 (!%p169_p3), %v1502_v2  ;;  %1368 = vmatprep.subr.bf16.mxu0 (!%p169_p3), %v1578_v1  ;;  %v1508_v8 = vld [vmem:[%s1835_s1 + $0x18] sm:$0xff] (!%p169_p3)   ;;  %v1512_v12 = vld [vmem:[%s1835_s1 + $0x60] sm:$0xff] (!%p169_p3)   ;;  %v1514_v14 = vld [vmem:[%s1835_s1 + $0x68] sm:$0xff] (!%p169_p3)  }
   0xa   : > { %1380 = vmatprep.subr.bf16.mxu1 (!%p169_p3), %v1578_v1  ;;  %1386 = vmatprep.mubr.msk.bf16.mxu1 (!%p169_p3), %vm1579_vm0, %v1578_v1  ;;  %v1515_v15 = vld [vmem:[%s1835_s1 + $0x50] sm:$0xff] (!%p169_p3)   ;;  %v1517_v19 = vld [vmem:[%s1835_s1 + $0x58] sm:$0xff] (!%p169_p3)   ;;  %v1520_v24 = vld [vmem:[%s1835_s1 + $0x80] sm:$0xff] (!%p169_p3)  }
   0xb   : > { %v1516_v17 = vld [vmem:[%s1835_s1 + $0x70] sm:$0xff] (!%p169_p3)   ;;  %v1518_v20 = vld [vmem:[%s1835_s1 + $0x78] sm:$0xff] (!%p169_p3)   ;;  %v1523_v26 = vld [vmem:[%s1835_s1 + $0xa0] sm:$0xff] (!%p169_p3)  }
   0xc   : > { %1369 = vmatpush3.bf16.msra.mxu0 (!%p169_p3), %v1503_v3  ;;  %v1524_v27 = vld [vmem:[%s1835_s1 + $0x88] sm:$0xff] (!%p169_p3)   ;;  %v1526_v29 = vld [vmem:[%s1835_s1 + $0x90] sm:$0xff] (!%p169_p3)   ;;  %v1528_v35 = vld [vmem:[%s1835_s1 + $0x98] sm:$0xff] (!%p169_p3)  }
   0xd   : > { %1381 = vmatpush3.bf16.msra.mxu1 (!%p169_p3), %v1504_v4  ;;  %1370 = vmatprep.subr.bf16.mxu0 (!%p169_p3), %v1578_v1  ;;  %v1525_v28 = vld [vmem:[%s1835_s1 + $0xa8] sm:$0xff] (!%p169_p3)   ;;  %v1527_v31 = vld [vmem:[%s1835_s1 + $0xb0] sm:$0xff] (!%p169_p3)   ;;  %v1529_v36 = vld [vmem:[%s1835_s1 + $0xb8] sm:$0xff] (!%p169_p3)  }
   0xe   : > { %s1843_s12 = smov (!%p202_p4, %s1568_s12), 1  ;;  %1382 = vmatprep.subr.bf16.mxu1 %v1578_v1  ;;  %v1532_v42 = vld [vmem:[%s1835_s1 + $0xc0] sm:$0xff]   ;;  %v1536_v45 = vld [vmem:[%s1835_s1 + $0xc8] sm:$0xff]   ;;  %v1538_v47 = vld [vmem:[%s1835_s1 + $0xd0] sm:$0xff]  }
   0xf   : > { %s1474_s26 = smul.u32 60, %s1843_s12  ;;  %v1535_v44 = vld [vmem:[%s1835_s1 + $0xe0] sm:$0xff]   ;;  %v1537_v46 = vld [vmem:[%s1835_s1 + $0xe8] sm:$0xff]   ;;  %v1539_v50 = vld [vmem:[%s1835_s1 + $0xf0] sm:$0xff]  }
  0x10   : > { %1371 = vmatpush3.bf16.msra.mxu0 %v1505_v5  ;;  %v1540_v53 = vld [vmem:[%s1835_s1 + $0xd8] sm:$0xff]   ;;  %v1544_v60 = vld [vmem:[%s1835_s1 + $0x100] sm:$0xff]   ;;  %v1547_v62 = vld [vmem:[%s1835_s1 + $0x108] sm:$0xff]  }
  0x11   : > { %s1652_s4 = scalar_lea.vmem %s1834_s0, %s1474_s26  ;;  %1383 = vmatpush3.bf16.msra.mxu1 %v1506_v6  ;;  %1372 = vmatprep.subr.bf16.mxu0 %v1578_v1  ;;  %v1541_v56 = vld [vmem:[%s1835_s1 + $0xf8] sm:$0xff]   ;;  %v1548_v63 = vld [vmem:[%s1835_s1 + $0x110] sm:$0xff]   ;;  %s1320_s26 = sshll.u32 %s1843_s12, 4 }
  0x12   : > { %1384 = vmatprep.subr.bf16.mxu1 %v1578_v1  ;;  %v1509_v10 = vld [vmem:[%s1652_s4 + $0x14] sm:$0xff]   ;;  %v1510_v11 = vld [vmem:[%s1652_s4] sm:$0xff]   ;;  %v1521_v16 = vld [vmem:[%s1652_s4 + $0x8] sm:$0xfc]   ;;  %s221_s29 = scalar_lea.vmem %s1837_s3, %s1320_s26 }
  0x13   : > { %v1522_v18 = vld [vmem:[%s1652_s4 + $0x10] ss:$0 sps:$4 sm:$0x33]   ;;  %v498_v21 = vrot.slane %v1521_v16, 2  ;;  %v1519_v23 = vld [vmem:[%s1652_s4 + $0x28] sm:$0xff]   ;;  %v1549_v3 = vld [vmem:[%s1835_s1 + $0x118] sm:$0xff]  }
  0x14   : > { %1373 = vmatpush3.bf16.msra.mxu0 %v1507_v7  ;;  %v499_v22 = vrot.slane %v1522_v18, 2  ;;  %v1531_v30 = vld [vmem:[%s1652_s4 + $0x24] ss:$0 sps:$4 sm:$0x33]   ;;  %v1530_v33 = vld [vmem:[%s1652_s4 + $0x1c] sm:$0xfc]  }
  0x15   : > { %1385 = vmatpush3.bf16.msra.mxu1 %v1508_v8  ;;  %1390 = vmatprep.subr.bf16.mxu0 %v1578_v1  ;;  %v1534_v32 = vld [vmem:[%s1652_s4 + $0x38] ss:$0 sps:$4 sm:$0x33]   ;;  %v1533_v34 = vld [vmem:[%s1652_s4 + $0x30] sm:$0xfc]   ;;  %v591_v37 = vrot.slane %v1530_v33, 2 }
  0x16   : > { %1402 = vmatprep.subr.bf16.mxu1 %v1578_v1  ;;  %v500_v25 = vsel %vm497_vm2, %v498_v21, %v499_v22  ;;  %v592_v38 = vrot.slane %v1531_v30, 2  ;;  %v684_v39 = vrot.slane %v1533_v34, 2  ;;  %v685_v40 = vrot.slane %v1534_v32, 2  ;;  %v1542_v48 = vld [vmem:[%s1652_s4] sm:$0xfc]  }
  0x17   : > { %1375 = vmatmul.mubr.msk.bf16.vlgmr.msra.gmra.mrb[0].mxu0 %vm273_vm1, %v1509_v10  ;;  %v1543_v49 = vld [vmem:[%s1652_s4 + $0x8] ss:$0 sps:$4 sm:$0x33]   ;;  %v1545_v51 = vld [vmem:[%s1652_s4 + $0x14] sm:$0xfc]   ;;  %v777_v54 = vrot.slane %v1542_v48, 2 }
  0x18   : > { %1387 = vmatmul.mubr.msk.bf16.vlgmr.msra.gmra.mrb[0].mxu1 %vm273_vm1, %v1510_v11  ;;  %1391 = vmatpush3.bf16.msra.mxu0 %v1511_v9  ;;  %v593_v41 = vsel %vm497_vm2, %v591_v37, %v592_v38  ;;  %v686_v43 = vsel %vm497_vm2, %v684_v39, %v685_v40  ;;  %v1546_v52 = vld [vmem:[%s1652_s4 + $0x1c] ss:$0 sps:$4 sm:$0x33]   ;;  %v778_v55 = vrot.slane %v1543_v49, 2  ;;  %v870_v57 = vrot.slane %v1545_v51, 2 }
  0x19   : > { %1403 = vmatpush3.bf16.msra.mxu1 %v1512_v12  ;;  %1392 = vmatprep.subr.bf16.mxu0 %v1578_v1  ;;  %v871_v58 = vrot.slane %v1546_v52, 2  ;;  %v1550_v0 = vld [vmem:[%s1652_s4 + $0x28] sm:$0xfc]   ;;  %v1551_v2 = vld [vmem:[%s1652_s4 + $0x30] ss:$0 sps:$4 sm:$0x33]  }
  0x1a   : > { %1404 = vmatprep.subr.bf16.mxu1 %v1578_v1  ;;  %1398 = vmatprep.mubr.msk.bf16.mxu0 %vm1579_vm0, %v1578_v1  ;;  %v779_v59 = vsel %vm497_vm2, %v777_v54, %v778_v55  ;;  %v963_v4 = vrot.slane %v1550_v0, 2  ;;  %v964_v5 = vrot.slane %v1551_v2, 2  ;;  %v1317_v55 = vld [vmem:[%s1836_s2] ss:$0 sm:$0xff] }
  0x1b   : > { %1410 = vmatprep.mubr.msk.bf16.mxu1 %vm1579_vm0, %v1578_v1  ;;  %v872_v61 = vsel %vm497_vm2, %v870_v57, %v871_v58 }
  0x1c   : > { %1393 = vmatpush3.bf16.msra.mxu0 %v1513_v13  ;;  %v965_v6 = vsel %vm497_vm2, %v963_v4, %v964_v5 }
  0x1d   : > { %1405 = vmatpush3.bf16.msra.mxu1 %v1514_v14  ;;  %1394 = vmatprep.subr.bf16.mxu0 %v1578_v1 }
  0x1e   : > { %1406 = vmatprep.subr.bf16.mxu1 %v1578_v1 }
  0x20   : > { %1395 = vmatpush3.bf16.msra.mxu0 %v1515_v15 }
  0x21   : > { %1407 = vmatpush3.bf16.msra.mxu1 %v1516_v17  ;;  %1396 = vmatprep.subr.bf16.mxu0 %v1578_v1 }
  0x22   : > { %1408 = vmatprep.subr.bf16.mxu1 %v1578_v1 }
  0x24   : > { %1397 = vmatpush3.bf16.msra.mxu0 %v1517_v19 }
  0x25   : > { %1409 = vmatpush3.bf16.msra.mxu1 %v1518_v20  ;;  %1414 = vmatprep.subr.bf16.mxu0 %v1578_v1 }
  0x26   : > { %1426 = vmatprep.subr.bf16.mxu1 %v1578_v1 }
  0x27   : > { %1399 = vmatmul.mubr.msk.bf16.vlgmr.msra.gmra.mrb[4].mxu0 %vm273_vm1, %v1519_v23 }
  0x28   : > { %1415 = vmatpush3.bf16.msra.mxu0 %v1520_v24  ;;  %1411 = vmatmul.mubr.msk.bf16.vlgmr.msra.gmra.mrb[4].mxu1 %vm273_vm1, %v500_v25 }
  0x29   : > { %1427 = vmatpush3.bf16.msra.mxu1 %v1523_v26  ;;  %1416 = vmatprep.subr.bf16.mxu0 %v1578_v1 }
  0x2a   : > { %1428 = vmatprep.subr.bf16.mxu1 %v1578_v1  ;;  %1422 = vmatprep.mubr.msk.bf16.mxu0 %vm1579_vm0, %v1578_v1 }
  0x2b   : > { %1434 = vmatprep.mubr.msk.bf16.mxu1 %vm1579_vm0, %v1578_v1 }
  0x2c   : > { %1417 = vmatpush3.bf16.msra.mxu0 %v1524_v27 }
  0x2d   : > { %1429 = vmatpush3.bf16.msra.mxu1 %v1525_v28  ;;  %1418 = vmatprep.subr.bf16.mxu0 %v1578_v1 }
  0x2e   : > { %1430 = vmatprep.subr.bf16.mxu1 %v1578_v1 }
  0x30   : > { %1419 = vmatpush3.bf16.msra.mxu0 %v1526_v29 }
  0x31   : > { %1431 = vmatpush3.bf16.msra.mxu1 %v1527_v31  ;;  %1420 = vmatprep.subr.bf16.mxu0 %v1578_v1 }
  0x32   : > { %1432 = vmatprep.subr.bf16.mxu1 %v1578_v1 }
  0x34   : > { %1421 = vmatpush3.bf16.msra.mxu0 %v1528_v35 }
  0x35   : > { %1433 = vmatpush3.bf16.msra.mxu1 %v1529_v36  ;;  %1438 = vmatprep.subr.bf16.mxu0 %v1578_v1 }
  0x36   : > { %1450 = vmatprep.subr.bf16.mxu1 %v1578_v1 }
  0x37   : > { %1423 = vmatmul.mubr.msk.bf16.vlgmr.msra.gmra.mrb[8].mxu0 %vm273_vm1, %v593_v41 }
  0x38   : > { %1439 = vmatpush3.bf16.msra.mxu0 %v1532_v42  ;;  %1435 = vmatmul.mubr.msk.bf16.vlgmr.msra.gmra.mrb[8].mxu1 %vm273_vm1, %v686_v43 }
  0x39   : > { %1451 = vmatpush3.bf16.msra.mxu1 %v1535_v44  ;;  %1440 = vmatprep.subr.bf16.mxu0 %v1578_v1 }
  0x3a   : > { %1452 = vmatprep.subr.bf16.mxu1 %v1578_v1  ;;  %1446 = vmatprep.mubr.msk.bf16.mxu0 %vm1579_vm0, %v1578_v1 }
  0x3b   : > { %1458 = vmatprep.mubr.msk.bf16.mxu1 %vm1579_vm0, %v1578_v1 }
  0x3c   : > { %1441 = vmatpush3.bf16.msra.mxu0 %v1536_v45 }
  0x3d   : > { %1453 = vmatpush3.bf16.msra.mxu1 %v1537_v46  ;;  %1442 = vmatprep.subr.bf16.mxu0 %v1578_v1 }
  0x3e   : > { %1454 = vmatprep.subr.bf16.mxu1 %v1578_v1 }
  0x40   : > { %1443 = vmatpush3.bf16.msra.mxu0 %v1538_v47 }
  0x41   : > { %1455 = vmatpush3.bf16.msra.mxu1 %v1539_v50  ;;  %1444 = vmatprep.subr.bf16.mxu0 %v1578_v1 }
  0x42   : > { %1456 = vmatprep.subr.bf16.mxu1 %v1578_v1 }
  0x44   : > { %1445 = vmatpush3.bf16.msra.mxu0 %v1540_v53 }
  0x45   : > { %1457 = vmatpush3.bf16.msra.mxu1 %v1541_v56  ;;  %1462 = vmatprep.subr.bf16.mxu0 %v1578_v1 }
  0x47   : > { %1447 = vmatmul.mubr.msk.bf16.vlgmr.msra.gmra.mrb[12].mxu0 %vm273_vm1, %v779_v59 }
  0x48   : > { %1463 = vmatpush3.bf16.msra.mxu0 %v1544_v60  ;;  %1459 = vmatmul.mubr.msk.bf16.vlgmr.msra.gmra.mrb[12].mxu1 %vm273_vm1, %v872_v61 }
  0x49   : > { %1464 = vmatprep.subr.bf16.mxu0 %v1578_v1  ;;  %1470 = vmatprep.mubr.msk.bf16.mxu0 %vm1579_vm0, %v1578_v1 }
  0x4c   : > { %1465 = vmatpush3.bf16.msra.mxu0 %v1547_v62 }
  0x4d   : > { %1466 = vmatprep.subr.bf16.mxu0 %v1578_v1 }
  0x50   : > { %1467 = vmatpush3.bf16.msra.mxu0 %v1548_v63 }
  0x51   : > { %1468 = vmatprep.subr.bf16.mxu0 %v1578_v1 }
  0x54   : > { %1469 = vmatpush3.bf16.msra.mxu0 %v1549_v3 }
  0x57   : > { %1471 = vmatmul.mubr.msk.bf16.vlgmr.msra.gmra.mrb[16].mxu0 %vm273_vm1, %v965_v6 }
  0xea   : > { %v311_v7 = vpop.f32.mrb[0].mxu0 }
  0xeb   : > { %v384_v8 = vpop.f32.mrb[0].mxu1  ;;  %v1376_v9 = vpop.f32.mrb[1].mxu0 }
  0xec   : > { %v385_v10 = vadd.f32 %v384_v8, %v311_v7  ;;  %v1388_v11 = vpop.f32.mrb[1].mxu1  ;;  %v314_v12 = vpop.f32.mrb[2].mxu0 }
  0xed   : > { %v387_v13 = vpop.f32.mrb[2].mxu1  ;;  %v1377_v14 = vpop.f32.mrb[3].mxu0 }
  0xee   : > { %v388_v15 = vadd.f32 %v387_v13, %v314_v12  ;;  %v1389_v16 = vpop.f32.mrb[3].mxu1 }
  0xfa   : > { %v468_v17 = vpop.f32.mrb[4].mxu0 }
  0xfb   : > { %v475_v18 = vadd.f32 %v468_v17, %v385_v10  ;;  %v1400_v19 = vpop.f32.mrb[5].mxu0  ;;  %v562_v20 = vpop.f32.mrb[4].mxu1 }
  0xfc   : > { %v471_v1 = vpop.f32.mrb[6].mxu0  ;;  %v1412_v21 = vpop.f32.mrb[5].mxu1 }
  0xfd   : > { %v476_v22 = vadd.f32 %v471_v1, %v388_v15  ;;  %v569_v23 = vadd.f32 %v562_v20, %v475_v18  ;;  %v1401_v24 = vpop.f32.mrb[7].mxu0  ;;  %v565_v25 = vpop.f32.mrb[6].mxu1 }
  0xfe   : > { %v1413_v26 = vpop.f32.mrb[7].mxu1 }
  0xff   : > { %v570_v27 = vadd.f32 %v565_v25, %v476_v22 }
 0x10a   : > { %v655_v28 = vpop.f32.mrb[8].mxu0 }
 0x10b   : > { %v662_v29 = vadd.f32 %v655_v28, %v569_v23  ;;  %v1424_v30 = vpop.f32.mrb[9].mxu0  ;;  %v748_v31 = vpop.f32.mrb[8].mxu1 }
 0x10c   : > { %v658_v32 = vpop.f32.mrb[10].mxu0  ;;  %v1436_v33 = vpop.f32.mrb[9].mxu1 }
 0x10d   : > { %v663_v34 = vadd.f32 %v658_v32, %v570_v27  ;;  %v755_v35 = vadd.f32 %v748_v31, %v662_v29  ;;  %v1425_v36 = vpop.f32.mrb[11].mxu0  ;;  %v751_v37 = vpop.f32.mrb[10].mxu1 }
 0x10e   : > { %v1437_v38 = vpop.f32.mrb[11].mxu1 }
 0x10f   : > { %v756_v39 = vadd.f32 %v751_v37, %v663_v34 }
 0x11a   : > { %v841_v40 = vpop.f32.mrb[12].mxu0 }
 0x11b   : > { %v848_v41 = vadd.f32 %v841_v40, %v755_v35  ;;  %v1448_v42 = vpop.f32.mrb[13].mxu0  ;;  %v934_v43 = vpop.f32.mrb[12].mxu1 }
 0x11c   : > { %v844_v44 = vpop.f32.mrb[14].mxu0  ;;  %v1460_v45 = vpop.f32.mrb[13].mxu1 }
 0x11d   : > { %v849_v46 = vadd.f32 %v844_v44, %v756_v39  ;;  %v941_v47 = vadd.f32 %v934_v43, %v848_v41  ;;  %v1449_v48 = vpop.f32.mrb[15].mxu0  ;;  %v937_v49 = vpop.f32.mrb[14].mxu1 }
 0x11e   : > { %v1461_v50 = vpop.f32.mrb[15].mxu1 }
 0x11f   : > { %v942_v51 = vadd.f32 %v937_v49, %v849_v46 }
 0x12a   : > { %v1027_v52 = vpop.f32.mrb[16].mxu0 }
 0x12b   : > { %v1034_v53 = vadd.f32 %v1027_v52, %v941_v47  ;;  %v1472_v54 = vpop.f32.mrb[17].mxu0 }
 0x12c   : > { %v1030_v56 = vpop.f32.mrb[18].mxu0 }
 0x12d   : > { %v1035_v57 = vadd.f32 %v1030_v56, %v942_v51  ;;  %v1473_v58 = vpop.f32.mrb[19].mxu0  ;;  %v1043_v59 = vadd.f32 %v1317_v55, %v1034_v53 }
 0x12f   : > { %v1044_v60 = vadd.f32 %v1317_v55, %v1035_v57 }
 0x131   : > { %v1045_v61 = vadd.f32 %v1044_v60, %v1043_v59 }
 0x133   : > { %v1046_v62 = vrot.slane %v1045_v61, 4 }
 0x135   : > { %v1047_v63 = vadd.f32 %v1046_v62, %v1045_v61 }
 0x137   : > { %v1048_v0 = vrot.slane %v1047_v63, 2 }
 0x139   : > { %v1049_v2 = vadd.f32 %v1048_v0, %v1047_v63 }
 0x13b   : > { %v1050_v3 = vrot.slane %v1049_v2, 1 }
 0x13d   : > { %v1051_v4 = vadd.f32 %v1050_v3, %v1049_v2 }
 0x13f   : > { %v1053_v5 = vmul.f32 0.0625, %v1051_v4 }
 0x141   : > { %v1054_v6 = vsub.f32 %v1043_v59, %v1053_v5  ;;  %v1055_v7 = vsub.f32 %v1044_v60, %v1053_v5 }
 0x143   : > { %v1056_v8 = vmul.f32 %v1054_v6, %v1054_v6  ;;  %v1057_v9 = vmul.f32 %v1055_v7, %v1055_v7 }
 0x145   : > { %v1058_v10 = vadd.f32 %v1057_v9, %v1056_v8 }
 0x147   : > { %v1059_v11 = vrot.slane %v1058_v10, 4 }
 0x149   : > { %v1060_v12 = vadd.f32 %v1059_v11, %v1058_v10 }
 0x14b   : > { %v1061_v13 = vrot.slane %v1060_v12, 2 }
 0x14d   : > { %v1062_v14 = vadd.f32 %v1061_v13, %v1060_v12 }
 0x14f   : > { %v1063_v15 = vrot.slane %v1062_v14, 1 }
 0x151   : > { %v1064_v16 = vadd.f32 %v1063_v15, %v1062_v14 }
 0x153   : > { %v1065_v17 = vmul.f32 0.0625, %v1064_v16 }
 0x155   : > { %v1066_v18 = vadd.f32 1e-05, %v1065_v17 }
 0x157   : > { %1552 = vrsqrt.f32 %v1066_v18 }
 0x161   : > { %v1553_v19 = vpop.eup %1552 }
 0x162   : > { %v1068_v20 = vmul.f32 %v1553_v19, %v1054_v6  ;;  %v1069_v1 = vmul.f32 %v1553_v19, %v1055_v7 }
 0x164   : > { %vm1070_vm3 = vcmp.ge.f32.partialorder %v1068_v20, 0.0  ;;  %vm1071_vm4 = vcmp.ge.f32.partialorder %v1069_v1, 0.0  ;;  %v1072_v21 = vmul.f32 0.2, %v1068_v20  ;;  %v1073_v22 = vmul.f32 0.2, %v1069_v1 }
 0x166   : > { %v1074_v23 = vsel %vm1070_vm3, %v1068_v20, %v1072_v21  ;;  %v1075_v24 = vsel %vm1071_vm4, %v1069_v1, %v1073_v22 }
 0x167   : > { %1076 = vst [vmem:[%s221_s29] sm:$0xff] %v1074_v23  ;;  %1077 = vst [vmem:[%s221_s29 + $0x8] sm:$0xff] %v1075_v24 }
 0x168 PF: > { %s13_s14 = sadd.s32 1, %s1576_s14   ;;  %s1838_s12 = smov %s1572_s13 }
 0x169   : > { %p10_p5 = scmp.ge.s32.totalorder %s13_s14, 4   ;;  %s1839_s13 = smov %s1841_s15 }
 0x16b   :  { %12 = sbr.rel (!%p10_p5) target bundleno = 2 (0x2), region = 76 }

// kernel: discriminator_forward.7
= control target key start
LH: loop header
LB: loop body
LE: loop exit
PB: predicated region body
PF: predicated region fallthrough
CT: control target
= control target key end

     0   :  { %s2685_s12 = smov 0   ;;  %s2687_s13 = smov 0   ;;  %s3254_s0 = inlined_call_operand.vmem [shape: bf16[2,36,128], index: 0, kind: input, shape index: {}]   ;;  %s3255_s1 = inlined_call_operand.vmem [shape: bf16[9,128,256], index: 1, kind: input, shape index: {}]   ;;  %s3256_s2 = inlined_call_operand.vmem [shape: f32[1,256], index: 2, kind: input, shape index: {}]   ;;  %s3257_s3 = inlined_call_operand.vmem [shape: f32[2,4,256], index: 3, kind: output, shape index: {}]  }
   0x1   :  { %s2689_s14 = smov 0   ;;  %s2691_s15 = smov 0  }
   0x2   :  { %s2693_s16 = smov 0   ;;  %s2695_s17 = smov 0  }
   0x3   :  { %s2697_s18 = smov 0  }
   0x4 LB: > { %s22_s19 = sadd.s32 1, %s2653_s16  ;;  %s25_s20 = sadd.s32 1, %s2657_s17  ;;  %s2661_s18 = sphi %s2697_s18, %s13_s18   ;;  %s2657_s17 = sphi %s2695_s17, %s3263_s17   ;;  %s2653_s16 = sphi %s2693_s16, %s3262_s16   ;;  %s2649_s15 = sphi %s2691_s15, %s3261_s15   ;;  %s2645_s14 = sphi %s2689_s14, %s3260_s14   ;;  %s2641_s13 = sphi %s2687_s13, %s3259_s13   ;;  %s2637_s12 = sphi %s2685_s12, %s3258_s12  }
   0x5   : > { %p23_p0 = scmp.ge.s32.totalorder %s22_s19, 2  ;;  %s58_s21 = sadd.s32 1, %s2641_s13 }
   0x6   : > { %p65_p1 = scmp.ne.s32.totalorder %s2641_s13, %s2637_s12  ;;  %p66_p2 = scmp.eq.s32.totalorder %s2661_s18, 0 }
   0x7   : > { %s3265_s19 = smov (%p23_p0, %s22_s19), 0  ;;  %s3267_s20 = smov (!%p23_p0, %s25_s20), %s2657_s17 }
   0x8   : > { %s55_s22 = ssub.s32 %s2653_s16, %s3265_s19  ;;  %p67_p3 = por %p66_p2, %p65_p1 }
   0x9   : > { %p27_p4 = scmp.ge.s32.totalorder %s3267_s20, 2  ;;  %p56_p5 = scmp.eq.s32.totalorder %s55_s22, 0 }
   0xa   : > { %p1988_p6 = scmp.ge.s32.totalorder %s2661_s18, 4 }
   0xb   : > { %s3269_s20 = smov (%p27_p4, %s3267_s20), 0 }
   0xc   : > { %s2734_s23 = scalar_select %p56_p5, %s2641_s13, %s58_s21  }
   0xd   : > { %145 = sbr.rel (%p1988_p6) target bundleno = 120 (0x78), region = 16 }
  0x14   : > { %156 = sbr.rel (!%p67_p3) target bundleno = 120 (0x78), region = 24  ;;  %s158_s24 = sand.u32 (%p67_p3), 1, %s2641_s13  }
  0x15   : > { %s1989_s25 = sshll.u32 (%p67_p3), %s2653_s16, 2  ;;  %s2465_s26 = smul.u32 (%p67_p3), 576, %s158_s24 }
  0x16   : > { %s2742_s29 = scalar_lea.vmem (%p67_p3), %s3255_s1, %s1989_s25 }
  0x17   : > { %v178_v0 = vld [vmem:[%s2742_s29] sm:$0xf] (%p67_p3)  ;;  %v180_v1 = vld [vmem:[%s2742_s29 + $0x8] sm:$0xf] (%p67_p3)  ;;  %v182_v2 = vld [vmem:[%s2742_s29 + $0x10] sm:$0xf] (%p67_p3) }
  0x18   : > { %v184_v3 = vld [vmem:[%s2742_s29 + $0x18] sm:$0xf] (%p67_p3)  ;;  %v186_v4 = vld [vmem:[%s2742_s29 + $0x20] sm:$0xf] (%p67_p3)  ;;  %s2749_s30 = scalar_lea.vmem (%p67_p3), [#allocation2], %s2465_s26 }
  0x19   : > { %179 = vst [vmem:[%s2749_s30] sm:$0xf] (%p67_p3), %v178_v0  ;;  %181 = vst [vmem:[%s2749_s30 + $0x4] sm:$0xf] (%p67_p3), %v180_v1  ;;  %v188_v5 = vld [vmem:[%s2742_s29 + $0x28] sm:$0xf] (%p67_p3) }
  0x1a   : > { %183 = vst [vmem:[%s2749_s30 + $0x8] sm:$0xf] (%p67_p3), %v182_v2  ;;  %185 = vst [vmem:[%s2749_s30 + $0xc] sm:$0xf] (%p67_p3), %v184_v3  ;;  %v190_v6 = vld [vmem:[%s2742_s29 + $0x30] sm:$0xf] (%p67_p3) }
  0x1b   : > { %187 = vst [vmem:[%s2749_s30 + $0x10] sm:$0xf] %v186_v4  ;;  %v192_v7 = vld [vmem:[%s2742_s29 + $0x38] sm:$0xf]  ;;  %189 = vst [vmem:[%s2749_s30 + $0x14] sm:$0xf] %v188_v5 }
  0x1c   : > { %191 = vst [vmem:[%s2749_s30 + $0x18] sm:$0xf] %v190_v6  ;;  %193 = vst [vmem:[%s2749_s30 + $0x1c] sm:$0xf] %v192_v7  ;;  %v194_v8 = vld [vmem:[%s2742_s29 + $0x40] sm:$0xf] }
  0x1d   : > { %v196_v9 = vld [vmem:[%s2742_s29 + $0x48] sm:$0xf]  ;;  %v198_v10 = vld [vmem:[%s2742_s29 + $0x50] sm:$0xf]  ;;  %195 = vst [vmem:[%s2749_s30 + $0x20] sm:$0xf] %v194_v8 }
  0x1e   : > { %197 = vst [vmem:[%s2749_s30 + $0x24] sm:$0xf] %v196_v9  ;;  %199 = vst [vmem:[%s2749_s30 + $0x28] sm:$0xf] %v198_v10  ;;  %v200_v11 = vld [vmem:[%s2742_s29 + $0x58] sm:$0xf] }
  0x1f   : > { %v202_v12 = vld [vmem:[%s2742_s29 + $0x60] sm:$0xf]  ;;  %v204_v13 = vld [vmem:[%s2742_s29 + $0x68] sm:$0xf]  ;;  %201 = vst [vmem:[%s2749_s30 + $0x2c] sm:$0xf] %v200_v11 }
  0x20   : > { %203 = vst [vmem:[%s2749_s30 + $0x30] sm:$0xf] %v202_v12  ;;  %205 = vst [vmem:[%s2749_s30 + $0x34] sm:$0xf] %v204_v13  ;;  %v206_v14 = vld [vmem:[%s2742_s29 + $0x70] sm:$0xf] }
  0x21   : > { %v208_v15 = vld [vmem:[%s2742_s29 + $0x78] sm:$0xf]  ;;  %v210_v16 = vld [vmem:[%s2742_s29 + $0x80] sm:$0xf]  ;;  %207 = vst [vmem:[%s2749_s30 + $0x38] sm:$0xf] %v206_v14 }
  0x22   : > { %209 = vst [vmem:[%s2749_s30 + $0x3c] sm:$0xf] %v208_v15  ;;  %211 = vst [vmem:[%s2749_s30 + $0x40] sm:$0xf] %v210_v16  ;;  %v212_v17 = vld [vmem:[%s2742_s29 + $0x88] sm:$0xf] }
  0x23   : > { %v214_v18 = vld [vmem:[%s2742_s29 + $0x90] sm:$0xf]  ;;  %v216_v19 = vld [vmem:[%s2742_s29 + $0x98] sm:$0xf]  ;;  %213 = vst [vmem:[%s2749_s30 + $0x44] sm:$0xf] %v212_v17 }
  0x24   : > { %215 = vst [vmem:[%s2749_s30 + $0x48] sm:$0xf] %v214_v18  ;;  %217 = vst [vmem:[%s2749_s30 + $0x4c] sm:$0xf] %v216_v19  ;;  %v218_v20 = vld [vmem:[%s2742_s29 + $0xa0] sm:$0xf] }
  0x25   : > { %v220_v21 = vld [vmem:[%s2742_s29 + $0xa8] sm:$0xf]  ;;  %v222_v22 = vld [vmem:[%s2742_s29 + $0xb0] sm:$0xf]  ;;  %219 = vst [vmem:[%s2749_s30 + $0x50] sm:$0xf] %v218_v20 }
  0x26   : > { %221 = vst [vmem:[%s2749_s30 + $0x54] sm:$0xf] %v220_v21  ;;  %223 = vst [vmem:[%s2749_s30 + $0x58] sm:$0xf] %v222_v22  ;;  %v224_v23 = vld [vmem:[%s2742_s29 + $0xb8] sm:$0xf] }
  0x27   : > { %v226_v24 = vld [vmem:[%s2742_s29 + $0xc0] sm:$0xf]  ;;  %v228_v25 = vld [vmem:[%s2742_s29 + $0xc8] sm:$0xf]  ;;  %225 = vst [vmem:[%s2749_s30 + $0x5c] sm:$0xf] %v224_v23 }
  0x28   : > { %227 = vst [vmem:[%s2749_s30 + $0x60] sm:$0xf] %v226_v24  ;;  %229 = vst [vmem:[%s2749_s30 + $0x64] sm:$0xf] %v228_v25  ;;  %v230_v26 = vld [vmem:[%s2742_s29 + $0xd0] sm:$0xf] }
  0x29   : > { %v232_v27 = vld [vmem:[%s2742_s29 + $0xd8] sm:$0xf]  ;;  %v234_v28 = vld [vmem:[%s2742_s29 + $0xe0] sm:$0xf]  ;;  %231 = vst [vmem:[%s2749_s30 + $0x68] sm:$0xf] %v230_v26 }
  0x2a   : > { %233 = vst [vmem:[%s2749_s30 + $0x6c] sm:$0xf] %v232_v27  ;;  %235 = vst [vmem:[%s2749_s30 + $0x70] sm:$0xf] %v234_v28  ;;  %v236_v29 = vld [vmem:[%s2742_s29 + $0xe8] sm:$0xf] }
  0x2b   : > { %v238_v30 = vld [vmem:[%s2742_s29 + $0xf0] sm:$0xf]  ;;  %v240_v31 = vld [vmem:[%s2742_s29 + $0xf8] sm:$0xf]  ;;  %237 = vst [vmem:[%s2749_s30 + $0x74] sm:$0xf] %v236_v29 }
  0x2c   : > { %239 = vst [vmem:[%s2749_s30 + $0x78] sm:$0xf] %v238_v30  ;;  %241 = vst [vmem:[%s2749_s30 + $0x7c] sm:$0xf] %v240_v31  ;;  %v242_v32 = vld [vmem:[%s2742_s29 + $0x100] sm:$0xf] }
  0x2d   : > { %v244_v33 = vld [vmem:[%s2742_s29 + $0x108] sm:$0xf]  ;;  %v246_v34 = vld [vmem:[%s2742_s29 + $0x110] sm:$0xf]  ;;  %243 = vst [vmem:[%s2749_s30 + $0x80] sm:$0xf] %v242_v32 }
  0x2e   : > { %245 = vst [vmem:[%s2749_s30 + $0x84] sm:$0xf] %v244_v33  ;;  %247 = vst [vmem:[%s2749_s30 + $0x88] sm:$0xf] %v246_v34  ;;  %v248_v35 = vld [vmem:[%s2742_s29 + $0x118] sm:$0xf] }
  0x2f   : > { %v250_v36 = vld [vmem:[%s2742_s29 + $0x120] sm:$0xf]  ;;  %v252_v37 = vld [vmem:[%s2742_s29 + $0x128] sm:$0xf]  ;;  %249 = vst [vmem:[%s2749_s30 + $0x8c] sm:$0xf] %v248_v35 }
  0x30   : > { %251 = vst [vmem:[%s2749_s30 + $0x90] sm:$0xf] %v250_v36  ;;  %253 = vst [vmem:[%s2749_s30 + $0x94] sm:$0xf] %v252_v37  ;;  %v254_v38 = vld [vmem:[%s2742_s29 + $0x130] sm:$0xf] }
  0x31   : > { %v256_v39 = vld [vmem:[%s2742_s29 + $0x138] sm:$0xf]  ;;  %v258_v40 = vld [vmem:[%s2742_s29 + $0x140] sm:$0xf]  ;;  %255 = vst [vmem:[%s2749_s30 + $0x98] sm:$0xf] %v254_v38 }
  0x32   : > { %257 = vst [vmem:[%s2749_s30 + $0x9c] sm:$0xf] %v256_v39  ;;  %259 = vst [vmem:[%s2749_s30 + $0xa0] sm:$0xf] %v258_v40  ;;  %v260_v41 = vld [vmem:[%s2742_s29 + $0x148] sm:$0xf] }
  0x33   : > { %v262_v42 = vld [vmem:[%s2742_s29 + $0x150] sm:$0xf]  ;;  %v264_v43 = vld [vmem:[%s2742_s29 + $0x158] sm:$0xf]  ;;  %261 = vst [vmem:[%s2749_s30 + $0xa4] sm:$0xf] %v260_v41 }
  0x34   : > { %263 = vst [vmem:[%s2749_s30 + $0xa8] sm:$0xf] %v262_v42  ;;  %265 = vst [vmem:[%s2749_s30 + $0xac] sm:$0xf] %v264_v43  ;;  %v266_v44 = vld [vmem:[%s2742_s29 + $0x160] sm:$0xf] }
  0x35   : > { %v268_v45 = vld [vmem:[%s2742_s29 + $0x168] sm:$0xf]  ;;  %v270_v46 = vld [vmem:[%s2742_s29 + $0x170] sm:$0xf]  ;;  %267 = vst [vmem:[%s2749_s30 + $0xb0] sm:$0xf] %v266_v44 }
  0x36   : > { %269 = vst [vmem:[%s2749_s30 + $0xb4] sm:$0xf] %v268_v45  ;;  %271 = vst [vmem:[%s2749_s30 + $0xb8] sm:$0xf] %v270_v46  ;;  %v272_v47 = vld [vmem:[%s2742_s29 + $0x178] sm:$0xf] }
  0x37   : > { %v274_v48 = vld [vmem:[%s2742_s29 + $0x180] sm:$0xf]  ;;  %v276_v49 = vld [vmem:[%s2742_s29 + $0x188] sm:$0xf]  ;;  %273 = vst [vmem:[%s2749_s30 + $0xbc] sm:$0xf] %v272_v47 }
  0x38   : > { %275 = vst [vmem:[%s2749_s30 + $0xc0] sm:$0xf] %v274_v48  ;;  %277 = vst [vmem:[%s2749_s30 + $0xc4] sm:$0xf] %v276_v49  ;;  %v278_v50 = vld [vmem:[%s2742_s29 + $0x190] sm:$0xf] }
  0x39   : > { %v280_v51 = vld [vmem:[%s2742_s29 + $0x198] sm:$0xf]  ;;  %v282_v52 = vld [vmem:[%s2742_s29 + $0x1a0] sm:$0xf]  ;;  %279 = vst [vmem:[%s2749_s30 + $0xc8] sm:$0xf] %v278_v50 }
  0x3a   : > { %281 = vst [vmem:[%s2749_s30 + $0xcc] sm:$0xf] %v280_v51  ;;  %283 = vst [vmem:[%s2749_s30 + $0xd0] sm:$0xf] %v282_v52  ;;  %v284_v53 = vld [vmem:[%s2742_s29 + $0x1a8] sm:$0xf] }
  0x3b   : > { %v286_v54 = vld [vmem:[%s2742_s29 + $0x1b0] sm:$0xf]  ;;  %v288_v55 = vld [vmem:[%s2742_s29 + $0x1b8] sm:$0xf]  ;;  %285 = vst [vmem:[%s2749_s30 + $0xd4] sm:$0xf] %v284_v53 }
  0x3c   : > { %287 = vst [vmem:[%s2749_s30 + $0xd8] sm:$0xf] %v286_v54  ;;  %289 = vst [vmem:[%s2749_s30 + $0xdc] sm:$0xf] %v288_v55  ;;  %v290_v56 = vld [vmem:[%s2742_s29 + $0x1c0] sm:$0xf] }
  0x3d   : > { %v292_v57 = vld [vmem:[%s2742_s29 + $0x1c8] sm:$0xf]  ;;  %v294_v58 = vld [vmem:[%s2742_s29 + $0x1d0] sm:$0xf]  ;;  %291 = vst [vmem:[%s2749_s30 + $0xe0] sm:$0xf] %v290_v56 }
  0x3e   : > { %293 = vst [vmem:[%s2749_s30 + $0xe4] sm:$0xf] %v292_v57  ;;  %295 = vst [vmem:[%s2749_s30 + $0xe8] sm:$0xf] %v294_v58  ;;  %v296_v59 = vld [vmem:[%s2742_s29 + $0x1d8] sm:$0xf] }
  0x3f   : > { %v298_v60 = vld [vmem:[%s2742_s29 + $0x1e0] sm:$0xf]  ;;  %v300_v61 = vld [vmem:[%s2742_s29 + $0x1e8] sm:$0xf]  ;;  %297 = vst [vmem:[%s2749_s30 + $0xec] sm:$0xf] %v296_v59 }
  0x40   : > { %299 = vst [vmem:[%s2749_s30 + $0xf0] sm:$0xf] %v298_v60  ;;  %301 = vst [vmem:[%s2749_s30 + $0xf4] sm:$0xf] %v300_v61  ;;  %v302_v62 = vld [vmem:[%s2742_s29 + $0x1f0] sm:$0xf] }
  0x41   : > { %v304_v63 = vld [vmem:[%s2742_s29 + $0x1f8] sm:$0xf]  ;;  %v306_v0 = vld [vmem:[%s2742_s29 + $0x200] sm:$0xf]  ;;  %303 = vst [vmem:[%s2749_s30 + $0xf8] sm:$0xf] %v302_v62 }
  0x42   : > { %305 = vst [vmem:[%s2749_s30 + $0xfc] sm:$0xf] %v304_v63  ;;  %307 = vst [vmem:[%s2749_s30 + $0x100] sm:$0xf] %v306_v0  ;;  %v308_v1 = vld [vmem:[%s2742_s29 + $0x208] sm:$0xf] }
  0x43   : > { %v310_v2 = vld [vmem:[%s2742_s29 + $0x210] sm:$0xf]  ;;  %v312_v3 = vld [vmem:[%s2742_s29 + $0x218] sm:$0xf]  ;;  %309 = vst [vmem:[%s2749_s30 + $0x104] sm:$0xf] %v308_v1 }
  0x44   : > { %311 = vst [vmem:[%s2749_s30 + $0x108] sm:$0xf] %v310_v2  ;;  %313 = vst [vmem:[%s2749_s30 + $0x10c] sm:$0xf] %v312_v3  ;;  %v314_v4 = vld [vmem:[%s2742_s29 + $0x220] sm:$0xf] }
  0x45   : > { %v316_v5 = vld [vmem:[%s2742_s29 + $0x228] sm:$0xf]  ;;  %v318_v6 = vld [vmem:[%s2742_s29 + $0x230] sm:$0xf]  ;;  %315 = vst [vmem:[%s2749_s30 + $0x110] sm:$0xf] %v314_v4 }
  0x46   : > { %317 = vst [vmem:[%s2749_s30 + $0x114] sm:$0xf] %v316_v5  ;;  %319 = vst [vmem:[%s2749_s30 + $0x118] sm:$0xf] %v318_v6  ;;  %v320_v7 = vld [vmem:[%s2742_s29 + $0x238] sm:$0xf] }
  0x47   : > { %v322_v8 = vld [vmem:[%s2742_s29 + $0x240] sm:$0xf]  ;;  %v324_v9 = vld [vmem:[%s2742_s29 + $0x248] sm:$0xf]  ;;  %321 = vst [vmem:[%s2749_s30 + $0x11c] sm:$0xf] %v320_v7 }
  0x48   : > { %323 = vst [vmem:[%s2749_s30 + $0x120] sm:$0xf] %v322_v8  ;;  %325 = vst [vmem:[%s2749_s30 + $0x124] sm:$0xf] %v324_v9  ;;  %v326_v10 = vld [vmem:[%s2742_s29 + $0x250] sm:$0xf] }
  0x49   : > { %v328_v11 = vld [vmem:[%s2742_s29 + $0x258] sm:$0xf]  ;;  %v330_v12 = vld [vmem:[%s2742_s29 + $0x260] sm:$0xf]  ;;  %327 = vst [vmem:[%s2749_s30 + $0x128] sm:$0xf] %v326_v10 }
  0x4a   : > { %329 = vst [vmem:[%s2749_s30 + $0x12c] sm:$0xf] %v328_v11  ;;  %331 = vst [vmem:[%s2749_s30 + $0x130] sm:$0xf] %v330_v12  ;;  %v332_v13 = vld [vmem:[%s2742_s29 + $0x268] sm:$0xf] }
  0x4b   : > { %v334_v14 = vld [vmem:[%s2742_s29 + $0x270] sm:$0xf]  ;;  %v336_v15 = vld [vmem:[%s2742_s29 + $0x278] sm:$0xf]  ;;  %333 = vst [vmem:[%s2749_s30 + $0x134] sm:$0xf] %v332_v13 }
  0x4c   : > { %335 = vst [vmem:[%s2749_s30 + $0x138] sm:$0xf] %v334_v14  ;;  %337 = vst [vmem:[%s2749_s30 + $0x13c] sm:$0xf] %v336_v15  ;;  %v338_v16 = vld [vmem:[%s2742_s29 + $0x280] sm:$0xf] }
  0x4d   : > { %v340_v17 = vld [vmem:[%s2742_s29 + $0x288] sm:$0xf]  ;;  %v342_v18 = vld [vmem:[%s2742_s29 + $0x290] sm:$0xf]  ;;  %339 = vst [vmem:[%s2749_s30 + $0x140] sm:$0xf] %v338_v16 }
  0x4e   : > { %341 = vst [vmem:[%s2749_s30 + $0x144] sm:$0xf] %v340_v17  ;;  %343 = vst [vmem:[%s2749_s30 + $0x148] sm:$0xf] %v342_v18  ;;  %v344_v19 = vld [vmem:[%s2742_s29 + $0x298] sm:$0xf] }
  0x4f   : > { %v346_v20 = vld [vmem:[%s2742_s29 + $0x2a0] sm:$0xf]  ;;  %v348_v21 = vld [vmem:[%s2742_s29 + $0x2a8] sm:$0xf]  ;;  %345 = vst [vmem:[%s2749_s30 + $0x14c] sm:$0xf] %v344_v19 }
  0x50   : > { %347 = vst [vmem:[%s2749_s30 + $0x150] sm:$0xf] %v346_v20  ;;  %349 = vst [vmem:[%s2749_s30 + $0x154] sm:$0xf] %v348_v21  ;;  %v350_v22 = vld [vmem:[%s2742_s29 + $0x2b0] sm:$0xf] }
  0x51   : > { %v352_v23 = vld [vmem:[%s2742_s29 + $0x2b8] sm:$0xf]  ;;  %v354_v24 = vld [vmem:[%s2742_s29 + $0x2c0] sm:$0xf]  ;;  %351 = vst [vmem:[%s2749_s30 + $0x158] sm:$0xf] %v350_v22 }
  0x52   : > { %353 = vst [vmem:[%s2749_s30 + $0x15c] sm:$0xf] %v352_v23  ;;  %355 = vst [vmem:[%s2749_s30 + $0x160] sm:$0xf] %v354_v24  ;;  %v356_v25 = vld [vmem:[%s2742_s29 + $0x2c8] sm:$0xf] }
  0x53   : > { %v358_v26 = vld [vmem:[%s2742_s29 + $0x2d0] sm:$0xf]  ;;  %v360_v27 = vld [vmem:[%s2742_s29 + $0x2d8] sm:$0xf]  ;;  %357 = vst [vmem:[%s2749_s30 + $0x164] sm:$0xf] %v356_v25 }
  0x54   : > { %359 = vst [vmem:[%s2749_s30 + $0x168] sm:$0xf] %v358_v26  ;;  %361 = vst [vmem:[%s2749_s30 + $0x16c] sm:$0xf] %v360_v27  ;;  %v362_v28 = vld [vmem:[%s2742_s29 + $0x2e0] sm:$0xf] }
  0x55   : > { %v364_v29 = vld [vmem:[%s2742_s29 + $0x2e8] sm:$0xf]  ;;  %v366_v30 = vld [vmem:[%s2742_s29 + $0x2f0] sm:$0xf]  ;;  %363 = vst [vmem:[%s2749_s30 + $0x170] sm:$0xf] %v362_v28 }
  0x56   : > { %365 = vst [vmem:[%s2749_s30 + $0x174] sm:$0xf] %v364_v29  ;;  %367 = vst [vmem:[%s2749_s30 + $0x178] sm:$0xf] %v366_v30  ;;  %v368_v31 = vld [vmem:[%s2742_s29 + $0x2f8] sm:$0xf] }
  0x57   : > { %v370_v32 = vld [vmem:[%s2742_s29 + $0x300] sm:$0xf]  ;;  %v372_v33 = vld [vmem:[%s2742_s29 + $0x308] sm:$0xf]  ;;  %369 = vst [vmem:[%s2749_s30 + $0x17c] sm:$0xf] %v368_v31 }
  0x58   : > { %371 = vst [vmem:[%s2749_s30 + $0x180] sm:$0xf] %v370_v32  ;;  %373 = vst [vmem:[%s2749_s30 + $0x184] sm:$0xf] %v372_v33  ;;  %v374_v34 = vld [vmem:[%s2742_s29 + $0x310] sm:$0xf] }
  0x59   : > { %v376_v35 = vld [vmem:[%s2742_s29 + $0x318] sm:$0xf]  ;;  %v378_v36 = vld [vmem:[%s2742_s29 + $0x320] sm:$0xf]  ;;  %375 = vst [vmem:[%s2749_s30 + $0x188] sm:$0xf] %v374_v34 }
  0x5a   : > { %377 = vst [vmem:[%s2749_s30 + $0x18c] sm:$0xf] %v376_v35  ;;  %379 = vst [vmem:[%s2749_s30 + $0x190] sm:$0xf] %v378_v36  ;;  %v380_v37 = vld [vmem:[%s2742_s29 + $0x328] sm:$0xf] }
  0x5b   : > { %v382_v38 = vld [vmem:[%s2742_s29 + $0x330] sm:$0xf]  ;;  %v384_v39 = vld [vmem:[%s2742_s29 + $0x338] sm:$0xf]  ;;  %381 = vst [vmem:[%s2749_s30 + $0x194] sm:$0xf] %v380_v37 }
  0x5c   : > { %383 = vst [vmem:[%s2749_s30 + $0x198] sm:$0xf] %v382_v38  ;;  %385 = vst [vmem:[%s2749_s30 + $0x19c] sm:$0xf] %v384_v39  ;;  %v386_v40 = vld [vmem:[%s2742_s29 + $0x340] sm:$0xf] }
  0x5d   : > { %v388_v41 = vld [vmem:[%s2742_s29 + $0x348] sm:$0xf]  ;;  %v390_v42 = vld [vmem:[%s2742_s29 + $0x350] sm:$0xf]  ;;  %387 = vst [vmem:[%s2749_s30 + $0x1a0] sm:$0xf] %v386_v40 }
  0x5e   : > { %389 = vst [vmem:[%s2749_s30 + $0x1a4] sm:$0xf] %v388_v41  ;;  %391 = vst [vmem:[%s2749_s30 + $0x1a8] sm:$0xf] %v390_v42  ;;  %v392_v43 = vld [vmem:[%s2742_s29 + $0x358] sm:$0xf] }
  0x5f   : > { %v394_v44 = vld [vmem:[%s2742_s29 + $0x360] sm:$0xf]  ;;  %v396_v45 = vld [vmem:[%s2742_s29 + $0x368] sm:$0xf]  ;;  %393 = vst [vmem:[%s2749_s30 + $0x1ac] sm:$0xf] %v392_v43 }
  0x60   : > { %395 = vst [vmem:[%s2749_s30 + $0x1b0] sm:$0xf] %v394_v44  ;;  %397 = vst [vmem:[%s2749_s30 + $0x1b4] sm:$0xf] %v396_v45  ;;  %v398_v46 = vld [vmem:[%s2742_s29 + $0x370] sm:$0xf] }
  0x61   : > { %v400_v47 = vld [vmem:[%s2742_s29 + $0x378] sm:$0xf]  ;;  %v402_v48 = vld [vmem:[%s2742_s29 + $0x380] sm:$0xf]  ;;  %399 = vst [vmem:[%s2749_s30 + $0x1b8] sm:$0xf] %v398_v46 }
  0x62   : > { %401 = vst [vmem:[%s2749_s30 + $0x1bc] sm:$0xf] %v400_v47  ;;  %403 = vst [vmem:[%s2749_s30 + $0x1c0] sm:$0xf] %v402_v48  ;;  %v404_v49 = vld [vmem:[%s2742_s29 + $0x388] sm:$0xf] }
  0x63   : > { %v406_v50 = vld [vmem:[%s2742_s29 + $0x390] sm:$0xf]  ;;  %v408_v51 = vld [vmem:[%s2742_s29 + $0x398] sm:$0xf]  ;;  %405 = vst [vmem:[%s2749_s30 + $0x1c4] sm:$0xf] %v404_v49 }
  0x64   : > { %407 = vst [vmem:[%s2749_s30 + $0x1c8] sm:$0xf] %v406_v50  ;;  %409 = vst [vmem:[%s2749_s30 + $0x1cc] sm:$0xf] %v408_v51  ;;  %v410_v52 = vld [vmem:[%s2742_s29 + $0x3a0] sm:$0xf] }
  0x65   : > { %v412_v53 = vld [vmem:[%s2742_s29 + $0x3a8] sm:$0xf]  ;;  %v414_v54 = vld [vmem:[%s2742_s29 + $0x3b0] sm:$0xf]  ;;  %411 = vst [vmem:[%s2749_s30 + $0x1d0] sm:$0xf] %v410_v52 }
  0x66   : > { %413 = vst [vmem:[%s2749_s30 + $0x1d4] sm:$0xf] %v412_v53  ;;  %415 = vst [vmem:[%s2749_s30 + $0x1d8] sm:$0xf] %v414_v54  ;;  %v416_v55 = vld [vmem:[%s2742_s29 + $0x3b8] sm:$0xf] }
  0x67   : > { %v418_v56 = vld [vmem:[%s2742_s29 + $0x3c0] sm:$0xf]  ;;  %v420_v57 = vld [vmem:[%s2742_s29 + $0x3c8] sm:$0xf]  ;;  %417 = vst [vmem:[%s2749_s30 + $0x1dc] sm:$0xf] %v416_v55 }
  0x68   : > { %419 = vst [vmem:[%s2749_s30 + $0x1e0] sm:$0xf] %v418_v56  ;;  %421 = vst [vmem:[%s2749_s30 + $0x1e4] sm:$0xf] %v420_v57  ;;  %v422_v58 = vld [vmem:[%s2742_s29 + $0x3d0] sm:$0xf] }
  0x69   : > { %v424_v59 = vld [vmem:[%s2742_s29 + $0x3d8] sm:$0xf]  ;;  %v426_v60 = vld [vmem:[%s2742_s29 + $0x3e0] sm:$0xf]  ;;  %423 = vst [vmem:[%s2749_s30 + $0x1e8] sm:$0xf] %v422_v58 }
  0x6a   : > { %425 = vst [vmem:[%s2749_s30 + $0x1ec] sm:$0xf] %v424_v59  ;;  %427 = vst [vmem:[%s2749_s30 + $0x1f0] sm:$0xf] %v426_v60  ;;  %v428_v61 = vld [vmem:[%s2742_s29 + $0x3e8] sm:$0xf] }
  0x6b   : > { %v430_v62 = vld [vmem:[%s2742_s29 + $0x3f0] sm:$0xf]  ;;  %v432_v63 = vld [vmem:[%s2742_s29 + $0x3f8] sm:$0xf]  ;;  %429 = vst [vmem:[%s2749_s30 + $0x1f4] sm:$0xf] %v428_v61 }
  0x6c   : > { %431 = vst [vmem:[%s2749_s30 + $0x1f8] sm:$0xf] %v430_v62  ;;  %433 = vst [vmem:[%s2749_s30 + $0x1fc] sm:$0xf] %v432_v63  ;;  %v434_v0 = vld [vmem:[%s2742_s29 + $0x400] sm:$0xf] }
  0x6d   : > { %v436_v1 = vld [vmem:[%s2742_s29 + $0x408] sm:$0xf]  ;;  %v438_v2 = vld [vmem:[%s2742_s29 + $0x410] sm:$0xf]  ;;  %435 = vst [vmem:[%s2749_s30 + $0x200] sm:$0xf] %v434_v0 }
  0x6e   : > { %437 = vst [vmem:[%s2749_s30 + $0x204] sm:$0xf] %v436_v1  ;;  %439 = vst [vmem:[%s2749_s30 + $0x208] sm:$0xf] %v438_v2  ;;  %v440_v3 = vld [vmem:[%s2742_s29 + $0x418] sm:$0xf] }
  0x6f   : > { %v442_v4 = vld [vmem:[%s2742_s29 + $0x420] sm:$0xf]  ;;  %v444_v5 = vld [vmem:[%s2742_s29 + $0x428] sm:$0xf]  ;;  %441 = vst [vmem:[%s2749_s30 + $0x20c] sm:$0xf] %v440_v3 }
  0x70   : > { %443 = vst [vmem:[%s2749_s30 + $0x210] sm:$0xf] %v442_v4  ;;  %445 = vst [vmem:[%s2749_s30 + $0x214] sm:$0xf] %v444_v5  ;;  %v446_v6 = vld [vmem:[%s2742_s29 + $0x430] sm:$0xf] }
  0x71   : > { %v448_v7 = vld [vmem:[%s2742_s29 + $0x438] sm:$0xf]  ;;  %v450_v8 = vld [vmem:[%s2742_s29 + $0x440] sm:$0xf]  ;;  %447 = vst [vmem:[%s2749_s30 + $0x218] sm:$0xf] %v446_v6 }
  0x72   : > { %449 = vst [vmem:[%s2749_s30 + $0x21c] sm:$0xf] %v448_v7  ;;  %451 = vst [vmem:[%s2749_s30 + $0x220] sm:$0xf] %v450_v8  ;;  %v452_v9 = vld [vmem:[%s2742_s29 + $0x448] sm:$0xf] }
  0x73   : > { %v454_v10 = vld [vmem:[%s2742_s29 + $0x450] sm:$0xf]  ;;  %v456_v11 = vld [vmem:[%s2742_s29 + $0x458] sm:$0xf]  ;;  %453 = vst [vmem:[%s2749_s30 + $0x224] sm:$0xf] %v452_v9 }
  0x74   : > { %455 = vst [vmem:[%s2749_s30 + $0x228] sm:$0xf] %v454_v10  ;;  %457 = vst [vmem:[%s2749_s30 + $0x22c] sm:$0xf] %v456_v11  ;;  %v458_v12 = vld [vmem:[%s2742_s29 + $0x460] sm:$0xf] }
  0x75   : > { %v460_v13 = vld [vmem:[%s2742_s29 + $0x468] sm:$0xf]  ;;  %v462_v14 = vld [vmem:[%s2742_s29 + $0x470] sm:$0xf]  ;;  %459 = vst [vmem:[%s2749_s30 + $0x230] sm:$0xf] %v458_v12 }
  0x76   : > { %461 = vst [vmem:[%s2749_s30 + $0x234] sm:$0xf] %v460_v13  ;;  %463 = vst [vmem:[%s2749_s30 + $0x238] sm:$0xf] %v462_v14  ;;  %v464_v15 = vld [vmem:[%s2742_s29 + $0x478] sm:$0xf] }
  0x77   : > { %465 = vst [vmem:[%s2749_s30 + $0x23c] sm:$0xf] %v464_v15 }
  0x78 PF: > { %p1990_p7 = scmp.ge.s32.totalorder %s2661_s18, 1  ;;  %p781_p8 = scmp.lt.s32.totalorder %s2661_s18, 5 }
  0x7a   : > { %p782_p9 = pnand %p1990_p7, %p781_p8 }
  0x7b   : > { %s788_s4 = sand.u32 (!%p782_p9), 1, %s2637_s12   ;;  %v2663_v16 = vmov (!%p782_p9), 0.0   ;;  %vm2664_vm0 = vmmov (!%p782_p9), 0   ;;  %p822_p10 = scmp.lt.s32.totalorder (!%p782_p9), %s2649_s15, 1  ;;  %vm1851_vm1 = vcmask (!%p782_p9), 1043456  }
  0x7c   : > { %785 = sbr.rel (%p782_p9) target bundleno = 557 (0x22d), region = 69  ;;  %2285 = vmatprep.subr.bf16.mxu0 (!%p782_p9), %v2663_v16  ;;  %2305 = vmatprep.subr.bf16.mxu1 (!%p782_p9), %v2663_v16  ;;  %p827_p11 = scmp.lt.s32.totalorder (!%p782_p9), %s2645_s14, 1 }
  0x7d   : > { %s2466_s5 = smul.u32 (!%p782_p9), 576, %s788_s4  ;;  %2301 = vmatprep.mubr.msk.bf16.mxu0 (!%p782_p9), %vm2664_vm0, %v2663_v16  ;;  %2321 = vmatprep.mubr.msk.bf16.mxu1 (!%p782_p9), %vm2664_vm0, %v2663_v16 }
  0x7f   : > { %s3043_s6 = scalar_lea.vmem (!%p782_p9), [#allocation2], %s2466_s5 }
  0x80   : > { %v2526_v17 = vld [vmem:[%s3043_s6 + $0x40] sm:$0xff] (!%p782_p9)   ;;  %v2528_v19 = vld [vmem:[%s3043_s6 + $0x48] sm:$0xff] (!%p782_p9)   ;;  %v2530_v21 = vld [vmem:[%s3043_s6 + $0x50] sm:$0xff] (!%p782_p9)  }
  0x81   : > { %v2527_v18 = vld [vmem:[%s3043_s6] sm:$0xff] (!%p782_p9)   ;;  %2286 = vmatpush3.bf16.msra.mxu0 (!%p782_p9), %v2526_v17  ;;  %v2529_v20 = vld [vmem:[%s3043_s6 + $0x8] sm:$0xff] (!%p782_p9)   ;;  %v2531_v22 = vld [vmem:[%s3043_s6 + $0x10] sm:$0xff] (!%p782_p9)  }
  0x82   : > { %2306 = vmatpush3.bf16.msra.mxu1 (!%p782_p9), %v2527_v18  ;;  %2287 = vmatprep.subr.bf16.mxu0 (!%p782_p9), %v2663_v16  ;;  %v2532_v23 = vld [vmem:[%s3043_s6 + $0x58] sm:$0xff] (!%p782_p9)   ;;  %v2534_v25 = vld [vmem:[%s3043_s6 + $0x60] sm:$0xff] (!%p782_p9)   ;;  %v2536_v27 = vld [vmem:[%s3043_s6 + $0x68] sm:$0xff] (!%p782_p9)  }
  0x83   : > { %2307 = vmatprep.subr.bf16.mxu1 %v2663_v16  ;;  %s3271_s15 = smov (!%p822_p10, %s2649_s15), 1  ;;  %v2533_v24 = vld [vmem:[%s3043_s6 + $0x18] sm:$0xff]   ;;  %v2535_v26 = vld [vmem:[%s3043_s6 + $0x20] sm:$0xff]   ;;  %v2537_v28 = vld [vmem:[%s3043_s6 + $0x28] sm:$0xff]   ;;  %s3273_s14 = smov (!%p827_p11, %s2645_s14), 1 }
  0x84   : > { %s2467_s7 = smul.u32 20, %s3271_s15  ;;  %v2538_v29 = vld [vmem:[%s3043_s6 + $0x70] sm:$0xff]   ;;  %v2540_v32 = vld [vmem:[%s3043_s6 + $0x78] sm:$0xff]   ;;  %v2543_v35 = vld [vmem:[%s3043_s6 + $0x80] sm:$0xff]   ;;  %s829_s21 = scalar_lea.vmem %s3256_s2, %s3273_s14 }
  0x85   : > { %2288 = vmatpush3.bf16.msra.mxu0 %v2528_v19  ;;  %v2539_v30 = vld [vmem:[%s3043_s6 + $0x30] sm:$0xff]   ;;  %v2541_v33 = vld [vmem:[%s3043_s6 + $0x38] sm:$0xff]   ;;  %v2544_v37 = vld [vmem:[%s3043_s6 + $0xc0] sm:$0xff]   ;;  %s1992_s22 = sshll.u32 %s3271_s15, 1 }
  0x86   : > { %2308 = vmatpush3.bf16.msra.mxu1 %v2529_v20  ;;  %2289 = vmatprep.subr.bf16.mxu0 %v2663_v16  ;;  %s3070_s10 = scalar_lea.vmem %s3254_s0, %s2467_s7  ;;  %v2545_v38 = vld [vmem:[%s3043_s6 + $0x88] sm:$0xff]   ;;  %v2547_v40 = vld [vmem:[%s3043_s6 + $0x90] sm:$0xff]   ;;  %v2549_v42 = vld [vmem:[%s3043_s6 + $0x98] sm:$0xff]   ;;  %s835_s24 = sadd.s32 %s1992_s22, %s3273_s14 }
  0x87   : > { %2309 = vmatprep.subr.bf16.mxu1 %v2663_v16  ;;  %v2542_v31 = vld [vmem:[%s3070_s10 + $0x4] ss:$0 sps:$4 sm:$0xcc]   ;;  %v839_v36 = vld [vmem:[%s3070_s10] sm:$0x3]  ;;  %v2546_v39 = vld [vmem:[%s3043_s6 + $0xc8] sm:$0xff]  }
  0x88   : > { %v877_v34 = vrot.slane %v2542_v31, 2  ;;  %v2548_v41 = vld [vmem:[%s3043_s6 + $0xd0] sm:$0xff]   ;;  %v2550_v43 = vld [vmem:[%s3043_s6 + $0xd8] sm:$0xff]   ;;  %v2551_v44 = vld [vmem:[%s3043_s6 + $0xa0] sm:$0xff]   ;;  %s1993_s25 = sshll.u32 %s835_s24, 2 }
  0x89   : > { %2290 = vmatpush3.bf16.msra.mxu0 %v2530_v21  ;;  %v2552_v45 = vld [vmem:[%s3043_s6 + $0xe0] sm:$0xff]   ;;  %v2553_v46 = vld [vmem:[%s3043_s6 + $0xa8] sm:$0xff]   ;;  %v2555_v48 = vld [vmem:[%s3043_s6 + $0xb0] sm:$0xff]   ;;  %s837_s28 = scalar_lea.vmem %s3257_s3, %s1993_s25 }
  0x8a   : > { %2310 = vmatpush3.bf16.msra.mxu1 %v2531_v22  ;;  %2291 = vmatprep.subr.bf16.mxu0 %v2663_v16  ;;  %v2554_v47 = vld [vmem:[%s3043_s6 + $0xe8] sm:$0xff]   ;;  %v2556_v49 = vld [vmem:[%s3043_s6 + $0xf0] sm:$0xff]   ;;  %v2557_v50 = vld [vmem:[%s3043_s6 + $0xb8] sm:$0xff]  }
  0x8b   : > { %2311 = vmatprep.subr.bf16.mxu1 %v2663_v16  ;;  %v2560_v51 = vld [vmem:[%s3070_s10] sm:$0x18]   ;;  %v2558_v52 = vld [vmem:[%s3043_s6 + $0xf8] sm:$0xff]   ;;  %v1055_v53 = vld [vmem:[%s3070_s10 + $0xc] sm:$0x3] }
  0x8c   : > { %v2559_v54 = vld [vmem:[%s3043_s6 + $0x100] sm:$0xff]   ;;  %v1186_v55 = vrot.slane %v2560_v51, 3  ;;  %v2562_v57 = vld [vmem:[%s3043_s6 + $0x108] sm:$0xff]   ;;  %v2564_v59 = vld [vmem:[%s3043_s6 + $0x110] sm:$0xff]  }
  0x8d   : > { %2292 = vmatpush3.bf16.msra.mxu0 %v2532_v23  ;;  %v2561_v56 = vld [vmem:[%s3043_s6 + $0x140] sm:$0xff]   ;;  %v2563_v58 = vld [vmem:[%s3043_s6 + $0x148] sm:$0xff]   ;;  %v2565_v60 = vld [vmem:[%s3043_s6 + $0x150] sm:$0xff]  }
  0x8e   : > { %2312 = vmatpush3.bf16.msra.mxu1 %v2533_v24  ;;  %2293 = vmatprep.subr.bf16.mxu0 %v2663_v16  ;;  %v2566_v61 = vld [vmem:[%s3043_s6 + $0x118] sm:$0xff]   ;;  %v2568_v63 = vld [vmem:[%s3043_s6 + $0x120] sm:$0xff]   ;;  %v2570_v1 = vld [vmem:[%s3043_s6 + $0x128] sm:$0xff]  }
  0x8f   : > { %2313 = vmatprep.subr.bf16.mxu1 %v2663_v16  ;;  %v2567_v62 = vld [vmem:[%s3043_s6 + $0x158] sm:$0xff]   ;;  %v2569_v0 = vld [vmem:[%s3043_s6 + $0x160] sm:$0xff]   ;;  %v2571_v2 = vld [vmem:[%s3043_s6 + $0x168] sm:$0xff]  }
  0x90   : > { %v2572_v3 = vld [vmem:[%s3043_s6 + $0x130] sm:$0xff]   ;;  %v2576_v5 = vld [vmem:[%s3070_s10 + $0x8] ss:$0 sps:$4 sm:$0x66]   ;;  %v2574_v6 = vld [vmem:[%s3043_s6 + $0x138] sm:$0xff]  }
  0x91   : > { %2294 = vmatpush3.bf16.msra.mxu0 %v2534_v25  ;;  %v2573_v4 = vld [vmem:[%s3043_s6 + $0x170] sm:$0xff]   ;;  %v2575_v8 = vld [vmem:[%s3043_s6 + $0x178] sm:$0xff]   ;;  %v1298_v9 = vrot.slane %v2576_v5, 1  ;;  %v2577_v10 = vld [vmem:[%s3043_s6 + $0x180] sm:$0xff]  }
  0x92   : > { %2314 = vmatpush3.bf16.msra.mxu1 %v2535_v26  ;;  %2295 = vmatprep.subr.bf16.mxu0 %v2663_v16  ;;  %v2578_v7 = vld [vmem:[%s3070_s10 + $0xc] sm:$0x18]   ;;  %v2579_v12 = vld [vmem:[%s3043_s6 + $0x1c0] sm:$0xff]   ;;  %v2584_v18 = vld [vmem:[%s3043_s6 + $0x198] sm:$0xff]  }
  0x93   : > { %2315 = vmatprep.subr.bf16.mxu1 %v2663_v16  ;;  %v1413_v11 = vrot.slane %v2578_v7, 3  ;;  %v2580_v13 = vld [vmem:[%s3043_s6 + $0x188] sm:$0xff]   ;;  %v2582_v15 = vld [vmem:[%s3043_s6 + $0x190] sm:$0xff]   ;;  %v2585_v19 = vld [vmem:[%s3043_s6 + $0x1d8] sm:$0xff]  }
  0x94   : > { %v2581_v14 = vld [vmem:[%s3043_s6 + $0x1c8] sm:$0xff]   ;;  %v2583_v17 = vld [vmem:[%s3043_s6 + $0x1d0] sm:$0xff]   ;;  %v2586_v20 = vld [vmem:[%s3043_s6 + $0x1a0] sm:$0xff]  }
  0x95   : > { %2296 = vmatpush3.bf16.msra.mxu0 %v2536_v27  ;;  %v2587_v21 = vld [vmem:[%s3043_s6 + $0x1e0] sm:$0xff]   ;;  %v2588_v22 = vld [vmem:[%s3043_s6 + $0x1a8] sm:$0xff]   ;;  %v2590_v24 = vld [vmem:[%s3043_s6 + $0x1b0] sm:$0xff]  }
  0x96   : > { %2316 = vmatpush3.bf16.msra.mxu1 %v2537_v28  ;;  %2297 = vmatprep.subr.bf16.mxu0 %v2663_v16  ;;  %v2589_v23 = vld [vmem:[%s3043_s6 + $0x1e8] sm:$0xff]   ;;  %v2591_v25 = vld [vmem:[%s3043_s6 + $0x1f0] sm:$0xff]   ;;  %v2594_v26 = vld [vmem:[%s3070_s10] ss:$0 sps:$4 sm:$0x66]  }
  0x97   : > { %2317 = vmatprep.subr.bf16.mxu1 %v2663_v16  ;;  %v2592_v27 = vld [vmem:[%s3043_s6 + $0x1b8] sm:$0xff]   ;;  %v2596_v28 = vld [vmem:[%s3070_s10 + $0x4] sm:$0x18]  }
  0x98   : > { %v2595_v31 = vld [vmem:[%s3043_s6 + $0x200] sm:$0xff]  }
  0x99   : > { %2298 = vmatpush3.bf16.msra.mxu0 %v2538_v29  ;;  %v2593_v29 = vld [vmem:[%s3043_s6 + $0x1f8] sm:$0xff]  }
  0x9a   : > { %2318 = vmatpush3.bf16.msra.mxu1 %v2539_v30  ;;  %2299 = vmatprep.subr.bf16.mxu0 %v2663_v16  ;;  %v1525_v30 = vrot.slane %v2594_v26, 1 }
  0x9b   : > { %2319 = vmatprep.subr.bf16.mxu1 %v2663_v16 }
  0x9d   : > { %2300 = vmatpush3.bf16.msra.mxu0 %v2540_v32  ;;  %v1640_v32 = vrot.slane %v2596_v28, 3 }
  0x9e   : > { %2320 = vmatpush3.bf16.msra.mxu1 %v2541_v33  ;;  %2325 = vmatprep.subr.bf16.mxu0 %v2663_v16  ;;  %v2597_v33 = vld [vmem:[%s3043_s6 + $0x208] sm:$0xff]  }
  0x9f   : > { %2345 = vmatprep.subr.bf16.mxu1 %v2663_v16 }
  0xa0   : > { %2302 = vmatmul.mubr.bf16.vlgmr.msra.gmra.mrb[0].mxu0 %v877_v34  ;;  %v2598_v34 = vld [vmem:[%s3043_s6 + $0x210] sm:$0xff]  }
  0xa1   : > { %2322 = vmatmul.mubr.bf16.vlgmr.msra.gmra.mrb[0].mxu1 %v839_v36  ;;  %2326 = vmatpush3.bf16.msra.mxu0 %v2543_v35  ;;  %v2599_v35 = vld [vmem:[%s3043_s6 + $0x218] sm:$0xff]   ;;  %v2600_v36 = vld [vmem:[%s3043_s6 + $0x220] sm:$0xff]  }
  0xa2   : > { %2346 = vmatpush3.bf16.msra.mxu1 %v2544_v37  ;;  %2327 = vmatprep.subr.bf16.mxu0 %v2663_v16  ;;  %v2601_v37 = vld [vmem:[%s3043_s6 + $0x228] sm:$0xff]  }
  0xa3   : > { %2347 = vmatprep.subr.bf16.mxu1 %v2663_v16  ;;  %2341 = vmatprep.mubr.msk.bf16.mxu0 %vm2664_vm0, %v2663_v16 }
  0xa4   : > { %2361 = vmatprep.mubr.msk.bf16.mxu1 %vm2664_vm0, %v2663_v16 }
  0xa5   : > { %2328 = vmatpush3.bf16.msra.mxu0 %v2545_v38  ;;  %v2602_v38 = vld [vmem:[%s3043_s6 + $0x230] sm:$0xff]  }
  0xa6   : > { %2348 = vmatpush3.bf16.msra.mxu1 %v2546_v39  ;;  %2329 = vmatprep.subr.bf16.mxu0 %v2663_v16  ;;  %v2604_v39 = vld [vmem:[%s3070_s10 + $0xc] ss:$0 sps:$4 sm:$0x66]  }
  0xa7   : > { %2349 = vmatprep.subr.bf16.mxu1 %v2663_v16 }
  0xa9   : > { %2330 = vmatpush3.bf16.msra.mxu0 %v2547_v40  ;;  %v2603_v40 = vld [vmem:[%s3043_s6 + $0x238] sm:$0xff]  }
  0xaa   : > { %2350 = vmatpush3.bf16.msra.mxu1 %v2548_v41  ;;  %2331 = vmatprep.subr.bf16.mxu0 %v2663_v16  ;;  %v1752_v41 = vrot.slane %v2604_v39, 1 }
  0xab   : > { %2351 = vmatprep.subr.bf16.mxu1 %v2663_v16 }
  0xad   : > { %2332 = vmatpush3.bf16.msra.mxu0 %v2549_v42 }
  0xae   : > { %2352 = vmatpush3.bf16.msra.mxu1 %v2550_v43  ;;  %2333 = vmatprep.subr.bf16.mxu0 %v2663_v16 }
  0xaf   : > { %2353 = vmatprep.subr.bf16.mxu1 %v2663_v16 }
  0xb1   : > { %2334 = vmatpush3.bf16.msra.mxu0 %v2551_v44 }
  0xb2   : > { %2354 = vmatpush3.bf16.msra.mxu1 %v2552_v45  ;;  %2335 = vmatprep.subr.bf16.mxu0 %v2663_v16 }
  0xb3   : > { %2355 = vmatprep.subr.bf16.mxu1 %v2663_v16 }
  0xb5   : > { %2336 = vmatpush3.bf16.msra.mxu0 %v2553_v46 }
  0xb6   : > { %2356 = vmatpush3.bf16.msra.mxu1 %v2554_v47  ;;  %2337 = vmatprep.subr.bf16.mxu0 %v2663_v16 }
  0xb7   : > { %2357 = vmatprep.subr.bf16.mxu1 %v2663_v16 }
  0xb9   : > { %2338 = vmatpush3.bf16.msra.mxu0 %v2555_v48 }
  0xba   : > { %2358 = vmatpush3.bf16.msra.mxu1 %v2556_v49  ;;  %2339 = vmatprep.subr.bf16.mxu0 %v2663_v16 }
  0xbb   : > { %2359 = vmatprep.subr.bf16.mxu1 %v2663_v16 }
  0xbd   : > { %2340 = vmatpush3.bf16.msra.mxu0 %v2557_v50 }
  0xbe   : > { %2360 = vmatpush3.bf16.msra.mxu1 %v2558_v52  ;;  %2365 = vmatprep.subr.bf16.mxu0 %v2663_v16 }
  0xbf   : > { %2385 = vmatprep.subr.bf16.mxu1 %v2663_v16 }
  0xc0   : > { %2342 = vmatmul.mubr.bf16.vlgmr.msra.gmra.mrb[4].mxu0 %v1055_v53 }
  0xc1   : > { %2366 = vmatpush3.bf16.msra.mxu0 %v2559_v54  ;;  %2362 = vmatmul.mubr.bf16.vlgmr.msra.gmra.mrb[4].mxu1 %v1186_v55 }
  0xc2   : > { %2386 = vmatpush3.bf16.msra.mxu1 %v2561_v56  ;;  %2367 = vmatprep.subr.bf16.mxu0 %v2663_v16 }
  0xc3   : > { %2387 = vmatprep.subr.bf16.mxu1 %v2663_v16  ;;  %2381 = vmatprep.mubr.msk.bf16.mxu0 %vm2664_vm0, %v2663_v16 }
  0xc4   : > { %2401 = vmatprep.mubr.msk.bf16.mxu1 %vm2664_vm0, %v2663_v16 }
  0xc5   : > { %2368 = vmatpush3.bf16.msra.mxu0 %v2562_v57 }
  0xc6   : > { %2388 = vmatpush3.bf16.msra.mxu1 %v2563_v58  ;;  %2369 = vmatprep.subr.bf16.mxu0 %v2663_v16 }
  0xc7   : > { %2389 = vmatprep.subr.bf16.mxu1 %v2663_v16 }
  0xc9   : > { %2370 = vmatpush3.bf16.msra.mxu0 %v2564_v59 }
  0xca   : > { %2390 = vmatpush3.bf16.msra.mxu1 %v2565_v60  ;;  %2371 = vmatprep.subr.bf16.mxu0 %v2663_v16 }
  0xcb   : > { %2391 = vmatprep.subr.bf16.mxu1 %v2663_v16 }
  0xcd   : > { %2372 = vmatpush3.bf16.msra.mxu0 %v2566_v61 }
  0xce   : > { %2392 = vmatpush3.bf16.msra.mxu1 %v2567_v62  ;;  %2373 = vmatprep.subr.bf16.mxu0 %v2663_v16 }
  0xcf   : > { %2393 = vmatprep.subr.bf16.mxu1 %v2663_v16 }
  0xd1   : > { %2374 = vmatpush3.bf16.msra.mxu0 %v2568_v63 }
  0xd2   : > { %2394 = vmatpush3.bf16.msra.mxu1 %v2569_v0  ;;  %2375 = vmatprep.subr.bf16.mxu0 %v2663_v16 }
  0xd3   : > { %2395 = vmatprep.subr.bf16.mxu1 %v2663_v16 }
  0xd5   : > { %2376 = vmatpush3.bf16.msra.mxu0 %v2570_v1 }
  0xd6   : > { %2396 = vmatpush3.bf16.msra.mxu1 %v2571_v2  ;;  %2377 = vmatprep.subr.bf16.mxu0 %v2663_v16 }
  0xd7   : > { %2397 = vmatprep.subr.bf16.mxu1 %v2663_v16 }
  0xd9   : > { %2378 = vmatpush3.bf16.msra.mxu0 %v2572_v3 }
  0xda   : > { %2398 = vmatpush3.bf16.msra.mxu1 %v2573_v4  ;;  %2379 = vmatprep.subr.bf16.mxu0 %v2663_v16 }
  0xdb   : > { %2399 = vmatprep.subr.bf16.mxu1 %v2663_v16 }
  0xdd   : > { %2380 = vmatpush3.bf16.msra.mxu0 %v2574_v6 }
  0xde   : > { %2400 = vmatpush3.bf16.msra.mxu1 %v2575_v8  ;;  %2405 = vmatprep.subr.bf16.mxu0 %v2663_v16 }
  0xdf   : > { %2425 = vmatprep.subr.bf16.mxu1 %v2663_v16 }
  0xe0   : > { %2382 = vmatmul.mubr.bf16.vlgmr.msra.gmra.mrb[8].mxu0 %v1298_v9 }
  0xe1   : > { %2406 = vmatpush3.bf16.msra.mxu0 %v2577_v10  ;;  %2402 = vmatmul.mubr.bf16.vlgmr.msra.gmra.mrb[8].mxu1 %v1413_v11 }
  0xe2   : > { %2426 = vmatpush3.bf16.msra.mxu1 %v2579_v12  ;;  %2407 = vmatprep.subr.bf16.mxu0 %v2663_v16 }
  0xe3   : > { %2427 = vmatprep.subr.bf16.mxu1 %v2663_v16  ;;  %2421 = vmatprep.mubr.msk.bf16.mxu0 %vm2664_vm0, %v2663_v16 }
  0xe4   : > { %2441 = vmatprep.mubr.msk.bf16.mxu1 %vm2664_vm0, %v2663_v16 }
  0xe5   : > { %2408 = vmatpush3.bf16.msra.mxu0 %v2580_v13 }
  0xe6   : > { %2428 = vmatpush3.bf16.msra.mxu1 %v2581_v14  ;;  %2409 = vmatprep.subr.bf16.mxu0 %v2663_v16 }
  0xe7   : > { %2429 = vmatprep.subr.bf16.mxu1 %v2663_v16 }
  0xe9   : > { %2410 = vmatpush3.bf16.msra.mxu0 %v2582_v15 }
  0xea   : > { %2430 = vmatpush3.bf16.msra.mxu1 %v2583_v17  ;;  %2411 = vmatprep.subr.bf16.mxu0 %v2663_v16 }
  0xeb   : > { %2431 = vmatprep.subr.bf16.mxu1 %v2663_v16 }
  0xed   : > { %2412 = vmatpush3.bf16.msra.mxu0 %v2584_v18  ;;  %v2201_v18 = vld [vmem:[%s829_s21] ss:$0 sm:$0xff] }
  0xee   : > { %2432 = vmatpush3.bf16.msra.mxu1 %v2585_v19  ;;  %2413 = vmatprep.subr.bf16.mxu0 %v2663_v16 }
  0xef   : > { %2433 = vmatprep.subr.bf16.mxu1 %v2663_v16 }
  0xf1   : > { %2414 = vmatpush3.bf16.msra.mxu0 %v2586_v20 }
  0xf2   : > { %2434 = vmatpush3.bf16.msra.mxu1 %v2587_v21  ;;  %2415 = vmatprep.subr.bf16.mxu0 %v2663_v16 }
  0xf3   : > { %2435 = vmatprep.subr.bf16.mxu1 %v2663_v16 }
  0xf5   : > { %2416 = vmatpush3.bf16.msra.mxu0 %v2588_v22 }
  0xf6   : > { %2436 = vmatpush3.bf16.msra.mxu1 %v2589_v23  ;;  %2417 = vmatprep.subr.bf16.mxu0 %v2663_v16 }
  0xf7   : > { %2437 = vmatprep.subr.bf16.mxu1 %v2663_v16 }
  0xf9   : > { %2418 = vmatpush3.bf16.msra.mxu0 %v2590_v24 }
  0xfa   : > { %2438 = vmatpush3.bf16.msra.mxu1 %v2591_v25  ;;  %2419 = vmatprep.subr.bf16.mxu0 %v2663_v16 }
  0xfb   : > { %2439 = vmatprep.subr.bf16.mxu1 %v2663_v16 }
  0xfd   : > { %2420 = vmatpush3.bf16.msra.mxu0 %v2592_v27 }
  0xfe   : > { %2440 = vmatpush3.bf16.msra.mxu1 %v2593_v29  ;;  %2445 = vmatprep.subr.bf16.mxu0 %v2663_v16 }
 0x100   : > { %2422 = vmatmul.mubr.bf16.vlgmr.msra.gmra.mrb[12].mxu0 %v1525_v30 }
 0x101   : > { %2446 = vmatpush3.bf16.msra.mxu0 %v2595_v31  ;;  %2442 = vmatmul.mubr.bf16.vlgmr.msra.gmra.mrb[12].mxu1 %v1640_v32 }
 0x102   : > { %2447 = vmatprep.subr.bf16.mxu0 %v2663_v16  ;;  %2461 = vmatprep.mubr.msk.bf16.mxu0 %vm2664_vm0, %v2663_v16 }
 0x105   : > { %2448 = vmatpush3.bf16.msra.mxu0 %v2597_v33 }
 0x106   : > { %2449 = vmatprep.subr.bf16.mxu0 %v2663_v16 }
 0x109   : > { %2450 = vmatpush3.bf16.msra.mxu0 %v2598_v34 }
 0x10a   : > { %2451 = vmatprep.subr.bf16.mxu0 %v2663_v16 }
 0x10d   : > { %2452 = vmatpush3.bf16.msra.mxu0 %v2599_v35 }
 0x10e   : > { %2453 = vmatprep.subr.bf16.mxu0 %v2663_v16 }
 0x111   : > { %2454 = vmatpush3.bf16.msra.mxu0 %v2600_v36 }
 0x112   : > { %2455 = vmatprep.subr.bf16.mxu0 %v2663_v16 }
 0x115   : > { %2456 = vmatpush3.bf16.msra.mxu0 %v2601_v37 }
 0x116   : > { %2457 = vmatprep.subr.bf16.mxu0 %v2663_v16 }
 0x119   : > { %2458 = vmatpush3.bf16.msra.mxu0 %v2602_v38 }
 0x11a   : > { %2459 = vmatprep.subr.bf16.mxu0 %v2663_v16 }
 0x11d   : > { %2460 = vmatpush3.bf16.msra.mxu0 %v2603_v40 }
 0x120   : > { %2462 = vmatmul.mubr.bf16.vlgmr.msra.gmra.mrb[16].mxu0 %v1752_v41 }
 0x173   : > { %v961_v42 = vpop.f32.mrb[0].mxu0 }
 0x174   : > { %v2303_v43 = vpop.f32.mrb[1].mxu0  ;;  %v1049_v44 = vpop.f32.mrb[0].mxu1 }
 0x175   : > { %v1050_v45 = vadd.f32 %v1049_v44, %v961_v42  ;;  %v964_v46 = vpop.f32.mrb[2].mxu0  ;;  %v2323_v47 = vpop.f32.mrb[1].mxu1 }
 0x176   : > { %v2304_v48 = vpop.f32.mrb[3].mxu0  ;;  %v1052_v49 = vpop.f32.mrb[2].mxu1 }
 0x177   : > { %v2324_v50 = vpop.f32.mrb[3].mxu1 }
 0x193   : > { %v1155_v51 = vpop.f32.mrb[4].mxu0 }
 0x194   : > { %v1161_v52 = vadd.f32 %v1155_v51, %v1050_v45  ;;  %v2343_v53 = vpop.f32.mrb[5].mxu0  ;;  %v1270_v54 = vpop.f32.mrb[4].mxu1 }
 0x195   : > { %v1158_v55 = vpop.f32.mrb[6].mxu0  ;;  %v2363_v56 = vpop.f32.mrb[5].mxu1 }
 0x196   : > { %v1276_v57 = vadd.f32 %v1270_v54, %v1161_v52  ;;  %v2344_v16 = vpop.f32.mrb[7].mxu0  ;;  %v1273_v58 = vpop.f32.mrb[6].mxu1 }
 0x197   : > { %v2364_v59 = vpop.f32.mrb[7].mxu1 }
 0x1b3   : > { %v1382_v60 = vpop.f32.mrb[8].mxu0 }
 0x1b4   : > { %v1388_v61 = vadd.f32 %v1382_v60, %v1276_v57  ;;  %v2383_v62 = vpop.f32.mrb[9].mxu0  ;;  %v1497_v63 = vpop.f32.mrb[8].mxu1 }
 0x1b5   : > { %v1385_v0 = vpop.f32.mrb[10].mxu0  ;;  %v2403_v1 = vpop.f32.mrb[9].mxu1 }
 0x1b6   : > { %v1503_v2 = vadd.f32 %v1497_v63, %v1388_v61  ;;  %v2384_v3 = vpop.f32.mrb[11].mxu0  ;;  %v1500_v4 = vpop.f32.mrb[10].mxu1 }
 0x1b7   : > { %v2404_v5 = vpop.f32.mrb[11].mxu1 }
 0x1d3   : > { %v1609_v6 = vpop.f32.mrb[12].mxu0 }
 0x1d4   : > { %v1615_v7 = vadd.f32 %v1609_v6, %v1503_v2  ;;  %v2423_v8 = vpop.f32.mrb[13].mxu0  ;;  %v1724_v9 = vpop.f32.mrb[12].mxu1 }
 0x1d5   : > { %v1612_v10 = vpop.f32.mrb[14].mxu0  ;;  %v2443_v11 = vpop.f32.mrb[13].mxu1 }
 0x1d6   : > { %v1730_v12 = vadd.f32 %v1724_v9, %v1615_v7  ;;  %v2424_v13 = vpop.f32.mrb[15].mxu0  ;;  %v1727_v14 = vpop.f32.mrb[14].mxu1 }
 0x1d7   : > { %v2444_v15 = vpop.f32.mrb[15].mxu1 }
 0x1f3   : > { %v1836_v17 = vpop.f32.mrb[16].mxu0 }
 0x1f4   : > { %v1842_v19 = vadd.f32 %v1836_v17, %v1730_v12  ;;  %v2463_v20 = vpop.f32.mrb[17].mxu0 }
 0x1f5   : > { %v1839_v21 = vpop.f32.mrb[18].mxu0 }
 0x1f6   : > { %v1850_v22 = vadd.f32 %v2201_v18, %v1842_v19  ;;  %v2464_v23 = vpop.f32.mrb[19].mxu0 }
 0x1f8   : > { %v1852_v24 = vsel %vm1851_vm1, %v1850_v22, 0.0 }
 0x1f9   : > { %v1853_v25 = vrot.slane %v1852_v24, 4 }
 0x1fb   : > { %v1854_v26 = vadd.f32 %v1853_v25, %v1852_v24 }
 0x1fd   : > { %v1855_v27 = vrot.slane %v1854_v26, 2 }
 0x1ff   : > { %v1856_v28 = vadd.f32 %v1855_v27, %v1854_v26 }
 0x201   : > { %v1857_v29 = vrot.slane %v1856_v28, 1 }
 0x203   : > { %v1858_v30 = vadd.f32 %v1857_v29, %v1856_v28 }
 0x205   : > { %v1860_v31 = vmul.f32 0.25, %v1858_v30 }
 0x207   : > { %v1861_v32 = vsub.f32 %v1850_v22, %v1860_v31 }
 0x209   : > { %v1862_v33 = vmul.f32 %v1861_v32, %v1861_v32 }
 0x20b   : > { %v1863_v34 = vsel %vm1851_vm1, %v1862_v33, 0.0 }
 0x20c   : > { %v1864_v35 = vrot.slane %v1863_v34, 4 }
 0x20e   : > { %v1865_v36 = vadd.f32 %v1864_v35, %v1863_v34 }
 0x210   : > { %v1866_v37 = vrot.slane %v1865_v36, 2 }
 0x212   : > { %v1867_v38 = vadd.f32 %v1866_v37, %v1865_v36 }
 0x214   : > { %v1868_v39 = vrot.slane %v1867_v38, 1 }
 0x216   : > { %v1869_v40 = vadd.f32 %v1868_v39, %v1867_v38 }
 0x218   : > { %v1870_v41 = vmul.f32 0.25, %v1869_v40 }
 0x21a   : > { %v1871_v42 = vadd.f32 1e-05, %v1870_v41 }
 0x21c   : > { %2605 = vrsqrt.f32 %v1871_v42 }
 0x226   : > { %v2606_v43 = vpop.eup %2605 }
 0x227   : > { %v1873_v44 = vmul.f32 %v2606_v43, %v1861_v32 }
 0x229   : > { %vm1874_vm2 = vcmp.ge.f32.partialorder %v1873_v44, 0.0  ;;  %v1875_v45 = vmul.f32 0.2, %v1873_v44 }
 0x22b   : > { %v1876_v46 = vsel %vm1874_vm2, %v1873_v44, %v1875_v45 }
 0x22c   : > { %1877 = vst [vmem:[%s837_s28] sm:$0xf] %v1876_v46 }
 0x22d PF: > { %s13_s18 = sadd.s32 1, %s2661_s18   ;;  %s3258_s12 = smov %s2641_s13 }
 0x22e   : > { %p10_p12 = scmp.ge.s32.totalorder %s13_s18, 6   ;;  %s3259_s13 = smov %s2734_s23 }
 0x22f   : > { %s3260_s14 = smov %s2653_s16  ;;  %s3261_s15 = smov %s2657_s17 }
 0x230   : > { %s3262_s16 = smov %s3265_s19  ;;  %s3263_s17 = smov %s3269_s20 }
 0x231   :  { %12 = sbr.rel (!%p10_p12) target bundleno = 4 (0x4), region = 122 }

// kernel: discriminator_forward.8
= control target key start
LH: loop header
LB: loop body
LE: loop exit
PB: predicated region body
PF: predicated region fallthrough
CT: control target
= control target key end

     0   :  { %s4095_s12 = smov 0   ;;  %s4097_s13 = smov 0   ;;  %s4934_s0 = inlined_call_operand.vmem [shape: bf16[2,24,256], index: 0, kind: input, shape index: {}]   ;;  %s4935_s1 = inlined_call_operand.vmem [shape: bf16[9,256,512], index: 1, kind: input, shape index: {}]   ;;  %s4936_s2 = inlined_call_operand.vmem [shape: f32[1,512], index: 2, kind: input, shape index: {}]   ;;  %s4937_s3 = inlined_call_operand.vmem [shape: f32[2,4,512], index: 3, kind: output, shape index: {}]  }
   0x1   :  { %s4099_s14 = smov 0   ;;  %s4101_s15 = smov 0  }
   0x2   :  { %s4103_s16 = smov 0   ;;  %s4105_s17 = smov 0  }
   0x3   :  { %s4107_s18 = smov 0  }
   0x4 LB: > { %s22_s19 = sadd.s32 1, %s4065_s16  ;;  %s25_s20 = sadd.s32 1, %s4069_s17  ;;  %s4073_s18 = sphi %s4107_s18, %s13_s18   ;;  %s4069_s17 = sphi %s4105_s17, %s4943_s17   ;;  %s4065_s16 = sphi %s4103_s16, %s4942_s16   ;;  %s4061_s15 = sphi %s4101_s15, %s4941_s15   ;;  %s4057_s14 = sphi %s4099_s14, %s4940_s14   ;;  %s4053_s13 = sphi %s4097_s13, %s4939_s13   ;;  %s4049_s12 = sphi %s4095_s12, %s4938_s12  }
   0x5   : > { %p23_p0 = scmp.ge.s32.totalorder %s22_s19, 4  ;;  %s58_s21 = sadd.s32 1, %s4053_s13 }
   0x6   : > { %p65_p1 = scmp.ne.s32.totalorder %s4053_s13, %s4049_s12  ;;  %p66_p2 = scmp.eq.s32.totalorder %s4073_s18, 0 }
   0x7   : > { %s4945_s19 = smov (%p23_p0, %s22_s19), 0  ;;  %s4947_s20 = smov (!%p23_p0, %s25_s20), %s4069_s17 }
   0x8   : > { %s55_s22 = ssub.s32 %s4065_s16, %s4945_s19  ;;  %p67_p3 = por %p66_p2, %p65_p1 }
   0x9   : > { %p27_p4 = scmp.ge.s32.totalorder %s4947_s20, 2  ;;  %p56_p5 = scmp.eq.s32.totalorder %s55_s22, 0 }
   0xa   : > { %p3171_p6 = scmp.ge.s32.totalorder %s4073_s18, 8 }
   0xb   : > { %s4949_s20 = smov (%p27_p4, %s4947_s20), 0 }
   0xc   : > { %s4144_s23 = scalar_select %p56_p5, %s4053_s13, %s58_s21  }
   0xd   : > { %145 = sbr.rel (%p3171_p6) target bundleno = 216 (0xd8), region = 16 }
  0x14   : > { %156 = sbr.rel (!%p67_p3) target bundleno = 216 (0xd8), region = 24  ;;  %s158_s24 = sand.u32 (%p67_p3), 1, %s4053_s13  }
  0x15   : > { %s3172_s25 = sshll.u32 (%p67_p3), %s4065_s16, 2  ;;  %s3796_s26 = smul.u32 (%p67_p3), 1152, %s158_s24 }
  0x16   : > { %s4152_s29 = scalar_lea.vmem (%p67_p3), %s4935_s1, %s3172_s25 }
  0x17   : > { %v178_v0 = vld [vmem:[%s4152_s29] sm:$0xf] (%p67_p3)  ;;  %v180_v1 = vld [vmem:[%s4152_s29 + $0x10] sm:$0xf] (%p67_p3)  ;;  %s4159_s30 = scalar_lea.vmem (%p67_p3), [#allocation2], %s3796_s26 }
  0x18   : > { %v182_v2 = vld [vmem:[%s4152_s29 + $0x20] sm:$0xf] (%p67_p3)  ;;  %v184_v3 = vld [vmem:[%s4152_s29 + $0x30] sm:$0xf] (%p67_p3)  ;;  %179 = vst [vmem:[%s4159_s30] sm:$0xf] (%p67_p3), %v178_v0 }
  0x19   : > { %v186_v4 = vld [vmem:[%s4152_s29 + $0x40] sm:$0xf] (%p67_p3)  ;;  %181 = vst [vmem:[%s4159_s30 + $0x4] sm:$0xf] (%p67_p3), %v180_v1  ;;  %183 = vst [vmem:[%s4159_s30 + $0x8] sm:$0xf] (%p67_p3), %v182_v2 }
  0x1a   : > { %185 = vst [vmem:[%s4159_s30 + $0xc] sm:$0xf] (%p67_p3), %v184_v3  ;;  %187 = vst [vmem:[%s4159_s30 + $0x10] sm:$0xf] (%p67_p3), %v186_v4  ;;  %v188_v5 = vld [vmem:[%s4152_s29 + $0x50] sm:$0xf] (%p67_p3) }
  0x1b   : > { %v190_v6 = vld [vmem:[%s4152_s29 + $0x60] sm:$0xf]  ;;  %v192_v7 = vld [vmem:[%s4152_s29 + $0x70] sm:$0xf]  ;;  %189 = vst [vmem:[%s4159_s30 + $0x14] sm:$0xf] %v188_v5 }
  0x1c   : > { %191 = vst [vmem:[%s4159_s30 + $0x18] sm:$0xf] %v190_v6  ;;  %193 = vst [vmem:[%s4159_s30 + $0x1c] sm:$0xf] %v192_v7  ;;  %v194_v8 = vld [vmem:[%s4152_s29 + $0x80] sm:$0xf] }
  0x1d   : > { %v196_v9 = vld [vmem:[%s4152_s29 + $0x90] sm:$0xf]  ;;  %v198_v10 = vld [vmem:[%s4152_s29 + $0xa0] sm:$0xf]  ;;  %195 = vst [vmem:[%s4159_s30 + $0x20] sm:$0xf] %v194_v8 }
  0x1e   : > { %197 = vst [vmem:[%s4159_s30 + $0x24] sm:$0xf] %v196_v9  ;;  %199 = vst [vmem:[%s4159_s30 + $0x28] sm:$0xf] %v198_v10  ;;  %v200_v11 = vld [vmem:[%s4152_s29 + $0xb0] sm:$0xf] }
  0x1f   : > { %v202_v12 = vld [vmem:[%s4152_s29 + $0xc0] sm:$0xf]  ;;  %v204_v13 = vld [vmem:[%s4152_s29 + $0xd0] sm:$0xf]  ;;  %201 = vst [vmem:[%s4159_s30 + $0x2c] sm:$0xf] %v200_v11 }
  0x20   : > { %203 = vst [vmem:[%s4159_s30 + $0x30] sm:$0xf] %v202_v12  ;;  %205 = vst [vmem:[%s4159_s30 + $0x34] sm:$0xf] %v204_v13  ;;  %v206_v14 = vld [vmem:[%s4152_s29 + $0xe0] sm:$0xf] }
  0x21   : > { %v208_v15 = vld [vmem:[%s4152_s29 + $0xf0] sm:$0xf]  ;;  %v210_v16 = vld [vmem:[%s4152_s29 + $0x100] sm:$0xf]  ;;  %207 = vst [vmem:[%s4159_s30 + $0x38] sm:$0xf] %v206_v14 }
  0x22   : > { %209 = vst [vmem:[%s4159_s30 + $0x3c] sm:$0xf] %v208_v15  ;;  %211 = vst [vmem:[%s4159_s30 + $0x40] sm:$0xf] %v210_v16  ;;  %v212_v17 = vld [vmem:[%s4152_s29 + $0x110] sm:$0xf] }
  0x23   : > { %v214_v18 = vld [vmem:[%s4152_s29 + $0x120] sm:$0xf]  ;;  %v216_v19 = vld [vmem:[%s4152_s29 + $0x130] sm:$0xf]  ;;  %213 = vst [vmem:[%s4159_s30 + $0x44] sm:$0xf] %v212_v17 }
  0x24   : > { %215 = vst [vmem:[%s4159_s30 + $0x48] sm:$0xf] %v214_v18  ;;  %217 = vst [vmem:[%s4159_s30 + $0x4c] sm:$0xf] %v216_v19  ;;  %v218_v20 = vld [vmem:[%s4152_s29 + $0x140] sm:$0xf] }
  0x25   : > { %v220_v21 = vld [vmem:[%s4152_s29 + $0x150] sm:$0xf]  ;;  %v222_v22 = vld [vmem:[%s4152_s29 + $0x160] sm:$0xf]  ;;  %219 = vst [vmem:[%s4159_s30 + $0x50] sm:$0xf] %v218_v20 }
  0x26   : > { %221 = vst [vmem:[%s4159_s30 + $0x54] sm:$0xf] %v220_v21  ;;  %223 = vst [vmem:[%s4159_s30 + $0x58] sm:$0xf] %v222_v22  ;;  %v224_v23 = vld [vmem:[%s4152_s29 + $0x170] sm:$0xf] }
  0x27   : > { %v226_v24 = vld [vmem:[%s4152_s29 + $0x180] sm:$0xf]  ;;  %v228_v25 = vld [vmem:[%s4152_s29 + $0x190] sm:$0xf]  ;;  %225 = vst [vmem:[%s4159_s30 + $0x5c] sm:$0xf] %v224_v23 }
  0x28   : > { %227 = vst [vmem:[%s4159_s30 + $0x60] sm:$0xf] %v226_v24  ;;  %229 = vst [vmem:[%s4159_s30 + $0x64] sm:$0xf] %v228_v25  ;;  %v230_v26 = vld [vmem:[%s4152_s29 + $0x1a0] sm:$0xf] }
  0x29   : > { %v232_v27 = vld [vmem:[%s4152_s29 + $0x1b0] sm:$0xf]  ;;  %v234_v28 = vld [vmem:[%s4152_s29 + $0x1c0] sm:$0xf]  ;;  %231 = vst [vmem:[%s4159_s30 + $0x68] sm:$0xf] %v230_v26 }
  0x2a   : > { %233 = vst [vmem:[%s4159_s30 + $0x6c] sm:$0xf] %v232_v27  ;;  %235 = vst [vmem:[%s4159_s30 + $0x70] sm:$0xf] %v234_v28  ;;  %v236_v29 = vld [vmem:[%s4152_s29 + $0x1d0] sm:$0xf] }
  0x2b   : > { %v238_v30 = vld [vmem:[%s4152_s29 + $0x1e0] sm:$0xf]  ;;  %v240_v31 = vld [vmem:[%s4152_s29 + $0x1f0] sm:$0xf]  ;;  %237 = vst [vmem:[%s4159_s30 + $0x74] sm:$0xf] %v236_v29 }
  0x2c   : > { %239 = vst [vmem:[%s4159_s30 + $0x78] sm:$0xf] %v238_v30  ;;  %241 = vst [vmem:[%s4159_s30 + $0x7c] sm:$0xf] %v240_v31  ;;  %v242_v32 = vld [vmem:[%s4152_s29 + $0x200] sm:$0xf] }
  0x2d   : > { %v244_v33 = vld [vmem:[%s4152_s29 + $0x210] sm:$0xf]  ;;  %v246_v34 = vld [vmem:[%s4152_s29 + $0x220] sm:$0xf]  ;;  %243 = vst [vmem:[%s4159_s30 + $0x80] sm:$0xf] %v242_v32 }
  0x2e   : > { %245 = vst [vmem:[%s4159_s30 + $0x84] sm:$0xf] %v244_v33  ;;  %247 = vst [vmem:[%s4159_s30 + $0x88] sm:$0xf] %v246_v34  ;;  %v248_v35 = vld [vmem:[%s4152_s29 + $0x230] sm:$0xf] }
  0x2f   : > { %v250_v36 = vld [vmem:[%s4152_s29 + $0x240] sm:$0xf]  ;;  %v252_v37 = vld [vmem:[%s4152_s29 + $0x250] sm:$0xf]  ;;  %249 = vst [vmem:[%s4159_s30 + $0x8c] sm:$0xf] %v248_v35 }
  0x30   : > { %251 = vst [vmem:[%s4159_s30 + $0x90] sm:$0xf] %v250_v36  ;;  %253 = vst [vmem:[%s4159_s30 + $0x94] sm:$0xf] %v252_v37  ;;  %v254_v38 = vld [vmem:[%s4152_s29 + $0x260] sm:$0xf] }
  0x31   : > { %v256_v39 = vld [vmem:[%s4152_s29 + $0x270] sm:$0xf]  ;;  %v258_v40 = vld [vmem:[%s4152_s29 + $0x280] sm:$0xf]  ;;  %255 = vst [vmem:[%s4159_s30 + $0x98] sm:$0xf] %v254_v38 }
  0x32   : > { %257 = vst [vmem:[%s4159_s30 + $0x9c] sm:$0xf] %v256_v39  ;;  %259 = vst [vmem:[%s4159_s30 + $0xa0] sm:$0xf] %v258_v40  ;;  %v260_v41 = vld [vmem:[%s4152_s29 + $0x290] sm:$0xf] }
  0x33   : > { %v262_v42 = vld [vmem:[%s4152_s29 + $0x2a0] sm:$0xf]  ;;  %v264_v43 = vld [vmem:[%s4152_s29 + $0x2b0] sm:$0xf]  ;;  %261 = vst [vmem:[%s4159_s30 + $0xa4] sm:$0xf] %v260_v41 }
  0x34   : > { %263 = vst [vmem:[%s4159_s30 + $0xa8] sm:$0xf] %v262_v42  ;;  %265 = vst [vmem:[%s4159_s30 + $0xac] sm:$0xf] %v264_v43  ;;  %v266_v44 = vld [vmem:[%s4152_s29 + $0x2c0] sm:$0xf] }
  0x35   : > { %v268_v45 = vld [vmem:[%s4152_s29 + $0x2d0] sm:$0xf]  ;;  %v270_v46 = vld [vmem:[%s4152_s29 + $0x2e0] sm:$0xf]  ;;  %267 = vst [vmem:[%s4159_s30 + $0xb0] sm:$0xf] %v266_v44 }
  0x36   : > { %269 = vst [vmem:[%s4159_s30 + $0xb4] sm:$0xf] %v268_v45  ;;  %271 = vst [vmem:[%s4159_s30 + $0xb8] sm:$0xf] %v270_v46  ;;  %v272_v47 = vld [vmem:[%s4152_s29 + $0x2f0] sm:$0xf] }
  0x37   : > { %v274_v48 = vld [vmem:[%s4152_s29 + $0x300] sm:$0xf]  ;;  %v276_v49 = vld [vmem:[%s4152_s29 + $0x310] sm:$0xf]  ;;  %273 = vst [vmem:[%s4159_s30 + $0xbc] sm:$0xf] %v272_v47 }
  0x38   : > { %275 = vst [vmem:[%s4159_s30 + $0xc0] sm:$0xf] %v274_v48  ;;  %277 = vst [vmem:[%s4159_s30 + $0xc4] sm:$0xf] %v276_v49  ;;  %v278_v50 = vld [vmem:[%s4152_s29 + $0x320] sm:$0xf] }
  0x39   : > { %v280_v51 = vld [vmem:[%s4152_s29 + $0x330] sm:$0xf]  ;;  %v282_v52 = vld [vmem:[%s4152_s29 + $0x340] sm:$0xf]  ;;  %279 = vst [vmem:[%s4159_s30 + $0xc8] sm:$0xf] %v278_v50 }
  0x3a   : > { %281 = vst [vmem:[%s4159_s30 + $0xcc] sm:$0xf] %v280_v51  ;;  %283 = vst [vmem:[%s4159_s30 + $0xd0] sm:$0xf] %v282_v52  ;;  %v284_v53 = vld [vmem:[%s4152_s29 + $0x350] sm:$0xf] }
  0x3b   : > { %v286_v54 = vld [vmem:[%s4152_s29 + $0x360] sm:$0xf]  ;;  %v288_v55 = vld [vmem:[%s4152_s29 + $0x370] sm:$0xf]  ;;  %285 = vst [vmem:[%s4159_s30 + $0xd4] sm:$0xf] %v284_v53 }
  0x3c   : > { %287 = vst [vmem:[%s4159_s30 + $0xd8] sm:$0xf] %v286_v54  ;;  %289 = vst [vmem:[%s4159_s30 + $0xdc] sm:$0xf] %v288_v55  ;;  %v290_v56 = vld [vmem:[%s4152_s29 + $0x380] sm:$0xf] }
  0x3d   : > { %v292_v57 = vld [vmem:[%s4152_s29 + $0x390] sm:$0xf]  ;;  %v294_v58 = vld [vmem:[%s4152_s29 + $0x3a0] sm:$0xf]  ;;  %291 = vst [vmem:[%s4159_s30 + $0xe0] sm:$0xf] %v290_v56 }
  0x3e   : > { %293 = vst [vmem:[%s4159_s30 + $0xe4] sm:$0xf] %v292_v57  ;;  %295 = vst [vmem:[%s4159_s30 + $0xe8] sm:$0xf] %v294_v58  ;;  %v296_v59 = vld [vmem:[%s4152_s29 + $0x3b0] sm:$0xf] }
  0x3f   : > { %v298_v60 = vld [vmem:[%s4152_s29 + $0x3c0] sm:$0xf]  ;;  %v300_v61 = vld [vmem:[%s4152_s29 + $0x3d0] sm:$0xf]  ;;  %297 = vst [vmem:[%s4159_s30 + $0xec] sm:$0xf] %v296_v59 }
  0x40   : > { %299 = vst [vmem:[%s4159_s30 + $0xf0] sm:$0xf] %v298_v60  ;;  %301 = vst [vmem:[%s4159_s30 + $0xf4] sm:$0xf] %v300_v61  ;;  %v302_v62 = vld [vmem:[%s4152_s29 + $0x3e0] sm:$0xf] }
  0x41   : > { %v304_v63 = vld [vmem:[%s4152_s29 + $0x3f0] sm:$0xf]  ;;  %v306_v0 = vld [vmem:[%s4152_s29 + $0x400] sm:$0xf]  ;;  %303 = vst [vmem:[%s4159_s30 + $0xf8] sm:$0xf] %v302_v62 }
  0x42   : > { %305 = vst [vmem:[%s4159_s30 + $0xfc] sm:$0xf] %v304_v63  ;;  %307 = vst [vmem:[%s4159_s30 + $0x100] sm:$0xf] %v306_v0  ;;  %v308_v1 = vld [vmem:[%s4152_s29 + $0x410] sm:$0xf] }
  0x43   : > { %v310_v2 = vld [vmem:[%s4152_s29 + $0x420] sm:$0xf]  ;;  %v312_v3 = vld [vmem:[%s4152_s29 + $0x430] sm:$0xf]  ;;  %309 = vst [vmem:[%s4159_s30 + $0x104] sm:$0xf] %v308_v1 }
  0x44   : > { %311 = vst [vmem:[%s4159_s30 + $0x108] sm:$0xf] %v310_v2  ;;  %313 = vst [vmem:[%s4159_s30 + $0x10c] sm:$0xf] %v312_v3  ;;  %v314_v4 = vld [vmem:[%s4152_s29 + $0x440] sm:$0xf] }
  0x45   : > { %v316_v5 = vld [vmem:[%s4152_s29 + $0x450] sm:$0xf]  ;;  %v318_v6 = vld [vmem:[%s4152_s29 + $0x460] sm:$0xf]  ;;  %315 = vst [vmem:[%s4159_s30 + $0x110] sm:$0xf] %v314_v4 }
  0x46   : > { %317 = vst [vmem:[%s4159_s30 + $0x114] sm:$0xf] %v316_v5  ;;  %319 = vst [vmem:[%s4159_s30 + $0x118] sm:$0xf] %v318_v6  ;;  %v320_v7 = vld [vmem:[%s4152_s29 + $0x470] sm:$0xf] }
  0x47   : > { %v322_v8 = vld [vmem:[%s4152_s29 + $0x480] sm:$0xf]  ;;  %v324_v9 = vld [vmem:[%s4152_s29 + $0x490] sm:$0xf]  ;;  %321 = vst [vmem:[%s4159_s30 + $0x11c] sm:$0xf] %v320_v7 }
  0x48   : > { %323 = vst [vmem:[%s4159_s30 + $0x120] sm:$0xf] %v322_v8  ;;  %325 = vst [vmem:[%s4159_s30 + $0x124] sm:$0xf] %v324_v9  ;;  %v326_v10 = vld [vmem:[%s4152_s29 + $0x4a0] sm:$0xf] }
  0x49   : > { %v328_v11 = vld [vmem:[%s4152_s29 + $0x4b0] sm:$0xf]  ;;  %v330_v12 = vld [vmem:[%s4152_s29 + $0x4c0] sm:$0xf]  ;;  %327 = vst [vmem:[%s4159_s30 + $0x128] sm:$0xf] %v326_v10 }
  0x4a   : > { %329 = vst [vmem:[%s4159_s30 + $0x12c] sm:$0xf] %v328_v11  ;;  %331 = vst [vmem:[%s4159_s30 + $0x130] sm:$0xf] %v330_v12  ;;  %v332_v13 = vld [vmem:[%s4152_s29 + $0x4d0] sm:$0xf] }
  0x4b   : > { %v334_v14 = vld [vmem:[%s4152_s29 + $0x4e0] sm:$0xf]  ;;  %v336_v15 = vld [vmem:[%s4152_s29 + $0x4f0] sm:$0xf]  ;;  %333 = vst [vmem:[%s4159_s30 + $0x134] sm:$0xf] %v332_v13 }
  0x4c   : > { %335 = vst [vmem:[%s4159_s30 + $0x138] sm:$0xf] %v334_v14  ;;  %337 = vst [vmem:[%s4159_s30 + $0x13c] sm:$0xf] %v336_v15  ;;  %v338_v16 = vld [vmem:[%s4152_s29 + $0x500] sm:$0xf] }
  0x4d   : > { %v340_v17 = vld [vmem:[%s4152_s29 + $0x510] sm:$0xf]  ;;  %v342_v18 = vld [vmem:[%s4152_s29 + $0x520] sm:$0xf]  ;;  %339 = vst [vmem:[%s4159_s30 + $0x140] sm:$0xf] %v338_v16 }
  0x4e   : > { %341 = vst [vmem:[%s4159_s30 + $0x144] sm:$0xf] %v340_v17  ;;  %343 = vst [vmem:[%s4159_s30 + $0x148] sm:$0xf] %v342_v18  ;;  %v344_v19 = vld [vmem:[%s4152_s29 + $0x530] sm:$0xf] }
  0x4f   : > { %v346_v20 = vld [vmem:[%s4152_s29 + $0x540] sm:$0xf]  ;;  %v348_v21 = vld [vmem:[%s4152_s29 + $0x550] sm:$0xf]  ;;  %345 = vst [vmem:[%s4159_s30 + $0x14c] sm:$0xf] %v344_v19 }
  0x50   : > { %347 = vst [vmem:[%s4159_s30 + $0x150] sm:$0xf] %v346_v20  ;;  %349 = vst [vmem:[%s4159_s30 + $0x154] sm:$0xf] %v348_v21  ;;  %v350_v22 = vld [vmem:[%s4152_s29 + $0x560] sm:$0xf] }
  0x51   : > { %v352_v23 = vld [vmem:[%s4152_s29 + $0x570] sm:$0xf]  ;;  %v354_v24 = vld [vmem:[%s4152_s29 + $0x580] sm:$0xf]  ;;  %351 = vst [vmem:[%s4159_s30 + $0x158] sm:$0xf] %v350_v22 }
  0x52   : > { %353 = vst [vmem:[%s4159_s30 + $0x15c] sm:$0xf] %v352_v23  ;;  %355 = vst [vmem:[%s4159_s30 + $0x160] sm:$0xf] %v354_v24  ;;  %v356_v25 = vld [vmem:[%s4152_s29 + $0x590] sm:$0xf] }
  0x53   : > { %v358_v26 = vld [vmem:[%s4152_s29 + $0x5a0] sm:$0xf]  ;;  %v360_v27 = vld [vmem:[%s4152_s29 + $0x5b0] sm:$0xf]  ;;  %357 = vst [vmem:[%s4159_s30 + $0x164] sm:$0xf] %v356_v25 }
  0x54   : > { %359 = vst [vmem:[%s4159_s30 + $0x168] sm:$0xf] %v358_v26  ;;  %361 = vst [vmem:[%s4159_s30 + $0x16c] sm:$0xf] %v360_v27  ;;  %v362_v28 = vld [vmem:[%s4152_s29 + $0x5c0] sm:$0xf] }
  0x55   : > { %v364_v29 = vld [vmem:[%s4152_s29 + $0x5d0] sm:$0xf]  ;;  %v366_v30 = vld [vmem:[%s4152_s29 + $0x5e0] sm:$0xf]  ;;  %363 = vst [vmem:[%s4159_s30 + $0x170] sm:$0xf] %v362_v28 }
  0x56   : > { %365 = vst [vmem:[%s4159_s30 + $0x174] sm:$0xf] %v364_v29  ;;  %367 = vst [vmem:[%s4159_s30 + $0x178] sm:$0xf] %v366_v30  ;;  %v368_v31 = vld [vmem:[%s4152_s29 + $0x5f0] sm:$0xf] }
  0x57   : > { %v370_v32 = vld [vmem:[%s4152_s29 + $0x600] sm:$0xf]  ;;  %v372_v33 = vld [vmem:[%s4152_s29 + $0x610] sm:$0xf]  ;;  %369 = vst [vmem:[%s4159_s30 + $0x17c] sm:$0xf] %v368_v31 }
  0x58   : > { %371 = vst [vmem:[%s4159_s30 + $0x180] sm:$0xf] %v370_v32  ;;  %373 = vst [vmem:[%s4159_s30 + $0x184] sm:$0xf] %v372_v33  ;;  %v374_v34 = vld [vmem:[%s4152_s29 + $0x620] sm:$0xf] }
  0x59   : > { %v376_v35 = vld [vmem:[%s4152_s29 + $0x630] sm:$0xf]  ;;  %v378_v36 = vld [vmem:[%s4152_s29 + $0x640] sm:$0xf]  ;;  %375 = vst [vmem:[%s4159_s30 + $0x188] sm:$0xf] %v374_v34 }
  0x5a   : > { %377 = vst [vmem:[%s4159_s30 + $0x18c] sm:$0xf] %v376_v35  ;;  %379 = vst [vmem:[%s4159_s30 + $0x190] sm:$0xf] %v378_v36  ;;  %v380_v37 = vld [vmem:[%s4152_s29 + $0x650] sm:$0xf] }
  0x5b   : > { %v382_v38 = vld [vmem:[%s4152_s29 + $0x660] sm:$0xf]  ;;  %v384_v39 = vld [vmem:[%s4152_s29 + $0x670] sm:$0xf]  ;;  %381 = vst [vmem:[%s4159_s30 + $0x194] sm:$0xf] %v380_v37 }
  0x5c   : > { %383 = vst [vmem:[%s4159_s30 + $0x198] sm:$0xf] %v382_v38  ;;  %385 = vst [vmem:[%s4159_s30 + $0x19c] sm:$0xf] %v384_v39  ;;  %v386_v40 = vld [vmem:[%s4152_s29 + $0x680] sm:$0xf] }
  0x5d   : > { %v388_v41 = vld [vmem:[%s4152_s29 + $0x690] sm:$0xf]  ;;  %v390_v42 = vld [vmem:[%s4152_s29 + $0x6a0] sm:$0xf]  ;;  %387 = vst [vmem:[%s4159_s30 + $0x1a0] sm:$0xf] %v386_v40 }
  0x5e   : > { %389 = vst [vmem:[%s4159_s30 + $0x1a4] sm:$0xf] %v388_v41  ;;  %391 = vst [vmem:[%s4159_s30 + $0x1a8] sm:$0xf] %v390_v42  ;;  %v392_v43 = vld [vmem:[%s4152_s29 + $0x6b0] sm:$0xf] }
  0x5f   : > { %v394_v44 = vld [vmem:[%s4152_s29 + $0x6c0] sm:$0xf]  ;;  %v396_v45 = vld [vmem:[%s4152_s29 + $0x6d0] sm:$0xf]  ;;  %393 = vst [vmem:[%s4159_s30 + $0x1ac] sm:$0xf] %v392_v43 }
  0x60   : > { %395 = vst [vmem:[%s4159_s30 + $0x1b0] sm:$0xf] %v394_v44  ;;  %397 = vst [vmem:[%s4159_s30 + $0x1b4] sm:$0xf] %v396_v45  ;;  %v398_v46 = vld [vmem:[%s4152_s29 + $0x6e0] sm:$0xf] }
  0x61   : > { %v400_v47 = vld [vmem:[%s4152_s29 + $0x6f0] sm:$0xf]  ;;  %v402_v48 = vld [vmem:[%s4152_s29 + $0x700] sm:$0xf]  ;;  %399 = vst [vmem:[%s4159_s30 + $0x1b8] sm:$0xf] %v398_v46 }
  0x62   : > { %401 = vst [vmem:[%s4159_s30 + $0x1bc] sm:$0xf] %v400_v47  ;;  %403 = vst [vmem:[%s4159_s30 + $0x1c0] sm:$0xf] %v402_v48  ;;  %v404_v49 = vld [vmem:[%s4152_s29 + $0x710] sm:$0xf] }
  0x63   : > { %v406_v50 = vld [vmem:[%s4152_s29 + $0x720] sm:$0xf]  ;;  %v408_v51 = vld [vmem:[%s4152_s29 + $0x730] sm:$0xf]  ;;  %405 = vst [vmem:[%s4159_s30 + $0x1c4] sm:$0xf] %v404_v49 }
  0x64   : > { %407 = vst [vmem:[%s4159_s30 + $0x1c8] sm:$0xf] %v406_v50  ;;  %409 = vst [vmem:[%s4159_s30 + $0x1cc] sm:$0xf] %v408_v51  ;;  %v410_v52 = vld [vmem:[%s4152_s29 + $0x740] sm:$0xf] }
  0x65   : > { %v412_v53 = vld [vmem:[%s4152_s29 + $0x750] sm:$0xf]  ;;  %v414_v54 = vld [vmem:[%s4152_s29 + $0x760] sm:$0xf]  ;;  %411 = vst [vmem:[%s4159_s30 + $0x1d0] sm:$0xf] %v410_v52 }
  0x66   : > { %413 = vst [vmem:[%s4159_s30 + $0x1d4] sm:$0xf] %v412_v53  ;;  %415 = vst [vmem:[%s4159_s30 + $0x1d8] sm:$0xf] %v414_v54  ;;  %v416_v55 = vld [vmem:[%s4152_s29 + $0x770] sm:$0xf] }
  0x67   : > { %v418_v56 = vld [vmem:[%s4152_s29 + $0x780] sm:$0xf]  ;;  %v420_v57 = vld [vmem:[%s4152_s29 + $0x790] sm:$0xf]  ;;  %417 = vst [vmem:[%s4159_s30 + $0x1dc] sm:$0xf] %v416_v55 }
  0x68   : > { %419 = vst [vmem:[%s4159_s30 + $0x1e0] sm:$0xf] %v418_v56  ;;  %421 = vst [vmem:[%s4159_s30 + $0x1e4] sm:$0xf] %v420_v57  ;;  %v422_v58 = vld [vmem:[%s4152_s29 + $0x7a0] sm:$0xf] }
  0x69   : > { %v424_v59 = vld [vmem:[%s4152_s29 + $0x7b0] sm:$0xf]  ;;  %v426_v60 = vld [vmem:[%s4152_s29 + $0x7c0] sm:$0xf]  ;;  %423 = vst [vmem:[%s4159_s30 + $0x1e8] sm:$0xf] %v422_v58 }
  0x6a   : > { %425 = vst [vmem:[%s4159_s30 + $0x1ec] sm:$0xf] %v424_v59  ;;  %427 = vst [vmem:[%s4159_s30 + $0x1f0] sm:$0xf] %v426_v60  ;;  %v428_v61 = vld [vmem:[%s4152_s29 + $0x7d0] sm:$0xf] }
  0x6b   : > { %v430_v62 = vld [vmem:[%s4152_s29 + $0x7e0] sm:$0xf]  ;;  %v432_v63 = vld [vmem:[%s4152_s29 + $0x7f0] sm:$0xf]  ;;  %429 = vst [vmem:[%s4159_s30 + $0x1f4] sm:$0xf] %v428_v61 }
  0x6c   : > { %431 = vst [vmem:[%s4159_s30 + $0x1f8] sm:$0xf] %v430_v62  ;;  %433 = vst [vmem:[%s4159_s30 + $0x1fc] sm:$0xf] %v432_v63  ;;  %v434_v0 = vld [vmem:[%s4152_s29 + $0x800] sm:$0xf] }
  0x6d   : > { %v436_v1 = vld [vmem:[%s4152_s29 + $0x810] sm:$0xf]  ;;  %v438_v2 = vld [vmem:[%s4152_s29 + $0x820] sm:$0xf]  ;;  %435 = vst [vmem:[%s4159_s30 + $0x200] sm:$0xf] %v434_v0 }
  0x6e   : > { %437 = vst [vmem:[%s4159_s30 + $0x204] sm:$0xf] %v436_v1  ;;  %439 = vst [vmem:[%s4159_s30 + $0x208] sm:$0xf] %v438_v2  ;;  %v440_v3 = vld [vmem:[%s4152_s29 + $0x830] sm:$0xf] }
  0x6f   : > { %v442_v4 = vld [vmem:[%s4152_s29 + $0x840] sm:$0xf]  ;;  %v444_v5 = vld [vmem:[%s4152_s29 + $0x850] sm:$0xf]  ;;  %441 = vst [vmem:[%s4159_s30 + $0x20c] sm:$0xf] %v440_v3 }
  0x70   : > { %443 = vst [vmem:[%s4159_s30 + $0x210] sm:$0xf] %v442_v4  ;;  %445 = vst [vmem:[%s4159_s30 + $0x214] sm:$0xf] %v444_v5  ;;  %v446_v6 = vld [vmem:[%s4152_s29 + $0x860] sm:$0xf] }
  0x71   : > { %v448_v7 = vld [vmem:[%s4152_s29 + $0x870] sm:$0xf]  ;;  %v450_v8 = vld [vmem:[%s4152_s29 + $0x880] sm:$0xf]  ;;  %447 = vst [vmem:[%s4159_s30 + $0x218] sm:$0xf] %v446_v6 }
  0x72   : > { %449 = vst [vmem:[%s4159_s30 + $0x21c] sm:$0xf] %v448_v7  ;;  %451 = vst [vmem:[%s4159_s30 + $0x220] sm:$0xf] %v450_v8  ;;  %v452_v9 = vld [vmem:[%s4152_s29 + $0x890] sm:$0xf] }
  0x73   : > { %v454_v10 = vld [vmem:[%s4152_s29 + $0x8a0] sm:$0xf]  ;;  %v456_v11 = vld [vmem:[%s4152_s29 + $0x8b0] sm:$0xf]  ;;  %453 = vst [vmem:[%s4159_s30 + $0x224] sm:$0xf] %v452_v9 }
  0x74   : > { %455 = vst [vmem:[%s4159_s30 + $0x228] sm:$0xf] %v454_v10  ;;  %457 = vst [vmem:[%s4159_s30 + $0x22c] sm:$0xf] %v456_v11  ;;  %v458_v12 = vld [vmem:[%s4152_s29 + $0x8c0] sm:$0xf] }
  0x75   : > { %v460_v13 = vld [vmem:[%s4152_s29 + $0x8d0] sm:$0xf]  ;;  %v462_v14 = vld [vmem:[%s4152_s29 + $0x8e0] sm:$0xf]  ;;  %459 = vst [vmem:[%s4159_s30 + $0x230] sm:$0xf] %v458_v12 }
  0x76   : > { %461 = vst [vmem:[%s4159_s30 + $0x234] sm:$0xf] %v460_v13  ;;  %463 = vst [vmem:[%s4159_s30 + $0x238] sm:$0xf] %v462_v14  ;;  %v464_v15 = vld [vmem:[%s4152_s29 + $0x8f0] sm:$0xf] }
  0x77   : > { %v466_v16 = vld [vmem:[%s4152_s29 + $0x900] sm:$0xf]  ;;  %v468_v17 = vld [vmem:[%s4152_s29 + $0x910] sm:$0xf]  ;;  %465 = vst [vmem:[%s4159_s30 + $0x23c] sm:$0xf] %v464_v15 }
  0x78   : > { %467 = vst [vmem:[%s4159_s30 + $0x240] sm:$0xf] %v466_v16  ;;  %469 = vst [vmem:[%s4159_s30 + $0x244] sm:$0xf] %v468_v17  ;;  %v470_v18 = vld [vmem:[%s4152_s29 + $0x920] sm:$0xf] }
  0x79   : > { %v472_v19 = vld [vmem:[%s4152_s29 + $0x930] sm:$0xf]  ;;  %v474_v20 = vld [vmem:[%s4152_s29 + $0x940] sm:$0xf]  ;;  %471 = vst [vmem:[%s4159_s30 + $0x248] sm:$0xf] %v470_v18 }
  0x7a   : > { %473 = vst [vmem:[%s4159_s30 + $0x24c] sm:$0xf] %v472_v19  ;;  %475 = vst [vmem:[%s4159_s30 + $0x250] sm:$0xf] %v474_v20  ;;  %v476_v21 = vld [vmem:[%s4152_s29 + $0x950] sm:$0xf] }
  0x7b   : > { %v478_v22 = vld [vmem:[%s4152_s29 + $0x960] sm:$0xf]  ;;  %v480_v23 = vld [vmem:[%s4152_s29 + $0x970] sm:$0xf]  ;;  %477 = vst [vmem:[%s4159_s30 + $0x254] sm:$0xf] %v476_v21 }
  0x7c   : > { %479 = vst [vmem:[%s4159_s30 + $0x258] sm:$0xf] %v478_v22  ;;  %481 = vst [vmem:[%s4159_s30 + $0x25c] sm:$0xf] %v480_v23  ;;  %v482_v24 = vld [vmem:[%s4152_s29 + $0x980] sm:$0xf] }
  0x7d   : > { %v484_v25 = vld [vmem:[%s4152_s29 + $0x990] sm:$0xf]  ;;  %v486_v26 = vld [vmem:[%s4152_s29 + $0x9a0] sm:$0xf]  ;;  %483 = vst [vmem:[%s4159_s30 + $0x260] sm:$0xf] %v482_v24 }
  0x7e   : > { %485 = vst [vmem:[%s4159_s30 + $0x264] sm:$0xf] %v484_v25  ;;  %487 = vst [vmem:[%s4159_s30 + $0x268] sm:$0xf] %v486_v26  ;;  %v488_v27 = vld [vmem:[%s4152_s29 + $0x9b0] sm:$0xf] }
  0x7f   : > { %v490_v28 = vld [vmem:[%s4152_s29 + $0x9c0] sm:$0xf]  ;;  %v492_v29 = vld [vmem:[%s4152_s29 + $0x9d0] sm:$0xf]  ;;  %489 = vst [vmem:[%s4159_s30 + $0x26c] sm:$0xf] %v488_v27 }
  0x80   : > { %491 = vst [vmem:[%s4159_s30 + $0x270] sm:$0xf] %v490_v28  ;;  %493 = vst [vmem:[%s4159_s30 + $0x274] sm:$0xf] %v492_v29  ;;  %v494_v30 = vld [vmem:[%s4152_s29 + $0x9e0] sm:$0xf] }
  0x81   : > { %v496_v31 = vld [vmem:[%s4152_s29 + $0x9f0] sm:$0xf]  ;;  %v498_v32 = vld [vmem:[%s4152_s29 + $0xa00] sm:$0xf]  ;;  %495 = vst [vmem:[%s4159_s30 + $0x278] sm:$0xf] %v494_v30 }
  0x82   : > { %497 = vst [vmem:[%s4159_s30 + $0x27c] sm:$0xf] %v496_v31  ;;  %499 = vst [vmem:[%s4159_s30 + $0x280] sm:$0xf] %v498_v32  ;;  %v500_v33 = vld [vmem:[%s4152_s29 + $0xa10] sm:$0xf] }
  0x83   : > { %v502_v34 = vld [vmem:[%s4152_s29 + $0xa20] sm:$0xf]  ;;  %v504_v35 = vld [vmem:[%s4152_s29 + $0xa30] sm:$0xf]  ;;  %501 = vst [vmem:[%s4159_s30 + $0x284] sm:$0xf] %v500_v33 }
  0x84   : > { %503 = vst [vmem:[%s4159_s30 + $0x288] sm:$0xf] %v502_v34  ;;  %505 = vst [vmem:[%s4159_s30 + $0x28c] sm:$0xf] %v504_v35  ;;  %v506_v36 = vld [vmem:[%s4152_s29 + $0xa40] sm:$0xf] }
  0x85   : > { %v508_v37 = vld [vmem:[%s4152_s29 + $0xa50] sm:$0xf]  ;;  %v510_v38 = vld [vmem:[%s4152_s29 + $0xa60] sm:$0xf]  ;;  %507 = vst [vmem:[%s4159_s30 + $0x290] sm:$0xf] %v506_v36 }
  0x86   : > { %509 = vst [vmem:[%s4159_s30 + $0x294] sm:$0xf] %v508_v37  ;;  %511 = vst [vmem:[%s4159_s30 + $0x298] sm:$0xf] %v510_v38  ;;  %v512_v39 = vld [vmem:[%s4152_s29 + $0xa70] sm:$0xf] }
  0x87   : > { %v514_v40 = vld [vmem:[%s4152_s29 + $0xa80] sm:$0xf]  ;;  %v516_v41 = vld [vmem:[%s4152_s29 + $0xa90] sm:$0xf]  ;;  %513 = vst [vmem:[%s4159_s30 + $0x29c] sm:$0xf] %v512_v39 }
  0x88   : > { %515 = vst [vmem:[%s4159_s30 + $0x2a0] sm:$0xf] %v514_v40  ;;  %517 = vst [vmem:[%s4159_s30 + $0x2a4] sm:$0xf] %v516_v41  ;;  %v518_v42 = vld [vmem:[%s4152_s29 + $0xaa0] sm:$0xf] }
  0x89   : > { %v520_v43 = vld [vmem:[%s4152_s29 + $0xab0] sm:$0xf]  ;;  %v522_v44 = vld [vmem:[%s4152_s29 + $0xac0] sm:$0xf]  ;;  %519 = vst [vmem:[%s4159_s30 + $0x2a8] sm:$0xf] %v518_v42 }
  0x8a   : > { %521 = vst [vmem:[%s4159_s30 + $0x2ac] sm:$0xf] %v520_v43  ;;  %523 = vst [vmem:[%s4159_s30 + $0x2b0] sm:$0xf] %v522_v44  ;;  %v524_v45 = vld [vmem:[%s4152_s29 + $0xad0] sm:$0xf] }
  0x8b   : > { %v526_v46 = vld [vmem:[%s4152_s29 + $0xae0] sm:$0xf]  ;;  %v528_v47 = vld [vmem:[%s4152_s29 + $0xaf0] sm:$0xf]  ;;  %525 = vst [vmem:[%s4159_s30 + $0x2b4] sm:$0xf] %v524_v45 }
  0x8c   : > { %527 = vst [vmem:[%s4159_s30 + $0x2b8] sm:$0xf] %v526_v46  ;;  %529 = vst [vmem:[%s4159_s30 + $0x2bc] sm:$0xf] %v528_v47  ;;  %v530_v48 = vld [vmem:[%s4152_s29 + $0xb00] sm:$0xf] }
  0x8d   : > { %v532_v49 = vld [vmem:[%s4152_s29 + $0xb10] sm:$0xf]  ;;  %v534_v50 = vld [vmem:[%s4152_s29 + $0xb20] sm:$0xf]  ;;  %531 = vst [vmem:[%s4159_s30 + $0x2c0] sm:$0xf] %v530_v48 }
  0x8e   : > { %533 = vst [vmem:[%s4159_s30 + $0x2c4] sm:$0xf] %v532_v49  ;;  %535 = vst [vmem:[%s4159_s30 + $0x2c8] sm:$0xf] %v534_v50  ;;  %v536_v51 = vld [vmem:[%s4152_s29 + $0xb30] sm:$0xf] }
  0x8f   : > { %v538_v52 = vld [vmem:[%s4152_s29 + $0xb40] sm:$0xf]  ;;  %v540_v53 = vld [vmem:[%s4152_s29 + $0xb50] sm:$0xf]  ;;  %537 = vst [vmem:[%s4159_s30 + $0x2cc] sm:$0xf] %v536_v51 }
  0x90   : > { %539 = vst [vmem:[%s4159_s30 + $0x2d0] sm:$0xf] %v538_v52  ;;  %541 = vst [vmem:[%s4159_s30 + $0x2d4] sm:$0xf] %v540_v53  ;;  %v542_v54 = vld [vmem:[%s4152_s29 + $0xb60] sm:$0xf] }
  0x91   : > { %v544_v55 = vld [vmem:[%s4152_s29 + $0xb70] sm:$0xf]  ;;  %v546_v56 = vld [vmem:[%s4152_s29 + $0xb80] sm:$0xf]  ;;  %543 = vst [vmem:[%s4159_s30 + $0x2d8] sm:$0xf] %v542_v54 }
  0x92   : > { %545 = vst [vmem:[%s4159_s30 + $0x2dc] sm:$0xf] %v544_v55  ;;  %547 = vst [vmem:[%s4159_s30 + $0x2e0] sm:$0xf] %v546_v56  ;;  %v548_v57 = vld [vmem:[%s4152_s29 + $0xb90] sm:$0xf] }
  0x93   : > { %v550_v58 = vld [vmem:[%s4152_s29 + $0xba0] sm:$0xf]  ;;  %v552_v59 = vld [vmem:[%s4152_s29 + $0xbb0] sm:$0xf]  ;;  %549 = vst [vmem:[%s4159_s30 + $0x2e4] sm:$0xf] %v548_v57 }
  0x94   : > { %551 = vst [vmem:[%s4159_s30 + $0x2e8] sm:$0xf] %v550_v58  ;;  %553 = vst [vmem:[%s4159_s30 + $0x2ec] sm:$0xf] %v552_v59  ;;  %v554_v60 = vld [vmem:[%s4152_s29 + $0xbc0] sm:$0xf] }
  0x95   : > { %v556_v61 = vld [vmem:[%s4152_s29 + $0xbd0] sm:$0xf]  ;;  %v558_v62 = vld [vmem:[%s4152_s29 + $0xbe0] sm:$0xf]  ;;  %555 = vst [vmem:[%s4159_s30 + $0x2f0] sm:$0xf] %v554_v60 }
  0x96   : > { %557 = vst [vmem:[%s4159_s30 + $0x2f4] sm:$0xf] %v556_v61  ;;  %559 = vst [vmem:[%s4159_s30 + $0x2f8] sm:$0xf] %v558_v62  ;;  %v560_v63 = vld [vmem:[%s4152_s29 + $0xbf0] sm:$0xf] }
  0x97   : > { %v562_v0 = vld [vmem:[%s4152_s29 + $0xc00] sm:$0xf]  ;;  %v564_v1 = vld [vmem:[%s4152_s29 + $0xc10] sm:$0xf]  ;;  %561 = vst [vmem:[%s4159_s30 + $0x2fc] sm:$0xf] %v560_v63 }
  0x98   : > { %563 = vst [vmem:[%s4159_s30 + $0x300] sm:$0xf] %v562_v0  ;;  %565 = vst [vmem:[%s4159_s30 + $0x304] sm:$0xf] %v564_v1  ;;  %v566_v2 = vld [vmem:[%s4152_s29 + $0xc20] sm:$0xf] }
  0x99   : > { %v568_v3 = vld [vmem:[%s4152_s29 + $0xc30] sm:$0xf]  ;;  %v570_v4 = vld [vmem:[%s4152_s29 + $0xc40] sm:$0xf]  ;;  %567 = vst [vmem:[%s4159_s30 + $0x308] sm:$0xf] %v566_v2 }
  0x9a   : > { %569 = vst [vmem:[%s4159_s30 + $0x30c] sm:$0xf] %v568_v3  ;;  %571 = vst [vmem:[%s4159_s30 + $0x310] sm:$0xf] %v570_v4  ;;  %v572_v5 = vld [vmem:[%s4152_s29 + $0xc50] sm:$0xf] }
  0x9b   : > { %v574_v6 = vld [vmem:[%s4152_s29 + $0xc60] sm:$0xf]  ;;  %v576_v7 = vld [vmem:[%s4152_s29 + $0xc70] sm:$0xf]  ;;  %573 = vst [vmem:[%s4159_s30 + $0x314] sm:$0xf] %v572_v5 }
  0x9c   : > { %575 = vst [vmem:[%s4159_s30 + $0x318] sm:$0xf] %v574_v6  ;;  %577 = vst [vmem:[%s4159_s30 + $0x31c] sm:$0xf] %v576_v7  ;;  %v578_v8 = vld [vmem:[%s4152_s29 + $0xc80] sm:$0xf] }
  0x9d   : > { %v580_v9 = vld [vmem:[%s4152_s29 + $0xc90] sm:$0xf]  ;;  %v582_v10 = vld [vmem:[%s4152_s29 + $0xca0] sm:$0xf]  ;;  %579 = vst [vmem:[%s4159_s30 + $0x320] sm:$0xf] %v578_v8 }
  0x9e   : > { %581 = vst [vmem:[%s4159_s30 + $0x324] sm:$0xf] %v580_v9  ;;  %583 = vst [vmem:[%s4159_s30 + $0x328] sm:$0xf] %v582_v10  ;;  %v584_v11 = vld [vmem:[%s4152_s29 + $0xcb0] sm:$0xf] }
  0x9f   : > { %v586_v12 = vld [vmem:[%s4152_s29 + $0xcc0] sm:$0xf]  ;;  %v588_v13 = vld [vmem:[%s4152_s29 + $0xcd0] sm:$0xf]  ;;  %585 = vst [vmem:[%s4159_s30 + $0x32c] sm:$0xf] %v584_v11 }
  0xa0   : > { %587 = vst [vmem:[%s4159_s30 + $0x330] sm:$0xf] %v586_v12  ;;  %589 = vst [vmem:[%s4159_s30 + $0x334] sm:$0xf] %v588_v13  ;;  %v590_v14 = vld [vmem:[%s4152_s29 + $0xce0] sm:$0xf] }
  0xa1   : > { %v592_v15 = vld [vmem:[%s4152_s29 + $0xcf0] sm:$0xf]  ;;  %v594_v16 = vld [vmem:[%s4152_s29 + $0xd00] sm:$0xf]  ;;  %591 = vst [vmem:[%s4159_s30 + $0x338] sm:$0xf] %v590_v14 }
  0xa2   : > { %593 = vst [vmem:[%s4159_s30 + $0x33c] sm:$0xf] %v592_v15  ;;  %595 = vst [vmem:[%s4159_s30 + $0x340] sm:$0xf] %v594_v16  ;;  %v596_v17 = vld [vmem:[%s4152_s29 + $0xd10] sm:$0xf] }
  0xa3   : > { %v598_v18 = vld [vmem:[%s4152_s29 + $0xd20] sm:$0xf]  ;;  %v600_v19 = vld [vmem:[%s4152_s29 + $0xd30] sm:$0xf]  ;;  %597 = vst [vmem:[%s4159_s30 + $0x344] sm:$0xf] %v596_v17 }
  0xa4   : > { %599 = vst [vmem:[%s4159_s30 + $0x348] sm:$0xf] %v598_v18  ;;  %601 = vst [vmem:[%s4159_s30 + $0x34c] sm:$0xf] %v600_v19  ;;  %v602_v20 = vld [vmem:[%s4152_s29 + $0xd40] sm:$0xf] }
  0xa5   : > { %v604_v21 = vld [vmem:[%s4152_s29 + $0xd50] sm:$0xf]  ;;  %v606_v22 = vld [vmem:[%s4152_s29 + $0xd60] sm:$0xf]  ;;  %603 = vst [vmem:[%s4159_s30 + $0x350] sm:$0xf] %v602_v20 }
  0xa6   : > { %605 = vst [vmem:[%s4159_s30 + $0x354] sm:$0xf] %v604_v21  ;;  %607 = vst [vmem:[%s4159_s30 + $0x358] sm:$0xf] %v606_v22  ;;  %v608_v23 = vld [vmem:[%s4152_s29 + $0xd70] sm:$0xf] }
  0xa7   : > { %v610_v24 = vld [vmem:[%s4152_s29 + $0xd80] sm:$0xf]  ;;  %v612_v25 = vld [vmem:[%s4152_s29 + $0xd90] sm:$0xf]  ;;  %609 = vst [vmem:[%s4159_s30 + $0x35c] sm:$0xf] %v608_v23 }
  0xa8   : > { %611 = vst [vmem:[%s4159_s30 + $0x360] sm:$0xf] %v610_v24  ;;  %613 = vst [vmem:[%s4159_s30 + $0x364] sm:$0xf] %v612_v25  ;;  %v614_v26 = vld [vmem:[%s4152_s29 + $0xda0] sm:$0xf] }
  0xa9   : > { %v616_v27 = vld [vmem:[%s4152_s29 + $0xdb0] sm:$0xf]  ;;  %v618_v28 = vld [vmem:[%s4152_s29 + $0xdc0] sm:$0xf]  ;;  %615 = vst [vmem:[%s4159_s30 + $0x368] sm:$0xf] %v614_v26 }
  0xaa   : > { %617 = vst [vmem:[%s4159_s30 + $0x36c] sm:$0xf] %v616_v27  ;;  %619 = vst [vmem:[%s4159_s30 + $0x370] sm:$0xf] %v618_v28  ;;  %v620_v29 = vld [vmem:[%s4152_s29 + $0xdd0] sm:$0xf] }
  0xab   : > { %v622_v30 = vld [vmem:[%s4152_s29 + $0xde0] sm:$0xf]  ;;  %v624_v31 = vld [vmem:[%s4152_s29 + $0xdf0] sm:$0xf]  ;;  %621 = vst [vmem:[%s4159_s30 + $0x374] sm:$0xf] %v620_v29 }
  0xac   : > { %623 = vst [vmem:[%s4159_s30 + $0x378] sm:$0xf] %v622_v30  ;;  %625 = vst [vmem:[%s4159_s30 + $0x37c] sm:$0xf] %v624_v31  ;;  %v626_v32 = vld [vmem:[%s4152_s29 + $0xe00] sm:$0xf] }
  0xad   : > { %v628_v33 = vld [vmem:[%s4152_s29 + $0xe10] sm:$0xf]  ;;  %v630_v34 = vld [vmem:[%s4152_s29 + $0xe20] sm:$0xf]  ;;  %627 = vst [vmem:[%s4159_s30 + $0x380] sm:$0xf] %v626_v32 }
  0xae   : > { %629 = vst [vmem:[%s4159_s30 + $0x384] sm:$0xf] %v628_v33  ;;  %631 = vst [vmem:[%s4159_s30 + $0x388] sm:$0xf] %v630_v34  ;;  %v632_v35 = vld [vmem:[%s4152_s29 + $0xe30] sm:$0xf] }
  0xaf   : > { %v634_v36 = vld [vmem:[%s4152_s29 + $0xe40] sm:$0xf]  ;;  %v636_v37 = vld [vmem:[%s4152_s29 + $0xe50] sm:$0xf]  ;;  %633 = vst [vmem:[%s4159_s30 + $0x38c] sm:$0xf] %v632_v35 }
  0xb0   : > { %635 = vst [vmem:[%s4159_s30 + $0x390] sm:$0xf] %v634_v36  ;;  %637 = vst [vmem:[%s4159_s30 + $0x394] sm:$0xf] %v636_v37  ;;  %v638_v38 = vld [vmem:[%s4152_s29 + $0xe60] sm:$0xf] }
  0xb1   : > { %v640_v39 = vld [vmem:[%s4152_s29 + $0xe70] sm:$0xf]  ;;  %v642_v40 = vld [vmem:[%s4152_s29 + $0xe80] sm:$0xf]  ;;  %639 = vst [vmem:[%s4159_s30 + $0x398] sm:$0xf] %v638_v38 }
  0xb2   : > { %641 = vst [vmem:[%s4159_s30 + $0x39c] sm:$0xf] %v640_v39  ;;  %643 = vst [vmem:[%s4159_s30 + $0x3a0] sm:$0xf] %v642_v40  ;;  %v644_v41 = vld [vmem:[%s4152_s29 + $0xe90] sm:$0xf] }
  0xb3   : > { %v646_v42 = vld [vmem:[%s4152_s29 + $0xea0] sm:$0xf]  ;;  %v648_v43 = vld [vmem:[%s4152_s29 + $0xeb0] sm:$0xf]  ;;  %645 = vst [vmem:[%s4159_s30 + $0x3a4] sm:$0xf] %v644_v41 }
  0xb4   : > { %647 = vst [vmem:[%s4159_s30 + $0x3a8] sm:$0xf] %v646_v42  ;;  %649 = vst [vmem:[%s4159_s30 + $0x3ac] sm:$0xf] %v648_v43  ;;  %v650_v44 = vld [vmem:[%s4152_s29 + $0xec0] sm:$0xf] }
  0xb5   : > { %v652_v45 = vld [vmem:[%s4152_s29 + $0xed0] sm:$0xf]  ;;  %v654_v46 = vld [vmem:[%s4152_s29 + $0xee0] sm:$0xf]  ;;  %651 = vst [vmem:[%s4159_s30 + $0x3b0] sm:$0xf] %v650_v44 }
  0xb6   : > { %653 = vst [vmem:[%s4159_s30 + $0x3b4] sm:$0xf] %v652_v45  ;;  %655 = vst [vmem:[%s4159_s30 + $0x3b8] sm:$0xf] %v654_v46  ;;  %v656_v47 = vld [vmem:[%s4152_s29 + $0xef0] sm:$0xf] }
  0xb7   : > { %v658_v48 = vld [vmem:[%s4152_s29 + $0xf00] sm:$0xf]  ;;  %v660_v49 = vld [vmem:[%s4152_s29 + $0xf10] sm:$0xf]  ;;  %657 = vst [vmem:[%s4159_s30 + $0x3bc] sm:$0xf] %v656_v47 }
  0xb8   : > { %659 = vst [vmem:[%s4159_s30 + $0x3c0] sm:$0xf] %v658_v48  ;;  %661 = vst [vmem:[%s4159_s30 + $0x3c4] sm:$0xf] %v660_v49  ;;  %v662_v50 = vld [vmem:[%s4152_s29 + $0xf20] sm:$0xf] }
  0xb9   : > { %v664_v51 = vld [vmem:[%s4152_s29 + $0xf30] sm:$0xf]  ;;  %v666_v52 = vld [vmem:[%s4152_s29 + $0xf40] sm:$0xf]  ;;  %663 = vst [vmem:[%s4159_s30 + $0x3c8] sm:$0xf] %v662_v50 }
  0xba   : > { %665 = vst [vmem:[%s4159_s30 + $0x3cc] sm:$0xf] %v664_v51  ;;  %667 = vst [vmem:[%s4159_s30 + $0x3d0] sm:$0xf] %v666_v52  ;;  %v668_v53 = vld [vmem:[%s4152_s29 + $0xf50] sm:$0xf] }
  0xbb   : > { %v670_v54 = vld [vmem:[%s4152_s29 + $0xf60] sm:$0xf]  ;;  %v672_v55 = vld [vmem:[%s4152_s29 + $0xf70] sm:$0xf]  ;;  %669 = vst [vmem:[%s4159_s30 + $0x3d4] sm:$0xf] %v668_v53 }
  0xbc   : > { %671 = vst [vmem:[%s4159_s30 + $0x3d8] sm:$0xf] %v670_v54  ;;  %673 = vst [vmem:[%s4159_s30 + $0x3dc] sm:$0xf] %v672_v55  ;;  %v674_v56 = vld [vmem:[%s4152_s29 + $0xf80] sm:$0xf] }
  0xbd   : > { %v676_v57 = vld [vmem:[%s4152_s29 + $0xf90] sm:$0xf]  ;;  %v678_v58 = vld [vmem:[%s4152_s29 + $0xfa0] sm:$0xf]  ;;  %675 = vst [vmem:[%s4159_s30 + $0x3e0] sm:$0xf] %v674_v56 }
  0xbe   : > { %677 = vst [vmem:[%s4159_s30 + $0x3e4] sm:$0xf] %v676_v57  ;;  %679 = vst [vmem:[%s4159_s30 + $0x3e8] sm:$0xf] %v678_v58  ;;  %v680_v59 = vld [vmem:[%s4152_s29 + $0xfb0] sm:$0xf] }
  0xbf   : > { %v682_v60 = vld [vmem:[%s4152_s29 + $0xfc0] sm:$0xf]  ;;  %v684_v61 = vld [vmem:[%s4152_s29 + $0xfd0] sm:$0xf]  ;;  %681 = vst [vmem:[%s4159_s30 + $0x3ec] sm:$0xf] %v680_v59 }
  0xc0   : > { %683 = vst [vmem:[%s4159_s30 + $0x3f0] sm:$0xf] %v682_v60  ;;  %685 = vst [vmem:[%s4159_s30 + $0x3f4] sm:$0xf] %v684_v61  ;;  %v686_v62 = vld [vmem:[%s4152_s29 + $0xfe0] sm:$0xf] }
  0xc1   : > { %v688_v63 = vld [vmem:[%s4152_s29 + $0xff0] sm:$0xf]  ;;  %v690_v0 = vld [vmem:[%s4152_s29 + $0x1000] sm:$0xf]  ;;  %687 = vst [vmem:[%s4159_s30 + $0x3f8] sm:$0xf] %v686_v62 }
  0xc2   : > { %689 = vst [vmem:[%s4159_s30 + $0x3fc] sm:$0xf] %v688_v63  ;;  %691 = vst [vmem:[%s4159_s30 + $0x400] sm:$0xf] %v690_v0  ;;  %v692_v1 = vld [vmem:[%s4152_s29 + $0x1010] sm:$0xf] }
  0xc3   : > { %v694_v2 = vld [vmem:[%s4152_s29 + $0x1020] sm:$0xf]  ;;  %v696_v3 = vld [vmem:[%s4152_s29 + $0x1030] sm:$0xf]  ;;  %693 = vst [vmem:[%s4159_s30 + $0x404] sm:$0xf] %v692_v1 }
  0xc4   : > { %695 = vst [vmem:[%s4159_s30 + $0x408] sm:$0xf] %v694_v2  ;;  %697 = vst [vmem:[%s4159_s30 + $0x40c] sm:$0xf] %v696_v3  ;;  %v698_v4 = vld [vmem:[%s4152_s29 + $0x1040] sm:$0xf] }
  0xc5   : > { %v700_v5 = vld [vmem:[%s4152_s29 + $0x1050] sm:$0xf]  ;;  %v702_v6 = vld [vmem:[%s4152_s29 + $0x1060] sm:$0xf]  ;;  %699 = vst [vmem:[%s4159_s30 + $0x410] sm:$0xf] %v698_v4 }
  0xc6   : > { %701 = vst [vmem:[%s4159_s30 + $0x414] sm:$0xf] %v700_v5  ;;  %703 = vst [vmem:[%s4159_s30 + $0x418] sm:$0xf] %v702_v6  ;;  %v704_v7 = vld [vmem:[%s4152_s29 + $0x1070] sm:$0xf] }
  0xc7   : > { %v706_v8 = vld [vmem:[%s4152_s29 + $0x1080] sm:$0xf]  ;;  %v708_v9 = vld [vmem:[%s4152_s29 + $0x1090] sm:$0xf]  ;;  %705 = vst [vmem:[%s4159_s30 + $0x41c] sm:$0xf] %v704_v7 }
  0xc8   : > { %707 = vst [vmem:[%s4159_s30 + $0x420] sm:$0xf] %v706_v8  ;;  %709 = vst [vmem:[%s4159_s30 + $0x424] sm:$0xf] %v708_v9  ;;  %v710_v10 = vld [vmem:[%s4152_s29 + $0x10a0] sm:$0xf] }
  0xc9   : > { %v712_v11 = vld [vmem:[%s4152_s29 + $0x10b0] sm:$0xf]  ;;  %v714_v12 = vld [vmem:[%s4152_s29 + $0x10c0] sm:$0xf]  ;;  %711 = vst [vmem:[%s4159_s30 + $0x428] sm:$0xf] %v710_v10 }
  0xca   : > { %713 = vst [vmem:[%s4159_s30 + $0x42c] sm:$0xf] %v712_v11  ;;  %715 = vst [vmem:[%s4159_s30 + $0x430] sm:$0xf] %v714_v12  ;;  %v716_v13 = vld [vmem:[%s4152_s29 + $0x10d0] sm:$0xf] }
  0xcb   : > { %v718_v14 = vld [vmem:[%s4152_s29 + $0x10e0] sm:$0xf]  ;;  %v720_v15 = vld [vmem:[%s4152_s29 + $0x10f0] sm:$0xf]  ;;  %717 = vst [vmem:[%s4159_s30 + $0x434] sm:$0xf] %v716_v13 }
  0xcc   : > { %719 = vst [vmem:[%s4159_s30 + $0x438] sm:$0xf] %v718_v14  ;;  %721 = vst [vmem:[%s4159_s30 + $0x43c] sm:$0xf] %v720_v15  ;;  %v722_v16 = vld [vmem:[%s4152_s29 + $0x1100] sm:$0xf] }
  0xcd   : > { %v724_v17 = vld [vmem:[%s4152_s29 + $0x1110] sm:$0xf]  ;;  %v726_v18 = vld [vmem:[%s4152_s29 + $0x1120] sm:$0xf]  ;;  %723 = vst [vmem:[%s4159_s30 + $0x440] sm:$0xf] %v722_v16 }
  0xce   : > { %725 = vst [vmem:[%s4159_s30 + $0x444] sm:$0xf] %v724_v17  ;;  %727 = vst [vmem:[%s4159_s30 + $0x448] sm:$0xf] %v726_v18  ;;  %v728_v19 = vld [vmem:[%s4152_s29 + $0x1130] sm:$0xf] }
  0xcf   : > { %v730_v20 = vld [vmem:[%s4152_s29 + $0x1140] sm:$0xf]  ;;  %v732_v21 = vld [vmem:[%s4152_s29 + $0x1150] sm:$0xf]  ;;  %729 = vst [vmem:[%s4159_s30 + $0x44c] sm:$0xf] %v728_v19 }
  0xd0   : > { %731 = vst [vmem:[%s4159_s30 + $0x450] sm:$0xf] %v730_v20  ;;  %733 = vst [vmem:[%s4159_s30 + $0x454] sm:$0xf] %v732_v21  ;;  %v734_v22 = vld [vmem:[%s4152_s29 + $0x1160] sm:$0xf] }
  0xd1   : > { %v736_v23 = vld [vmem:[%s4152_s29 + $0x1170] sm:$0xf]  ;;  %v738_v24 = vld [vmem:[%s4152_s29 + $0x1180] sm:$0xf]  ;;  %735 = vst [vmem:[%s4159_s30 + $0x458] sm:$0xf] %v734_v22 }
  0xd2   : > { %737 = vst [vmem:[%s4159_s30 + $0x45c] sm:$0xf] %v736_v23  ;;  %739 = vst [vmem:[%s4159_s30 + $0x460] sm:$0xf] %v738_v24  ;;  %v740_v25 = vld [vmem:[%s4152_s29 + $0x1190] sm:$0xf] }
  0xd3   : > { %v742_v26 = vld [vmem:[%s4152_s29 + $0x11a0] sm:$0xf]  ;;  %v744_v27 = vld [vmem:[%s4152_s29 + $0x11b0] sm:$0xf]  ;;  %741 = vst [vmem:[%s4159_s30 + $0x464] sm:$0xf] %v740_v25 }
  0xd4   : > { %743 = vst [vmem:[%s4159_s30 + $0x468] sm:$0xf] %v742_v26  ;;  %745 = vst [vmem:[%s4159_s30 + $0x46c] sm:$0xf] %v744_v27  ;;  %v746_v28 = vld [vmem:[%s4152_s29 + $0x11c0] sm:$0xf] }
  0xd5   : > { %v748_v29 = vld [vmem:[%s4152_s29 + $0x11d0] sm:$0xf]  ;;  %v750_v30 = vld [vmem:[%s4152_s29 + $0x11e0] sm:$0xf]  ;;  %747 = vst [vmem:[%s4159_s30 + $0x470] sm:$0xf] %v746_v28 }
  0xd6   : > { %749 = vst [vmem:[%s4159_s30 + $0x474] sm:$0xf] %v748_v29  ;;  %751 = vst [vmem:[%s4159_s30 + $0x478] sm:$0xf] %v750_v30  ;;  %v752_v31 = vld [vmem:[%s4152_s29 + $0x11f0] sm:$0xf] }
  0xd7   : > { %753 = vst [vmem:[%s4159_s30 + $0x47c] sm:$0xf] %v752_v31 }
  0xd8 PF: > { %p3173_p7 = scmp.ge.s32.totalorder %s4073_s18, 1  ;;  %p1357_p8 = scmp.lt.s32.totalorder %s4073_s18, 9 }
  0xda   : > { %p1358_p9 = pnand %p3173_p7, %p1357_p8 }
  0xdb   : > { %s1364_s4 = sand.u32 (!%p1358_p9), 1, %s4049_s12   ;;  %p1398_p10 = scmp.lt.s32.totalorder (!%p1358_p9), %s4061_s15, 1  ;;  %vm3034_vm0 = vcmask (!%p1358_p9), 1043456  }
  0xdc   : > { %1361 = sbr.rel (%p1358_p9) target bundleno = 658 (0x292), region = 69  ;;  %p1403_p11 = scmp.lt.s32.totalorder (!%p1358_p9), %s4057_s14, 3 }
  0xdd   : > { %s3797_s5 = smul.u32 (!%p1358_p9), 1152, %s1364_s4 }
  0xdf   : > { %s4735_s6 = scalar_lea.vmem (!%p1358_p9), [#allocation2], %s3797_s5 }
  0xe0   : > { %v3855_v32 = vld [vmem:[%s4735_s6 + $0xc0] sm:$0xff] (!%p1358_p9)   ;;  %v3859_v36 = vld [vmem:[%s4735_s6 + $0xc8] sm:$0xff] (!%p1358_p9)   ;;  %v3863_v40 = vld [vmem:[%s4735_s6 + $0xd0] sm:$0xff] (!%p1358_p9)  }
  0xe1   : > { %v3856_v33 = vld [vmem:[%s4735_s6 + $0x40] sm:$0xff] (!%p1358_p9)   ;;  %3598 = vmatprep.subr.bf16.mxu0 (!%p1358_p9), %v3855_v32  ;;  %v3860_v37 = vld [vmem:[%s4735_s6 + $0x48] sm:$0xff] (!%p1358_p9)   ;;  %v3864_v41 = vld [vmem:[%s4735_s6 + $0x50] sm:$0xff] (!%p1358_p9)  }
  0xe2   : > { %v3857_v34 = vld [vmem:[%s4735_s6 + $0x80] sm:$0xff] (!%p1358_p9)   ;;  %3620 = vmatprep.subr.bf16.mxu1 (!%p1358_p9), %v3856_v33  ;;  %v3861_v38 = vld [vmem:[%s4735_s6 + $0x88] sm:$0xff] (!%p1358_p9)   ;;  %v3865_v42 = vld [vmem:[%s4735_s6 + $0x90] sm:$0xff] (!%p1358_p9)  }
  0xe3   : > { %v3858_v35 = vld [vmem:[%s4735_s6] sm:$0xff]   ;;  %3599 = vmatpush3.bf16.msra.mxu0 %v3857_v34  ;;  %v3862_v39 = vld [vmem:[%s4735_s6 + $0x8] sm:$0xff]   ;;  %v3866_v43 = vld [vmem:[%s4735_s6 + $0x10] sm:$0xff]   ;;  %s4951_s15 = smov (!%p1398_p10, %s4061_s15), 1  ;;  %s4953_s14 = smov (!%p1403_p11, %s4057_s14), 3 }
  0xe4   : > { %3621 = vmatpush3.bf16.msra.mxu1 %v3858_v35  ;;  %3600 = vmatprep.subr.bf16.mxu0 %v3859_v36  ;;  %v3867_v44 = vld [vmem:[%s4735_s6 + $0xd8] sm:$0xff]   ;;  %v3871_v48 = vld [vmem:[%s4735_s6 + $0xe0] sm:$0xff]   ;;  %v3875_v52 = vld [vmem:[%s4735_s6 + $0xe8] sm:$0xff]   ;;  %s3798_s7 = smul.u32 24, %s4951_s15  ;;  %s1405_s21 = scalar_lea.vmem %s4936_s2, %s4953_s14 }
  0xe5   : > { %3622 = vmatprep.subr.bf16.mxu1 %v3860_v37  ;;  %v3868_v45 = vld [vmem:[%s4735_s6 + $0x58] sm:$0xff]   ;;  %v3872_v49 = vld [vmem:[%s4735_s6 + $0x60] sm:$0xff]   ;;  %v3876_v53 = vld [vmem:[%s4735_s6 + $0x68] sm:$0xff]   ;;  %s3175_s22 = sshll.u32 %s4951_s15, 2 }
  0xe6   : > { %v3869_v46 = vld [vmem:[%s4735_s6 + $0x98] sm:$0xff]   ;;  %v3873_v50 = vld [vmem:[%s4735_s6 + $0xa0] sm:$0xff]   ;;  %v3877_v54 = vld [vmem:[%s4735_s6 + $0xa8] sm:$0xff]   ;;  %s4775_s10 = scalar_lea.vmem %s4934_s0, %s3798_s7  ;;  %s1411_s24 = sadd.s32 %s3175_s22, %s4953_s14 }
  0xe7   : > { %3601 = vmatpush3.bf16.msra.mxu0 %v3861_v38  ;;  %v3870_v47 = vld [vmem:[%s4735_s6 + $0x18] sm:$0xff]   ;;  %v3874_v51 = vld [vmem:[%s4735_s6 + $0x20] sm:$0xff]   ;;  %v3878_v55 = vld [vmem:[%s4735_s6 + $0x28] sm:$0xff]   ;;  %s3176_s25 = sshll.u32 %s1411_s24, 2 }
  0xe8   : > { %3623 = vmatpush3.bf16.msra.mxu1 %v3862_v39  ;;  %3602 = vmatprep.subr.bf16.mxu0 %v3863_v40  ;;  %v3879_v56 = vld [vmem:[%s4735_s6 + $0xf0] sm:$0xff]   ;;  %v3883_v60 = vld [vmem:[%s4735_s6 + $0xf8] sm:$0xff]   ;;  %v1448_v0 = vld [vmem:[%s4775_s10 + $0x8] sm:$0x33]  ;;  %s1413_s28 = scalar_lea.vmem %s4937_s3, %s3176_s25 }
  0xe9   : > { %3624 = vmatprep.subr.bf16.mxu1 %v3864_v41  ;;  %v3880_v57 = vld [vmem:[%s4735_s6 + $0x70] sm:$0xff]   ;;  %v3884_v61 = vld [vmem:[%s4735_s6 + $0x78] sm:$0xff]   ;;  %v1415_v1 = vld [vmem:[%s4775_s10] sm:$0x33]  ;;  %v3209_v2 = vcombine.low %v1448_v0, %v1448_v0  ;;  %v3210_v3 = vcombine.high %v1448_v0, %v1448_v0 }
  0xea   : > { %v3881_v58 = vld [vmem:[%s4735_s6 + $0xb0] sm:$0xff]   ;;  %v3885_v62 = vld [vmem:[%s4735_s6 + $0xb8] sm:$0xff]   ;;  %v3227_v4 = vcombine.low %v1415_v1, %v1415_v1  ;;  %v3228_v5 = vcombine.high %v1415_v1, %v1415_v1  ;;  %v3891_v6 = vld [vmem:[%s4735_s6 + $0x140] sm:$0xff]  }
  0xeb   : > { %3603 = vmatpush3.bf16.msra.mxu0 %v3865_v42  ;;  %v3882_v59 = vld [vmem:[%s4735_s6 + $0x30] sm:$0xff]   ;;  %v3886_v63 = vld [vmem:[%s4735_s6 + $0x38] sm:$0xff]   ;;  %v3892_v7 = vld [vmem:[%s4735_s6 + $0x100] sm:$0xff]   ;;  %1617 = vmatprep.mubr.bf16.mxu0 %v3210_v3 }
  0xec   : > { %3625 = vmatpush3.bf16.msra.mxu1 %v3866_v43  ;;  %3604 = vmatprep.subr.bf16.mxu0 %v3867_v44  ;;  %v3893_v8 = vld [vmem:[%s4735_s6 + $0x1c0] sm:$0xff]   ;;  %v3895_v10 = vld [vmem:[%s4735_s6 + $0x148] sm:$0xff]   ;;  %v3899_v14 = vld [vmem:[%s4735_s6 + $0x150] sm:$0xff]  }
  0xed   : > { %3626 = vmatprep.subr.bf16.mxu1 %v3868_v45  ;;  %1760 = vmatprep.mubr.bf16.mxu1 %v3228_v5  ;;  %v3894_v9 = vld [vmem:[%s4735_s6 + $0x180] sm:$0xff]   ;;  %v3896_v11 = vld [vmem:[%s4735_s6 + $0x108] sm:$0xff]   ;;  %v3900_v15 = vld [vmem:[%s4735_s6 + $0x110] sm:$0xff]  }
  0xee   : > { %v3897_v12 = vld [vmem:[%s4735_s6 + $0x1c8] sm:$0xff]   ;;  %v3901_v16 = vld [vmem:[%s4735_s6 + $0x1d0] sm:$0xff]   ;;  %v3903_v18 = vld [vmem:[%s4735_s6 + $0x158] sm:$0xff]  }
  0xef   : > { %3605 = vmatpush3.bf16.msra.mxu0 %v3869_v46  ;;  %v3898_v13 = vld [vmem:[%s4735_s6 + $0x188] sm:$0xff]   ;;  %v3902_v17 = vld [vmem:[%s4735_s6 + $0x190] sm:$0xff]   ;;  %v3904_v19 = vld [vmem:[%s4735_s6 + $0x118] sm:$0xff]  }
  0xf0   : > { %3627 = vmatpush3.bf16.msra.mxu1 %v3870_v47  ;;  %3606 = vmatprep.subr.bf16.mxu0 %v3871_v48  ;;  %v3905_v20 = vld [vmem:[%s4735_s6 + $0x1d8] sm:$0xff]   ;;  %v3907_v22 = vld [vmem:[%s4735_s6 + $0x160] sm:$0xff]   ;;  %v3911_v26 = vld [vmem:[%s4735_s6 + $0x168] sm:$0xff]  }
  0xf1   : > { %3628 = vmatprep.subr.bf16.mxu1 %v3872_v49  ;;  %v3906_v21 = vld [vmem:[%s4735_s6 + $0x198] sm:$0xff]   ;;  %v3908_v23 = vld [vmem:[%s4735_s6 + $0x120] sm:$0xff]   ;;  %v3912_v27 = vld [vmem:[%s4735_s6 + $0x128] sm:$0xff]  }
  0xf2   : > { %v3909_v24 = vld [vmem:[%s4735_s6 + $0x1e0] sm:$0xff]   ;;  %v3913_v28 = vld [vmem:[%s4735_s6 + $0x1e8] sm:$0xff]   ;;  %v3915_v30 = vld [vmem:[%s4735_s6 + $0x170] sm:$0xff]  }
  0xf3   : > { %3607 = vmatpush3.bf16.msra.mxu0 %v3873_v50  ;;  %v3910_v25 = vld [vmem:[%s4735_s6 + $0x1a0] sm:$0xff]   ;;  %v3914_v29 = vld [vmem:[%s4735_s6 + $0x1a8] sm:$0xff]   ;;  %v3916_v31 = vld [vmem:[%s4735_s6 + $0x130] sm:$0xff]  }
  0xf4   : > { %3629 = vmatpush3.bf16.msra.mxu1 %v3874_v51  ;;  %3608 = vmatprep.subr.bf16.mxu0 %v3875_v52  ;;  %v3917_v32 = vld [vmem:[%s4735_s6 + $0x1f0] sm:$0xff]   ;;  %v3919_v34 = vld [vmem:[%s4735_s6 + $0x178] sm:$0xff]   ;;  %v3925_v41 = vld [vmem:[%s4735_s6 + $0x240] sm:$0xff]  }
  0xf5   : > { %3630 = vmatprep.subr.bf16.mxu1 %v3876_v53  ;;  %v3918_v33 = vld [vmem:[%s4735_s6 + $0x1b0] sm:$0xff]   ;;  %v3920_v35 = vld [vmem:[%s4735_s6 + $0x138] sm:$0xff]   ;;  %v1946_v42 = vld [vmem:[%s4775_s10] sm:$0x66] }
  0xf6   : > { %v3921_v36 = vld [vmem:[%s4735_s6 + $0x1f8] sm:$0xff]   ;;  %v1768_v37 = vld [vmem:[%s4775_s10 + $0x10] sm:$0x33]  ;;  %v3327_v43 = vcombine.low %v1946_v42, %v1946_v42  ;;  %v3328_v44 = vcombine.high %v1946_v42, %v1946_v42  ;;  %v3928_v45 = vld [vmem:[%s4735_s6 + $0x200] sm:$0xff]  }
  0xf7   : > { %3609 = vmatpush3.bf16.msra.mxu0 %v3877_v54  ;;  %v3278_v38 = vcombine.high %v1768_v37, %v1768_v37  ;;  %v3924_v39 = vld [vmem:[%s4735_s6 + $0x1b8] sm:$0xff]   ;;  %v3277_v40 = vcombine.low %v1768_v37, %v1768_v37  ;;  %v3929_v46 = vld [vmem:[%s4735_s6 + $0x2c0] sm:$0xff]   ;;  %v3931_v50 = vld [vmem:[%s4735_s6 + $0x248] sm:$0xff]  }
  0xf8   : > { %3631 = vmatpush3.bf16.msra.mxu1 %v3878_v55  ;;  %3610 = vmatprep.subr.bf16.mxu0 %v3879_v56  ;;  %v1985_v47 = vrot.slane %v3327_v43, 1  ;;  %v1986_v48 = vrot.slane %v3328_v44, 1  ;;  %v3930_v49 = vld [vmem:[%s4735_s6 + $0x280] sm:$0xff]   ;;  %v3932_v51 = vld [vmem:[%s4735_s6 + $0x208] sm:$0xff]   ;;  %v3935_v54 = vld [vmem:[%s4735_s6 + $0x250] sm:$0xff]  }
  0xf9   : > { %3632 = vmatprep.subr.bf16.mxu1 %v3880_v57  ;;  %v3933_v52 = vld [vmem:[%s4735_s6 + $0x2c8] sm:$0xff]   ;;  %v3936_v55 = vld [vmem:[%s4735_s6 + $0x210] sm:$0xff]   ;;  %v3945_v0 = vld [vmem:[%s4735_s6 + $0x2e0] sm:$0xff]  }
  0xfa   : > { %v3934_v53 = vld [vmem:[%s4735_s6 + $0x288] sm:$0xff]   ;;  %v3937_v56 = vld [vmem:[%s4735_s6 + $0x2d0] sm:$0xff]   ;;  %v3946_v1 = vld [vmem:[%s4735_s6 + $0x2a0] sm:$0xff]  }
  0xfb   : > { %3611 = vmatpush3.bf16.msra.mxu0 %v3881_v58  ;;  %v3938_v57 = vld [vmem:[%s4735_s6 + $0x290] sm:$0xff]   ;;  %v3939_v58 = vld [vmem:[%s4735_s6 + $0x258] sm:$0xff]   ;;  %v3948_v3 = vld [vmem:[%s4735_s6 + $0x228] sm:$0xff]  }
  0xfc   : > { %3633 = vmatpush3.bf16.msra.mxu1 %v3882_v59  ;;  %3612 = vmatprep.subr.bf16.mxu0 %v3883_v60  ;;  %v3940_v59 = vld [vmem:[%s4735_s6 + $0x218] sm:$0xff]   ;;  %v3950_v5 = vld [vmem:[%s4735_s6 + $0x2a8] sm:$0xff]   ;;  %v3981_v42 = vld [vmem:[%s4735_s6 + $0x3e0] sm:$0xff]  }
  0xfd   : > { %3634 = vmatprep.subr.bf16.mxu1 %v3884_v61  ;;  %v3941_v60 = vld [vmem:[%s4735_s6 + $0x2d8] sm:$0xff]   ;;  %v3982_v43 = vld [vmem:[%s4735_s6 + $0x3a0] sm:$0xff]   ;;  %v3983_v44 = vld [vmem:[%s4735_s6 + $0x368] sm:$0xff]  }
  0xfe   : > { %v3942_v61 = vld [vmem:[%s4735_s6 + $0x298] sm:$0xff]  }
  0xff   : > { %3613 = vmatpush3.bf16.msra.mxu0 %v3885_v62  ;;  %v3943_v62 = vld [vmem:[%s4735_s6 + $0x260] sm:$0xff]   ;;  %v3976_v37 = vld [vmem:[%s4735_s6 + $0x318] sm:$0xff]  }
 0x100   : > { %3635 = vmatpush3.bf16.msra.mxu1 %v3886_v63  ;;  %3642 = vmatprep.subr.bf16.mxu0 %v3891_v6  ;;  %v3944_v63 = vld [vmem:[%s4735_s6 + $0x220] sm:$0xff]   ;;  %v3951_v6 = vld [vmem:[%s4735_s6 + $0x270] sm:$0xff]  }
 0x101   : > { %3664 = vmatprep.subr.bf16.mxu1 %v3893_v8  ;;  %v3953_v8 = vld [vmem:[%s4735_s6 + $0x2f0] sm:$0xff]  }
 0x102   : > { %1618 = vmatmul.mubr.bf16.vlgmr.msra.gmra.mrb[0].mxu0 %v3209_v2  ;;  %v3947_v2 = vld [vmem:[%s4735_s6 + $0x268] sm:$0xff]  }
 0x103   : > { %1761 = vmatmul.mubr.bf16.vlgmr.msra.gmra.mrb[0].mxu1 %v3227_v4  ;;  %3643 = vmatpush3.bf16.msra.mxu0 %v3892_v7  ;;  %v3949_v4 = vld [vmem:[%s4735_s6 + $0x2e8] sm:$0xff]   ;;  %v3952_v7 = vld [vmem:[%s4735_s6 + $0x230] sm:$0xff]  }
 0x104   : > { %3665 = vmatpush3.bf16.msra.mxu1 %v3894_v9  ;;  %3644 = vmatprep.subr.bf16.mxu0 %v3895_v10  ;;  %v3954_v9 = vld [vmem:[%s4735_s6 + $0x2b0] sm:$0xff]   ;;  %v3955_v10 = vld [vmem:[%s4735_s6 + $0x278] sm:$0xff]  }
 0x105   : > { %3666 = vmatprep.subr.bf16.mxu1 %v3897_v12  ;;  %1937 = vmatprep.mubr.bf16.mxu0 %v3278_v38  ;;  %v3957_v12 = vld [vmem:[%s4735_s6 + $0x2f8] sm:$0xff]  }
 0x106   : > { %2117 = vmatprep.mubr.bf16.mxu1 %v1986_v48  ;;  %v3977_v38 = vld [vmem:[%s4735_s6 + $0x3d8] sm:$0xff]   ;;  %v3987_v48 = vld [vmem:[%s4735_s6 + $0x370] sm:$0xff]  }
 0x107   : > { %3645 = vmatpush3.bf16.msra.mxu0 %v3896_v11  ;;  %v3956_v11 = vld [vmem:[%s4735_s6 + $0x238] sm:$0xff]  }
 0x108   : > { %3667 = vmatpush3.bf16.msra.mxu1 %v3898_v13  ;;  %3646 = vmatprep.subr.bf16.mxu0 %v3899_v14  ;;  %v2126_v13 = vld [vmem:[%s4775_s10 + $0x8] sm:$0x66] }
 0x109   : > { %3668 = vmatprep.subr.bf16.mxu1 %v3901_v16  ;;  %v3377_v14 = vcombine.low %v2126_v13, %v2126_v13  ;;  %v3960_v16 = vld [vmem:[%s4735_s6 + $0x2b8] sm:$0xff]  }
 0x10b   : > { %3647 = vmatpush3.bf16.msra.mxu0 %v3900_v15  ;;  %v3378_v15 = vcombine.high %v2126_v13, %v2126_v13 }
 0x10c   : > { %3669 = vmatpush3.bf16.msra.mxu1 %v3902_v17  ;;  %3648 = vmatprep.subr.bf16.mxu0 %v3903_v18  ;;  %v3961_v17 = vld [vmem:[%s4735_s6 + $0x340] sm:$0xff]   ;;  %v2306_v18 = vld [vmem:[%s4775_s10 + $0x10] sm:$0x66] }
 0x10d   : > { %3670 = vmatprep.subr.bf16.mxu1 %v3905_v20  ;;  %v2166_v20 = vrot.slane %v3378_v15, 1 }
 0x10f   : > { %3649 = vmatpush3.bf16.msra.mxu0 %v3904_v19  ;;  %v2165_v19 = vrot.slane %v3377_v14, 1  ;;  %v4009_v14 = vld [vmem:[%s4735_s6 + $0x468] sm:$0xff]  }
 0x110   : > { %3671 = vmatpush3.bf16.msra.mxu1 %v3906_v21  ;;  %3650 = vmatprep.subr.bf16.mxu0 %v3907_v22  ;;  %v3427_v21 = vcombine.low %v2306_v18, %v2306_v18  ;;  %v3428_v22 = vcombine.high %v2306_v18, %v2306_v18  ;;  %v4012_v18 = vld [vmem:[%s4735_s6 + $0x430] sm:$0xff]  }
 0x111   : > { %3672 = vmatprep.subr.bf16.mxu1 %v3909_v24 }
 0x112   : > { %v2345_v24 = vrot.slane %v3427_v21, 1  ;;  %v4014_v21 = vld [vmem:[%s4735_s6 + $0x438] sm:$0xff]  }
 0x113   : > { %3651 = vmatpush3.bf16.msra.mxu0 %v3908_v23  ;;  %v3964_v23 = vld [vmem:[%s4735_s6 + $0x300] sm:$0xff]  }
 0x114   : > { %3673 = vmatpush3.bf16.msra.mxu1 %v3910_v25  ;;  %3652 = vmatprep.subr.bf16.mxu0 %v3911_v26  ;;  %v2346_v25 = vrot.slane %v3428_v22, 1  ;;  %v3965_v26 = vld [vmem:[%s4735_s6 + $0x3c0] sm:$0xff]  }
 0x115   : > { %3674 = vmatprep.subr.bf16.mxu1 %v3913_v28  ;;  %v3967_v28 = vld [vmem:[%s4735_s6 + $0x348] sm:$0xff]  }
 0x117   : > { %3653 = vmatpush3.bf16.msra.mxu0 %v3912_v27  ;;  %v3966_v27 = vld [vmem:[%s4735_s6 + $0x380] sm:$0xff]  }
 0x118   : > { %3675 = vmatpush3.bf16.msra.mxu1 %v3914_v29  ;;  %3654 = vmatprep.subr.bf16.mxu0 %v3915_v30  ;;  %v3968_v29 = vld [vmem:[%s4735_s6 + $0x308] sm:$0xff]  }
 0x119   : > { %3676 = vmatprep.subr.bf16.mxu1 %v3917_v32  ;;  %v3969_v30 = vld [vmem:[%s4735_s6 + $0x3c8] sm:$0xff]   ;;  %v3971_v32 = vld [vmem:[%s4735_s6 + $0x350] sm:$0xff]  }
 0x11b   : > { %3655 = vmatpush3.bf16.msra.mxu0 %v3916_v31  ;;  %v3970_v31 = vld [vmem:[%s4735_s6 + $0x388] sm:$0xff]  }
 0x11c   : > { %3677 = vmatpush3.bf16.msra.mxu1 %v3918_v33  ;;  %3656 = vmatprep.subr.bf16.mxu0 %v3919_v34  ;;  %v3972_v33 = vld [vmem:[%s4735_s6 + $0x310] sm:$0xff]  }
 0x11d   : > { %3678 = vmatprep.subr.bf16.mxu1 %v3921_v36  ;;  %v3973_v34 = vld [vmem:[%s4735_s6 + $0x3d0] sm:$0xff]   ;;  %v3975_v36 = vld [vmem:[%s4735_s6 + $0x358] sm:$0xff]  }
 0x11f   : > { %3657 = vmatpush3.bf16.msra.mxu0 %v3920_v35  ;;  %v3974_v35 = vld [vmem:[%s4735_s6 + $0x390] sm:$0xff]  }
 0x120   : > { %3679 = vmatpush3.bf16.msra.mxu1 %v3924_v39  ;;  %3686 = vmatprep.subr.bf16.mxu0 %v3925_v41  ;;  %v3978_v39 = vld [vmem:[%s4735_s6 + $0x398] sm:$0xff]   ;;  %v3980_v41 = vld [vmem:[%s4735_s6 + $0x320] sm:$0xff]  }
 0x121   : > { %3708 = vmatprep.subr.bf16.mxu1 %v3929_v46  ;;  %v3985_v46 = vld [vmem:[%s4735_s6 + $0x3e8] sm:$0xff]  }
 0x122   : > { %1938 = vmatmul.mubr.bf16.vlgmr.msra.gmra.mrb[4].mxu0 %v3277_v40  ;;  %v3979_v40 = vld [vmem:[%s4735_s6 + $0x360] sm:$0xff]  }
 0x123   : > { %3687 = vmatpush3.bf16.msra.mxu0 %v3928_v45  ;;  %2118 = vmatmul.mubr.bf16.vlgmr.msra.gmra.mrb[4].mxu1 %v1985_v47  ;;  %v3984_v45 = vld [vmem:[%s4735_s6 + $0x328] sm:$0xff]  }
 0x124   : > { %3688 = vmatprep.subr.bf16.mxu0 %v3931_v50  ;;  %3709 = vmatpush3.bf16.msra.mxu1 %v3930_v49  ;;  %v3986_v47 = vld [vmem:[%s4735_s6 + $0x3a8] sm:$0xff]   ;;  %v3988_v49 = vld [vmem:[%s4735_s6 + $0x330] sm:$0xff]  }
 0x125   : > { %3710 = vmatprep.subr.bf16.mxu1 %v3933_v52  ;;  %2297 = vmatprep.mubr.bf16.mxu0 %v2166_v20  ;;  %v3989_v50 = vld [vmem:[%s4735_s6 + $0x3f0] sm:$0xff]   ;;  %v3991_v52 = vld [vmem:[%s4735_s6 + $0x378] sm:$0xff]  }
 0x126   : > { %2477 = vmatprep.mubr.bf16.mxu1 %v2346_v25 }
 0x127   : > { %3689 = vmatpush3.bf16.msra.mxu0 %v3932_v51  ;;  %v3990_v51 = vld [vmem:[%s4735_s6 + $0x3b0] sm:$0xff]  }
 0x128   : > { %3690 = vmatprep.subr.bf16.mxu0 %v3935_v54  ;;  %3711 = vmatpush3.bf16.msra.mxu1 %v3934_v53  ;;  %v3992_v53 = vld [vmem:[%s4735_s6 + $0x338] sm:$0xff]  }
 0x129   : > { %3712 = vmatprep.subr.bf16.mxu1 %v3937_v56  ;;  %v3993_v54 = vld [vmem:[%s4735_s6 + $0x3f8] sm:$0xff]  }
 0x12b   : > { %3691 = vmatpush3.bf16.msra.mxu0 %v3936_v55  ;;  %v2486_v55 = vld [vmem:[%s4775_s10] sm:$0xcc] }
 0x12c   : > { %3692 = vmatprep.subr.bf16.mxu0 %v3939_v58  ;;  %3713 = vmatpush3.bf16.msra.mxu1 %v3938_v57  ;;  %v3477_v56 = vcombine.low %v2486_v55, %v2486_v55  ;;  %v3478_v57 = vcombine.high %v2486_v55, %v2486_v55  ;;  %v3996_v58 = vld [vmem:[%s4735_s6 + $0x3b8] sm:$0xff]  }
 0x12d   : > { %3714 = vmatprep.subr.bf16.mxu1 %v3941_v60  ;;  %v2666_v60 = vld [vmem:[%s4775_s10 + $0x8] sm:$0xcc] }
 0x12f   : > { %3693 = vmatpush3.bf16.msra.mxu0 %v3940_v59  ;;  %v3997_v59 = vld [vmem:[%s4735_s6 + $0x440] sm:$0xff]  }
 0x130   : > { %3694 = vmatprep.subr.bf16.mxu0 %v3943_v62  ;;  %3715 = vmatpush3.bf16.msra.mxu1 %v3942_v61  ;;  %v2525_v61 = vrot.slane %v3477_v56, 2  ;;  %v2526_v62 = vrot.slane %v3478_v57, 2 }
 0x131   : > { %3716 = vmatprep.subr.bf16.mxu1 %v3945_v0  ;;  %v3528_v0 = vcombine.high %v2666_v60, %v2666_v60 }
 0x133   : > { %3695 = vmatpush3.bf16.msra.mxu0 %v3944_v63  ;;  %v3527_v63 = vcombine.low %v2666_v60, %v2666_v60 }
 0x134   : > { %3696 = vmatprep.subr.bf16.mxu0 %v3947_v2  ;;  %3717 = vmatpush3.bf16.msra.mxu1 %v3946_v1  ;;  %v4000_v1 = vld [vmem:[%s4735_s6 + $0x400] sm:$0xff]  }
 0x135   : > { %3718 = vmatprep.subr.bf16.mxu1 %v3949_v4  ;;  %v2705_v2 = vrot.slane %v3527_v63, 2  ;;  %v4001_v4 = vld [vmem:[%s4735_s6 + $0x448] sm:$0xff]  }
 0x137   : > { %3697 = vmatpush3.bf16.msra.mxu0 %v3948_v3  ;;  %v2706_v3 = vrot.slane %v3528_v0, 2 }
 0x138   : > { %3698 = vmatprep.subr.bf16.mxu0 %v3951_v6  ;;  %3719 = vmatpush3.bf16.msra.mxu1 %v3950_v5  ;;  %v4002_v5 = vld [vmem:[%s4735_s6 + $0x408] sm:$0xff]   ;;  %v4003_v6 = vld [vmem:[%s4735_s6 + $0x450] sm:$0xff]  }
 0x139   : > { %3720 = vmatprep.subr.bf16.mxu1 %v3953_v8  ;;  %v4005_v8 = vld [vmem:[%s4735_s6 + $0x458] sm:$0xff]  }
 0x13b   : > { %3699 = vmatpush3.bf16.msra.mxu0 %v3952_v7  ;;  %v4004_v7 = vld [vmem:[%s4735_s6 + $0x410] sm:$0xff]  }
 0x13c   : > { %3700 = vmatprep.subr.bf16.mxu0 %v3955_v10  ;;  %3721 = vmatpush3.bf16.msra.mxu1 %v3954_v9  ;;  %v4006_v9 = vld [vmem:[%s4735_s6 + $0x418] sm:$0xff]   ;;  %v4007_v10 = vld [vmem:[%s4735_s6 + $0x460] sm:$0xff]  }
 0x13d   : > { %3722 = vmatprep.subr.bf16.mxu1 %v3957_v12  ;;  %v4008_v12 = vld [vmem:[%s4735_s6 + $0x420] sm:$0xff]  }
 0x13f   : > { %3701 = vmatpush3.bf16.msra.mxu0 %v3956_v11  ;;  %v2846_v11 = vld [vmem:[%s4775_s10 + $0x10] sm:$0xcc] }
 0x140   : > { %3730 = vmatprep.subr.bf16.mxu0 %v3961_v17  ;;  %3723 = vmatpush3.bf16.msra.mxu1 %v3960_v16  ;;  %v3578_v13 = vcombine.high %v2846_v11, %v2846_v11  ;;  %v4010_v16 = vld [vmem:[%s4735_s6 + $0x428] sm:$0xff]   ;;  %v4011_v17 = vld [vmem:[%s4735_s6 + $0x470] sm:$0xff]   ;;  %v3577_v20 = vcombine.low %v2846_v11, %v2846_v11 }
 0x141   : > { %3752 = vmatprep.subr.bf16.mxu1 %v3965_v26 }
 0x142   : > { %2298 = vmatmul.mubr.bf16.vlgmr.msra.gmra.mrb[8].mxu0 %v2165_v19  ;;  %v2886_v15 = vrot.slane %v3578_v13, 2  ;;  %v4013_v19 = vld [vmem:[%s4735_s6 + $0x478] sm:$0xff]   ;;  %v2885_v22 = vrot.slane %v3577_v20, 2 }
 0x143   : > { %3731 = vmatpush3.bf16.msra.mxu0 %v3964_v23  ;;  %2478 = vmatmul.mubr.bf16.vlgmr.msra.gmra.mrb[8].mxu1 %v2345_v24 }
 0x144   : > { %3753 = vmatpush3.bf16.msra.mxu1 %v3966_v27  ;;  %3732 = vmatprep.subr.bf16.mxu0 %v3967_v28 }
 0x145   : > { %3754 = vmatprep.subr.bf16.mxu1 %v3969_v30  ;;  %2657 = vmatprep.mubr.bf16.mxu0 %v2526_v62 }
 0x146   : > { %2837 = vmatprep.mubr.bf16.mxu1 %v2706_v3 }
 0x147   : > { %3733 = vmatpush3.bf16.msra.mxu0 %v3968_v29 }
 0x148   : > { %3755 = vmatpush3.bf16.msra.mxu1 %v3970_v31  ;;  %3734 = vmatprep.subr.bf16.mxu0 %v3971_v32 }
 0x149   : > { %3756 = vmatprep.subr.bf16.mxu1 %v3973_v34 }
 0x14b   : > { %3735 = vmatpush3.bf16.msra.mxu0 %v3972_v33 }
 0x14c   : > { %3757 = vmatpush3.bf16.msra.mxu1 %v3974_v35  ;;  %3736 = vmatprep.subr.bf16.mxu0 %v3975_v36 }
 0x14d   : > { %3758 = vmatprep.subr.bf16.mxu1 %v3977_v38 }
 0x14f   : > { %3737 = vmatpush3.bf16.msra.mxu0 %v3976_v37 }
 0x150   : > { %3759 = vmatpush3.bf16.msra.mxu1 %v3978_v39  ;;  %3738 = vmatprep.subr.bf16.mxu0 %v3979_v40 }
 0x151   : > { %3760 = vmatprep.subr.bf16.mxu1 %v3981_v42 }
 0x153   : > { %3739 = vmatpush3.bf16.msra.mxu0 %v3980_v41 }
 0x154   : > { %3761 = vmatpush3.bf16.msra.mxu1 %v3982_v43  ;;  %3740 = vmatprep.subr.bf16.mxu0 %v3983_v44 }
 0x155   : > { %3762 = vmatprep.subr.bf16.mxu1 %v3985_v46 }
 0x157   : > { %3741 = vmatpush3.bf16.msra.mxu0 %v3984_v45 }
 0x158   : > { %3763 = vmatpush3.bf16.msra.mxu1 %v3986_v47  ;;  %3742 = vmatprep.subr.bf16.mxu0 %v3987_v48 }
 0x159   : > { %3764 = vmatprep.subr.bf16.mxu1 %v3989_v50 }
 0x15b   : > { %3743 = vmatpush3.bf16.msra.mxu0 %v3988_v49 }
 0x15c   : > { %3765 = vmatpush3.bf16.msra.mxu1 %v3990_v51  ;;  %3744 = vmatprep.subr.bf16.mxu0 %v3991_v52 }
 0x15d   : > { %3766 = vmatprep.subr.bf16.mxu1 %v3993_v54 }
 0x15f   : > { %3745 = vmatpush3.bf16.msra.mxu0 %v3992_v53 }
 0x160   : > { %3767 = vmatpush3.bf16.msra.mxu1 %v3996_v58  ;;  %3774 = vmatprep.subr.bf16.mxu0 %v3997_v59 }
 0x162   : > { %2658 = vmatmul.mubr.bf16.vlgmr.msra.gmra.mrb[12].mxu0 %v2525_v61 }
 0x163   : > { %3775 = vmatpush3.bf16.msra.mxu0 %v4000_v1  ;;  %2838 = vmatmul.mubr.bf16.vlgmr.msra.gmra.mrb[12].mxu1 %v2705_v2 }
 0x164   : > { %3776 = vmatprep.subr.bf16.mxu0 %v4001_v4  ;;  %3017 = vmatprep.mubr.bf16.mxu0 %v2886_v15 }
 0x167   : > { %3777 = vmatpush3.bf16.msra.mxu0 %v4002_v5 }
 0x168   : > { %3778 = vmatprep.subr.bf16.mxu0 %v4003_v6 }
 0x16b   : > { %3779 = vmatpush3.bf16.msra.mxu0 %v4004_v7 }
 0x16c   : > { %3780 = vmatprep.subr.bf16.mxu0 %v4005_v8 }
 0x16f   : > { %3781 = vmatpush3.bf16.msra.mxu0 %v4006_v9 }
 0x170   : > { %3782 = vmatprep.subr.bf16.mxu0 %v4007_v10  ;;  %v3595_v10 = vld [vmem:[%s1405_s21] ss:$0 sm:$0xff] }
 0x173   : > { %3783 = vmatpush3.bf16.msra.mxu0 %v4008_v12 }
 0x174   : > { %3784 = vmatprep.subr.bf16.mxu0 %v4009_v14 }
 0x177   : > { %3785 = vmatpush3.bf16.msra.mxu0 %v4010_v16 }
 0x178   : > { %3786 = vmatprep.subr.bf16.mxu0 %v4011_v17 }
 0x17b   : > { %3787 = vmatpush3.bf16.msra.mxu0 %v4012_v18 }
 0x17c   : > { %3788 = vmatprep.subr.bf16.mxu0 %v4013_v19 }
 0x17f   : > { %3789 = vmatpush3.bf16.msra.mxu0 %v4014_v21 }
 0x182   : > { %3018 = vmatmul.mubr.bf16.vlgmr.msra.gmra.mrb[16].mxu0 %v2885_v22 }
 0x1d5   : > { %v3614_v23 = vpop.f32.mrb[0].mxu0 }
 0x1d6   : > { %v3636_v24 = vpop.f32.mrb[0].mxu1  ;;  %v3615_v25 = vpop.f32.mrb[1].mxu0 }
 0x1d7   : > { %v3637_v26 = vpop.f32.mrb[1].mxu1  ;;  %v3616_v27 = vadd.f32 %v3615_v25, %v3614_v23  ;;  %v3617_v29 = vpop.f32.mrb[2].mxu0 }
 0x1d8   : > { %v3638_v28 = vadd.f32 %v3637_v26, %v3636_v24  ;;  %v3639_v30 = vpop.f32.mrb[2].mxu1  ;;  %v3618_v31 = vpop.f32.mrb[3].mxu0 }
 0x1d9   : > { %v3640_v32 = vpop.f32.mrb[3].mxu1 }
 0x1da   : > { %v1763_v33 = vadd.f32 %v3638_v28, %v3616_v27 }
 0x1f5   : > { %v3658_v34 = vpop.f32.mrb[4].mxu0 }
 0x1f6   : > { %v3659_v35 = vpop.f32.mrb[5].mxu0  ;;  %v3680_v38 = vpop.f32.mrb[4].mxu1 }
 0x1f7   : > { %v3660_v36 = vadd.f32 %v3659_v35, %v3658_v34  ;;  %v3661_v37 = vpop.f32.mrb[6].mxu0  ;;  %v3681_v41 = vpop.f32.mrb[5].mxu1 }
 0x1f8   : > { %v3662_v39 = vpop.f32.mrb[7].mxu0  ;;  %v3682_v42 = vadd.f32 %v3681_v41, %v3680_v38  ;;  %v3683_v43 = vpop.f32.mrb[6].mxu1 }
 0x1f9   : > { %v1945_v40 = vadd.f32 %v3660_v36, %v1763_v33  ;;  %v3684_v44 = vpop.f32.mrb[7].mxu1 }
 0x1fb   : > { %v2125_v45 = vadd.f32 %v3682_v42, %v1945_v40 }
 0x215   : > { %v3702_v46 = vpop.f32.mrb[8].mxu0 }
 0x216   : > { %v3703_v47 = vpop.f32.mrb[9].mxu0  ;;  %v3724_v50 = vpop.f32.mrb[8].mxu1 }
 0x217   : > { %v3704_v48 = vadd.f32 %v3703_v47, %v3702_v46  ;;  %v3705_v49 = vpop.f32.mrb[10].mxu0  ;;  %v3725_v52 = vpop.f32.mrb[9].mxu1 }
 0x218   : > { %v3706_v51 = vpop.f32.mrb[11].mxu0  ;;  %v3726_v54 = vadd.f32 %v3725_v52, %v3724_v50  ;;  %v3727_v55 = vpop.f32.mrb[10].mxu1 }
 0x219   : > { %v2305_v53 = vadd.f32 %v3704_v48, %v2125_v45  ;;  %v3728_v56 = vpop.f32.mrb[11].mxu1 }
 0x21b   : > { %v2485_v57 = vadd.f32 %v3726_v54, %v2305_v53 }
 0x235   : > { %v3746_v58 = vpop.f32.mrb[12].mxu0 }
 0x236   : > { %v3747_v59 = vpop.f32.mrb[13].mxu0  ;;  %v3768_v62 = vpop.f32.mrb[12].mxu1 }
 0x237   : > { %v3748_v60 = vadd.f32 %v3747_v59, %v3746_v58  ;;  %v3749_v61 = vpop.f32.mrb[14].mxu0  ;;  %v3769_v0 = vpop.f32.mrb[13].mxu1 }
 0x238   : > { %v3750_v63 = vpop.f32.mrb[15].mxu0  ;;  %v3770_v2 = vadd.f32 %v3769_v0, %v3768_v62  ;;  %v3771_v3 = vpop.f32.mrb[14].mxu1 }
 0x239   : > { %v2665_v1 = vadd.f32 %v3748_v60, %v2485_v57  ;;  %v3772_v4 = vpop.f32.mrb[15].mxu1 }
 0x23b   : > { %v2845_v5 = vadd.f32 %v3770_v2, %v2665_v1 }
 0x255   : > { %v3790_v6 = vpop.f32.mrb[16].mxu0 }
 0x256   : > { %v3791_v7 = vpop.f32.mrb[17].mxu0 }
 0x257   : > { %v3792_v8 = vadd.f32 %v3791_v7, %v3790_v6  ;;  %v3793_v9 = vpop.f32.mrb[18].mxu0 }
 0x258   : > { %v3794_v11 = vpop.f32.mrb[19].mxu0 }
 0x259   : > { %v3025_v12 = vadd.f32 %v3792_v8, %v2845_v5 }
 0x25b   : > { %v3033_v13 = vadd.f32 %v3595_v10, %v3025_v12 }
 0x25d   : > { %v3035_v14 = vsel %vm3034_vm0, %v3033_v13, 0.0 }
 0x25e   : > { %v3036_v15 = vrot.slane %v3035_v14, 4 }
 0x260   : > { %v3037_v16 = vadd.f32 %v3036_v15, %v3035_v14 }
 0x262   : > { %v3038_v17 = vrot.slane %v3037_v16, 2 }
 0x264   : > { %v3039_v18 = vadd.f32 %v3038_v17, %v3037_v16 }
 0x266   : > { %v3040_v19 = vrot.slane %v3039_v18, 1 }
 0x268   : > { %v3041_v20 = vadd.f32 %v3040_v19, %v3039_v18 }
 0x26a   : > { %v3043_v21 = vmul.f32 0.25, %v3041_v20 }
 0x26c   : > { %v3044_v22 = vsub.f32 %v3033_v13, %v3043_v21 }
 0x26e   : > { %v3045_v23 = vmul.f32 %v3044_v22, %v3044_v22 }
 0x270   : > { %v3046_v24 = vsel %vm3034_vm0, %v3045_v23, 0.0 }
 0x271   : > { %v3047_v25 = vrot.slane %v3046_v24, 4 }
 0x273   : > { %v3048_v26 = vadd.f32 %v3047_v25, %v3046_v24 }
 0x275   : > { %v3049_v27 = vrot.slane %v3048_v26, 2 }
 0x277   : > { %v3050_v28 = vadd.f32 %v3049_v27, %v3048_v26 }
 0x279   : > { %v3051_v29 = vrot.slane %v3050_v28, 1 }
 0x27b   : > { %v3052_v30 = vadd.f32 %v3051_v29, %v3050_v28 }
 0x27d   : > { %v3053_v31 = vmul.f32 0.25, %v3052_v30 }
 0x27f   : > { %v3054_v32 = vadd.f32 1e-05, %v3053_v31 }
 0x281   : > { %4017 = vrsqrt.f32 %v3054_v32 }
 0x28b   : > { %v4018_v33 = vpop.eup %4017 }
 0x28c   : > { %v3056_v34 = vmul.f32 %v4018_v33, %v3044_v22 }
 0x28e   : > { %vm3057_vm1 = vcmp.ge.f32.partialorder %v3056_v34, 0.0  ;;  %v3058_v35 = vmul.f32 0.2, %v3056_v34 }
 0x290   : > { %v3059_v36 = vsel %vm3057_vm1, %v3056_v34, %v3058_v35 }
 0x291   : > { %3060 = vst [vmem:[%s1413_s28] sm:$0xf] %v3059_v36 }
 0x292 PF: > { %s13_s18 = sadd.s32 1, %s4073_s18   ;;  %s4938_s12 = smov %s4053_s13 }
 0x293   : > { %p10_p12 = scmp.ge.s32.totalorder %s13_s18, 10   ;;  %s4939_s13 = smov %s4144_s23 }
 0x294   : > { %s4940_s14 = smov %s4065_s16  ;;  %s4941_s15 = smov %s4069_s17 }
 0x295   : > { %s4942_s16 = smov %s4945_s19  ;;  %s4943_s17 = smov %s4949_s20 }
 0x296   :  { %12 = sbr.rel (!%p10_p12) target bundleno = 4 (0x4), region = 122 }

// kernel: discriminator_forward.9
= control target key start
LH: loop header
LB: loop body
LE: loop exit
PB: predicated region body
PF: predicated region fallthrough
CT: control target
= control target key end

     0   :  { %s5173_s12 = smov 0   ;;  %s5175_s13 = smov 0   ;;  %s6104_s0 = inlined_call_operand.vmem [shape: bf16[2,24,512], index: 0, kind: input, shape index: {}]   ;;  %s6105_s1 = inlined_call_operand.vmem [shape: bf16[9,512,128], index: 1, kind: input, shape index: {}]   ;;  %s6106_s2 = inlined_call_operand.vmem [shape: f32[1,128], index: 2, kind: input, shape index: {}]   ;;  %s6107_s3 = inlined_call_operand.vmem [shape: f32[2,4,128], index: 3, kind: output, shape index: {}]  }
   0x1   :  { %s5177_s14 = smov 0  }
   0x2 LB: > { %s25_s15 = sadd.s32 1, %s5147_s13  ;;  %p3542_p0 = scmp.ge.s32.totalorder %s5151_s14, 1  ;;  %s5151_s14 = sphi %s5177_s14, %s13_s14   ;;  %s5147_s13 = sphi %s5175_s13, %s6109_s13   ;;  %s5143_s12 = sphi %s5173_s12, %s6108_s12  }
   0x3   : > { %p27_p1 = scmp.ge.s32.totalorder %s25_s15, 2  ;;  %p168_p2 = scmp.lt.s32.totalorder %s5151_s14, 3 }
   0x5   : > { %s6111_s15 = smov (%p27_p1, %s25_s15), 0  ;;  %p169_p3 = pnand %p3542_p0, %p168_p2 }
   0x6   : > { %v4805_v0 = vld [vmem:[%s6105_s1 + $0x140] sm:$0xff] (!%p169_p3)   ;;  %v4809_v4 = vld [vmem:[%s6105_s1 + $0x148] sm:$0xff] (!%p169_p3)   ;;  %v4813_v8 = vld [vmem:[%s6105_s1 + $0x150] sm:$0xff] (!%p169_p3)   ;;  %p201_p4 = scmp.lt.s32.totalorder (!%p169_p3), %s5143_s12, 1 }
   0x7   : > { %172 = sbr.rel (%p169_p3) target bundleno = 519 (0x207), region = 32  ;;  %v4806_v1 = vld [vmem:[%s6105_s1 + $0x1c0] sm:$0xff] (!%p169_p3)   ;;  %4384 = vmatprep.subr.bf16.mxu0 (!%p169_p3), %v4805_v0  ;;  %v4810_v5 = vld [vmem:[%s6105_s1 + $0x1c8] sm:$0xff] (!%p169_p3)   ;;  %v4814_v9 = vld [vmem:[%s6105_s1 + $0x1d0] sm:$0xff] (!%p169_p3)  }
   0x8   : > { %v4807_v2 = vld [vmem:[%s6105_s1 + $0x100] sm:$0xff] (!%p169_p3)   ;;  %4406 = vmatprep.subr.bf16.mxu1 (!%p169_p3), %v4806_v1  ;;  %v4811_v6 = vld [vmem:[%s6105_s1 + $0x108] sm:$0xff] (!%p169_p3)   ;;  %v4815_v10 = vld [vmem:[%s6105_s1 + $0x110] sm:$0xff] (!%p169_p3)  }
   0x9   : > { %v4808_v3 = vld [vmem:[%s6105_s1 + $0x180] sm:$0xff] (!%p169_p3)   ;;  %4385 = vmatpush3.bf16.msra.mxu0 (!%p169_p3), %v4807_v2  ;;  %v4812_v7 = vld [vmem:[%s6105_s1 + $0x188] sm:$0xff] (!%p169_p3)   ;;  %v4816_v11 = vld [vmem:[%s6105_s1 + $0x190] sm:$0xff] (!%p169_p3)  }
   0xa   : > { %4407 = vmatpush3.bf16.msra.mxu1 (!%p169_p3), %v4808_v3  ;;  %4386 = vmatprep.subr.bf16.mxu0 (!%p169_p3), %v4809_v4  ;;  %v4817_v12 = vld [vmem:[%s6105_s1 + $0x158] sm:$0xff] (!%p169_p3)   ;;  %v4821_v16 = vld [vmem:[%s6105_s1 + $0x160] sm:$0xff] (!%p169_p3)   ;;  %v4825_v20 = vld [vmem:[%s6105_s1 + $0x168] sm:$0xff] (!%p169_p3)  }
   0xb   : > { %4408 = vmatprep.subr.bf16.mxu1 (!%p169_p3), %v4810_v5  ;;  %v4818_v13 = vld [vmem:[%s6105_s1 + $0x1d8] sm:$0xff] (!%p169_p3)   ;;  %v4822_v17 = vld [vmem:[%s6105_s1 + $0x1e0] sm:$0xff] (!%p169_p3)   ;;  %v4826_v21 = vld [vmem:[%s6105_s1 + $0x1e8] sm:$0xff] (!%p169_p3)  }
   0xc   : > { %v4819_v14 = vld [vmem:[%s6105_s1 + $0x118] sm:$0xff] (!%p169_p3)   ;;  %v4823_v18 = vld [vmem:[%s6105_s1 + $0x120] sm:$0xff] (!%p169_p3)   ;;  %v4827_v22 = vld [vmem:[%s6105_s1 + $0x128] sm:$0xff] (!%p169_p3)  }
   0xd   : > { %4387 = vmatpush3.bf16.msra.mxu0 (!%p169_p3), %v4811_v6  ;;  %v4820_v15 = vld [vmem:[%s6105_s1 + $0x198] sm:$0xff] (!%p169_p3)   ;;  %v4824_v19 = vld [vmem:[%s6105_s1 + $0x1a0] sm:$0xff] (!%p169_p3)   ;;  %v4828_v23 = vld [vmem:[%s6105_s1 + $0x1a8] sm:$0xff] (!%p169_p3)  }
   0xe   : > { %4409 = vmatpush3.bf16.msra.mxu1 %v4812_v7  ;;  %4388 = vmatprep.subr.bf16.mxu0 %v4813_v8  ;;  %s6113_s12 = smov (!%p201_p4, %s5143_s12), 1  ;;  %v4829_v24 = vld [vmem:[%s6105_s1 + $0x170] sm:$0xff]   ;;  %v4833_v28 = vld [vmem:[%s6105_s1 + $0x178] sm:$0xff]   ;;  %v4841_v38 = vld [vmem:[%s6105_s1 + $0x40] sm:$0xff]  }
   0xf   : > { %4410 = vmatprep.subr.bf16.mxu1 %v4814_v9  ;;  %v4830_v25 = vld [vmem:[%s6105_s1 + $0x1f0] sm:$0xff]   ;;  %s4780_s22 = smul.u32 48, %s6113_s12  ;;  %v4834_v29 = vld [vmem:[%s6105_s1 + $0x1f8] sm:$0xff]   ;;  %v4842_v39 = vld [vmem:[%s6105_s1 + $0xc0] sm:$0xff]  }
  0x10   : > { %v4831_v26 = vld [vmem:[%s6105_s1 + $0x130] sm:$0xff]   ;;  %v4835_v30 = vld [vmem:[%s6105_s1 + $0x138] sm:$0xff]   ;;  %v4843_v40 = vld [vmem:[%s6105_s1] sm:$0xff]  }
  0x11   : > { %4389 = vmatpush3.bf16.msra.mxu0 %v4815_v10  ;;  %v4832_v27 = vld [vmem:[%s6105_s1 + $0x1b0] sm:$0xff]   ;;  %s5291_s6 = scalar_lea.vmem %s6104_s0, %s4780_s22  ;;  %v4836_v31 = vld [vmem:[%s6105_s1 + $0x1b8] sm:$0xff]   ;;  %v4844_v41 = vld [vmem:[%s6105_s1 + $0x80] sm:$0xff]  }
  0x12   : > { %4411 = vmatpush3.bf16.msra.mxu1 %v4816_v11  ;;  %4390 = vmatprep.subr.bf16.mxu0 %v4817_v12  ;;  %v287_v32 = vld [vmem:[%s5291_s6 + $0x10] sm:$0x33]  ;;  %v288_v33 = vld [vmem:[%s5291_s6 + $0x18] sm:$0x33]  ;;  %v4845_v42 = vld [vmem:[%s6105_s1 + $0x48] sm:$0xff]  }
  0x13   : > { %4412 = vmatprep.subr.bf16.mxu1 %v4818_v13  ;;  %v3609_v34 = vcombine.low %v287_v32, %v287_v32  ;;  %v3610_v35 = vcombine.high %v287_v32, %v287_v32  ;;  %v3611_v36 = vcombine.low %v288_v33, %v288_v33  ;;  %v3612_v37 = vcombine.high %v288_v33, %v288_v33  ;;  %v4846_v43 = vld [vmem:[%s6105_s1 + $0xc8] sm:$0xff]   ;;  %v4849_v46 = vld [vmem:[%s6105_s1 + $0x50] sm:$0xff]   ;;  %v4853_v50 = vld [vmem:[%s6105_s1 + $0x58] sm:$0xff]  }
  0x14   : > { %v4847_v44 = vld [vmem:[%s6105_s1 + $0x8] sm:$0xff]   ;;  %v4850_v47 = vld [vmem:[%s6105_s1 + $0xd0] sm:$0xff]   ;;  %v4854_v51 = vld [vmem:[%s6105_s1 + $0xd8] sm:$0xff]  }
  0x15   : > { %4391 = vmatpush3.bf16.msra.mxu0 %v4819_v14  ;;  %592 = vmatprep.mubr.bf16.mxu0 %v3610_v35  ;;  %v4848_v45 = vld [vmem:[%s6105_s1 + $0x88] sm:$0xff]   ;;  %v4851_v48 = vld [vmem:[%s6105_s1 + $0x10] sm:$0xff]   ;;  %v4855_v52 = vld [vmem:[%s6105_s1 + $0x18] sm:$0xff]  }
  0x16   : > { %4413 = vmatpush3.bf16.msra.mxu1 %v4820_v15  ;;  %4392 = vmatprep.subr.bf16.mxu0 %v4821_v16  ;;  %v4852_v49 = vld [vmem:[%s6105_s1 + $0x90] sm:$0xff]   ;;  %v4856_v53 = vld [vmem:[%s6105_s1 + $0x98] sm:$0xff]   ;;  %v4857_v54 = vld [vmem:[%s6105_s1 + $0x60] sm:$0xff]  }
  0x17   : > { %4414 = vmatprep.subr.bf16.mxu1 %v4822_v17  ;;  %632 = vmatprep.mubr.bf16.mxu1 %v3612_v37  ;;  %v4858_v55 = vld [vmem:[%s6105_s1 + $0xe0] sm:$0xff]   ;;  %v4861_v58 = vld [vmem:[%s6105_s1 + $0x68] sm:$0xff]   ;;  %v4865_v62 = vld [vmem:[%s6105_s1 + $0x70] sm:$0xff]  }
  0x18   : > { %v4859_v56 = vld [vmem:[%s6105_s1 + $0x20] sm:$0xff]   ;;  %v4862_v59 = vld [vmem:[%s6105_s1 + $0xe8] sm:$0xff]   ;;  %v4866_v63 = vld [vmem:[%s6105_s1 + $0xf0] sm:$0xff]  }
  0x19   : > { %4393 = vmatpush3.bf16.msra.mxu0 %v4823_v18  ;;  %v4860_v57 = vld [vmem:[%s6105_s1 + $0xa0] sm:$0xff]   ;;  %v4863_v60 = vld [vmem:[%s6105_s1 + $0x28] sm:$0xff]   ;;  %v4867_v0 = vld [vmem:[%s6105_s1 + $0x30] sm:$0xff]  }
  0x1a   : > { %4415 = vmatpush3.bf16.msra.mxu1 %v4824_v19  ;;  %4394 = vmatprep.subr.bf16.mxu0 %v4825_v20  ;;  %v4864_v61 = vld [vmem:[%s6105_s1 + $0xa8] sm:$0xff]   ;;  %v4868_v1 = vld [vmem:[%s6105_s1 + $0xb0] sm:$0xff]   ;;  %v4869_v2 = vld [vmem:[%s6105_s1 + $0x78] sm:$0xff]  }
  0x1b   : > { %4416 = vmatprep.subr.bf16.mxu1 %v4826_v21  ;;  %v4870_v3 = vld [vmem:[%s6105_s1 + $0xf8] sm:$0xff]   ;;  %v221_v6 = vld [vmem:[%s5291_s6] sm:$0x33]  ;;  %v222_v9 = vld [vmem:[%s5291_s6 + $0x8] sm:$0x33] }
  0x1c   : > { %v4871_v4 = vld [vmem:[%s6105_s1 + $0x38] sm:$0xff]   ;;  %v3645_v7 = vcombine.low %v221_v6, %v221_v6  ;;  %v3646_v8 = vcombine.high %v221_v6, %v221_v6  ;;  %v3647_v10 = vcombine.low %v222_v9, %v222_v9  ;;  %v3648_v11 = vcombine.high %v222_v9, %v222_v9  ;;  %v4877_v12 = vld [vmem:[%s6105_s1 + $0x240] sm:$0xff]   ;;  %v4881_v16 = vld [vmem:[%s6105_s1 + $0x248] sm:$0xff]  }
  0x1d   : > { %4395 = vmatpush3.bf16.msra.mxu0 %v4827_v22  ;;  %v4872_v5 = vld [vmem:[%s6105_s1 + $0xb8] sm:$0xff]   ;;  %v4878_v13 = vld [vmem:[%s6105_s1 + $0x2c0] sm:$0xff]   ;;  %v4882_v17 = vld [vmem:[%s6105_s1 + $0x2c8] sm:$0xff]  }
  0x1e   : > { %4417 = vmatpush3.bf16.msra.mxu1 %v4828_v23  ;;  %4396 = vmatprep.subr.bf16.mxu0 %v4829_v24  ;;  %v4879_v14 = vld [vmem:[%s6105_s1 + $0x200] sm:$0xff]   ;;  %v4883_v18 = vld [vmem:[%s6105_s1 + $0x208] sm:$0xff]   ;;  %v4885_v20 = vld [vmem:[%s6105_s1 + $0x250] sm:$0xff]  }
  0x1f   : > { %4418 = vmatprep.subr.bf16.mxu1 %v4830_v25  ;;  %v4880_v15 = vld [vmem:[%s6105_s1 + $0x280] sm:$0xff]   ;;  %v4884_v19 = vld [vmem:[%s6105_s1 + $0x288] sm:$0xff]   ;;  %v4886_v21 = vld [vmem:[%s6105_s1 + $0x2d0] sm:$0xff]  }
  0x20   : > { %v4887_v22 = vld [vmem:[%s6105_s1 + $0x210] sm:$0xff]   ;;  %v4889_v24 = vld [vmem:[%s6105_s1 + $0x258] sm:$0xff]   ;;  %v4897_v32 = vld [vmem:[%s6105_s1 + $0x268] sm:$0xff]  }
  0x21   : > { %4397 = vmatpush3.bf16.msra.mxu0 %v4831_v26  ;;  %v4888_v23 = vld [vmem:[%s6105_s1 + $0x290] sm:$0xff]   ;;  %v4890_v25 = vld [vmem:[%s6105_s1 + $0x2d8] sm:$0xff]   ;;  %v4898_v33 = vld [vmem:[%s6105_s1 + $0x2e8] sm:$0xff]  }
  0x22   : > { %4419 = vmatpush3.bf16.msra.mxu1 %v4832_v27  ;;  %4398 = vmatprep.subr.bf16.mxu0 %v4833_v28  ;;  %v4891_v26 = vld [vmem:[%s6105_s1 + $0x218] sm:$0xff]   ;;  %v4893_v28 = vld [vmem:[%s6105_s1 + $0x260] sm:$0xff]   ;;  %v4900_v35 = vld [vmem:[%s6105_s1 + $0x2a8] sm:$0xff]  }
  0x23   : > { %4420 = vmatprep.subr.bf16.mxu1 %v4834_v29  ;;  %v4892_v27 = vld [vmem:[%s6105_s1 + $0x298] sm:$0xff]   ;;  %v4894_v29 = vld [vmem:[%s6105_s1 + $0x2e0] sm:$0xff]   ;;  %v4902_v37 = vld [vmem:[%s6105_s1 + $0x2f0] sm:$0xff]  }
  0x24   : > { %v4933_v6 = vld [vmem:[%s6105_s1 + $0x368] sm:$0xff]  }
  0x25   : > { %4399 = vmatpush3.bf16.msra.mxu0 %v4835_v30  ;;  %v4895_v30 = vld [vmem:[%s6105_s1 + $0x220] sm:$0xff]   ;;  %v4936_v9 = vld [vmem:[%s6105_s1 + $0x3a8] sm:$0xff]  }
  0x26   : > { %4421 = vmatpush3.bf16.msra.mxu1 %v4836_v31  ;;  %4428 = vmatprep.subr.bf16.mxu0 %v4841_v38  ;;  %v4896_v31 = vld [vmem:[%s6105_s1 + $0x2a0] sm:$0xff]   ;;  %v4903_v38 = vld [vmem:[%s6105_s1 + $0x230] sm:$0xff]  }
  0x27   : > { %4450 = vmatprep.subr.bf16.mxu1 %v4842_v39  ;;  %v4904_v39 = vld [vmem:[%s6105_s1 + $0x2b0] sm:$0xff]  }
  0x28   : > { %593 = vmatmul.mubr.bf16.vlgmr.msra.gmra.mrb[0].mxu0 %v3609_v34  ;;  %v4899_v34 = vld [vmem:[%s6105_s1 + $0x228] sm:$0xff]  }
  0x29   : > { %633 = vmatmul.mubr.bf16.vlgmr.msra.gmra.mrb[0].mxu1 %v3611_v36  ;;  %4429 = vmatpush3.bf16.msra.mxu0 %v4843_v40  ;;  %v4901_v36 = vld [vmem:[%s6105_s1 + $0x270] sm:$0xff]   ;;  %v4905_v40 = vld [vmem:[%s6105_s1 + $0x278] sm:$0xff]  }
  0x2a   : > { %4451 = vmatpush3.bf16.msra.mxu1 %v4844_v41  ;;  %4430 = vmatprep.subr.bf16.mxu0 %v4845_v42  ;;  %v4906_v41 = vld [vmem:[%s6105_s1 + $0x2f8] sm:$0xff]  }
  0x2b   : > { %4452 = vmatprep.subr.bf16.mxu1 %v4846_v43  ;;  %878 = vmatprep.mubr.bf16.mxu0 %v3646_v8  ;;  %v4907_v42 = vld [vmem:[%s6105_s1 + $0x238] sm:$0xff]   ;;  %v4935_v8 = vld [vmem:[%s6105_s1 + $0x328] sm:$0xff]  }
  0x2c   : > { %918 = vmatprep.mubr.bf16.mxu1 %v3648_v11  ;;  %v4908_v43 = vld [vmem:[%s6105_s1 + $0x2b8] sm:$0xff]   ;;  %v4938_v11 = vld [vmem:[%s6105_s1 + $0x3f0] sm:$0xff]  }
  0x2d   : > { %4431 = vmatpush3.bf16.msra.mxu0 %v4847_v44  ;;  %v926_v44 = vld [vmem:[%s5291_s6 + $0x20] sm:$0x33] }
  0x2e   : > { %4453 = vmatpush3.bf16.msra.mxu1 %v4848_v45  ;;  %4432 = vmatprep.subr.bf16.mxu0 %v4849_v46  ;;  %v927_v45 = vld [vmem:[%s5291_s6 + $0x28] sm:$0x33]  ;;  %v3745_v46 = vcombine.low %v926_v44, %v926_v44 }
  0x2f   : > { %4454 = vmatprep.subr.bf16.mxu1 %v4850_v47  ;;  %v3746_v47 = vcombine.high %v926_v44, %v926_v44  ;;  %v4965_v44 = vld [vmem:[%s6105_s1 + $0x460] sm:$0xff]  }
  0x31   : > { %4433 = vmatpush3.bf16.msra.mxu0 %v4851_v48  ;;  %v3747_v48 = vcombine.low %v927_v45, %v927_v45 }
  0x32   : > { %4455 = vmatpush3.bf16.msra.mxu1 %v4852_v49  ;;  %4434 = vmatprep.subr.bf16.mxu0 %v4853_v50  ;;  %v3748_v49 = vcombine.high %v927_v45, %v927_v45  ;;  %v4913_v50 = vld [vmem:[%s6105_s1 + $0x340] sm:$0xff]  }
  0x33   : > { %4456 = vmatprep.subr.bf16.mxu1 %v4854_v51  ;;  %v4914_v51 = vld [vmem:[%s6105_s1 + $0x3c0] sm:$0xff]  }
  0x34   : > { %v4966_v45 = vld [vmem:[%s6105_s1 + $0x4e0] sm:$0xff]  }
  0x35   : > { %4435 = vmatpush3.bf16.msra.mxu0 %v4855_v52  ;;  %v4915_v52 = vld [vmem:[%s6105_s1 + $0x300] sm:$0xff]  }
  0x36   : > { %4457 = vmatpush3.bf16.msra.mxu1 %v4856_v53  ;;  %4436 = vmatprep.subr.bf16.mxu0 %v4857_v54  ;;  %v4916_v53 = vld [vmem:[%s6105_s1 + $0x380] sm:$0xff]   ;;  %v4917_v54 = vld [vmem:[%s6105_s1 + $0x348] sm:$0xff]  }
  0x37   : > { %4458 = vmatprep.subr.bf16.mxu1 %v4858_v55  ;;  %v4918_v55 = vld [vmem:[%s6105_s1 + $0x3c8] sm:$0xff]  }
  0x39   : > { %4437 = vmatpush3.bf16.msra.mxu0 %v4859_v56  ;;  %v4919_v56 = vld [vmem:[%s6105_s1 + $0x308] sm:$0xff]  }
  0x3a   : > { %4459 = vmatpush3.bf16.msra.mxu1 %v4860_v57  ;;  %4438 = vmatprep.subr.bf16.mxu0 %v4861_v58  ;;  %v4920_v57 = vld [vmem:[%s6105_s1 + $0x388] sm:$0xff]   ;;  %v4921_v58 = vld [vmem:[%s6105_s1 + $0x350] sm:$0xff]  }
  0x3b   : > { %4460 = vmatprep.subr.bf16.mxu1 %v4862_v59  ;;  %v4922_v59 = vld [vmem:[%s6105_s1 + $0x3d0] sm:$0xff]  }
  0x3d   : > { %4439 = vmatpush3.bf16.msra.mxu0 %v4863_v60  ;;  %v4923_v60 = vld [vmem:[%s6105_s1 + $0x310] sm:$0xff]  }
  0x3e   : > { %4461 = vmatpush3.bf16.msra.mxu1 %v4864_v61  ;;  %4440 = vmatprep.subr.bf16.mxu0 %v4865_v62  ;;  %v4924_v61 = vld [vmem:[%s6105_s1 + $0x390] sm:$0xff]   ;;  %v4925_v62 = vld [vmem:[%s6105_s1 + $0x358] sm:$0xff]  }
  0x3f   : > { %4462 = vmatprep.subr.bf16.mxu1 %v4866_v63  ;;  %v4926_v63 = vld [vmem:[%s6105_s1 + $0x3d8] sm:$0xff]  }
  0x41   : > { %4441 = vmatpush3.bf16.msra.mxu0 %v4867_v0  ;;  %v4927_v0 = vld [vmem:[%s6105_s1 + $0x318] sm:$0xff]  }
  0x42   : > { %4463 = vmatpush3.bf16.msra.mxu1 %v4868_v1  ;;  %4442 = vmatprep.subr.bf16.mxu0 %v4869_v2  ;;  %v4928_v1 = vld [vmem:[%s6105_s1 + $0x398] sm:$0xff]   ;;  %v4929_v2 = vld [vmem:[%s6105_s1 + $0x360] sm:$0xff]  }
  0x43   : > { %4464 = vmatprep.subr.bf16.mxu1 %v4870_v3  ;;  %v4930_v3 = vld [vmem:[%s6105_s1 + $0x3e0] sm:$0xff]  }
  0x45   : > { %4443 = vmatpush3.bf16.msra.mxu0 %v4871_v4  ;;  %v4931_v4 = vld [vmem:[%s6105_s1 + $0x320] sm:$0xff]  }
  0x46   : > { %4465 = vmatpush3.bf16.msra.mxu1 %v4872_v5  ;;  %4472 = vmatprep.subr.bf16.mxu0 %v4877_v12  ;;  %v4932_v5 = vld [vmem:[%s6105_s1 + $0x3a0] sm:$0xff]   ;;  %v4939_v12 = vld [vmem:[%s6105_s1 + $0x330] sm:$0xff]  }
  0x47   : > { %4494 = vmatprep.subr.bf16.mxu1 %v4878_v13  ;;  %v4940_v13 = vld [vmem:[%s6105_s1 + $0x3b0] sm:$0xff]  }
  0x48   : > { %879 = vmatmul.mubr.bf16.vlgmr.msra.gmra.mrb[4].mxu0 %v3645_v7  ;;  %v4934_v7 = vld [vmem:[%s6105_s1 + $0x3e8] sm:$0xff]  }
  0x49   : > { %919 = vmatmul.mubr.bf16.vlgmr.msra.gmra.mrb[4].mxu1 %v3647_v10  ;;  %4473 = vmatpush3.bf16.msra.mxu0 %v4879_v14  ;;  %v4937_v10 = vld [vmem:[%s6105_s1 + $0x370] sm:$0xff]   ;;  %v4941_v14 = vld [vmem:[%s6105_s1 + $0x378] sm:$0xff]  }
  0x4a   : > { %4495 = vmatpush3.bf16.msra.mxu1 %v4880_v15  ;;  %4474 = vmatprep.subr.bf16.mxu0 %v4881_v16  ;;  %v4942_v15 = vld [vmem:[%s6105_s1 + $0x3f8] sm:$0xff]  }
  0x4b   : > { %4496 = vmatprep.subr.bf16.mxu1 %v4882_v17  ;;  %1231 = vmatprep.mubr.bf16.mxu0 %v3746_v47  ;;  %v4943_v16 = vld [vmem:[%s6105_s1 + $0x338] sm:$0xff]   ;;  %v4968_v47 = vld [vmem:[%s6105_s1 + $0x4a0] sm:$0xff]  }
  0x4c   : > { %1271 = vmatprep.mubr.bf16.mxu1 %v3748_v49  ;;  %v4944_v17 = vld [vmem:[%s6105_s1 + $0x3b8] sm:$0xff]   ;;  %v4970_v49 = vld [vmem:[%s6105_s1 + $0x4e8] sm:$0xff]  }
  0x4d   : > { %4475 = vmatpush3.bf16.msra.mxu0 %v4883_v18  ;;  %v1280_v18 = vld [vmem:[%s5291_s6] sm:$0x66] }
  0x4e   : > { %4497 = vmatpush3.bf16.msra.mxu1 %v4884_v19  ;;  %4476 = vmatprep.subr.bf16.mxu0 %v4885_v20  ;;  %v1281_v19 = vld [vmem:[%s5291_s6 + $0x8] sm:$0x66]  ;;  %v3845_v20 = vcombine.low %v1280_v18, %v1280_v18 }
  0x4f   : > { %4498 = vmatprep.subr.bf16.mxu1 %v4886_v21  ;;  %v3846_v21 = vcombine.high %v1280_v18, %v1280_v18  ;;  %v4997_v18 = vld [vmem:[%s6105_s1 + $0x558] sm:$0xff]  }
  0x51   : > { %4477 = vmatpush3.bf16.msra.mxu0 %v4887_v22  ;;  %v3847_v22 = vcombine.low %v1281_v19, %v1281_v19 }
  0x52   : > { %4499 = vmatpush3.bf16.msra.mxu1 %v4888_v23  ;;  %4478 = vmatprep.subr.bf16.mxu0 %v4889_v24  ;;  %v4949_v23 = vld [vmem:[%s6105_s1 + $0x440] sm:$0xff]   ;;  %v3848_v24 = vcombine.high %v1281_v19, %v1281_v19  ;;  %v4998_v19 = vld [vmem:[%s6105_s1 + $0x5d8] sm:$0xff]  }
  0x53   : > { %4500 = vmatprep.subr.bf16.mxu1 %v4890_v25  ;;  %v4950_v25 = vld [vmem:[%s6105_s1 + $0x4c0] sm:$0xff]  }
  0x55   : > { %4479 = vmatpush3.bf16.msra.mxu0 %v4891_v26  ;;  %v1357_v26 = vrot.slane %v3845_v20, 1  ;;  %v4999_v20 = vld [vmem:[%s6105_s1 + $0x518] sm:$0xff]  }
  0x56   : > { %4501 = vmatpush3.bf16.msra.mxu1 %v4892_v27  ;;  %4480 = vmatprep.subr.bf16.mxu0 %v4893_v28  ;;  %v1358_v27 = vrot.slane %v3846_v21, 1  ;;  %v1359_v28 = vrot.slane %v3847_v22, 1  ;;  %v5000_v21 = vld [vmem:[%s6105_s1 + $0x598] sm:$0xff]   ;;  %v5001_v22 = vld [vmem:[%s6105_s1 + $0x560] sm:$0xff]  }
  0x57   : > { %4502 = vmatprep.subr.bf16.mxu1 %v4894_v29  ;;  %v4951_v29 = vld [vmem:[%s6105_s1 + $0x400] sm:$0xff]  }
  0x59   : > { %4481 = vmatpush3.bf16.msra.mxu0 %v4895_v30  ;;  %v1360_v30 = vrot.slane %v3848_v24, 1  ;;  %v5003_v24 = vld [vmem:[%s6105_s1 + $0x520] sm:$0xff]  }
  0x5a   : > { %4503 = vmatpush3.bf16.msra.mxu1 %v4896_v31  ;;  %4482 = vmatprep.subr.bf16.mxu0 %v4897_v32  ;;  %v4952_v31 = vld [vmem:[%s6105_s1 + $0x480] sm:$0xff]   ;;  %v4953_v32 = vld [vmem:[%s6105_s1 + $0x448] sm:$0xff]  }
  0x5b   : > { %4504 = vmatprep.subr.bf16.mxu1 %v4898_v33  ;;  %v4954_v33 = vld [vmem:[%s6105_s1 + $0x4c8] sm:$0xff]  }
  0x5d   : > { %4483 = vmatpush3.bf16.msra.mxu0 %v4899_v34  ;;  %v4955_v34 = vld [vmem:[%s6105_s1 + $0x408] sm:$0xff]  }
  0x5e   : > { %4505 = vmatpush3.bf16.msra.mxu1 %v4900_v35  ;;  %4484 = vmatprep.subr.bf16.mxu0 %v4901_v36  ;;  %v4956_v35 = vld [vmem:[%s6105_s1 + $0x488] sm:$0xff]   ;;  %v4957_v36 = vld [vmem:[%s6105_s1 + $0x450] sm:$0xff]  }
  0x5f   : > { %4506 = vmatprep.subr.bf16.mxu1 %v4902_v37  ;;  %v4958_v37 = vld [vmem:[%s6105_s1 + $0x4d0] sm:$0xff]  }
  0x61   : > { %4485 = vmatpush3.bf16.msra.mxu0 %v4903_v38  ;;  %v4959_v38 = vld [vmem:[%s6105_s1 + $0x410] sm:$0xff]  }
  0x62   : > { %4507 = vmatpush3.bf16.msra.mxu1 %v4904_v39  ;;  %4486 = vmatprep.subr.bf16.mxu0 %v4905_v40  ;;  %v4960_v39 = vld [vmem:[%s6105_s1 + $0x490] sm:$0xff]   ;;  %v4961_v40 = vld [vmem:[%s6105_s1 + $0x458] sm:$0xff]  }
  0x63   : > { %4508 = vmatprep.subr.bf16.mxu1 %v4906_v41  ;;  %v4962_v41 = vld [vmem:[%s6105_s1 + $0x4d8] sm:$0xff]  }
  0x65   : > { %4487 = vmatpush3.bf16.msra.mxu0 %v4907_v42  ;;  %v4963_v42 = vld [vmem:[%s6105_s1 + $0x418] sm:$0xff]  }
  0x66   : > { %4509 = vmatpush3.bf16.msra.mxu1 %v4908_v43  ;;  %4516 = vmatprep.subr.bf16.mxu0 %v4913_v50  ;;  %v4964_v43 = vld [vmem:[%s6105_s1 + $0x498] sm:$0xff]   ;;  %v4971_v50 = vld [vmem:[%s6105_s1 + $0x428] sm:$0xff]  }
  0x67   : > { %4538 = vmatprep.subr.bf16.mxu1 %v4914_v51  ;;  %v4972_v51 = vld [vmem:[%s6105_s1 + $0x4a8] sm:$0xff]  }
  0x68   : > { %1232 = vmatmul.mubr.bf16.vlgmr.msra.gmra.mrb[8].mxu0 %v3745_v46  ;;  %v4967_v46 = vld [vmem:[%s6105_s1 + $0x420] sm:$0xff]  }
  0x69   : > { %1272 = vmatmul.mubr.bf16.vlgmr.msra.gmra.mrb[8].mxu1 %v3747_v48  ;;  %4517 = vmatpush3.bf16.msra.mxu0 %v4915_v52  ;;  %v4969_v48 = vld [vmem:[%s6105_s1 + $0x468] sm:$0xff]   ;;  %v4973_v52 = vld [vmem:[%s6105_s1 + $0x470] sm:$0xff]  }
  0x6a   : > { %4539 = vmatpush3.bf16.msra.mxu1 %v4916_v53  ;;  %4518 = vmatprep.subr.bf16.mxu0 %v4917_v54  ;;  %v4974_v53 = vld [vmem:[%s6105_s1 + $0x4f0] sm:$0xff]  }
  0x6b   : > { %4540 = vmatprep.subr.bf16.mxu1 %v4918_v55  ;;  %1589 = vmatprep.mubr.bf16.mxu0 %v1358_v27  ;;  %v4975_v54 = vld [vmem:[%s6105_s1 + $0x430] sm:$0xff]   ;;  %v5006_v27 = vld [vmem:[%s6105_s1 + $0x5e8] sm:$0xff]  }
  0x6c   : > { %1629 = vmatprep.mubr.bf16.mxu1 %v1360_v30  ;;  %v4976_v55 = vld [vmem:[%s6105_s1 + $0x4b0] sm:$0xff]  }
  0x6d   : > { %4519 = vmatpush3.bf16.msra.mxu0 %v4919_v56  ;;  %v4977_v56 = vld [vmem:[%s6105_s1 + $0x478] sm:$0xff]   ;;  %v5009_v30 = vld [vmem:[%s6105_s1 + $0x570] sm:$0xff]  }
  0x6e   : > { %4541 = vmatpush3.bf16.msra.mxu1 %v4920_v57  ;;  %4520 = vmatprep.subr.bf16.mxu0 %v4921_v58  ;;  %v4978_v57 = vld [vmem:[%s6105_s1 + $0x4f8] sm:$0xff]  }
  0x6f   : > { %4542 = vmatprep.subr.bf16.mxu1 %v4922_v59  ;;  %v4979_v58 = vld [vmem:[%s6105_s1 + $0x438] sm:$0xff]  }
  0x70   : > { %v4980_v59 = vld [vmem:[%s6105_s1 + $0x4b8] sm:$0xff]  }
  0x71   : > { %4521 = vmatpush3.bf16.msra.mxu0 %v4923_v60  ;;  %v1638_v60 = vld [vmem:[%s5291_s6 + $0x10] sm:$0x66] }
  0x72   : > { %4543 = vmatpush3.bf16.msra.mxu1 %v4924_v61  ;;  %4522 = vmatprep.subr.bf16.mxu0 %v4925_v62  ;;  %v1639_v61 = vld [vmem:[%s5291_s6 + $0x18] sm:$0x66]  ;;  %v3945_v62 = vcombine.low %v1638_v60, %v1638_v60 }
  0x73   : > { %4544 = vmatprep.subr.bf16.mxu1 %v4926_v63  ;;  %v3946_v63 = vcombine.high %v1638_v60, %v1638_v60  ;;  %v5033_v60 = vld [vmem:[%s6105_s1 + $0x658] sm:$0xff]  }
  0x75   : > { %4523 = vmatpush3.bf16.msra.mxu0 %v4927_v0  ;;  %v3947_v0 = vcombine.low %v1639_v61, %v1639_v61 }
  0x76   : > { %4545 = vmatpush3.bf16.msra.mxu1 %v4928_v1  ;;  %4524 = vmatprep.subr.bf16.mxu0 %v4929_v2  ;;  %v3948_v1 = vcombine.high %v1639_v61, %v1639_v61  ;;  %v4985_v2 = vld [vmem:[%s6105_s1 + $0x540] sm:$0xff]   ;;  %v5034_v61 = vld [vmem:[%s6105_s1 + $0x6d8] sm:$0xff]  }
  0x77   : > { %4546 = vmatprep.subr.bf16.mxu1 %v4930_v3  ;;  %v4986_v3 = vld [vmem:[%s6105_s1 + $0x5c0] sm:$0xff]  }
  0x79   : > { %4525 = vmatpush3.bf16.msra.mxu0 %v4931_v4  ;;  %v1715_v4 = vrot.slane %v3945_v62, 1  ;;  %v5035_v62 = vld [vmem:[%s6105_s1 + $0x618] sm:$0xff]  }
  0x7a   : > { %4547 = vmatpush3.bf16.msra.mxu1 %v4932_v5  ;;  %4526 = vmatprep.subr.bf16.mxu0 %v4933_v6  ;;  %v1716_v5 = vrot.slane %v3946_v63, 1  ;;  %v1717_v6 = vrot.slane %v3947_v0, 1  ;;  %v5036_v63 = vld [vmem:[%s6105_s1 + $0x698] sm:$0xff]   ;;  %v5037_v0 = vld [vmem:[%s6105_s1 + $0x660] sm:$0xff]  }
  0x7b   : > { %4548 = vmatprep.subr.bf16.mxu1 %v4934_v7  ;;  %v1718_v7 = vrot.slane %v3948_v1, 1  ;;  %v5038_v1 = vld [vmem:[%s6105_s1 + $0x6e0] sm:$0xff]  }
  0x7d   : > { %4527 = vmatpush3.bf16.msra.mxu0 %v4935_v8  ;;  %v4987_v8 = vld [vmem:[%s6105_s1 + $0x500] sm:$0xff]  }
  0x7e   : > { %4549 = vmatpush3.bf16.msra.mxu1 %v4936_v9  ;;  %4528 = vmatprep.subr.bf16.mxu0 %v4937_v10  ;;  %v4988_v9 = vld [vmem:[%s6105_s1 + $0x580] sm:$0xff]   ;;  %v4989_v10 = vld [vmem:[%s6105_s1 + $0x548] sm:$0xff]  }
  0x7f   : > { %4550 = vmatprep.subr.bf16.mxu1 %v4938_v11  ;;  %v4990_v11 = vld [vmem:[%s6105_s1 + $0x5c8] sm:$0xff]  }
  0x81   : > { %4529 = vmatpush3.bf16.msra.mxu0 %v4939_v12  ;;  %v4991_v12 = vld [vmem:[%s6105_s1 + $0x508] sm:$0xff]  }
  0x82   : > { %4551 = vmatpush3.bf16.msra.mxu1 %v4940_v13  ;;  %4530 = vmatprep.subr.bf16.mxu0 %v4941_v14  ;;  %v4992_v13 = vld [vmem:[%s6105_s1 + $0x588] sm:$0xff]   ;;  %v4993_v14 = vld [vmem:[%s6105_s1 + $0x550] sm:$0xff]  }
  0x83   : > { %4552 = vmatprep.subr.bf16.mxu1 %v4942_v15  ;;  %v4994_v15 = vld [vmem:[%s6105_s1 + $0x5d0] sm:$0xff]  }
  0x85   : > { %4531 = vmatpush3.bf16.msra.mxu0 %v4943_v16  ;;  %v4995_v16 = vld [vmem:[%s6105_s1 + $0x510] sm:$0xff]  }
  0x86   : > { %4553 = vmatpush3.bf16.msra.mxu1 %v4944_v17  ;;  %4560 = vmatprep.subr.bf16.mxu0 %v4949_v23  ;;  %v4996_v17 = vld [vmem:[%s6105_s1 + $0x590] sm:$0xff]   ;;  %v5002_v23 = vld [vmem:[%s6105_s1 + $0x5e0] sm:$0xff]  }
  0x87   : > { %4582 = vmatprep.subr.bf16.mxu1 %v4950_v25  ;;  %v5004_v25 = vld [vmem:[%s6105_s1 + $0x5a0] sm:$0xff]  }
  0x88   : > { %1590 = vmatmul.mubr.bf16.vlgmr.msra.gmra.mrb[12].mxu0 %v1357_v26  ;;  %v5005_v26 = vld [vmem:[%s6105_s1 + $0x568] sm:$0xff]  }
  0x89   : > { %1630 = vmatmul.mubr.bf16.vlgmr.msra.gmra.mrb[12].mxu1 %v1359_v28  ;;  %4561 = vmatpush3.bf16.msra.mxu0 %v4951_v29  ;;  %v5007_v28 = vld [vmem:[%s6105_s1 + $0x528] sm:$0xff]  }
  0x8a   : > { %4583 = vmatpush3.bf16.msra.mxu1 %v4952_v31  ;;  %4562 = vmatprep.subr.bf16.mxu0 %v4953_v32  ;;  %v5008_v29 = vld [vmem:[%s6105_s1 + $0x5a8] sm:$0xff]   ;;  %v5010_v31 = vld [vmem:[%s6105_s1 + $0x5f0] sm:$0xff]  }
  0x8b   : > { %4584 = vmatprep.subr.bf16.mxu1 %v4954_v33  ;;  %1947 = vmatprep.mubr.bf16.mxu0 %v1716_v5  ;;  %v5011_v32 = vld [vmem:[%s6105_s1 + $0x530] sm:$0xff]   ;;  %v5042_v5 = vld [vmem:[%s6105_s1 + $0x6e8] sm:$0xff]  }
  0x8c   : > { %1987 = vmatprep.mubr.bf16.mxu1 %v1718_v7  ;;  %v5012_v33 = vld [vmem:[%s6105_s1 + $0x5b0] sm:$0xff]   ;;  %v5044_v7 = vld [vmem:[%s6105_s1 + $0x6a8] sm:$0xff]  }
  0x8d   : > { %4563 = vmatpush3.bf16.msra.mxu0 %v4955_v34  ;;  %v5013_v34 = vld [vmem:[%s6105_s1 + $0x578] sm:$0xff]  }
  0x8e   : > { %4585 = vmatpush3.bf16.msra.mxu1 %v4956_v35  ;;  %4564 = vmatprep.subr.bf16.mxu0 %v4957_v36  ;;  %v5014_v35 = vld [vmem:[%s6105_s1 + $0x5f8] sm:$0xff]  }
  0x8f   : > { %4586 = vmatprep.subr.bf16.mxu1 %v4958_v37  ;;  %v5015_v36 = vld [vmem:[%s6105_s1 + $0x538] sm:$0xff]  }
  0x90   : > { %v5016_v37 = vld [vmem:[%s6105_s1 + $0x5b8] sm:$0xff]  }
  0x91   : > { %4565 = vmatpush3.bf16.msra.mxu0 %v4959_v38  ;;  %v1996_v38 = vld [vmem:[%s5291_s6 + $0x20] sm:$0x66] }
  0x92   : > { %4587 = vmatpush3.bf16.msra.mxu1 %v4960_v39  ;;  %4566 = vmatprep.subr.bf16.mxu0 %v4961_v40  ;;  %v1997_v39 = vld [vmem:[%s5291_s6 + $0x28] sm:$0x66]  ;;  %v4045_v40 = vcombine.low %v1996_v38, %v1996_v38 }
  0x93   : > { %4588 = vmatprep.subr.bf16.mxu1 %v4962_v41  ;;  %v4046_v41 = vcombine.high %v1996_v38, %v1996_v38  ;;  %v5069_v38 = vld [vmem:[%s6105_s1 + $0x758] sm:$0xff]  }
  0x95   : > { %4567 = vmatpush3.bf16.msra.mxu0 %v4963_v42  ;;  %v4047_v42 = vcombine.low %v1997_v39, %v1997_v39 }
  0x96   : > { %4589 = vmatpush3.bf16.msra.mxu1 %v4964_v43  ;;  %4568 = vmatprep.subr.bf16.mxu0 %v4965_v44  ;;  %v4048_v43 = vcombine.high %v1997_v39, %v1997_v39  ;;  %v5021_v44 = vld [vmem:[%s6105_s1 + $0x640] sm:$0xff]   ;;  %v5070_v39 = vld [vmem:[%s6105_s1 + $0x7d8] sm:$0xff]  }
  0x97   : > { %4590 = vmatprep.subr.bf16.mxu1 %v4966_v45  ;;  %v5022_v45 = vld [vmem:[%s6105_s1 + $0x6c0] sm:$0xff]  }
  0x99   : > { %4569 = vmatpush3.bf16.msra.mxu0 %v4967_v46  ;;  %v2073_v46 = vrot.slane %v4045_v40, 1  ;;  %v5071_v40 = vld [vmem:[%s6105_s1 + $0x718] sm:$0xff]  }
  0x9a   : > { %4591 = vmatpush3.bf16.msra.mxu1 %v4968_v47  ;;  %4570 = vmatprep.subr.bf16.mxu0 %v4969_v48  ;;  %v2074_v47 = vrot.slane %v4046_v41, 1  ;;  %v2075_v48 = vrot.slane %v4047_v42, 1  ;;  %v5072_v41 = vld [vmem:[%s6105_s1 + $0x798] sm:$0xff]   ;;  %v5073_v42 = vld [vmem:[%s6105_s1 + $0x760] sm:$0xff]  }
  0x9b   : > { %4592 = vmatprep.subr.bf16.mxu1 %v4970_v49  ;;  %v2076_v49 = vrot.slane %v4048_v43, 1 }
  0x9d   : > { %4571 = vmatpush3.bf16.msra.mxu0 %v4971_v50  ;;  %v5023_v50 = vld [vmem:[%s6105_s1 + $0x600] sm:$0xff]  }
  0x9e   : > { %4593 = vmatpush3.bf16.msra.mxu1 %v4972_v51  ;;  %4572 = vmatprep.subr.bf16.mxu0 %v4973_v52  ;;  %v5024_v51 = vld [vmem:[%s6105_s1 + $0x680] sm:$0xff]   ;;  %v5025_v52 = vld [vmem:[%s6105_s1 + $0x648] sm:$0xff]  }
  0x9f   : > { %4594 = vmatprep.subr.bf16.mxu1 %v4974_v53  ;;  %v5026_v53 = vld [vmem:[%s6105_s1 + $0x6c8] sm:$0xff]  }
  0xa1   : > { %4573 = vmatpush3.bf16.msra.mxu0 %v4975_v54  ;;  %v5027_v54 = vld [vmem:[%s6105_s1 + $0x608] sm:$0xff]  }
  0xa2   : > { %4595 = vmatpush3.bf16.msra.mxu1 %v4976_v55  ;;  %4574 = vmatprep.subr.bf16.mxu0 %v4977_v56  ;;  %v5028_v55 = vld [vmem:[%s6105_s1 + $0x688] sm:$0xff]   ;;  %v5029_v56 = vld [vmem:[%s6105_s1 + $0x650] sm:$0xff]  }
  0xa3   : > { %4596 = vmatprep.subr.bf16.mxu1 %v4978_v57  ;;  %v5030_v57 = vld [vmem:[%s6105_s1 + $0x6d0] sm:$0xff]  }
  0xa5   : > { %4575 = vmatpush3.bf16.msra.mxu0 %v4979_v58  ;;  %v5031_v58 = vld [vmem:[%s6105_s1 + $0x610] sm:$0xff]  }
  0xa6   : > { %4597 = vmatpush3.bf16.msra.mxu1 %v4980_v59  ;;  %4604 = vmatprep.subr.bf16.mxu0 %v4985_v2  ;;  %v5032_v59 = vld [vmem:[%s6105_s1 + $0x690] sm:$0xff]   ;;  %v5039_v2 = vld [vmem:[%s6105_s1 + $0x620] sm:$0xff]  }
  0xa7   : > { %4626 = vmatprep.subr.bf16.mxu1 %v4986_v3  ;;  %v5040_v3 = vld [vmem:[%s6105_s1 + $0x6a0] sm:$0xff]  }
  0xa8   : > { %1948 = vmatmul.mubr.bf16.vlgmr.msra.gmra.mrb[16].mxu0 %v1715_v4  ;;  %v5041_v4 = vld [vmem:[%s6105_s1 + $0x668] sm:$0xff]  }
  0xa9   : > { %1988 = vmatmul.mubr.bf16.vlgmr.msra.gmra.mrb[16].mxu1 %v1717_v6  ;;  %4605 = vmatpush3.bf16.msra.mxu0 %v4987_v8  ;;  %v5043_v6 = vld [vmem:[%s6105_s1 + $0x628] sm:$0xff]   ;;  %v5045_v8 = vld [vmem:[%s6105_s1 + $0x670] sm:$0xff]  }
  0xaa   : > { %4627 = vmatpush3.bf16.msra.mxu1 %v4988_v9  ;;  %4606 = vmatprep.subr.bf16.mxu0 %v4989_v10  ;;  %v5046_v9 = vld [vmem:[%s6105_s1 + $0x6f0] sm:$0xff]  }
  0xab   : > { %4628 = vmatprep.subr.bf16.mxu1 %v4990_v11  ;;  %2305 = vmatprep.mubr.bf16.mxu0 %v2074_v47  ;;  %v5047_v10 = vld [vmem:[%s6105_s1 + $0x630] sm:$0xff]  }
  0xac   : > { %2345 = vmatprep.mubr.bf16.mxu1 %v2076_v49  ;;  %v5048_v11 = vld [vmem:[%s6105_s1 + $0x6b0] sm:$0xff]  }
  0xad   : > { %4607 = vmatpush3.bf16.msra.mxu0 %v4991_v12  ;;  %v5049_v12 = vld [vmem:[%s6105_s1 + $0x678] sm:$0xff]  }
  0xae   : > { %4629 = vmatpush3.bf16.msra.mxu1 %v4992_v13  ;;  %4608 = vmatprep.subr.bf16.mxu0 %v4993_v14  ;;  %v5050_v13 = vld [vmem:[%s6105_s1 + $0x6f8] sm:$0xff]  }
  0xaf   : > { %4630 = vmatprep.subr.bf16.mxu1 %v4994_v15  ;;  %v5051_v14 = vld [vmem:[%s6105_s1 + $0x638] sm:$0xff]  }
  0xb0   : > { %v5052_v15 = vld [vmem:[%s6105_s1 + $0x6b8] sm:$0xff]  }
  0xb1   : > { %4609 = vmatpush3.bf16.msra.mxu0 %v4995_v16  ;;  %v2354_v16 = vld [vmem:[%s5291_s6] sm:$0xcc] }
  0xb2   : > { %4631 = vmatpush3.bf16.msra.mxu1 %v4996_v17  ;;  %4610 = vmatprep.subr.bf16.mxu0 %v4997_v18  ;;  %v4145_v17 = vcombine.low %v2354_v16, %v2354_v16  ;;  %v4146_v18 = vcombine.high %v2354_v16, %v2354_v16 }
  0xb3   : > { %4632 = vmatprep.subr.bf16.mxu1 %v4998_v19  ;;  %v2355_v19 = vld [vmem:[%s5291_s6 + $0x8] sm:$0xcc] }
  0xb5   : > { %4611 = vmatpush3.bf16.msra.mxu0 %v4999_v20  ;;  %v4147_v20 = vcombine.low %v2355_v19, %v2355_v19 }
  0xb6   : > { %4633 = vmatpush3.bf16.msra.mxu1 %v5000_v21  ;;  %4612 = vmatprep.subr.bf16.mxu0 %v5001_v22  ;;  %v4148_v21 = vcombine.high %v2355_v19, %v2355_v19  ;;  %v5057_v22 = vld [vmem:[%s6105_s1 + $0x740] sm:$0xff]   ;;  %v5097_v19 = vld [vmem:[%s6105_s1 + $0x848] sm:$0xff]  }
  0xb7   : > { %4634 = vmatprep.subr.bf16.mxu1 %v5002_v23  ;;  %v2431_v23 = vrot.slane %v4145_v17, 2 }
  0xb9   : > { %4613 = vmatpush3.bf16.msra.mxu0 %v5003_v24  ;;  %v2432_v24 = vrot.slane %v4146_v18, 2  ;;  %v5096_v18 = vld [vmem:[%s6105_s1 + $0x880] sm:$0xff]  }
  0xba   : > { %4635 = vmatpush3.bf16.msra.mxu1 %v5004_v25  ;;  %4614 = vmatprep.subr.bf16.mxu0 %v5005_v26  ;;  %v5058_v25 = vld [vmem:[%s6105_s1 + $0x7c0] sm:$0xff]  }
  0xbb   : > { %4636 = vmatprep.subr.bf16.mxu1 %v5006_v27  ;;  %v5059_v26 = vld [vmem:[%s6105_s1 + $0x700] sm:$0xff]   ;;  %v2433_v27 = vrot.slane %v4147_v20, 2  ;;  %v5098_v20 = vld [vmem:[%s6105_s1 + $0x8c8] sm:$0xff]  }
  0xbd   : > { %4615 = vmatpush3.bf16.msra.mxu0 %v5007_v28  ;;  %v2434_v28 = vrot.slane %v4148_v21, 2  ;;  %v5099_v21 = vld [vmem:[%s6105_s1 + $0x808] sm:$0xff]  }
  0xbe   : > { %4637 = vmatpush3.bf16.msra.mxu1 %v5008_v29  ;;  %4616 = vmatprep.subr.bf16.mxu0 %v5009_v30  ;;  %v5060_v29 = vld [vmem:[%s6105_s1 + $0x780] sm:$0xff]   ;;  %v5061_v30 = vld [vmem:[%s6105_s1 + $0x748] sm:$0xff]  }
  0xbf   : > { %4638 = vmatprep.subr.bf16.mxu1 %v5010_v31  ;;  %v5062_v31 = vld [vmem:[%s6105_s1 + $0x7c8] sm:$0xff]  }
  0xc1   : > { %4617 = vmatpush3.bf16.msra.mxu0 %v5011_v32  ;;  %v5063_v32 = vld [vmem:[%s6105_s1 + $0x708] sm:$0xff]  }
  0xc2   : > { %4639 = vmatpush3.bf16.msra.mxu1 %v5012_v33  ;;  %4618 = vmatprep.subr.bf16.mxu0 %v5013_v34  ;;  %v5064_v33 = vld [vmem:[%s6105_s1 + $0x788] sm:$0xff]   ;;  %v5065_v34 = vld [vmem:[%s6105_s1 + $0x750] sm:$0xff]  }
  0xc3   : > { %4640 = vmatprep.subr.bf16.mxu1 %v5014_v35  ;;  %v5066_v35 = vld [vmem:[%s6105_s1 + $0x7d0] sm:$0xff]  }
  0xc5   : > { %4619 = vmatpush3.bf16.msra.mxu0 %v5015_v36  ;;  %v5067_v36 = vld [vmem:[%s6105_s1 + $0x710] sm:$0xff]  }
  0xc6   : > { %4641 = vmatpush3.bf16.msra.mxu1 %v5016_v37  ;;  %4648 = vmatprep.subr.bf16.mxu0 %v5021_v44  ;;  %v5068_v37 = vld [vmem:[%s6105_s1 + $0x790] sm:$0xff]   ;;  %v5074_v44 = vld [vmem:[%s6105_s1 + $0x7e0] sm:$0xff]  }
  0xc7   : > { %4670 = vmatprep.subr.bf16.mxu1 %v5022_v45 }
  0xc8   : > { %2306 = vmatmul.mubr.bf16.vlgmr.msra.gmra.mrb[20].mxu0 %v2073_v46  ;;  %v5075_v46 = vld [vmem:[%s6105_s1 + $0x720] sm:$0xff]  }
  0xc9   : > { %2346 = vmatmul.mubr.bf16.vlgmr.msra.gmra.mrb[20].mxu1 %v2075_v48  ;;  %4649 = vmatpush3.bf16.msra.mxu0 %v5023_v50  ;;  %v5076_v48 = vld [vmem:[%s6105_s1 + $0x7a0] sm:$0xff]  }
  0xca   : > { %4671 = vmatpush3.bf16.msra.mxu1 %v5024_v51  ;;  %4650 = vmatprep.subr.bf16.mxu0 %v5025_v52  ;;  %v5077_v52 = vld [vmem:[%s6105_s1 + $0x768] sm:$0xff]  }
  0xcb   : > { %4672 = vmatprep.subr.bf16.mxu1 %v5026_v53  ;;  %2663 = vmatprep.mubr.bf16.mxu0 %v2432_v24  ;;  %v5102_v24 = vld [vmem:[%s6105_s1 + $0x8d0] sm:$0xff]  }
  0xcc   : > { %2703 = vmatprep.mubr.bf16.mxu1 %v2434_v28  ;;  %v5106_v28 = vld [vmem:[%s6105_s1 + $0x8d8] sm:$0xff]  }
  0xcd   : > { %4651 = vmatpush3.bf16.msra.mxu0 %v5027_v54  ;;  %v5078_v54 = vld [vmem:[%s6105_s1 + $0x7e8] sm:$0xff]  }
  0xce   : > { %4673 = vmatpush3.bf16.msra.mxu1 %v5028_v55  ;;  %4652 = vmatprep.subr.bf16.mxu0 %v5029_v56 }
  0xcf   : > { %4674 = vmatprep.subr.bf16.mxu1 %v5030_v57  ;;  %v5079_v57 = vld [vmem:[%s6105_s1 + $0x728] sm:$0xff]  }
  0xd1   : > { %4653 = vmatpush3.bf16.msra.mxu0 %v5031_v58 }
  0xd2   : > { %4675 = vmatpush3.bf16.msra.mxu1 %v5032_v59  ;;  %4654 = vmatprep.subr.bf16.mxu0 %v5033_v60  ;;  %v5080_v59 = vld [vmem:[%s6105_s1 + $0x7a8] sm:$0xff]  }
  0xd3   : > { %4676 = vmatprep.subr.bf16.mxu1 %v5034_v61  ;;  %v5081_v61 = vld [vmem:[%s6105_s1 + $0x770] sm:$0xff]  }
  0xd5   : > { %4655 = vmatpush3.bf16.msra.mxu0 %v5035_v62  ;;  %v5082_v62 = vld [vmem:[%s6105_s1 + $0x7f0] sm:$0xff]  }
  0xd6   : > { %4677 = vmatpush3.bf16.msra.mxu1 %v5036_v63  ;;  %4656 = vmatprep.subr.bf16.mxu0 %v5037_v0  ;;  %v5083_v63 = vld [vmem:[%s6105_s1 + $0x730] sm:$0xff]  }
  0xd7   : > { %4678 = vmatprep.subr.bf16.mxu1 %v5038_v1  ;;  %v5084_v0 = vld [vmem:[%s6105_s1 + $0x7b0] sm:$0xff]   ;;  %v5085_v1 = vld [vmem:[%s6105_s1 + $0x778] sm:$0xff]  }
  0xd9   : > { %4657 = vmatpush3.bf16.msra.mxu0 %v5039_v2  ;;  %v5086_v2 = vld [vmem:[%s6105_s1 + $0x7f8] sm:$0xff]  }
  0xda   : > { %4679 = vmatpush3.bf16.msra.mxu1 %v5040_v3  ;;  %4658 = vmatprep.subr.bf16.mxu0 %v5041_v4  ;;  %v5087_v3 = vld [vmem:[%s6105_s1 + $0x738] sm:$0xff]  }
  0xdb   : > { %4680 = vmatprep.subr.bf16.mxu1 %v5042_v5  ;;  %v5088_v4 = vld [vmem:[%s6105_s1 + $0x7b8] sm:$0xff]   ;;  %v2712_v5 = vld [vmem:[%s5291_s6 + $0x10] sm:$0xcc] }
  0xdd   : > { %4659 = vmatpush3.bf16.msra.mxu0 %v5043_v6  ;;  %v4245_v6 = vcombine.low %v2712_v5, %v2712_v5 }
  0xde   : > { %4681 = vmatpush3.bf16.msra.mxu1 %v5044_v7  ;;  %4660 = vmatprep.subr.bf16.mxu0 %v5045_v8  ;;  %v4246_v7 = vcombine.high %v2712_v5, %v2712_v5  ;;  %v2713_v8 = vld [vmem:[%s5291_s6 + $0x18] sm:$0xcc] }
  0xdf   : > { %4682 = vmatprep.subr.bf16.mxu1 %v5046_v9  ;;  %v4247_v9 = vcombine.low %v2713_v8, %v2713_v8 }
  0xe1   : > { %4661 = vmatpush3.bf16.msra.mxu0 %v5047_v10  ;;  %v4248_v10 = vcombine.high %v2713_v8, %v2713_v8  ;;  %v2791_v16 = vrot.slane %v4247_v9, 2 }
  0xe2   : > { %4683 = vmatpush3.bf16.msra.mxu1 %v5048_v11  ;;  %4662 = vmatprep.subr.bf16.mxu0 %v5049_v12  ;;  %v5093_v11 = vld [vmem:[%s6105_s1 + $0x840] sm:$0xff]   ;;  %v2789_v12 = vrot.slane %v4245_v6, 2 }
  0xe3   : > { %4684 = vmatprep.subr.bf16.mxu1 %v5050_v13  ;;  %v2790_v13 = vrot.slane %v4246_v7, 2  ;;  %v2792_v17 = vrot.slane %v4248_v10, 2 }
  0xe5   : > { %4663 = vmatpush3.bf16.msra.mxu0 %v5051_v14  ;;  %v5094_v14 = vld [vmem:[%s6105_s1 + $0x8c0] sm:$0xff]  }
  0xe6   : > { %4685 = vmatpush3.bf16.msra.mxu1 %v5052_v15  ;;  %4692 = vmatprep.subr.bf16.mxu0 %v5057_v22  ;;  %v5095_v15 = vld [vmem:[%s6105_s1 + $0x800] sm:$0xff]   ;;  %v5100_v22 = vld [vmem:[%s6105_s1 + $0x888] sm:$0xff]  }
  0xe7   : > { %4714 = vmatprep.subr.bf16.mxu1 %v5058_v25  ;;  %v5103_v25 = vld [vmem:[%s6105_s1 + $0x810] sm:$0xff]  }
  0xe8   : > { %2664 = vmatmul.mubr.bf16.vlgmr.msra.gmra.mrb[24].mxu0 %v2431_v23  ;;  %v5101_v23 = vld [vmem:[%s6105_s1 + $0x850] sm:$0xff]  }
  0xe9   : > { %2704 = vmatmul.mubr.bf16.vlgmr.msra.gmra.mrb[24].mxu1 %v2433_v27  ;;  %4693 = vmatpush3.bf16.msra.mxu0 %v5059_v26  ;;  %v5104_v26 = vld [vmem:[%s6105_s1 + $0x890] sm:$0xff]   ;;  %v5105_v27 = vld [vmem:[%s6105_s1 + $0x858] sm:$0xff]  }
  0xea   : > { %4715 = vmatpush3.bf16.msra.mxu1 %v5060_v29  ;;  %4694 = vmatprep.subr.bf16.mxu0 %v5061_v30  ;;  %v5107_v29 = vld [vmem:[%s6105_s1 + $0x818] sm:$0xff]  }
  0xeb   : > { %4716 = vmatprep.subr.bf16.mxu1 %v5062_v31  ;;  %3021 = vmatprep.mubr.bf16.mxu0 %v2790_v13  ;;  %v5108_v30 = vld [vmem:[%s6105_s1 + $0x898] sm:$0xff]   ;;  %v5109_v31 = vld [vmem:[%s6105_s1 + $0x860] sm:$0xff]  }
  0xec   : > { %3061 = vmatprep.mubr.bf16.mxu1 %v2792_v17 }
  0xed   : > { %4695 = vmatpush3.bf16.msra.mxu0 %v5063_v32 }
  0xee   : > { %4717 = vmatpush3.bf16.msra.mxu1 %v5064_v33  ;;  %4696 = vmatprep.subr.bf16.mxu0 %v5065_v34  ;;  %v5110_v33 = vld [vmem:[%s6105_s1 + $0x8e0] sm:$0xff]  }
  0xef   : > { %4718 = vmatprep.subr.bf16.mxu1 %v5066_v35  ;;  %v5111_v35 = vld [vmem:[%s6105_s1 + $0x820] sm:$0xff]  }
  0xf1   : > { %4697 = vmatpush3.bf16.msra.mxu0 %v5067_v36 }
  0xf2   : > { %4719 = vmatpush3.bf16.msra.mxu1 %v5068_v37  ;;  %4698 = vmatprep.subr.bf16.mxu0 %v5069_v38  ;;  %v5112_v37 = vld [vmem:[%s6105_s1 + $0x8a0] sm:$0xff]  }
  0xf3   : > { %4720 = vmatprep.subr.bf16.mxu1 %v5070_v39 }
  0xf5   : > { %4699 = vmatpush3.bf16.msra.mxu0 %v5071_v40 }
  0xf6   : > { %4721 = vmatpush3.bf16.msra.mxu1 %v5072_v41  ;;  %4700 = vmatprep.subr.bf16.mxu0 %v5073_v42  ;;  %v5113_v41 = vld [vmem:[%s6105_s1 + $0x868] sm:$0xff]  }
  0xf7   : > { %4722 = vmatprep.subr.bf16.mxu1 %v5074_v44  ;;  %v5114_v44 = vld [vmem:[%s6105_s1 + $0x8e8] sm:$0xff]  }
  0xf9   : > { %4701 = vmatpush3.bf16.msra.mxu0 %v5075_v46  ;;  %v5115_v46 = vld [vmem:[%s6105_s1 + $0x828] sm:$0xff]  }
  0xfa   : > { %4723 = vmatpush3.bf16.msra.mxu1 %v5076_v48  ;;  %4702 = vmatprep.subr.bf16.mxu0 %v5077_v52  ;;  %v5118_v52 = vld [vmem:[%s6105_s1 + $0x8f0] sm:$0xff]  }
  0xfb   : > { %v4400_v43 = vpop.f32.mrb[0].mxu0  ;;  %4724 = vmatprep.subr.bf16.mxu1 %v5078_v54  ;;  %v5120_v54 = vld [vmem:[%s6105_s1 + $0x8b0] sm:$0xff]  }
  0xfc   : > { %v4422_v45 = vpop.f32.mrb[0].mxu1  ;;  %v4401_v47 = vpop.f32.mrb[1].mxu0 }
  0xfd   : > { %v4402_v49 = vadd.f32 %v4401_v47, %v4400_v43  ;;  %v4423_v50 = vpop.f32.mrb[1].mxu1  ;;  %v4403_v53 = vpop.f32.mrb[2].mxu0  ;;  %4703 = vmatpush3.bf16.msra.mxu0 %v5079_v57  ;;  %v5123_v57 = vld [vmem:[%s6105_s1 + $0x838] sm:$0xff]  }
  0xfe   : > { %v4424_v51 = vadd.f32 %v4423_v50, %v4422_v45  ;;  %v4425_v55 = vpop.f32.mrb[2].mxu1  ;;  %v4404_v58 = vpop.f32.mrb[3].mxu0  ;;  %4725 = vmatpush3.bf16.msra.mxu1 %v5080_v59  ;;  %4704 = vmatprep.subr.bf16.mxu0 %v5081_v61  ;;  %v5119_v53 = vld [vmem:[%s6105_s1 + $0x830] sm:$0xff]   ;;  %v3070_v59 = vld [vmem:[%s5291_s6 + $0x20] sm:$0xcc] }
  0xff   : > { %v4426_v60 = vpop.f32.mrb[3].mxu1  ;;  %4726 = vmatprep.subr.bf16.mxu1 %v5082_v62  ;;  %v5121_v55 = vld [vmem:[%s6105_s1 + $0x878] sm:$0xff]   ;;  %v4346_v61 = vcombine.high %v3070_v59, %v3070_v59  ;;  %v3071_v62 = vld [vmem:[%s5291_s6 + $0x28] sm:$0xcc]  ;;  %s3544_s6 = sshll.u32 %s6113_s12, 2 }
 0x100   : > { %v5955_v56 = vadd.f32 %v4424_v51, %v4402_v49  ;;  %v5116_v49 = vld [vmem:[%s6105_s1 + $0x8a8] sm:$0xff]   ;;  %v5117_v51 = vld [vmem:[%s6105_s1 + $0x870] sm:$0xff]   ;;  %v5124_v58 = vld [vmem:[%s6105_s1 + $0x8b8] sm:$0xff]   ;;  %v4345_v60 = vcombine.low %v3070_v59, %v3070_v59  ;;  %s219_s25 = scalar_lea.vmem %s6107_s3, %s3544_s6 }
 0x101   : > { %4705 = vmatpush3.bf16.msra.mxu0 %v5083_v63  ;;  %v4347_v63 = vcombine.low %v3071_v62, %v3071_v62 }
 0x102   : > { %4727 = vmatpush3.bf16.msra.mxu1 %v5084_v0  ;;  %4706 = vmatprep.subr.bf16.mxu0 %v5085_v1  ;;  %v4348_v0 = vcombine.high %v3071_v62, %v3071_v62  ;;  %v3147_v1 = vrot.slane %v4345_v60, 2 }
 0x103   : > { %4728 = vmatprep.subr.bf16.mxu1 %v5086_v2  ;;  %v3148_v2 = vrot.slane %v4346_v61, 2 }
 0x105   : > { %4707 = vmatpush3.bf16.msra.mxu0 %v5087_v3  ;;  %v3149_v3 = vrot.slane %v4347_v63, 2 }
 0x106   : > { %4729 = vmatpush3.bf16.msra.mxu1 %v5088_v4  ;;  %4736 = vmatprep.subr.bf16.mxu0 %v5093_v11  ;;  %v3150_v4 = vrot.slane %v4348_v0, 2 }
 0x107   : > { %4758 = vmatprep.subr.bf16.mxu1 %v5094_v14 }
 0x108   : > { %3022 = vmatmul.mubr.bf16.vlgmr.msra.gmra.mrb[28].mxu0 %v2789_v12 }
 0x109   : > { %3062 = vmatmul.mubr.bf16.vlgmr.msra.gmra.mrb[28].mxu1 %v2791_v16  ;;  %4737 = vmatpush3.bf16.msra.mxu0 %v5095_v15 }
 0x10a   : > { %4759 = vmatpush3.bf16.msra.mxu1 %v5096_v18  ;;  %4738 = vmatprep.subr.bf16.mxu0 %v5097_v19 }
 0x10b   : > { %4760 = vmatprep.subr.bf16.mxu1 %v5098_v20  ;;  %3379 = vmatprep.mubr.bf16.mxu0 %v3148_v2 }
 0x10c   : > { %3419 = vmatprep.mubr.bf16.mxu1 %v3150_v4 }
 0x10d   : > { %4739 = vmatpush3.bf16.msra.mxu0 %v5099_v21 }
 0x10e   : > { %4761 = vmatpush3.bf16.msra.mxu1 %v5100_v22  ;;  %4740 = vmatprep.subr.bf16.mxu0 %v5101_v23 }
 0x10f   : > { %4762 = vmatprep.subr.bf16.mxu1 %v5102_v24 }
 0x111   : > { %4741 = vmatpush3.bf16.msra.mxu0 %v5103_v25 }
 0x112   : > { %4763 = vmatpush3.bf16.msra.mxu1 %v5104_v26  ;;  %4742 = vmatprep.subr.bf16.mxu0 %v5105_v27 }
 0x113   : > { %4764 = vmatprep.subr.bf16.mxu1 %v5106_v28 }
 0x115   : > { %4743 = vmatpush3.bf16.msra.mxu0 %v5107_v29 }
 0x116   : > { %4765 = vmatpush3.bf16.msra.mxu1 %v5108_v30  ;;  %4744 = vmatprep.subr.bf16.mxu0 %v5109_v31 }
 0x117   : > { %4766 = vmatprep.subr.bf16.mxu1 %v5110_v33 }
 0x119   : > { %4745 = vmatpush3.bf16.msra.mxu0 %v5111_v35 }
 0x11a   : > { %4767 = vmatpush3.bf16.msra.mxu1 %v5112_v37  ;;  %4746 = vmatprep.subr.bf16.mxu0 %v5113_v41 }
 0x11b   : > { %v4444_v32 = vpop.f32.mrb[4].mxu0  ;;  %4768 = vmatprep.subr.bf16.mxu1 %v5114_v44 }
 0x11c   : > { %v4466_v34 = vpop.f32.mrb[4].mxu1  ;;  %v4445_v36 = vpop.f32.mrb[5].mxu0 }
 0x11d   : > { %v4446_v38 = vadd.f32 %v4445_v36, %v4444_v32  ;;  %v4467_v39 = vpop.f32.mrb[5].mxu1  ;;  %v4447_v42 = vpop.f32.mrb[6].mxu0  ;;  %4747 = vmatpush3.bf16.msra.mxu0 %v5115_v46 }
 0x11e   : > { %v4468_v40 = vadd.f32 %v4467_v39, %v4466_v34  ;;  %v4469_v45 = vpop.f32.mrb[6].mxu1  ;;  %v4448_v47 = vpop.f32.mrb[7].mxu0  ;;  %4769 = vmatpush3.bf16.msra.mxu1 %v5116_v49  ;;  %4748 = vmatprep.subr.bf16.mxu0 %v5117_v51 }
 0x11f   : > { %v881_v43 = vadd.f32 %v4446_v38, %v5955_v56  ;;  %v4470_v50 = vpop.f32.mrb[7].mxu1  ;;  %4770 = vmatprep.subr.bf16.mxu1 %v5118_v52  ;;  %v5122_v56 = vld [vmem:[%s6105_s1 + $0x8f8] sm:$0xff]  }
 0x121   : > { %v921_v48 = vadd.f32 %v4468_v40, %v881_v43  ;;  %4749 = vmatpush3.bf16.msra.mxu0 %v5119_v53 }
 0x122   : > { %4771 = vmatpush3.bf16.msra.mxu1 %v5120_v54  ;;  %4750 = vmatprep.subr.bf16.mxu0 %v5121_v55 }
 0x123   : > { %4772 = vmatprep.subr.bf16.mxu1 %v5122_v56 }
 0x125   : > { %4751 = vmatpush3.bf16.msra.mxu0 %v5123_v57 }
 0x126   : > { %4773 = vmatpush3.bf16.msra.mxu1 %v5124_v58 }
 0x128   : > { %3380 = vmatmul.mubr.bf16.vlgmr.msra.gmra.mrb[32].mxu0 %v3147_v1 }
 0x129   : > { %3420 = vmatmul.mubr.bf16.vlgmr.msra.gmra.mrb[32].mxu1 %v3149_v3 }
 0x13b   : > { %v4488_v5 = vpop.f32.mrb[8].mxu0 }
 0x13c   : > { %v4510_v6 = vpop.f32.mrb[8].mxu1  ;;  %v4489_v7 = vpop.f32.mrb[9].mxu0 }
 0x13d   : > { %v4490_v8 = vadd.f32 %v4489_v7, %v4488_v5  ;;  %v4511_v9 = vpop.f32.mrb[9].mxu1  ;;  %v4491_v10 = vpop.f32.mrb[10].mxu0 }
 0x13e   : > { %v4512_v11 = vadd.f32 %v4511_v9, %v4510_v6  ;;  %v4513_v12 = vpop.f32.mrb[10].mxu1  ;;  %v4492_v13 = vpop.f32.mrb[11].mxu0 }
 0x13f   : > { %v4514_v14 = vpop.f32.mrb[11].mxu1 }
 0x140   : > { %v1274_v15 = vadd.f32 %v4512_v11, %v4490_v8 }
 0x142   : > { %v1279_v16 = vadd.f32 %v1274_v15, %v921_v48 }
 0x15b   : > { %v4532_v17 = vpop.f32.mrb[12].mxu0 }
 0x15c   : > { %v4554_v18 = vpop.f32.mrb[12].mxu1  ;;  %v4533_v19 = vpop.f32.mrb[13].mxu0 }
 0x15d   : > { %v4534_v20 = vadd.f32 %v4533_v19, %v4532_v17  ;;  %v4555_v21 = vpop.f32.mrb[13].mxu1  ;;  %v4535_v22 = vpop.f32.mrb[14].mxu0 }
 0x15e   : > { %v4556_v23 = vadd.f32 %v4555_v21, %v4554_v18  ;;  %v4557_v24 = vpop.f32.mrb[14].mxu1  ;;  %v4536_v25 = vpop.f32.mrb[15].mxu0 }
 0x15f   : > { %v4558_v26 = vpop.f32.mrb[15].mxu1  ;;  %v4381_v24 = vld [vmem:[%s6106_s2] ss:$0 sm:$0xff] }
 0x160   : > { %v1632_v27 = vadd.f32 %v4556_v23, %v4534_v20 }
 0x162   : > { %v1637_v28 = vadd.f32 %v1632_v27, %v1279_v16 }
 0x17b   : > { %v4576_v29 = vpop.f32.mrb[16].mxu0 }
 0x17c   : > { %v4598_v30 = vpop.f32.mrb[16].mxu1  ;;  %v4577_v31 = vpop.f32.mrb[17].mxu0 }
 0x17d   : > { %v4599_v32 = vpop.f32.mrb[17].mxu1  ;;  %v4578_v33 = vadd.f32 %v4577_v31, %v4576_v29  ;;  %v4579_v35 = vpop.f32.mrb[18].mxu0 }
 0x17e   : > { %v4600_v34 = vadd.f32 %v4599_v32, %v4598_v30  ;;  %v4601_v36 = vpop.f32.mrb[18].mxu1  ;;  %v4580_v37 = vpop.f32.mrb[19].mxu0 }
 0x17f   : > { %v4602_v38 = vpop.f32.mrb[19].mxu1 }
 0x180   : > { %v1990_v39 = vadd.f32 %v4600_v34, %v4578_v33 }
 0x182   : > { %v1995_v40 = vadd.f32 %v1990_v39, %v1637_v28 }
 0x19b   : > { %v4620_v41 = vpop.f32.mrb[20].mxu0 }
 0x19c   : > { %v4642_v42 = vpop.f32.mrb[20].mxu1  ;;  %v4621_v43 = vpop.f32.mrb[21].mxu0 }
 0x19d   : > { %v4643_v44 = vpop.f32.mrb[21].mxu1  ;;  %v4622_v45 = vadd.f32 %v4621_v43, %v4620_v41  ;;  %v4623_v47 = vpop.f32.mrb[22].mxu0 }
 0x19e   : > { %v4644_v46 = vadd.f32 %v4643_v44, %v4642_v42  ;;  %v4645_v48 = vpop.f32.mrb[22].mxu1  ;;  %v4624_v49 = vpop.f32.mrb[23].mxu0 }
 0x19f   : > { %v4646_v50 = vpop.f32.mrb[23].mxu1 }
 0x1a0   : > { %v2348_v51 = vadd.f32 %v4644_v46, %v4622_v45 }
 0x1a2   : > { %v2353_v52 = vadd.f32 %v2348_v51, %v1995_v40 }
 0x1bb   : > { %v4664_v53 = vpop.f32.mrb[24].mxu0 }
 0x1bc   : > { %v4686_v54 = vpop.f32.mrb[24].mxu1  ;;  %v4665_v55 = vpop.f32.mrb[25].mxu0 }
 0x1bd   : > { %v4666_v56 = vadd.f32 %v4665_v55, %v4664_v53  ;;  %v4687_v57 = vpop.f32.mrb[25].mxu1  ;;  %v4667_v58 = vpop.f32.mrb[26].mxu0 }
 0x1be   : > { %v4688_v59 = vadd.f32 %v4687_v57, %v4686_v54  ;;  %v4689_v60 = vpop.f32.mrb[26].mxu1  ;;  %v4668_v61 = vpop.f32.mrb[27].mxu0 }
 0x1bf   : > { %v4690_v62 = vpop.f32.mrb[27].mxu1 }
 0x1c0   : > { %v2706_v63 = vadd.f32 %v4688_v59, %v4666_v56 }
 0x1c2   : > { %v2711_v0 = vadd.f32 %v2706_v63, %v2353_v52 }
 0x1db   : > { %v4708_v1 = vpop.f32.mrb[28].mxu0 }
 0x1dc   : > { %v4730_v2 = vpop.f32.mrb[28].mxu1  ;;  %v4709_v3 = vpop.f32.mrb[29].mxu0 }
 0x1dd   : > { %v4710_v4 = vadd.f32 %v4709_v3, %v4708_v1  ;;  %v4731_v5 = vpop.f32.mrb[29].mxu1  ;;  %v4711_v6 = vpop.f32.mrb[30].mxu0 }
 0x1de   : > { %v4732_v7 = vadd.f32 %v4731_v5, %v4730_v2  ;;  %v4733_v8 = vpop.f32.mrb[30].mxu1  ;;  %v4712_v9 = vpop.f32.mrb[31].mxu0 }
 0x1df   : > { %v4734_v10 = vpop.f32.mrb[31].mxu1 }
 0x1e0   : > { %v3064_v11 = vadd.f32 %v4732_v7, %v4710_v4 }
 0x1e2   : > { %v3069_v12 = vadd.f32 %v3064_v11, %v2711_v0 }
 0x1fb   : > { %v4752_v13 = vpop.f32.mrb[32].mxu0 }
 0x1fc   : > { %v4774_v14 = vpop.f32.mrb[32].mxu1  ;;  %v4753_v15 = vpop.f32.mrb[33].mxu0 }
 0x1fd   : > { %v4754_v16 = vadd.f32 %v4753_v15, %v4752_v13  ;;  %v4775_v17 = vpop.f32.mrb[33].mxu1  ;;  %v4755_v18 = vpop.f32.mrb[34].mxu0 }
 0x1fe   : > { %v4776_v19 = vadd.f32 %v4775_v17, %v4774_v14  ;;  %v4777_v20 = vpop.f32.mrb[34].mxu1  ;;  %v4756_v21 = vpop.f32.mrb[35].mxu0 }
 0x1ff   : > { %v4778_v22 = vpop.f32.mrb[35].mxu1 }
 0x200   : > { %v3422_v23 = vadd.f32 %v4776_v19, %v4754_v16 }
 0x202   : > { %v3427_v25 = vadd.f32 %v3422_v23, %v3069_v12 }
 0x204   : > { %v3435_v26 = vadd.f32 %v4381_v24, %v3427_v25 }
 0x206   : > { %3436 = vst [vmem:[%s219_s25] sm:$0xf] %v3435_v26 }
 0x207 PF: > { %s13_s14 = sadd.s32 1, %s5151_s14   ;;  %s6108_s12 = smov %s5147_s13 }
 0x208   : > { %p10_p5 = scmp.ge.s32.totalorder %s13_s14, 4   ;;  %s6109_s13 = smov %s6111_s15 }
 0x20a   :  { %12 = sbr.rel (!%p10_p5) target bundleno = 2 (0x2), region = 76 }

</bundles_post_ra>
